<compile_context>
chip_gen: v5e
topology: v5e:2x2
jax: 0.10.0
libtpu: 0.0.40
codegen_flags: <defaults>
</compile_context>

<pallas_src>
import numpy as np
import jax
import jax.numpy as jnp
from jax import lax
from jax.experimental import pallas as pl
from jax.experimental.pallas import tpu as pltpu

CROP_H0, CROP_H1 = 35, 223    # -> 188 rows
CROP_W0, CROP_W1 = 32, 220    # -> 188 cols
POOL_IN_H = CROP_H1 - CROP_H0
POOL_IN_W = CROP_W1 - CROP_W0
POOL_OUT = 112
POOL_OUT_PAD = 128            # lane-dense store width (sliced back in wrapper)
EMBED_DIM = 512


def _adaptive_pool_matrix(in_size, out_size):
    """Row-stochastic matrix reproducing torch AdaptiveAvgPool1d exactly."""
    m = np.zeros((out_size, in_size), dtype=np.float32)
    for i in range(out_size):
        s = (i * in_size) // out_size
        e = -(-((i + 1) * in_size) // out_size)  # ceil
        m[i, s:e] = 1.0 / (e - s)
    return m


def make_pool_matrices():
    ph = _adaptive_pool_matrix(POOL_IN_H, POOL_OUT)           # (112, 188)
    pw = _adaptive_pool_matrix(POOL_IN_W, POOL_OUT)           # (112, 188)
    pwt_pad = np.zeros((POOL_IN_W, POOL_OUT_PAD), np.float32)  # (188, 128)
    pwt_pad[:, :POOL_OUT] = pw.T
    return jnp.asarray(ph), jnp.asarray(pwt_pad)


# ---------------------------------------------------------------------------
# Kernel 1: adaptive average pool (112,112) — collapsed grid, lane-dense output
# ---------------------------------------------------------------------------
def _pool_kernel(ph_ref, pwt_ref, x_ref, o_ref):
    ph = ph_ref[...]                                   # (112, 188)
    pwt = pwt_ref[...]                                 # (188, 128), cols 112: zero
    # Static unroll over the few slabs in this block: plain 2D MXU dots.
    for i in range(x_ref.shape[0]):
        t = jnp.dot(ph, x_ref[i], preferred_element_type=jnp.float32)   # (112, 188)
        o_ref[i] = jnp.dot(t, pwt, preferred_element_type=jnp.float32)  # (112, 128)


def adaptive_avg_pool(x, ph, pwt_pad):
    # x: (N, 188, 188) -> (N, 112, 128)  (last 16 lanes are zero padding)
    n, hin, win = x.shape
    g = 2 if n % 2 == 0 else 1          # 2-way parallel grid keeps both v7x TCs busy
    nb = n // g
    return pl.pallas_call(
        _pool_kernel,
        out_shape=jax.ShapeDtypeStruct((n, POOL_OUT, POOL_OUT_PAD), jnp.float32),
        grid=(g,),
        in_specs=[
            pl.BlockSpec((POOL_OUT, hin), lambda i: (0, 0)),
            pl.BlockSpec((win, POOL_OUT_PAD), lambda i: (0, 0)),
            pl.BlockSpec((nb, hin, win), lambda i: (i, 0, 0)),
        ],
        out_specs=pl.BlockSpec((nb, POOL_OUT, POOL_OUT_PAD), lambda i: (i, 0, 0)),
        compiler_params=pltpu.CompilerParams(dimension_semantics=("parallel",)),
    )(ph, pwt_pad, x)


# ---------------------------------------------------------------------------
# Kernel 2: synthetic facenet — (2B, K) @ (K, 512) bf16 matmul, f32 accumulation
#           directly into the VMEM-resident output block (no scratch), with the
#           output-N dimension as a parallel grid axis (megacore on v7x).
# ---------------------------------------------------------------------------
def _embed_kernel(x_ref, w_ref, o_ref):
    k = pl.program_id(1)

    @pl.when(k == 0)
    def _():
        o_ref[...] = jnp.zeros_like(o_ref)

    o_ref[...] += jnp.dot(x_ref[...], w_ref[...],
                          preferred_element_type=jnp.float32)


def embed(x, w, *, tk=5376, tn=256):
    # x: (2B, K) bf16, w: (K, 512) bf16 -> (2B, 512) f32 (unnormalized)
    b, kdim = x.shape
    _, n = w.shape
    assert kdim % tk == 0 and n % tn == 0, (kdim, tk, n, tn)
    return pl.pallas_call(
        _embed_kernel,
        out_shape=jax.ShapeDtypeStruct((b, n), jnp.float32),
        grid=(n // tn, kdim // tk),                 # reduction axis (k) last
        in_specs=[
            pl.BlockSpec((b, tk), lambda j, k: (0, k)),
            pl.BlockSpec((tk, tn), lambda j, k: (k, j)),
        ],
        out_specs=pl.BlockSpec((b, tn), lambda j, k: (0, j)),
        compiler_params=pltpu.CompilerParams(
            dimension_semantics=("parallel", "arbitrary")),
    )(x, w)


# ---------------------------------------------------------------------------
# IDLoss forward
# ---------------------------------------------------------------------------
def id_loss(y_hat, y, ph, pwt_pad, w_embed):
    b, c = y.shape[0], y.shape[1]

    # Fuse both feature extractions: the 38 MB bf16 embedding weight is
    # streamed from HBM exactly once for [y; y_hat].
    x = jnp.concatenate([y, y_hat], axis=0)                   # (2B, C, H, W)
    xc = x[:, :, CROP_H0:CROP_H1, CROP_W0:CROP_W1]            # (2B, C, 188, 188)
    n = 2 * b * c
    pooled = adaptive_avg_pool(
        xc.reshape(n, POOL_IN_H, POOL_IN_W), ph, pwt_pad)     # (n, 112, 128)
    pooled = pooled[:, :, :POOL_OUT]                          # drop lane padding
    flat = pooled.reshape(2 * b, c * POOL_OUT * POOL_OUT).astype(jnp.bfloat16)

    feats = embed(flat, w_embed)                              # (2B, 512) f32

    y_feats = lax.stop_gradient(feats[:b])                    # .detach() on target
    y_hat_feats = feats[b:]

    # ArcFace-style l2_norm folded into the cosine loss (tiny (B,512) work: XLA).
    a = y_hat_feats * lax.rsqrt(
        jnp.maximum(jnp.sum(y_hat_feats * y_hat_feats, -1, keepdims=True), 1e-12))
    t = y_feats * lax.rsqrt(
        jnp.maximum(jnp.sum(y_feats * y_feats, -1, keepdims=True), 1e-12))
    return jnp.mean(1.0 - jnp.sum(a * t, axis=-1))


if __name__ == "__main__":
    B, C, H, W = 2, 3, 224, 224     # must cover the hard-coded crop 35:223, 32:220

    key = jax.random.PRNGKey(0)
    k_yh, k_y, k_w = jax.random.split(key, 3)
    y_hat = jax.random.normal(k_yh, (B, C, H, W), jnp.float32)
    y = jax.random.normal(k_y, (B, C, H, W), jnp.float32)

    # Deterministic synthetic "facenet" embedding weight, stored bf16 (HBM-BW
    # bound stage; f32 accumulation preserved in-kernel).
    K = C * POOL_OUT * POOL_OUT                                   # 37632
    w_embed = (jax.random.normal(k_w, (K, EMBED_DIM), jnp.float32)
               / jnp.sqrt(K)).astype(jnp.bfloat16)

    # Exact PyTorch adaptive-avg-pool averaging matrices (188 -> 112), with the
    # column-pool matrix padded to 128 lanes for unmasked stores.
    ph, pwt_pad = make_pool_matrices()

    loss = jax.jit(id_loss)(y_hat, y, ph, pwt_pad, w_embed)
    jax.block_until_ready(loss)
    print("KERNEL_OK")
</pallas_src>

<mosaic_0001>
module attributes {stable_mosaic.version = 11 : i64} {
  func.func @_pool_kernel(%arg0: i32, %arg1: memref<112x188xf32, #tpu.memory_space<vmem>>, %arg2: memref<188x128xf32, #tpu.memory_space<vmem>>, %arg3: memref<6x188x188xf32, #tpu.memory_space<vmem>>, %arg4: memref<6x112x128xf32, #tpu.memory_space<vmem>>) attributes {dimension_semantics = [#tpu.dimension_semantics<parallel>], iteration_bounds = array<i64: 2>, scalar_prefetch = 0 : i64, scratch_operands = 0 : i64, tpu.core_type = #tpu.core_type<tc>, window_params = [{pipeline_mode = #tpu.pipeline_mode<synchronous>, transform_indices = @transform_0, window_bounds = array<i64: 112, 188>}, {pipeline_mode = #tpu.pipeline_mode<synchronous>, transform_indices = @transform_1, window_bounds = array<i64: 188, 128>}, {transform_indices = @transform_2, window_bounds = array<i64: 6, 188, 188>}, {transform_indices = @transform_3, window_bounds = array<i64: 6, 112, 128>}]} {
    %c0 = arith.constant 0 : index
    %c0_0 = arith.constant 0 : index
    %0 = vector.load %arg1[%c0, %c0_0] : memref<112x188xf32, #tpu.memory_space<vmem>>, vector<112x188xf32>
    %c0_1 = arith.constant 0 : index
    %c0_2 = arith.constant 0 : index
    %1 = vector.load %arg2[%c0_1, %c0_2] : memref<188x128xf32, #tpu.memory_space<vmem>>, vector<188x128xf32>
    %c0_3 = arith.constant 0 : index
    %c0_4 = arith.constant 0 : index
    %c0_5 = arith.constant 0 : index
    %2 = vector.load %arg3[%c0_3, %c0_4, %c0_5] : memref<6x188x188xf32, #tpu.memory_space<vmem>>, vector<1x188x188xf32>
    %3 = vector.shape_cast %2 : vector<1x188x188xf32> to vector<188x188xf32>
    %cst = arith.constant dense<0.000000e+00> : vector<112x188xf32>
    %4 = tpu.matmul %0, %3, %cst {dimension_numbers = #tpu.dot_dimension_numbers<[1], [0], [0], [1], [0, 0, 1, 1], [], []>} : vector<112x188xf32>, vector<188x188xf32>, vector<112x188xf32> -> vector<112x188xf32>
    %cst_6 = arith.constant dense<0.000000e+00> : vector<112x128xf32>
    %5 = tpu.matmul %4, %1, %cst_6 {dimension_numbers = #tpu.dot_dimension_numbers<[1], [0], [0], [1], [0, 0, 1, 1], [], []>} : vector<112x188xf32>, vector<188x128xf32>, vector<112x128xf32> -> vector<112x128xf32>
    %c0_7 = arith.constant 0 : index
    %c0_8 = arith.constant 0 : index
    %c0_9 = arith.constant 0 : index
    %6 = vector.load %arg4[%c0_7, %c0_8, %c0_9] : memref<6x112x128xf32, #tpu.memory_space<vmem>>, vector<1x112x128xf32>
    %7 = vector.shape_cast %6 : vector<1x112x128xf32> to vector<112x128xf32>
    %8 = vector.shape_cast %5 : vector<112x128xf32> to vector<1x112x128xf32>
    tpu.vector_store %arg4[%c0_7, %c0_8, %c0_9], %8 {strides = array<i32>} : memref<6x112x128xf32, #tpu.memory_space<vmem>>, vector<1x112x128xf32>,
    %c1 = arith.constant 1 : index
    %c0_10 = arith.constant 0 : index
    %c0_11 = arith.constant 0 : index
    %9 = vector.load %arg3[%c1, %c0_10, %c0_11] : memref<6x188x188xf32, #tpu.memory_space<vmem>>, vector<1x188x188xf32>
    %10 = vector.shape_cast %9 : vector<1x188x188xf32> to vector<188x188xf32>
    %cst_12 = arith.constant dense<0.000000e+00> : vector<112x188xf32>
    %11 = tpu.matmul %0, %10, %cst_12 {dimension_numbers = #tpu.dot_dimension_numbers<[1], [0], [0], [1], [0, 0, 1, 1], [], []>} : vector<112x188xf32>, vector<188x188xf32>, vector<112x188xf32> -> vector<112x188xf32>
    %cst_13 = arith.constant dense<0.000000e+00> : vector<112x128xf32>
    %12 = tpu.matmul %11, %1, %cst_13 {dimension_numbers = #tpu.dot_dimension_numbers<[1], [0], [0], [1], [0, 0, 1, 1], [], []>} : vector<112x188xf32>, vector<188x128xf32>, vector<112x128xf32> -> vector<112x128xf32>
    %c1_14 = arith.constant 1 : index
    %c0_15 = arith.constant 0 : index
    %c0_16 = arith.constant 0 : index
    %13 = vector.load %arg4[%c1_14, %c0_15, %c0_16] : memref<6x112x128xf32, #tpu.memory_space<vmem>>, vector<1x112x128xf32>
    %14 = vector.shape_cast %13 : vector<1x112x128xf32> to vector<112x128xf32>
    %15 = vector.shape_cast %12 : vector<112x128xf32> to vector<1x112x128xf32>
    tpu.vector_store %arg4[%c1_14, %c0_15, %c0_16], %15 {strides = array<i32>} : memref<6x112x128xf32, #tpu.memory_space<vmem>>, vector<1x112x128xf32>,
    %c2 = arith.constant 2 : index
    %c0_17 = arith.constant 0 : index
    %c0_18 = arith.constant 0 : index
    %16 = vector.load %arg3[%c2, %c0_17, %c0_18] : memref<6x188x188xf32, #tpu.memory_space<vmem>>, vector<1x188x188xf32>
    %17 = vector.shape_cast %16 : vector<1x188x188xf32> to vector<188x188xf32>
    %cst_19 = arith.constant dense<0.000000e+00> : vector<112x188xf32>
    %18 = tpu.matmul %0, %17, %cst_19 {dimension_numbers = #tpu.dot_dimension_numbers<[1], [0], [0], [1], [0, 0, 1, 1], [], []>} : vector<112x188xf32>, vector<188x188xf32>, vector<112x188xf32> -> vector<112x188xf32>
    %cst_20 = arith.constant dense<0.000000e+00> : vector<112x128xf32>
    %19 = tpu.matmul %18, %1, %cst_20 {dimension_numbers = #tpu.dot_dimension_numbers<[1], [0], [0], [1], [0, 0, 1, 1], [], []>} : vector<112x188xf32>, vector<188x128xf32>, vector<112x128xf32> -> vector<112x128xf32>
    %c2_21 = arith.constant 2 : index
    %c0_22 = arith.constant 0 : index
    %c0_23 = arith.constant 0 : index
    %20 = vector.load %arg4[%c2_21, %c0_22, %c0_23] : memref<6x112x128xf32, #tpu.memory_space<vmem>>, vector<1x112x128xf32>
    %21 = vector.shape_cast %20 : vector<1x112x128xf32> to vector<112x128xf32>
    %22 = vector.shape_cast %19 : vector<112x128xf32> to vector<1x112x128xf32>
    tpu.vector_store %arg4[%c2_21, %c0_22, %c0_23], %22 {strides = array<i32>} : memref<6x112x128xf32, #tpu.memory_space<vmem>>, vector<1x112x128xf32>,
    %c3 = arith.constant 3 : index
    %c0_24 = arith.constant 0 : index
    %c0_25 = arith.constant 0 : index
    %23 = vector.load %arg3[%c3, %c0_24, %c0_25] : memref<6x188x188xf32, #tpu.memory_space<vmem>>, vector<1x188x188xf32>
    %24 = vector.shape_cast %23 : vector<1x188x188xf32> to vector<188x188xf32>
    %cst_26 = arith.constant dense<0.000000e+00> : vector<112x188xf32>
    %25 = tpu.matmul %0, %24, %cst_26 {dimension_numbers = #tpu.dot_dimension_numbers<[1], [0], [0], [1], [0, 0, 1, 1], [], []>} : vector<112x188xf32>, vector<188x188xf32>, vector<112x188xf32> -> vector<112x188xf32>
    %cst_27 = arith.constant dense<0.000000e+00> : vector<112x128xf32>
    %26 = tpu.matmul %25, %1, %cst_27 {dimension_numbers = #tpu.dot_dimension_numbers<[1], [0], [0], [1], [0, 0, 1, 1], [], []>} : vector<112x188xf32>, vector<188x128xf32>, vector<112x128xf32> -> vector<112x128xf32>
    %c3_28 = arith.constant 3 : index
    %c0_29 = arith.constant 0 : index
    %c0_30 = arith.constant 0 : index
    %27 = vector.load %arg4[%c3_28, %c0_29, %c0_30] : memref<6x112x128xf32, #tpu.memory_space<vmem>>, vector<1x112x128xf32>
    %28 = vector.shape_cast %27 : vector<1x112x128xf32> to vector<112x128xf32>
    %29 = vector.shape_cast %26 : vector<112x128xf32> to vector<1x112x128xf32>
    tpu.vector_store %arg4[%c3_28, %c0_29, %c0_30], %29 {strides = array<i32>} : memref<6x112x128xf32, #tpu.memory_space<vmem>>, vector<1x112x128xf32>,
    %c4 = arith.constant 4 : index
    %c0_31 = arith.constant 0 : index
    %c0_32 = arith.constant 0 : index
    %30 = vector.load %arg3[%c4, %c0_31, %c0_32] : memref<6x188x188xf32, #tpu.memory_space<vmem>>, vector<1x188x188xf32>
    %31 = vector.shape_cast %30 : vector<1x188x188xf32> to vector<188x188xf32>
    %cst_33 = arith.constant dense<0.000000e+00> : vector<112x188xf32>
    %32 = tpu.matmul %0, %31, %cst_33 {dimension_numbers = #tpu.dot_dimension_numbers<[1], [0], [0], [1], [0, 0, 1, 1], [], []>} : vector<112x188xf32>, vector<188x188xf32>, vector<112x188xf32> -> vector<112x188xf32>
    %cst_34 = arith.constant dense<0.000000e+00> : vector<112x128xf32>
    %33 = tpu.matmul %32, %1, %cst_34 {dimension_numbers = #tpu.dot_dimension_numbers<[1], [0], [0], [1], [0, 0, 1, 1], [], []>} : vector<112x188xf32>, vector<188x128xf32>, vector<112x128xf32> -> vector<112x128xf32>
    %c4_35 = arith.constant 4 : index
    %c0_36 = arith.constant 0 : index
    %c0_37 = arith.constant 0 : index
    %34 = vector.load %arg4[%c4_35, %c0_36, %c0_37] : memref<6x112x128xf32, #tpu.memory_space<vmem>>, vector<1x112x128xf32>
    %35 = vector.shape_cast %34 : vector<1x112x128xf32> to vector<112x128xf32>
    %36 = vector.shape_cast %33 : vector<112x128xf32> to vector<1x112x128xf32>
    tpu.vector_store %arg4[%c4_35, %c0_36, %c0_37], %36 {strides = array<i32>} : memref<6x112x128xf32, #tpu.memory_space<vmem>>, vector<1x112x128xf32>,
    %c5 = arith.constant 5 : index
    %c0_38 = arith.constant 0 : index
    %c0_39 = arith.constant 0 : index
    %37 = vector.load %arg3[%c5, %c0_38, %c0_39] : memref<6x188x188xf32, #tpu.memory_space<vmem>>, vector<1x188x188xf32>
    %38 = vector.shape_cast %37 : vector<1x188x188xf32> to vector<188x188xf32>
    %cst_40 = arith.constant dense<0.000000e+00> : vector<112x188xf32>
    %39 = tpu.matmul %0, %38, %cst_40 {dimension_numbers = #tpu.dot_dimension_numbers<[1], [0], [0], [1], [0, 0, 1, 1], [], []>} : vector<112x188xf32>, vector<188x188xf32>, vector<112x188xf32> -> vector<112x188xf32>
    %cst_41 = arith.constant dense<0.000000e+00> : vector<112x128xf32>
    %40 = tpu.matmul %39, %1, %cst_41 {dimension_numbers = #tpu.dot_dimension_numbers<[1], [0], [0], [1], [0, 0, 1, 1], [], []>} : vector<112x188xf32>, vector<188x128xf32>, vector<112x128xf32> -> vector<112x128xf32>
    %c5_42 = arith.constant 5 : index
    %c0_43 = arith.constant 0 : index
    %c0_44 = arith.constant 0 : index
    %41 = vector.load %arg4[%c5_42, %c0_43, %c0_44] : memref<6x112x128xf32, #tpu.memory_space<vmem>>, vector<1x112x128xf32>
    %42 = vector.shape_cast %41 : vector<1x112x128xf32> to vector<112x128xf32>
    %43 = vector.shape_cast %40 : vector<112x128xf32> to vector<1x112x128xf32>
    tpu.vector_store %arg4[%c5_42, %c0_43, %c0_44], %43 {strides = array<i32>} : memref<6x112x128xf32, #tpu.memory_space<vmem>>, vector<1x112x128xf32>,
    return
  }
  func.func @transform_0(%arg0: i32) -> (i32, i32) {
    %c0_i32 = arith.constant 0 : i32
    %c0_i32_0 = arith.constant 0 : i32
    %c0_i32_1 = arith.constant 0 : i32
    return %c0_i32, %c0_i32_0 : i32, i32
  }
  func.func @transform_1(%arg0: i32) -> (i32, i32) {
    %c0_i32 = arith.constant 0 : i32
    %c0_i32_0 = arith.constant 0 : i32
    %c0_i32_1 = arith.constant 0 : i32
    return %c0_i32, %c0_i32_0 : i32, i32
  }
  func.func @transform_2(%arg0: i32) -> (i32, i32, i32) {
    %c0_i32 = arith.constant 0 : i32
    %c0_i32_0 = arith.constant 0 : i32
    %c0_i32_1 = arith.constant 0 : i32
    return %arg0, %c0_i32, %c0_i32_0 : i32, i32, i32
  }
  func.func @transform_3(%arg0: i32) -> (i32, i32, i32) {
    %c0_i32 = arith.constant 0 : i32
    %c0_i32_0 = arith.constant 0 : i32
    %c0_i32_1 = arith.constant 0 : i32
    return %arg0, %c0_i32, %c0_i32_0 : i32, i32, i32
  }
}

module attributes {stable_mosaic.version = 11 : i64} {
  func.func @_embed_kernel(%arg0: i32, %arg1: i32, %arg2: memref<4x5376xbf16, #tpu.memory_space<vmem>>, %arg3: memref<5376x256xbf16, #tpu.memory_space<vmem>>, %arg4: memref<4x256xf32, #tpu.memory_space<vmem>>) attributes {dimension_semantics = [#tpu.dimension_semantics<parallel>, #tpu.dimension_semantics<arbitrary>], iteration_bounds = array<i64: 2, 7>, scalar_prefetch = 0 : i64, scratch_operands = 0 : i64, tpu.core_type = #tpu.core_type<tc>, window_params = [{transform_indices = @transform_0, window_bounds = array<i64: 4, 5376>}, {transform_indices = @transform_1, window_bounds = array<i64: 5376, 256>}, {transform_indices = @transform_2, window_bounds = array<i64: 4, 256>}]} {
    %c0_i32 = arith.constant 0 : i32
    %0 = arith.cmpi eq, %arg1, %c0_i32 : i32
    %1 = arith.extui %0 : i1 to i32
    %c0_i32_0 = arith.constant 0 : i32
    %2 = arith.cmpi ne, %1, %c0_i32_0 : i32
    scf.if %2 {
      %cst_8 = arith.constant 0.000000e+00 : f32
      %9 = vector.broadcast %cst_8 : f32 to vector<4x256xf32>
      %c0_9 = arith.constant 0 : index
      %c0_10 = arith.constant 0 : index
      %10 = vector.load %arg4[%c0_9, %c0_10] : memref<4x256xf32, #tpu.memory_space<vmem>>, vector<4x256xf32>
      tpu.vector_store %arg4[%c0_9, %c0_10], %9 {strides = array<i32>} : memref<4x256xf32, #tpu.memory_space<vmem>>, vector<4x256xf32>,
    } else {
    }
    %c0 = arith.constant 0 : index
    %c0_1 = arith.constant 0 : index
    %3 = vector.load %arg4[%c0, %c0_1] : memref<4x256xf32, #tpu.memory_space<vmem>>, vector<4x256xf32>
    %c0_2 = arith.constant 0 : index
    %c0_3 = arith.constant 0 : index
    %4 = vector.load %arg2[%c0_2, %c0_3] : memref<4x5376xbf16, #tpu.memory_space<vmem>>, vector<4x5376xbf16>
    %c0_4 = arith.constant 0 : index
    %c0_5 = arith.constant 0 : index
    %5 = vector.load %arg3[%c0_4, %c0_5] : memref<5376x256xbf16, #tpu.memory_space<vmem>>, vector<5376x256xbf16>
    %cst = arith.constant dense<0.000000e+00> : vector<4x256xf32>
    %6 = tpu.matmul %4, %5, %cst {dimension_numbers = #tpu.dot_dimension_numbers<[1], [0], [0], [1], [0, 0, 1, 1], [], []>} : vector<4x5376xbf16>, vector<5376x256xbf16>, vector<4x256xf32> -> vector<4x256xf32>
    %7 = arith.addf %3, %6 : vector<4x256xf32>
    %c0_6 = arith.constant 0 : index
    %c0_7 = arith.constant 0 : index
    %8 = vector.load %arg4[%c0_6, %c0_7] : memref<4x256xf32, #tpu.memory_space<vmem>>, vector<4x256xf32>
    tpu.vector_store %arg4[%c0_6, %c0_7], %7 {strides = array<i32>} : memref<4x256xf32, #tpu.memory_space<vmem>>, vector<4x256xf32>,
    return
  }
  func.func @transform_0(%arg0: i32, %arg1: i32) -> (i32, i32) {
    %c0_i32 = arith.constant 0 : i32
    %c0_i32_0 = arith.constant 0 : i32
    return %c0_i32, %arg1 : i32, i32
  }
  func.func @transform_1(%arg0: i32, %arg1: i32) -> (i32, i32) {
    %c0_i32 = arith.constant 0 : i32
    return %arg1, %arg0 : i32, i32
  }
  func.func @transform_2(%arg0: i32, %arg1: i32) -> (i32, i32) {
    %c0_i32 = arith.constant 0 : i32
    %c0_i32_0 = arith.constant 0 : i32
    return %c0_i32, %arg0 : i32, i32
  }
}

</mosaic_0001>

<bundles_post_ra>
// kernel: id_loss.2
= control target key start
LH: loop header
LB: loop body
LE: loop exit
PB: predicated region body
PF: predicated region fallthrough
CT: control target
= control target key end

     0   :  { %s3885_s12 = smov 0   ;;  %s5837_s0 = inlined_call_operand.vmem [shape: f32[112,188], index: 0, kind: input, shape index: {}]   ;;  %s5838_s1 = inlined_call_operand.vmem [shape: f32[188,128], index: 1, kind: input, shape index: {}]   ;;  %s5839_s2 = inlined_call_operand.vmem [shape: f32[12,188,188], index: 2, kind: input, shape index: {}]   ;;  %s5840_s3 = inlined_call_operand.vmem [shape: f32[12,112,128], index: 3, kind: output, shape index: {}]  }
   0x1 LB: > { %s3130_s13 = sadd.s32 4294967295, %s3863_s12   ;;  %p3134_p0 = scmp.ge.s32.totalorder %s3863_s12, 1  ;;  %s3863_s12 = sphi %s3885_s12, %s13_s12  }
   0x2   : > { %p139_p1 = scmp.lt.s32.totalorder %s3863_s12, 3 }
   0x4   : > { %p140_p2 = pnand %p3134_p0, %p139_p1 }
   0x6   : > { %143 = sbr.rel (%p140_p2) target bundleno = 1654 (0x676), region = 32 }
   0xb   : > { %s165_s14 = smul.u32 6, %s3130_s13  ;;  %vm322_vm0 = vcmask 1043456   ;;  %v3941_v35 = vld [vmem:[%s5837_s0 + $0x8] sm:$0xff]  ;;  %vm279_vm1 = vcmask 490496   ;;  %v3950_v40 = vld [vmem:[%s5838_s1 + $0xb8] sm:$0xf] }
   0xc   : > { %v3963_v45 = vld [vmem:[%s5838_s1 + $0x78] sm:$0xff]  ;;  %v3980_v51 = vld [vmem:[%s5837_s0] sm:$0xff]  ;;  %v3989_v53 = vld [vmem:[%s5838_s1 + $0x70] sm:$0xff] }
   0xd   : > { %p166_p3 = scmp.lt.s32.totalorder %s165_s14, 11  ;;  %v3972_v48 = vld [vmem:[%s5837_s0 + $0x18] sm:$0xff]  ;;  %v3994_v54 = vld [vmem:[%s5838_s1 + $0xb0] sm:$0xff]  ;;  %v4003_v55 = vld [vmem:[%s5837_s0 + $0x28] sm:$0xff] }
   0xe   : > { %v4009_v56 = vld [vmem:[%s5837_s0 + $0x10] sm:$0xff]  ;;  %v4017_v57 = vld [vmem:[%s5838_s1 + $0x68] sm:$0xff]  ;;  %v4026_v58 = vld [vmem:[%s5837_s0 + $0x38] sm:$0xff] }
   0xf   : > { %s5906_s14 = smov (!%p166_p3, %s165_s14), 11  ;;  %v4031_v59 = vld [vmem:[%s5837_s0 + $0x20] sm:$0xff]  ;;  %v4044_v61 = vld [vmem:[%s5838_s1 + $0xa8] sm:$0xff]  ;;  %v4059_v63 = vld [vmem:[%s5837_s0 + $0x30] sm:$0xff] }
  0x10   : > { %s3743_s15 = smul.u32 384, %s5906_s14  ;;  %v4039_v60 = vld [vmem:[%s5838_s1 + $0x60] sm:$0xff]  ;;  %v4054_v62 = vld [vmem:[%s5837_s0 + $0x48] sm:$0xff] }
  0x11   : > { %s3744_s27 = smul.u32 112, %s5906_s14 }
  0x12   : > { %s3899_s18 = scalar_lea.vmem %s5839_s2, %s3743_s15 }
  0x13   : > { %v262_v0 = vld [vmem:[%s3899_s18 + $0xf8] sm:$0xff]  ;;  %v260_v1 = vld [vmem:[%s3899_s18 + $0xe8] sm:$0xff]  ;;  %v261_v3 = vld [vmem:[%s3899_s18 + $0xf0] sm:$0xff]  ;;  %s4445_s30 = scalar_lea.vmem %s5840_s3, %s3744_s27 }
  0x14   : > { %447 = vmatpush.msra.mxu2 %v262_v0  ;;  %v258_v2 = vld [vmem:[%s3899_s18 + $0xd8] sm:$0xff]  ;;  %v259_v4 = vld [vmem:[%s3899_s18 + $0xe0] sm:$0xff]  ;;  %329 = vmatpush.msra.mxu0 %v261_v3  ;;  %v256_v5 = vld [vmem:[%s3899_s18 + $0xc8] sm:$0xff] }
  0x15   : > { %v257_v6 = vld [vmem:[%s3899_s18 + $0xd0] sm:$0xff]  ;;  %v278_v7 = vld [vmem:[%s3899_s18 + $0x178] sm:$0xf]  ;;  %v276_v8 = vld [vmem:[%s3899_s18 + $0x168] sm:$0xff] }
  0x16   : > { %448 = vmatpush.msra.mxu2 %v260_v1  ;;  %330 = vmatpush.msra.mxu0 %v259_v4  ;;  %v254_v9 = vld [vmem:[%s3899_s18 + $0xb8] sm:$0xff]  ;;  %v255_v10 = vld [vmem:[%s3899_s18 + $0xc0] sm:$0xff]  ;;  %v252_v12 = vld [vmem:[%s3899_s18 + $0xa8] sm:$0xff] }
  0x17   : > { %3152 = vmatpush.msk.msra.mxu3 %vm322_vm0, %v278_v7  ;;  %v274_v11 = vld [vmem:[%s3899_s18 + $0x158] sm:$0xff]  ;;  %v253_v13 = vld [vmem:[%s3899_s18 + $0xb0] sm:$0xff]  ;;  %v272_v14 = vld [vmem:[%s3899_s18 + $0x148] sm:$0xff] }
  0x18   : > { %449 = vmatpush.msra.mxu2 %v258_v2  ;;  %331 = vmatpush.msra.mxu0 %v257_v6  ;;  %v277_v15 = vld [vmem:[%s3899_s18 + $0x170] sm:$0xf]  ;;  %v250_v16 = vld [vmem:[%s3899_s18 + $0x98] sm:$0xff]  ;;  %v251_v17 = vld [vmem:[%s3899_s18 + $0xa0] sm:$0xff] }
  0x19   : > { %515 = vmatpush.msra.mxu3 %v276_v8  ;;  %3137 = vmatpush.msk.msra.mxu1 %vm322_vm0, %v277_v15  ;;  %v270_v18 = vld [vmem:[%s3899_s18 + $0x138] sm:$0xff]  ;;  %v275_v19 = vld [vmem:[%s3899_s18 + $0x160] sm:$0xff]  ;;  %v248_v20 = vld [vmem:[%s3899_s18 + $0x88] sm:$0xff] }
  0x1a   : > { %450 = vmatpush.msra.mxu2 %v256_v5  ;;  %332 = vmatpush.msra.mxu0 %v255_v10  ;;  %v249_v21 = vld [vmem:[%s3899_s18 + $0x90] sm:$0xff]  ;;  %v268_v23 = vld [vmem:[%s3899_s18 + $0x128] sm:$0xff]  ;;  %v271_v24 = vld [vmem:[%s3899_s18 + $0x140] sm:$0xff] }
  0x1b   : > { %516 = vmatpush.msra.mxu3 %v274_v11  ;;  %397 = vmatpush.msra.mxu1 %v275_v19  ;;  %v273_v22 = vld [vmem:[%s3899_s18 + $0x150] sm:$0xff]  ;;  %v246_v25 = vld [vmem:[%s3899_s18 + $0x78] sm:$0xff]  ;;  %v247_v26 = vld [vmem:[%s3899_s18 + $0x80] sm:$0xff] }
  0x1c   : > { %451 = vmatpush.msra.mxu2 %v254_v9  ;;  %333 = vmatpush.msra.mxu0 %v253_v13  ;;  %v266_v27 = vld [vmem:[%s3899_s18 + $0x118] sm:$0xff]  ;;  %v269_v28 = vld [vmem:[%s3899_s18 + $0x130] sm:$0xff]  ;;  %v244_v29 = vld [vmem:[%s3899_s18 + $0x68] sm:$0xff] }
  0x1d   : > { %517 = vmatpush.msra.mxu3 %v272_v14  ;;  %398 = vmatpush.msra.mxu1 %v273_v22  ;;  %v245_v30 = vld [vmem:[%s3899_s18 + $0x70] sm:$0xff]  ;;  %v264_v31 = vld [vmem:[%s3899_s18 + $0x108] sm:$0xff]  ;;  %v267_v32 = vld [vmem:[%s3899_s18 + $0x120] sm:$0xff] }
  0x1e   : > { %452 = vmatpush.msra.mxu2 %v252_v12  ;;  %334 = vmatpush.msra.mxu0 %v251_v17  ;;  %v242_v33 = vld [vmem:[%s3899_s18 + $0x58] sm:$0xff]  ;;  %v243_v34 = vld [vmem:[%s3899_s18 + $0x60] sm:$0xff]  ;;  %v265_v36 = vld [vmem:[%s3899_s18 + $0x110] sm:$0xff] }
  0x1f   : > { %518 = vmatpush.msra.mxu3 %v270_v18  ;;  %399 = vmatpush.msra.mxu1 %v271_v24  ;;  %v240_v37 = vld [vmem:[%s3899_s18 + $0x48] sm:$0xff]  ;;  %v241_v38 = vld [vmem:[%s3899_s18 + $0x50] sm:$0xff]  ;;  %v263_v39 = vld [vmem:[%s3899_s18 + $0x100] sm:$0xff] }
  0x20   : > { %453 = vmatpush.msra.mxu2 %v250_v16  ;;  %335 = vmatpush.msra.mxu0 %v249_v21  ;;  %v238_v41 = vld [vmem:[%s3899_s18 + $0x38] sm:$0xff]  ;;  %v239_v42 = vld [vmem:[%s3899_s18 + $0x40] sm:$0xff]  ;;  %v236_v43 = vld [vmem:[%s3899_s18 + $0x28] sm:$0xff] }
  0x21   : > { %519 = vmatpush.msra.mxu3 %v268_v23  ;;  %400 = vmatpush.msra.mxu1 %v269_v28  ;;  %v237_v44 = vld [vmem:[%s3899_s18 + $0x30] sm:$0xff]  ;;  %v234_v46 = vld [vmem:[%s3899_s18 + $0x18] sm:$0xff]  ;;  %v235_v47 = vld [vmem:[%s3899_s18 + $0x20] sm:$0xff] }
  0x22   : > { %454 = vmatpush.msra.mxu2 %v248_v20  ;;  %336 = vmatpush.msra.mxu0 %v247_v26  ;;  %v232_v49 = vld [vmem:[%s3899_s18 + $0x8] sm:$0xff]  ;;  %v233_v50 = vld [vmem:[%s3899_s18 + $0x10] sm:$0xff]  ;;  %v231_v52 = vld [vmem:[%s3899_s18] sm:$0xff] }
  0x23   : > { %520 = vmatpush.msra.mxu3 %v266_v27  ;;  %401 = vmatpush.msra.mxu1 %v267_v32  ;;  %v4067_v0 = vld [vmem:[%s5838_s1 + $0x58] sm:$0xff]  ;;  %v4072_v1 = vld [vmem:[%s5838_s1 + $0x50] sm:$0xff]  ;;  %v4087_v3 = vld [vmem:[%s5837_s0 + $0x40] sm:$0xff] }
  0x24   : > { %455 = vmatpush.msra.mxu2 %v246_v25  ;;  %337 = vmatpush.msra.mxu0 %v245_v30  ;;  %v4081_v2 = vld [vmem:[%s5837_s0 + $0x58] sm:$0xff]  ;;  %v4095_v4 = vld [vmem:[%s5838_s1 + $0xa0] sm:$0xff]  ;;  %v4100_v5 = vld [vmem:[%s5838_s1 + $0x48] sm:$0xff] }
  0x25   : > { %521 = vmatpush.msra.mxu3 %v264_v31  ;;  %402 = vmatpush.msra.mxu1 %v265_v36  ;;  %v4110_v6 = vld [vmem:[%s5837_s0 + $0x68] sm:$0xff]  ;;  %v4115_v7 = vld [vmem:[%s5837_s0 + $0x50] sm:$0xff]  ;;  %v4123_v8 = vld [vmem:[%s5838_s1 + $0x40] sm:$0xff] }
  0x26   : > { %456 = vmatpush.msra.mxu2 %v244_v29  ;;  %338 = vmatpush.msra.mxu0 %v243_v34  ;;  %v4128_v9 = vld [vmem:[%s5838_s1 + $0x98] sm:$0xff]  ;;  %v4143_v11 = vld [vmem:[%s5837_s0 + $0x60] sm:$0xff]  ;;  %v4160_v13 = vld [vmem:[%s5837_s0 + $0x88] sm:$0xff] }
  0x27   : > { %3153 = vmatmul.msk.f32.vlgmr.msra.gmra.mxu3 %vm279_vm1, %v3941_v35  ;;  %403 = vmatpush.msra.mxu1 %v263_v39  ;;  %v4138_v10 = vld [vmem:[%s5837_s0 + $0x78] sm:$0xff]  ;;  %v4165_v14 = vld [vmem:[%s5837_s0 + $0x70] sm:$0xff]  ;;  %v4193_v18 = vld [vmem:[%s5837_s0 + $0x80] sm:$0xff] }
  0x28   : > { %457 = vmatpush.msra.mxu2 %v242_v33  ;;  %339 = vmatpush.msra.mxu0 %v241_v38  ;;  %v4151_v12 = vld [vmem:[%s5838_s1 + $0x38] sm:$0xff]  ;;  %v4173_v15 = vld [vmem:[%s5838_s1 + $0x30] sm:$0xff]  ;;  %v4201_v19 = vld [vmem:[%s5838_s1 + $0x28] sm:$0xff] }
  0x29   : > { %3167 = vmatpush.msk.msrb.mxu3 %vm322_vm0, %v3950_v40  ;;  %3138 = vmatmul.msk.f32.vlgmr.msra.gmra.mxu1 %vm279_vm1, %v3941_v35  ;;  %v4178_v16 = vld [vmem:[%s5838_s1 + $0x90] sm:$0xff]  ;;  %v4188_v17 = vld [vmem:[%s5837_s0 + $0x98] sm:$0xff]  ;;  %v4210_v20 = vld [vmem:[%s5837_s0 + $0xa8] sm:$0xff] }
  0x2a   : > { %458 = vmatpush.msra.mxu2 %v240_v37  ;;  %340 = vmatpush.msra.mxu0 %v239_v42  ;;  %v4215_v21 = vld [vmem:[%s5837_s0 + $0x90] sm:$0xff]  ;;  %v4223_v22 = vld [vmem:[%s5838_s1 + $0x20] sm:$0xff]  ;;  %v4228_v23 = vld [vmem:[%s5838_s1 + $0x88] sm:$0xff] }
  0x2b   : > { %610 = vmatpush.msrb.mxu1 %v3963_v45  ;;  %678 = vmatpush.msrb.mxu3 %v3994_v54  ;;  %v4233_v24 = vld [vmem:[%s5838_s1 + $0x18] sm:$0xff]  ;;  %v4243_v25 = vld [vmem:[%s5838_s1 + $0x10] sm:$0xff]  ;;  %v4248_v26 = vld [vmem:[%s5838_s1 + $0x80] sm:$0xff] }
  0x2c   : > { %459 = vmatpush.msra.mxu2 %v238_v41  ;;  %341 = vmatpush.msra.mxu0 %v237_v44  ;;  %v4253_v27 = vld [vmem:[%s5837_s0 + $0xb8] sm:$0xff]  ;;  %v4260_v28 = vld [vmem:[%s5838_s1 + $0x8] sm:$0xff]  ;;  %v4265_v29 = vld [vmem:[%s5837_s0 + $0xa0] sm:$0xff] }
  0x2d   : > { %611 = vmatpush.msrb.mxu1 %v3989_v53  ;;  %679 = vmatpush.msrb.mxu3 %v4044_v61  ;;  %v4278_v30 = vld [vmem:[%s5837_s0 + $0xc8] sm:$0xff]  ;;  %v4283_v31 = vld [vmem:[%s5837_s0 + $0xb0] sm:$0xff]  ;;  %v4294_v32 = vld [vmem:[%s5837_s0 + $0xd8] sm:$0xff] }
  0x2e   : > { %460 = vmatpush.msra.mxu2 %v236_v43  ;;  %342 = vmatpush.msra.mxu0 %v235_v47  ;;  %5873 = vst [vmem:[#allocation2_spill] sm:$0xff] %v4278_v30  ;;  %v4299_v33 = vld [vmem:[%s5837_s0 + $0xc0] sm:$0xff]  ;;  %v4315_v36 = vld [vmem:[%s5837_s0 + $0xd0] sm:$0xff]  ;;  %v3229_v37 = vld [vmem:[%s3899_s18 + $0x2f8] sm:$0xf] }
  0x2f   : > { %3154 = vmatmul.msk.f32.gmra.mxu3 %vm279_vm1, %v3972_v48  ;;  %612 = vmatpush.msrb.mxu1 %v4017_v57  ;;  %5874 = vst [vmem:[#allocation3_spill] sm:$0xff] %v4294_v32  ;;  %v4310_v34 = vld [vmem:[%s5838_s1] sm:$0xff]  ;;  %v3228_v38 = vld [vmem:[%s3899_s18 + $0x2f0] sm:$0xf]  ;;  %v3213_v39 = vld [vmem:[%s3899_s18 + $0x278] sm:$0xff] }
  0x30   : > { %461 = vmatpush.msra.mxu2 %v234_v46  ;;  %343 = vmatpush.msra.mxu0 %v233_v50  ;;  %5875 = vst [vmem:[#allocation4_spill] sm:$0xff] %v4299_v33  ;;  %v3212_v41 = vld [vmem:[%s3899_s18 + $0x270] sm:$0xff]  ;;  %v3211_v42 = vld [vmem:[%s3899_s18 + $0x268] sm:$0xff]  ;;  %v3210_v44 = vld [vmem:[%s3899_s18 + $0x260] sm:$0xff] }
  0x31   : > { %3139 = vmatmul.msk.f32.gmra.mxu1 %vm279_vm1, %v3972_v48  ;;  %680 = vmatpush.msrb.mxu3 %v4095_v4  ;;  %5876 = vst [vmem:[#allocation5_spill] sm:$0xff] %v4315_v36  ;;  %v3227_v43 = vld [vmem:[%s3899_s18 + $0x2e8] sm:$0xff]  ;;  %v3226_v46 = vld [vmem:[%s3899_s18 + $0x2e0] sm:$0xff]  ;;  %v3209_v47 = vld [vmem:[%s3899_s18 + $0x258] sm:$0xff] }
  0x32   : > { %462 = vmatpush.msra.mxu2 %v232_v49  ;;  %344 = vmatpush.msra.mxu0 %v231_v52  ;;  %v3208_v52 = vld [vmem:[%s3899_s18 + $0x250] sm:$0xff] }
  0x33   : > { %463 = vmatmul.f32.vlgmr.msra.gmra.mxu2 %v3980_v51  ;;  %345 = vmatmul.f32.vlgmr.msra.gmra.mxu0 %v3980_v51 }
  0x34   : > { %613 = vmatpush.msrb.mxu1 %v4039_v60  ;;  %681 = vmatpush.msrb.mxu3 %v4128_v9 }
  0x35   : > { %3230 = vmatpush.msk.msrb.mxu2 %vm322_vm0, %v3228_v38  ;;  %797 = vmatpush.msrb.mxu0 %v3212_v41  ;;  %v3225_v38 = vld [vmem:[%s3899_s18 + $0x2d8] sm:$0xff] }
  0x36   : > { %614 = vmatpush.msrb.mxu1 %v4067_v0  ;;  %682 = vmatpush.msrb.mxu3 %v4178_v16 }
  0x37   : > { %3155 = vmatmul.msk.f32.gmra.mxu3 %vm279_vm1, %v4003_v55  ;;  %798 = vmatpush.msrb.mxu0 %v3210_v44  ;;  %v3206_v44 = vld [vmem:[%s3899_s18 + $0x240] sm:$0xff] }
  0x38   : > { %615 = vmatpush.msrb.mxu1 %v4072_v1  ;;  %683 = vmatpush.msrb.mxu3 %v4228_v23 }
  0x39   : > { %3140 = vmatmul.msk.f32.gmra.mxu1 %vm279_vm1, %v4003_v55  ;;  %865 = vmatpush.msrb.mxu2 %v3226_v46  ;;  %v3224_v46 = vld [vmem:[%s3899_s18 + $0x2d0] sm:$0xff] }
  0x3a   : > { %616 = vmatpush.msrb.mxu1 %v4100_v5  ;;  %684 = vmatpush.msrb.mxu3 %v4248_v26 }
  0x3b   : > { %466 = vmatmul.f32.gmra.mxu2 %v4009_v56  ;;  %348 = vmatmul.f32.gmra.mxu0 %v4009_v56 }
  0x3c   : > { %617 = vmatpush.msrb.mxu1 %v4123_v8  ;;  %3245 = vmatpush.msk.msra.mxu3 %vm322_vm0, %v3229_v37  ;;  %v3207_v37 = vld [vmem:[%s3899_s18 + $0x248] sm:$0xff] }
  0x3d   : > { %799 = vmatpush.msrb.mxu0 %v3208_v52  ;;  %866 = vmatpush.msrb.mxu2 %v3224_v46 }
  0x3e   : > { %618 = vmatpush.msrb.mxu1 %v4151_v12  ;;  %983 = vmatpush.msra.mxu3 %v3227_v43 }
  0x3f   : > { %3156 = vmatmul.msk.f32.gmra.mxu3 %vm279_vm1, %v4026_v58  ;;  %800 = vmatpush.msrb.mxu0 %v3206_v44 }
  0x40   : > { %619 = vmatpush.msrb.mxu1 %v4173_v15  ;;  %984 = vmatpush.msra.mxu3 %v3225_v38 }
  0x41   : > { %3141 = vmatmul.msk.f32.gmra.mxu1 %vm279_vm1, %v4026_v58 }
  0x42   : > { %620 = vmatpush.msrb.mxu1 %v4201_v19 }
  0x43   : > { %469 = vmatmul.f32.gmra.mxu2 %v4031_v59  ;;  %351 = vmatmul.f32.gmra.mxu0 %v4031_v59 }
  0x44   : > { %621 = vmatpush.msrb.mxu1 %v4223_v22 }
  0x46   : > { %622 = vmatpush.msrb.mxu1 %v4233_v24 }
  0x47   : > { %3157 = vmatmul.msk.f32.gmra.mxu3 %vm279_vm1, %v4054_v62 }
  0x48   : > { %623 = vmatpush.msrb.mxu1 %v4243_v25 }
  0x49   : > { %3142 = vmatmul.msk.f32.gmra.mxu1 %vm279_vm1, %v4054_v62 }
  0x4a   : > { %624 = vmatpush.msrb.mxu1 %v4260_v28 }
  0x4b   : > { %472 = vmatmul.f32.gmra.mxu2 %v4059_v63  ;;  %354 = vmatmul.f32.gmra.mxu0 %v4059_v63 }
  0x4c   : > { %625 = vmatpush.msrb.mxu1 %v4310_v34 }
  0x4e   : > { %915 = vmatpush.msra.mxu1 %v3213_v39 }
  0x4f   : > { %3158 = vmatmul.msk.f32.gmra.mxu3 %vm279_vm1, %v4081_v2 }
  0x50   : > { %916 = vmatpush.msra.mxu1 %v3211_v42 }
  0x51   : > { %3143 = vmatmul.msk.f32.gmra.mxu1 %vm279_vm1, %v4081_v2 }
  0x52   : > { %917 = vmatpush.msra.mxu1 %v3209_v47  ;;  %v3205_v47 = vld [vmem:[%s3899_s18 + $0x238] sm:$0xff] }
  0x53   : > { %475 = vmatmul.f32.gmra.mxu2 %v4087_v3  ;;  %357 = vmatmul.f32.gmra.mxu0 %v4087_v3 }
  0x54   : > { %918 = vmatpush.msra.mxu1 %v3207_v37 }
  0x56   : > { %919 = vmatpush.msra.mxu1 %v3205_v47  ;;  %v3222_v47 = vld [vmem:[%s3899_s18 + $0x2c0] sm:$0xff] }
  0x57   : > { %3159 = vmatmul.msk.f32.gmra.mxu3 %vm279_vm1, %v4110_v6  ;;  %867 = vmatpush.msrb.mxu2 %v3222_v47 }
  0x59   : > { %3144 = vmatmul.msk.f32.gmra.mxu1 %vm279_vm1, %v4110_v6 }
  0x5b   : > { %478 = vmatmul.f32.gmra.mxu2 %v4115_v7  ;;  %360 = vmatmul.f32.gmra.mxu0 %v4115_v7 }
  0x5f   : > { %3160 = vmatmul.msk.f32.gmra.mxu3 %vm279_vm1, %v4138_v10 }
  0x61   : > { %3145 = vmatmul.msk.f32.gmra.mxu1 %vm279_vm1, %v4138_v10 }
  0x63   : > { %481 = vmatmul.f32.gmra.mxu2 %v4143_v11  ;;  %363 = vmatmul.f32.gmra.mxu0 %v4143_v11 }
  0x67   : > { %3161 = vmatmul.msk.f32.gmra.mxu3 %vm279_vm1, %v4160_v13 }
  0x69   : > { %3146 = vmatmul.msk.f32.gmra.mxu1 %vm279_vm1, %v4160_v13 }
  0x6b   : > { %484 = vmatmul.f32.gmra.mxu2 %v4165_v14  ;;  %366 = vmatmul.f32.gmra.mxu0 %v4165_v14 }
  0x6f   : > { %3162 = vmatmul.msk.f32.gmra.mxu3 %vm279_vm1, %v4188_v17 }
  0x71   : > { %3147 = vmatmul.msk.f32.gmra.mxu1 %vm279_vm1, %v4188_v17 }
  0x73   : > { %487 = vmatmul.f32.gmra.mxu2 %v4193_v18  ;;  %369 = vmatmul.f32.gmra.mxu0 %v4193_v18 }
  0x77   : > { %3163 = vmatmul.msk.f32.gmra.mxu3 %vm279_vm1, %v4210_v20 }
  0x79   : > { %3148 = vmatmul.msk.f32.gmra.mxu1 %vm279_vm1, %v4210_v20 }
  0x7b   : > { %490 = vmatmul.f32.gmra.mxu2 %v4215_v21  ;;  %372 = vmatmul.f32.gmra.mxu0 %v4215_v21 }
  0x7f   : > { %3164 = vmatmul.msk.f32.gmra.mxu3 %vm279_vm1, %v4253_v27 }
  0x81   : > { %3149 = vmatmul.msk.f32.gmra.mxu1 %vm279_vm1, %v4253_v27 }
  0x83   : > { %493 = vmatmul.f32.gmra.mxu2 %v4265_v29  ;;  %375 = vmatmul.f32.gmra.mxu0 %v4265_v29 }
  0x87   : > { %3165 = vmatmul.msk.f32.gmra.mxu3 %vm279_vm1, %v4278_v30 }
  0x89   : > { %3150 = vmatmul.msk.f32.gmra.mxu1 %vm279_vm1, %v4278_v30 }
  0x8b   : > { %496 = vmatmul.f32.gmra.mxu2 %v4283_v31  ;;  %378 = vmatmul.f32.gmra.mxu0 %v4283_v31 }
  0x8f   : > { %3166 = vmatmul.msk.f32.gmra.mxu3 %vm279_vm1, %v4294_v32 }
  0x91   : > { %3151 = vmatmul.msk.f32.gmra.mxu1 %vm279_vm1, %v4294_v32 }
  0x93   : > { %499 = vmatmul.f32.gmra.mxu2 %v4299_v33  ;;  %381 = vmatmul.f32.gmra.mxu0 %v4299_v33 }
  0x9b   : > { %502 = vmatmul.f32.gmra.mxu2 %v4315_v36  ;;  %384 = vmatmul.f32.gmra.mxu0 %v4315_v36 }
  0xa6   : > { %v405_v49 = vpop.f32.mrf.mxu1 }
  0xaa   : > { %v523_v50 = vpop.f32.mrf.mxu3 }
  0xae   : > { %v408_v41 = vpop.f32.mrf.mxu1 }
  0xb0   : > { %v346_v39 = vpop.f32.mrf.mxu0 }
  0xb1   : > { %v406_v42 = vadd.f32 %v405_v49, %v346_v39 }
  0xb2   : > { %v526_v43 = vpop.f32.mrf.mxu3 }
  0xb3   : > { %626 = vmatmul.f32.vlgmr.msrb.gmra.mxu1 %v406_v42 }
  0xb6   : > { %v464_v36 = vpop.f32.mrf.mxu2  ;;  %v411_v30 = vpop.f32.mrf.mxu1 }
  0xb7   : > { %v524_v32 = vadd.f32 %v523_v50, %v464_v36  ;;  %v3204_v36 = vld [vmem:[%s3899_s18 + $0x230] sm:$0xff]  ;;  %v3223_v50 = vld [vmem:[%s3899_s18 + $0x2c8] sm:$0xff] }
  0xb8   : > { %v349_v33 = vpop.f32.mrf.mxu0  ;;  %801 = vmatpush.msrb.mxu0 %v3204_v36  ;;  %985 = vmatpush.msra.mxu3 %v3223_v50 }
  0xb9   : > { %3168 = vmatmul.msk.f32.vlgmr.msrb.gmra.mxu3 %vm279_vm1, %v524_v32  ;;  %v409_v52 = vadd.f32 %v408_v41, %v349_v33  ;;  %v3203_v32 = vld [vmem:[%s3899_s18 + $0x228] sm:$0xff] }
  0xba   : > { %v529_v49 = vpop.f32.mrf.mxu3  ;;  %920 = vmatpush.msra.mxu1 %v3203_v32 }
  0xbb   : > { %629 = vmatmul.f32.gmra.mxu1 %v409_v52  ;;  %v3201_v52 = vld [vmem:[%s3899_s18 + $0x218] sm:$0xff] }
  0xbc   : > { %921 = vmatpush.msra.mxu1 %v3201_v52 }
  0xbe   : > { %v467_v37 = vpop.f32.mrf.mxu2  ;;  %v414_v42 = vpop.f32.mrf.mxu1 }
  0xbf   : > { %v527_v38 = vadd.f32 %v526_v43, %v467_v37  ;;  %v3202_v43 = vld [vmem:[%s3899_s18 + $0x220] sm:$0xff] }
  0xc0   : > { %v352_v39 = vpop.f32.mrf.mxu0  ;;  %802 = vmatpush.msrb.mxu0 %v3202_v43 }
  0xc1   : > { %3169 = vmatmul.msk.f32.gmra.mxu3 %vm279_vm1, %v527_v38  ;;  %v412_v44 = vadd.f32 %v411_v30, %v352_v39  ;;  %v3199_v39 = vld [vmem:[%s3899_s18 + $0x208] sm:$0xff] }
  0xc2   : > { %v532_v33 = vpop.f32.mrf.mxu3  ;;  %922 = vmatpush.msra.mxu1 %v3199_v39 }
  0xc3   : > { %632 = vmatmul.f32.gmra.mxu1 %v412_v44  ;;  %v3221_v44 = vld [vmem:[%s3899_s18 + $0x2b8] sm:$0xff] }
  0xc4   : > { %986 = vmatpush.msra.mxu3 %v3221_v44 }
  0xc6   : > { %v470_v41 = vpop.f32.mrf.mxu2  ;;  %v417_v38 = vpop.f32.mrf.mxu1 }
  0xc7   : > { %v530_v46 = vadd.f32 %v529_v49, %v470_v41  ;;  %v3200_v49 = vld [vmem:[%s3899_s18 + $0x210] sm:$0xff] }
  0xc8   : > { %v355_v37 = vpop.f32.mrf.mxu0  ;;  %803 = vmatpush.msrb.mxu0 %v3200_v49 }
  0xc9   : > { %3170 = vmatmul.msk.f32.gmra.mxu3 %vm279_vm1, %v530_v46  ;;  %v415_v36 = vadd.f32 %v414_v42, %v355_v37  ;;  %v3198_v37 = vld [vmem:[%s3899_s18 + $0x200] sm:$0xff] }
  0xca   : > { %v535_v30 = vpop.f32.mrf.mxu3  ;;  %804 = vmatpush.msrb.mxu0 %v3198_v37  ;;  %v3193_v37 = vld [vmem:[%s3899_s18 + $0x1d8] sm:$0xff] }
  0xcb   : > { %635 = vmatmul.f32.gmra.mxu1 %v415_v36  ;;  %v3197_v36 = vld [vmem:[%s3899_s18 + $0x1f8] sm:$0xff] }
  0xcc   : > { %923 = vmatpush.msra.mxu1 %v3197_v36 }
  0xce   : > { %v473_v32 = vpop.f32.mrf.mxu2  ;;  %v420_v46 = vpop.f32.mrf.mxu1 }
  0xcf   : > { %v533_v50 = vadd.f32 %v532_v33, %v473_v32  ;;  %v3220_v33 = vld [vmem:[%s3899_s18 + $0x2b0] sm:$0xff] }
  0xd0   : > { %v358_v41 = vpop.f32.mrf.mxu0  ;;  %868 = vmatpush.msrb.mxu2 %v3220_v33  ;;  %v3196_v32 = vld [vmem:[%s3899_s18 + $0x1f0] sm:$0xff] }
  0xd1   : > { %3171 = vmatmul.msk.f32.gmra.mxu3 %vm279_vm1, %v533_v50  ;;  %v418_v43 = vadd.f32 %v417_v38, %v358_v41  ;;  %805 = vmatpush.msrb.mxu0 %v3196_v32  ;;  %v3195_v41 = vld [vmem:[%s3899_s18 + $0x1e8] sm:$0xff] }
  0xd2   : > { %v538_v42 = vpop.f32.mrf.mxu3  ;;  %924 = vmatpush.msra.mxu1 %v3195_v41 }
  0xd3   : > { %638 = vmatmul.f32.gmra.mxu1 %v418_v43  ;;  %v3219_v43 = vld [vmem:[%s3899_s18 + $0x2a8] sm:$0xff] }
  0xd4   : > { %987 = vmatpush.msra.mxu3 %v3219_v43  ;;  %925 = vmatpush.msra.mxu1 %v3193_v37 }
  0xd6   : > { %v476_v47 = vpop.f32.mrf.mxu2  ;;  %v423_v38 = vpop.f32.mrf.mxu1 }
  0xd7   : > { %v536_v52 = vadd.f32 %v535_v30, %v476_v47  ;;  %v3194_v47 = vld [vmem:[%s3899_s18 + $0x1e0] sm:$0xff] }
  0xd8   : > { %v361_v50 = vpop.f32.mrf.mxu0  ;;  %806 = vmatpush.msrb.mxu0 %v3194_v47 }
  0xd9   : > { %3172 = vmatmul.msk.f32.gmra.mxu3 %vm279_vm1, %v536_v52  ;;  %v421_v49 = vadd.f32 %v420_v46, %v361_v50  ;;  %v3218_v52 = vld [vmem:[%s3899_s18 + $0x2a0] sm:$0xff] }
  0xda   : > { %v541_v39 = vpop.f32.mrf.mxu3  ;;  %869 = vmatpush.msrb.mxu2 %v3218_v52 }
  0xdb   : > { %641 = vmatmul.f32.gmra.mxu1 %v421_v49  ;;  %v3192_v49 = vld [vmem:[%s3899_s18 + $0x1d0] sm:$0xff] }
  0xdc   : > { %807 = vmatpush.msrb.mxu0 %v3192_v49 }
  0xde   : > { %v479_v30 = vpop.f32.mrf.mxu2  ;;  %v426_v36 = vpop.f32.mrf.mxu1 }
  0xdf   : > { %v539_v44 = vadd.f32 %v538_v42, %v479_v30  ;;  %v3191_v30 = vld [vmem:[%s3899_s18 + $0x1c8] sm:$0xff] }
  0xe0   : > { %v364_v33 = vpop.f32.mrf.mxu0  ;;  %926 = vmatpush.msra.mxu1 %v3191_v30 }
  0xe1   : > { %3173 = vmatmul.msk.f32.gmra.mxu3 %vm279_vm1, %v539_v44  ;;  %v424_v46 = vadd.f32 %v423_v38, %v364_v33  ;;  %v3217_v44 = vld [vmem:[%s3899_s18 + $0x298] sm:$0xff]  ;;  %v3216_v33 = vld [vmem:[%s3899_s18 + $0x290] sm:$0xff] }
  0xe2   : > { %v544_v32 = vpop.f32.mrf.mxu3  ;;  %988 = vmatpush.msra.mxu3 %v3217_v44  ;;  %870 = vmatpush.msrb.mxu2 %v3216_v33 }
  0xe3   : > { %644 = vmatmul.f32.gmra.mxu1 %v424_v46  ;;  %v3189_v46 = vld [vmem:[%s3899_s18 + $0x1b8] sm:$0xff] }
  0xe4   : > { %927 = vmatpush.msra.mxu1 %v3189_v46 }
  0xe6   : > { %v482_v42 = vpop.f32.mrf.mxu2  ;;  %v429_v43 = vpop.f32.mrf.mxu1 }
  0xe7   : > { %v542_v50 = vadd.f32 %v541_v39, %v482_v42  ;;  %v3190_v39 = vld [vmem:[%s3899_s18 + $0x1c0] sm:$0xff] }
  0xe8   : > { %v367_v41 = vpop.f32.mrf.mxu0  ;;  %808 = vmatpush.msrb.mxu0 %v3190_v39 }
  0xe9   : > { %3174 = vmatmul.msk.f32.gmra.mxu3 %vm279_vm1, %v542_v50  ;;  %v427_v47 = vadd.f32 %v426_v36, %v367_v41  ;;  %v3187_v41 = vld [vmem:[%s3899_s18 + $0x1a8] sm:$0xff] }
  0xea   : > { %v547_v38 = vpop.f32.mrf.mxu3  ;;  %928 = vmatpush.msra.mxu1 %v3187_v41 }
  0xeb   : > { %647 = vmatmul.f32.gmra.mxu1 %v427_v47  ;;  %v3215_v47 = vld [vmem:[%s3899_s18 + $0x288] sm:$0xff] }
  0xec   : > { %989 = vmatpush.msra.mxu3 %v3215_v47 }
  0xee   : > { %v485_v52 = vpop.f32.mrf.mxu2  ;;  %v432_v50 = vpop.f32.mrf.mxu1 }
  0xef   : > { %v545_v37 = vadd.f32 %v544_v32, %v485_v52  ;;  %v3188_v32 = vld [vmem:[%s3899_s18 + $0x1b0] sm:$0xff] }
  0xf0   : > { %v370_v42 = vpop.f32.mrf.mxu0  ;;  %809 = vmatpush.msrb.mxu0 %v3188_v32  ;;  %v3183_v32 = vld [vmem:[%s3899_s18 + $0x188] sm:$0xff] }
  0xf1   : > { %3175 = vmatmul.msk.f32.gmra.mxu3 %vm279_vm1, %v545_v37  ;;  %v430_v49 = vadd.f32 %v429_v43, %v370_v42  ;;  %v3214_v42 = vld [vmem:[%s3899_s18 + $0x280] sm:$0xff] }
  0xf2   : > { %v550_v36 = vpop.f32.mrf.mxu3  ;;  %871 = vmatpush.msrb.mxu2 %v3214_v42 }
  0xf3   : > { %650 = vmatmul.f32.gmra.mxu1 %v430_v49  ;;  %v3185_v49 = vld [vmem:[%s3899_s18 + $0x198] sm:$0xff]  ;;  %3231 = vmatmul.msk.f32.vlgmr.msrb.gmra.mxu2 %vm279_vm1, %v3941_v35 }
  0xf4   : > { %929 = vmatpush.msra.mxu1 %v3185_v49  ;;  %3260 = vmatpush.msk.msra.mxu2 %vm322_vm0, %v3950_v40 }
  0xf6   : > { %v488_v30 = vpop.f32.mrf.mxu2  ;;  %v435_v37 = vpop.f32.mrf.mxu1  ;;  %930 = vmatpush.msra.mxu1 %v3183_v32  ;;  %1143 = vmatpush.msra.mxu2 %v3994_v54 }
  0xf7   : > { %v548_v44 = vadd.f32 %v547_v38, %v488_v30  ;;  %v3186_v38 = vld [vmem:[%s3899_s18 + $0x1a0] sm:$0xff]  ;;  %v3184_v30 = vld [vmem:[%s3899_s18 + $0x190] sm:$0xff] }
  0xf8   : > { %v373_v52 = vpop.f32.mrf.mxu0  ;;  %810 = vmatpush.msrb.mxu0 %v3186_v38  ;;  %1144 = vmatpush.msra.mxu2 %v4044_v61 }
  0xf9   : > { %3176 = vmatmul.msk.f32.gmra.mxu3 %vm279_vm1, %v548_v44  ;;  %v433_v43 = vadd.f32 %v432_v50, %v373_v52 }
  0xfa   : > { %v553_v33 = vpop.f32.mrf.mxu3  ;;  %811 = vmatpush.msrb.mxu0 %v3184_v30  ;;  %1145 = vmatpush.msra.mxu2 %v4095_v4 }
  0xfb   : > { %653 = vmatmul.f32.gmra.mxu1 %v433_v43  ;;  %3232 = vmatmul.msk.f32.gmra.mxu2 %vm279_vm1, %v3972_v48 }
  0xfc   : > { %1146 = vmatpush.msra.mxu2 %v4128_v9 }
  0xfe   : > { %v491_v39 = vpop.f32.mrf.mxu2  ;;  %v438_v50 = vpop.f32.mrf.mxu1  ;;  %1147 = vmatpush.msra.mxu2 %v4178_v16 }
  0xff   : > { %v551_v46 = vadd.f32 %v550_v36, %v491_v39 }
 0x100   : > { %v376_v44 = vpop.f32.mrf.mxu0  ;;  %1148 = vmatpush.msra.mxu2 %v4228_v23 }
 0x101   : > { %3177 = vmatmul.msk.f32.gmra.mxu3 %vm279_vm1, %v551_v46  ;;  %v436_v41 = vadd.f32 %v435_v37, %v376_v44  ;;  %v3182_v37 = vld [vmem:[%s3899_s18 + $0x180] sm:$0xff] }
 0x102   : > { %v556_v52 = vpop.f32.mrf.mxu3  ;;  %812 = vmatpush.msrb.mxu0 %v3182_v37  ;;  %1149 = vmatpush.msra.mxu2 %v4248_v26 }
 0x103   : > { %656 = vmatmul.f32.gmra.mxu1 %v436_v41  ;;  %813 = vmatmul.f32.vlgmr.msrb.gmra.mxu0 %v3980_v51 }
 0x104   : > { %1075 = vmatpush.msra.mxu0 %v3963_v45  ;;  %3233 = vmatmul.msk.f32.gmra.mxu2 %vm279_vm1, %v4003_v55 }
 0x106   : > { %v494_v36 = vpop.f32.mrf.mxu2  ;;  %v441_v54 = vpop.f32.mrf.mxu1  ;;  %1076 = vmatpush.msra.mxu0 %v3989_v53 }
 0x107   : > { %v554_v47 = vadd.f32 %v553_v33, %v494_v36 }
 0x108   : > { %v379_v43 = vpop.f32.mrf.mxu0  ;;  %1077 = vmatpush.msra.mxu0 %v4017_v57 }
 0x109   : > { %3178 = vmatmul.msk.f32.gmra.mxu3 %vm279_vm1, %v554_v47  ;;  %v439_v39 = vadd.f32 %v438_v50, %v379_v43  ;;  %v3335_v47 = vld [vmem:[%s3899_s18 + $0x470] sm:$0xf] }
 0x10a   : > { %v559_v4 = vpop.f32.mrf.mxu3  ;;  %1078 = vmatpush.msra.mxu0 %v4039_v60  ;;  %3337 = vmatpush.msk.msrb.mxu3 %vm322_vm0, %v3335_v47 }
 0x10b   : > { %659 = vmatmul.f32.gmra.mxu1 %v439_v39  ;;  %816 = vmatmul.f32.gmra.mxu0 %v4009_v56  ;;  %v3319_v39 = vld [vmem:[%s3899_s18 + $0x3f0] sm:$0xff] }
 0x10c   : > { %1079 = vmatpush.msra.mxu0 %v4067_v0  ;;  %3234 = vmatmul.msk.f32.gmra.mxu2 %vm279_vm1, %v4026_v58 }
 0x10d   : > { %1263 = vmatpush.msrb.mxu1 %v3319_v39 }
 0x10e   : > { %v497_v40 = vpop.f32.mrf.mxu2  ;;  %1080 = vmatpush.msra.mxu0 %v4072_v1  ;;  %v444_v9 = vpop.f32.mrf.mxu1 }
 0x10f   : > { %v557_v61 = vadd.f32 %v556_v52, %v497_v40  ;;  %v3320_v52 = vld [vmem:[%s3899_s18 + $0x3f8] sm:$0xff] }
 0x110   : > { %v382_v33 = vpop.f32.mrf.mxu0  ;;  %1081 = vmatpush.msra.mxu0 %v4100_v5 }
 0x111   : > { %3179 = vmatmul.msk.f32.gmra.mxu3 %vm279_vm1, %v557_v61  ;;  %v442_v45 = vadd.f32 %v441_v54, %v382_v33  ;;  %v3318_v33 = vld [vmem:[%s3899_s18 + $0x3e8] sm:$0xff] }
 0x112   : > { %1082 = vmatpush.msra.mxu0 %v4123_v8  ;;  %v562_v0 = vpop.f32.mrf.mxu3 }
 0x113   : > { %662 = vmatmul.f32.gmra.mxu1 %v442_v45  ;;  %819 = vmatmul.f32.gmra.mxu0 %v4031_v59  ;;  %v3334_v45 = vld [vmem:[%s3899_s18 + $0x468] sm:$0xff] }
 0x114   : > { %1083 = vmatpush.msra.mxu0 %v4151_v12  ;;  %3235 = vmatmul.msk.f32.gmra.mxu2 %vm279_vm1, %v4054_v62 }
 0x116   : > { %v500_v53 = vpop.f32.mrf.mxu2  ;;  %1084 = vmatpush.msra.mxu0 %v4173_v15 }
 0x117   : > { %v560_v57 = vadd.f32 %v559_v4, %v500_v53 }
 0x118   : > { %v385_v60 = vpop.f32.mrf.mxu0  ;;  %1085 = vmatpush.msra.mxu0 %v4201_v19  ;;  %v5877_v19 = vld [vmem:[#allocation2_spill] sm:$0xff] }
 0x119   : > { %3180 = vmatmul.msk.f32.gmra.mxu3 %vm279_vm1, %v560_v57  ;;  %v445_v16 = vadd.f32 %v444_v9, %v385_v60  ;;  %v3317_v9 = vld [vmem:[%s3899_s18 + $0x3e0] sm:$0xff] }
 0x11a   : > { %1086 = vmatpush.msra.mxu0 %v4223_v22  ;;  %v3333_v60 = vld [vmem:[%s3899_s18 + $0x460] sm:$0xff]  ;;  %1264 = vmatpush.msrb.mxu1 %v3317_v9 }
 0x11b   : > { %665 = vmatmul.f32.gmra.mxu1 %v445_v16  ;;  %822 = vmatmul.f32.gmra.mxu0 %v4059_v63  ;;  %v3316_v16 = vld [vmem:[%s3899_s18 + $0x3d8] sm:$0xff] }
 0x11c   : > { %1087 = vmatpush.msra.mxu0 %v4233_v24  ;;  %3236 = vmatmul.msk.f32.gmra.mxu2 %vm279_vm1, %v4081_v2  ;;  %v5878_v24 = vld [vmem:[#allocation4_spill] sm:$0xff] }
 0x11d   : > { %1331 = vmatpush.msrb.mxu3 %v3333_v60 }
 0x11e   : > { %v503_v1 = vpop.f32.mrf.mxu2  ;;  %1088 = vmatpush.msra.mxu0 %v4243_v25  ;;  %v5879_v25 = vld [vmem:[#allocation3_spill] sm:$0xff] }
 0x11f   : > { %v563_v23 = vadd.f32 %v562_v0, %v503_v1 }
 0x120   : > { %1089 = vmatpush.msra.mxu0 %v4260_v28  ;;  %v5880_v28 = vld [vmem:[#allocation5_spill] sm:$0xff] }
 0x121   : > { %3181 = vmatmul.msk.f32.gmra.mxu3 %vm279_vm1, %v563_v23 }
 0x122   : > { %1090 = vmatpush.msra.mxu0 %v4310_v34 }
 0x123   : > { %931 = vmatmul.f32.vlgmr.msra.gmra.mxu1 %v3980_v51  ;;  %825 = vmatmul.f32.gmra.mxu0 %v4087_v3 }
 0x124   : > { %3237 = vmatmul.msk.f32.gmra.mxu2 %vm279_vm1, %v4110_v6  ;;  %1381 = vmatpush.msrb.mxu0 %v3320_v52  ;;  %v3305_v52 = vld [vmem:[%s3899_s18 + $0x380] sm:$0xff] }
 0x126   : > { %1382 = vmatpush.msrb.mxu0 %v3318_v33 }
 0x128   : > { %1383 = vmatpush.msrb.mxu0 %v3316_v16  ;;  %v3301_v16 = vld [vmem:[%s3899_s18 + $0x360] sm:$0xff] }
 0x129   : > { %3246 = vmatmul.msk.f32.vlgmr.msra.gmra.mxu3 %vm279_vm1, %v3941_v35 }
 0x12b   : > { %934 = vmatmul.f32.gmra.mxu1 %v4009_v56  ;;  %828 = vmatmul.f32.gmra.mxu0 %v4115_v7 }
 0x12c   : > { %3238 = vmatmul.msk.f32.gmra.mxu2 %vm279_vm1, %v4138_v10 }
 0x130   : > { %v627_v51 = vpop.f32.mrf.mxu1 }
 0x131   : > { %3247 = vmatmul.msk.f32.gmra.mxu3 %vm279_vm1, %v3972_v48 }
 0x133   : > { %937 = vmatmul.f32.gmra.mxu1 %v4031_v59  ;;  %831 = vmatmul.f32.gmra.mxu0 %v4143_v11 }
 0x134   : > { %3239 = vmatmul.msk.f32.gmra.mxu2 %vm279_vm1, %v4160_v13 }
 0x138   : > { %v630_v35 = vpop.f32.mrf.mxu1 }
 0x139   : > { %3248 = vmatmul.msk.f32.gmra.mxu3 %vm279_vm1, %v4003_v55 }
 0x13b   : > { %940 = vmatmul.f32.gmra.mxu1 %v4059_v63  ;;  %834 = vmatmul.f32.gmra.mxu0 %v4165_v14 }
 0x13c   : > { %v686_v48 = vpop.f32.mrf.mxu3  ;;  %3240 = vmatmul.msk.f32.gmra.mxu2 %vm279_vm1, %v4188_v17 }
 0x13d   : > { %v687_v56 = vadd.f32 %v686_v48, %v627_v51 }
 0x13f   : > { %728 = vst [vmem:[%s4445_s30] sm:$0xff] %v687_v56 }
 0x140   : > { %v633_v55 = vpop.f32.mrf.mxu1 }
 0x141   : > { %3249 = vmatmul.msk.f32.gmra.mxu3 %vm279_vm1, %v4026_v58 }
 0x143   : > { %943 = vmatmul.f32.gmra.mxu1 %v4087_v3  ;;  %837 = vmatmul.f32.gmra.mxu0 %v4193_v18 }
 0x144   : > { %v689_v59 = vpop.f32.mrf.mxu3  ;;  %3241 = vmatmul.msk.f32.gmra.mxu2 %vm279_vm1, %v4210_v20 }
 0x145   : > { %v690_v5 = vadd.f32 %v689_v59, %v630_v35  ;;  %v3315_v35 = vld [vmem:[%s3899_s18 + $0x3d0] sm:$0xff]  ;;  %v3332_v59 = vld [vmem:[%s3899_s18 + $0x458] sm:$0xff] }
 0x146   : > { %1265 = vmatpush.msrb.mxu1 %v3315_v35 }
 0x147   : > { %729 = vst [vmem:[%s4445_s30 + $0x8] sm:$0xff] %v690_v5 }
 0x148   : > { %v636_v63 = vpop.f32.mrf.mxu1 }
 0x149   : > { %3250 = vmatmul.msk.f32.gmra.mxu3 %vm279_vm1, %v4054_v62 }
 0x14b   : > { %946 = vmatmul.f32.gmra.mxu1 %v4115_v7  ;;  %840 = vmatmul.f32.gmra.mxu0 %v4215_v21 }
 0x14c   : > { %v692_v58 = vpop.f32.mrf.mxu3  ;;  %3242 = vmatmul.msk.f32.gmra.mxu2 %vm279_vm1, %v4253_v27 }
 0x14d   : > { %v693_v8 = vadd.f32 %v692_v58, %v633_v55  ;;  %v3314_v55 = vld [vmem:[%s3899_s18 + $0x3c8] sm:$0xff] }
 0x14e   : > { %1384 = vmatpush.msrb.mxu0 %v3314_v55 }
 0x14f   : > { %730 = vst [vmem:[%s4445_s30 + $0x10] sm:$0xff] %v693_v8 }
 0x150   : > { %v639_v3 = vpop.f32.mrf.mxu1 }
 0x151   : > { %3251 = vmatmul.msk.f32.gmra.mxu3 %vm279_vm1, %v4081_v2 }
 0x153   : > { %949 = vmatmul.f32.gmra.mxu1 %v4143_v11  ;;  %843 = vmatmul.f32.gmra.mxu0 %v4265_v29 }
 0x154   : > { %v695_v62 = vpop.f32.mrf.mxu3  ;;  %3243 = vmatmul.msk.f32.gmra.mxu2 %vm279_vm1, %v5877_v19 }
 0x155   : > { %v696_v12 = vadd.f32 %v695_v62, %v636_v63  ;;  %v3331_v62 = vld [vmem:[%s3899_s18 + $0x450] sm:$0xff] }
 0x156   : > { %1332 = vmatpush.msrb.mxu3 %v3331_v62 }
 0x157   : > { %731 = vst [vmem:[%s4445_s30 + $0x18] sm:$0xff] %v696_v12  ;;  %v3312_v12 = vld [vmem:[%s3899_s18 + $0x3b8] sm:$0xff] }
 0x158   : > { %v642_v7 = vpop.f32.mrf.mxu1  ;;  %1385 = vmatpush.msrb.mxu0 %v3312_v12  ;;  %v3297_v12 = vld [vmem:[%s3899_s18 + $0x340] sm:$0xff] }
 0x159   : > { %3252 = vmatmul.msk.f32.gmra.mxu3 %vm279_vm1, %v4110_v6 }
 0x15b   : > { %952 = vmatmul.f32.gmra.mxu1 %v4165_v14  ;;  %846 = vmatmul.f32.gmra.mxu0 %v4283_v31 }
 0x15c   : > { %v698_v2 = vpop.f32.mrf.mxu3  ;;  %3244 = vmatmul.msk.f32.gmra.mxu2 %vm279_vm1, %v5879_v25 }
 0x15d   : > { %v699_v15 = vadd.f32 %v698_v2, %v639_v3  ;;  %v3313_v3 = vld [vmem:[%s3899_s18 + $0x3c0] sm:$0xff] }
 0x15e   : > { %1266 = vmatpush.msrb.mxu1 %v3313_v3 }
 0x15f   : > { %732 = vst [vmem:[%s4445_s30 + $0x20] sm:$0xff] %v699_v15 }
 0x160   : > { %v645_v11 = vpop.f32.mrf.mxu1 }
 0x161   : > { %3253 = vmatmul.msk.f32.gmra.mxu3 %vm279_vm1, %v4138_v10 }
 0x163   : > { %955 = vmatmul.f32.gmra.mxu1 %v4193_v18  ;;  %849 = vmatmul.f32.gmra.mxu0 %v5878_v24 }
 0x164   : > { %v701_v6 = vpop.f32.mrf.mxu3 }
 0x165   : > { %v702_v22 = vadd.f32 %v701_v6, %v642_v7 }
 0x167   : > { %733 = vst [vmem:[%s4445_s30 + $0x28] sm:$0xff] %v702_v22  ;;  %v3311_v22 = vld [vmem:[%s3899_s18 + $0x3b0] sm:$0xff] }
 0x168   : > { %v648_v14 = vpop.f32.mrf.mxu1  ;;  %1267 = vmatpush.msrb.mxu1 %v3311_v22 }
 0x169   : > { %3254 = vmatmul.msk.f32.gmra.mxu3 %vm279_vm1, %v4160_v13 }
 0x16b   : > { %958 = vmatmul.f32.gmra.mxu1 %v4215_v21  ;;  %852 = vmatmul.f32.gmra.mxu0 %v5880_v28 }
 0x16c   : > { %v704_v10 = vpop.f32.mrf.mxu3 }
 0x16d   : > { %v705_v26 = vadd.f32 %v704_v10, %v645_v11 }
 0x16f   : > { %734 = vst [vmem:[%s4445_s30 + $0x30] sm:$0xff] %v705_v26 }
 0x170   : > { %v651_v18 = vpop.f32.mrf.mxu1 }
 0x171   : > { %3255 = vmatmul.msk.f32.gmra.mxu3 %vm279_vm1, %v4188_v17 }
 0x173   : > { %961 = vmatmul.f32.gmra.mxu1 %v4265_v29 }
 0x174   : > { %v707_v13 = vpop.f32.mrf.mxu3 }
 0x175   : > { %v708_v34 = vadd.f32 %v707_v13, %v648_v14  ;;  %v3310_v14 = vld [vmem:[%s3899_s18 + $0x3a8] sm:$0xff] }
 0x176   : > { %v873_v44 = vpop.f32.mrf.mxu2  ;;  %1386 = vmatpush.msrb.mxu0 %v3310_v14 }
 0x177   : > { %735 = vst [vmem:[%s4445_s30 + $0x38] sm:$0xff] %v708_v34  ;;  %v3309_v34 = vld [vmem:[%s3899_s18 + $0x3a0] sm:$0xff] }
 0x178   : > { %v654_v46 = vpop.f32.mrf.mxu1  ;;  %1268 = vmatpush.msrb.mxu1 %v3309_v34 }
 0x179   : > { %3256 = vmatmul.msk.f32.gmra.mxu3 %vm279_vm1, %v4210_v20 }
 0x17b   : > { %964 = vmatmul.f32.gmra.mxu1 %v4283_v31  ;;  %v3336_v31 = vld [vmem:[%s3899_s18 + $0x478] sm:$0xf] }
 0x17c   : > { %v710_v38 = vpop.f32.mrf.mxu3  ;;  %3352 = vmatpush.msk.msrb.mxu2 %vm322_vm0, %v3336_v31  ;;  %v3306_v31 = vld [vmem:[%s3899_s18 + $0x388] sm:$0xff] }
 0x17d   : > { %v711_v21 = vadd.f32 %v710_v38, %v651_v18  ;;  %v3308_v38 = vld [vmem:[%s3899_s18 + $0x398] sm:$0xff] }
 0x17e   : > { %v876_v43 = vpop.f32.mrf.mxu2  ;;  %1449 = vmatpush.msrb.mxu2 %v3334_v45  ;;  %1387 = vmatpush.msrb.mxu0 %v3308_v38  ;;  %v3293_v38 = vld [vmem:[%s3899_s18 + $0x320] sm:$0xff] }
 0x17f   : > { %736 = vst [vmem:[%s4445_s30 + $0x40] sm:$0xff] %v711_v21 }
 0x180   : > { %v657_v17 = vpop.f32.mrf.mxu1  ;;  %1450 = vmatpush.msrb.mxu2 %v3332_v59  ;;  %1388 = vmatpush.msrb.mxu0 %v3306_v31  ;;  %v4575_v31 = vld [vmem:[%s5837_s0 + $0x8] sm:$0xff] }
 0x181   : > { %3257 = vmatmul.msk.f32.gmra.mxu3 %vm279_vm1, %v4253_v27  ;;  %v814_v27 = vpop.f32.mrf.mxu0 }
 0x182   : > { %v874_v32 = vadd.f32 %v873_v44, %v814_v27  ;;  %v3328_v27 = vld [vmem:[%s3899_s18 + $0x438] sm:$0xff] }
 0x183   : > { %967 = vmatmul.f32.gmra.mxu1 %v5878_v24  ;;  %v3330_v24 = vld [vmem:[%s3899_s18 + $0x448] sm:$0xff] }
 0x184   : > { %v713_v42 = vpop.f32.mrf.mxu3  ;;  %1091 = vmatmul.f32.vlgmr.msra.gmra.mxu0 %v874_v32  ;;  %1451 = vmatpush.msrb.mxu2 %v3330_v24  ;;  %v3295_v24 = vld [vmem:[%s3899_s18 + $0x330] sm:$0xff] }
 0x185   : > { %v714_v49 = vadd.f32 %v713_v42, %v654_v46  ;;  %v3329_v46 = vld [vmem:[%s3899_s18 + $0x440] sm:$0xff] }
 0x186   : > { %1333 = vmatpush.msrb.mxu3 %v3329_v46  ;;  %1452 = vmatpush.msrb.mxu2 %v3328_v27  ;;  %v4582_v27 = vld [vmem:[%s5838_s1 + $0xb8] sm:$0xf] }
 0x187   : > { %737 = vst [vmem:[%s4445_s30 + $0x48] sm:$0xff] %v714_v49  ;;  %v879_v57 = vpop.f32.mrf.mxu2 }
 0x188   : > { %v660_v20 = vpop.f32.mrf.mxu1 }
 0x189   : > { %3258 = vmatmul.msk.f32.gmra.mxu3 %vm279_vm1, %v5877_v19  ;;  %v817_v37 = vpop.f32.mrf.mxu0 }
 0x18a   : > { %v877_v40 = vadd.f32 %v876_v43, %v817_v37  ;;  %v3327_v37 = vld [vmem:[%s3899_s18 + $0x430] sm:$0xff]  ;;  %v3304_v43 = vld [vmem:[%s3899_s18 + $0x378] sm:$0xff] }
 0x18b   : > { %970 = vmatmul.f32.gmra.mxu1 %v5880_v28  ;;  %1334 = vmatpush.msrb.mxu3 %v3327_v37  ;;  %v4609_v37 = vld [vmem:[%s5837_s0] sm:$0xff] }
 0x18c   : > { %v716_v29 = vpop.f32.mrf.mxu3  ;;  %1094 = vmatmul.f32.gmra.mxu0 %v877_v40 }
 0x18d   : > { %v717_v30 = vadd.f32 %v716_v29, %v657_v17  ;;  %1389 = vmatpush.msrb.mxu0 %v3304_v43  ;;  %v4615_v43 = vld [vmem:[%s5837_s0 + $0x18] sm:$0xff] }
 0x18f   : > { %738 = vst [vmem:[%s4445_s30 + $0x50] sm:$0xff] %v717_v30  ;;  %v882_v56 = vpop.f32.mrf.mxu2  ;;  %v3307_v30 = vld [vmem:[%s3899_s18 + $0x390] sm:$0xff] }
 0x190   : > { %v663_v41 = vpop.f32.mrf.mxu1  ;;  %1269 = vmatpush.msrb.mxu1 %v3307_v30  ;;  %v3290_v30 = vld [vmem:[%s3899_s18 + $0x308] sm:$0xff] }
 0x191   : > { %3259 = vmatmul.msk.f32.gmra.mxu3 %vm279_vm1, %v5879_v25  ;;  %v820_v53 = vpop.f32.mrf.mxu0 }
 0x192   : > { %v880_v0 = vadd.f32 %v879_v57, %v820_v53  ;;  %1270 = vmatpush.msrb.mxu1 %v3305_v52  ;;  %v3302_v53 = vld [vmem:[%s3899_s18 + $0x368] sm:$0xff]  ;;  %v4603_v52 = vld [vmem:[%s5838_s1 + $0xa0] sm:$0xff] }
 0x193   : > { %v3326_v57 = vld [vmem:[%s3899_s18 + $0x428] sm:$0xff]  ;;  %1390 = vmatpush.msrb.mxu0 %v3302_v53 }
 0x194   : > { %v719_v50 = vpop.f32.mrf.mxu3  ;;  %1097 = vmatmul.f32.gmra.mxu0 %v880_v0  ;;  %1453 = vmatpush.msrb.mxu2 %v3326_v57  ;;  %v3325_v0 = vld [vmem:[%s3899_s18 + $0x420] sm:$0xff]  ;;  %v4654_v53 = vld [vmem:[%s5838_s1 + $0x88] sm:$0xff] }
 0x195   : > { %v720_v36 = vadd.f32 %v719_v50, %v660_v20  ;;  %1335 = vmatpush.msrb.mxu3 %v3325_v0  ;;  %v4680_v0 = vld [vmem:[%s5838_s1 + $0x58] sm:$0xff] }
 0x197   : > { %739 = vst [vmem:[%s4445_s30 + $0x58] sm:$0xff] %v720_v36  ;;  %v885_v2 = vpop.f32.mrf.mxu2 }
 0x198   : > { %v666_v54 = vpop.f32.mrf.mxu1 }
 0x199   : > { %v823_v48 = vpop.f32.mrf.mxu0 }
 0x19a   : > { %v883_v5 = vadd.f32 %v882_v56, %v823_v48  ;;  %v3299_v56 = vld [vmem:[%s3899_s18 + $0x350] sm:$0xff] }
 0x19c   : > { %v722_v61 = vpop.f32.mrf.mxu3  ;;  %1100 = vmatmul.f32.gmra.mxu0 %v883_v5  ;;  %v3298_v5 = vld [vmem:[%s3899_s18 + $0x348] sm:$0xff] }
 0x19d   : > { %v723_v4 = vadd.f32 %v722_v61, %v663_v41 }
 0x19f   : > { %740 = vst [vmem:[%s4445_s30 + $0x60] sm:$0xff] %v723_v4  ;;  %v888_v10 = vpop.f32.mrf.mxu2 }
 0x1a0   : > { %v932_v1 = vpop.f32.mrf.mxu1 }
 0x1a1   : > { %v826_v7 = vpop.f32.mrf.mxu0 }
 0x1a2   : > { %v886_v15 = vadd.f32 %v885_v2, %v826_v7  ;;  %v3323_v7 = vld [vmem:[%s3899_s18 + $0x410] sm:$0xff]  ;;  %v3296_v2 = vld [vmem:[%s3899_s18 + $0x338] sm:$0xff] }
 0x1a3   : > { %1336 = vmatpush.msrb.mxu3 %v3323_v7 }
 0x1a4   : > { %v725_v23 = vpop.f32.mrf.mxu3  ;;  %1103 = vmatmul.f32.gmra.mxu0 %v886_v15 }
 0x1a5   : > { %v726_v51 = vadd.f32 %v725_v23, %v666_v54  ;;  %v3303_v54 = vld [vmem:[%s3899_s18 + $0x370] sm:$0xff] }
 0x1a6   : > { %1271 = vmatpush.msrb.mxu1 %v3303_v54 }
 0x1a7   : > { %741 = vst [vmem:[%s4445_s30 + $0x68] sm:$0xff] %v726_v51  ;;  %v891_v17 = vpop.f32.mrf.mxu2 }
 0x1a8   : > { %v935_v63 = vpop.f32.mrf.mxu1  ;;  %1272 = vmatpush.msrb.mxu1 %v3301_v16  ;;  %v4672_v16 = vld [vmem:[%s5837_s0 + $0x28] sm:$0xff] }
 0x1a9   : > { %v829_v25 = vpop.f32.mrf.mxu0 }
 0x1aa   : > { %v889_v26 = vadd.f32 %v888_v10, %v829_v25  ;;  %1273 = vmatpush.msrb.mxu1 %v3299_v56  ;;  %v3294_v25 = vld [vmem:[%s3899_s18 + $0x328] sm:$0xff] }
 0x1ab   : > { %v3322_v10 = vld [vmem:[%s3899_s18 + $0x408] sm:$0xff] }
 0x1ac   : > { %v991_v58 = vpop.f32.mrf.mxu3  ;;  %1106 = vmatmul.f32.gmra.mxu0 %v889_v26  ;;  %1274 = vmatpush.msrb.mxu1 %v3297_v12  ;;  %v4737_v12 = vld [vmem:[%s5838_s1 + $0x28] sm:$0xff] }
 0x1ad   : > { %v992_v8 = vadd.f32 %v991_v58, %v932_v1  ;;  %v3300_v1 = vld [vmem:[%s3899_s18 + $0x358] sm:$0xff] }
 0x1ae   : > { %1391 = vmatpush.msrb.mxu0 %v3300_v1  ;;  %1275 = vmatpush.msrb.mxu1 %v3295_v24  ;;  %v4686_v1 = vld [vmem:[%s5838_s1 + $0x80] sm:$0xff] }
 0x1af   : > { %3261 = vmatmul.msk.f32.vlgmr.msra.gmra.mxu2 %vm279_vm1, %v992_v8  ;;  %v894_v32 = vpop.f32.mrf.mxu2  ;;  %v4784_v24 = vld [vmem:[%s5838_s1] sm:$0xff] }
 0x1b0   : > { %v938_v11 = vpop.f32.mrf.mxu1  ;;  %1392 = vmatpush.msrb.mxu0 %v3298_v5  ;;  %1276 = vmatpush.msrb.mxu1 %v3293_v38  ;;  %v4717_v5 = vld [vmem:[%s5837_s0 + $0x38] sm:$0xff] }
 0x1b1   : > { %v832_v21 = vpop.f32.mrf.mxu0 }
 0x1b2   : > { %v892_v42 = vadd.f32 %v891_v17, %v832_v21  ;;  %1393 = vmatpush.msrb.mxu0 %v3296_v2  ;;  %v3321_v21 = vld [vmem:[%s3899_s18 + $0x400] sm:$0xff]  ;;  %v3292_v17 = vld [vmem:[%s3899_s18 + $0x318] sm:$0xff] }
 0x1b3   : > { %1337 = vmatpush.msrb.mxu3 %v3321_v21  ;;  %v4744_v2 = vld [vmem:[%s5838_s1 + $0x20] sm:$0xff] }
 0x1b4   : > { %v994_v19 = vpop.f32.mrf.mxu3  ;;  %1109 = vmatmul.f32.gmra.mxu0 %v892_v42  ;;  %3338 = vmatmul.msk.f32.vlgmr.msrb.gmra.mxu3 %vm279_vm1, %v4575_v31 }
 0x1b5   : > { %v995_v6 = vadd.f32 %v994_v19, %v935_v63  ;;  %v3324_v63 = vld [vmem:[%s3899_s18 + $0x418] sm:$0xff]  ;;  %1394 = vmatpush.msrb.mxu0 %v3294_v25  ;;  %3367 = vmatpush.msk.msra.mxu3 %vm322_vm0, %v4582_v27  ;;  %v4790_v25 = vld [vmem:[%s5837_s0 + $0x40] sm:$0xff] }
 0x1b6   : > { %1454 = vmatpush.msrb.mxu2 %v3324_v63 }
 0x1b7   : > { %3262 = vmatmul.msk.f32.gmra.mxu2 %vm279_vm1, %v995_v6  ;;  %v897_v40 = vpop.f32.mrf.mxu2  ;;  %1395 = vmatpush.msrb.mxu0 %v3292_v17 }
 0x1b8   : > { %v941_v18 = vpop.f32.mrf.mxu1  ;;  %1455 = vmatpush.msrb.mxu2 %v3322_v10  ;;  %v4796_v10 = vld [vmem:[%s5837_s0 + $0x58] sm:$0xff] }
 0x1b9   : > { %v835_v44 = vpop.f32.mrf.mxu0  ;;  %1396 = vmatpush.msrb.mxu0 %v3290_v30 }
 0x1ba   : > { %v895_v41 = vadd.f32 %v894_v32, %v835_v44  ;;  %v4589_v32 = vld [vmem:[%s5838_s1 + $0xb0] sm:$0xff] }
 0x1bb   : > { %1609 = vmatpush.msra.mxu3 %v4589_v32 }
 0x1bc   : > { %v997_v28 = vpop.f32.mrf.mxu3  ;;  %1112 = vmatmul.f32.gmra.mxu0 %v895_v41  ;;  %3339 = vmatmul.msk.f32.gmra.mxu3 %vm279_vm1, %v4615_v43 }
 0x1bd   : > { %v998_v13 = vadd.f32 %v997_v28, %v938_v11 }
 0x1bf   : > { %3263 = vmatmul.msk.f32.gmra.mxu2 %vm279_vm1, %v998_v13  ;;  %v900_v60 = vpop.f32.mrf.mxu2 }
 0x1c0   : > { %v944_v49 = vpop.f32.mrf.mxu1 }
 0x1c1   : > { %v838_v39 = vpop.f32.mrf.mxu0 }
 0x1c2   : > { %v898_v61 = vadd.f32 %v897_v40, %v838_v39  ;;  %v4623_v39 = vld [vmem:[%s5838_s1 + $0x78] sm:$0xff] }
 0x1c3   : > { %v4629_v40 = vld [vmem:[%s5838_s1 + $0x98] sm:$0xff] }
 0x1c4   : > { %v1000_v20 = vpop.f32.mrf.mxu3  ;;  %1115 = vmatmul.f32.gmra.mxu0 %v898_v61  ;;  %v4635_v61 = vld [vmem:[%s5838_s1 + $0x70] sm:$0xff]  ;;  %3340 = vmatmul.msk.f32.gmra.mxu3 %vm279_vm1, %v4672_v16 }
 0x1c5   : > { %v1001_v29 = vadd.f32 %v1000_v20, %v941_v18  ;;  %v3291_v20 = vld [vmem:[%s3899_s18 + $0x310] sm:$0xff] }
 0x1c6   : > { %1277 = vmatpush.msrb.mxu1 %v3291_v20 }
 0x1c7   : > { %3264 = vmatmul.msk.f32.gmra.mxu2 %vm279_vm1, %v1001_v29  ;;  %v903_v59 = vpop.f32.mrf.mxu2 }
 0x1c8   : > { %v947_v50 = vpop.f32.mrf.mxu1 }
 0x1c9   : > { %v841_v9 = vpop.f32.mrf.mxu0 }
 0x1ca   : > { %v901_v23 = vadd.f32 %v900_v60, %v841_v9  ;;  %v4660_v9 = vld [vmem:[%s5838_s1 + $0x60] sm:$0xff]  ;;  %v4666_v60 = vld [vmem:[%s5837_s0 + $0x10] sm:$0xff] }
 0x1cc   : > { %v1003_v36 = vpop.f32.mrf.mxu3  ;;  %1118 = vmatmul.f32.gmra.mxu0 %v901_v23  ;;  %3341 = vmatmul.msk.f32.gmra.mxu3 %vm279_vm1, %v4717_v5 }
 0x1cd   : > { %v1004_v47 = vadd.f32 %v1003_v36, %v944_v49  ;;  %v4595_v36 = vld [vmem:[%s5838_s1 + $0xa8] sm:$0xff] }
 0x1ce   : > { %1610 = vmatpush.msra.mxu3 %v4595_v36 }
 0x1cf   : > { %3265 = vmatmul.msk.f32.gmra.mxu2 %vm279_vm1, %v1004_v47  ;;  %v906_v11 = vpop.f32.mrf.mxu2  ;;  %v3289_v47 = vld [vmem:[%s3899_s18 + $0x300] sm:$0xff] }
 0x1d0   : > { %v950_v4 = vpop.f32.mrf.mxu1  ;;  %1278 = vmatpush.msrb.mxu1 %v3289_v47  ;;  %1611 = vmatpush.msra.mxu3 %v4603_v52 }
 0x1d1   : > { %v844_v55 = vpop.f32.mrf.mxu0  ;;  %1279 = vmatmul.f32.vlgmr.msrb.gmra.mxu1 %v4609_v37 }
 0x1d2   : > { %v904_v58 = vadd.f32 %v903_v59, %v844_v55  ;;  %1541 = vmatpush.msra.mxu1 %v4623_v39  ;;  %1612 = vmatpush.msra.mxu3 %v4629_v40  ;;  %v4705_v55 = vld [vmem:[%s5838_s1 + $0x40] sm:$0xff] }
 0x1d3   : > { %v4711_v59 = vld [vmem:[%s5837_s0 + $0x20] sm:$0xff] }
 0x1d4   : > { %v1006_v33 = vpop.f32.mrf.mxu3  ;;  %1121 = vmatmul.f32.gmra.mxu0 %v904_v58  ;;  %1542 = vmatpush.msra.mxu1 %v4635_v61  ;;  %v4725_v58 = vld [vmem:[%s5838_s1 + $0x38] sm:$0xff] }
 0x1d5   : > { %v1007_v45 = vadd.f32 %v1006_v33, %v947_v50  ;;  %v4641_v33 = vld [vmem:[%s5838_s1 + $0x90] sm:$0xff] }
 0x1d6   : > { %1613 = vmatpush.msra.mxu3 %v4641_v33 }
 0x1d7   : > { %3266 = vmatmul.msk.f32.gmra.mxu2 %vm279_vm1, %v1007_v45  ;;  %v909_v18 = vpop.f32.mrf.mxu2  ;;  %v4647_v45 = vld [vmem:[%s5838_s1 + $0x68] sm:$0xff] }
 0x1d8   : > { %v953_v51 = vpop.f32.mrf.mxu1  ;;  %1543 = vmatpush.msra.mxu1 %v4647_v45  ;;  %1614 = vmatpush.msra.mxu3 %v4654_v53 }
 0x1d9   : > { %v847_v15 = vpop.f32.mrf.mxu0  ;;  %1282 = vmatmul.f32.gmra.mxu1 %v4666_v60 }
 0x1da   : > { %v907_v19 = vadd.f32 %v906_v11, %v847_v15  ;;  %1544 = vmatpush.msra.mxu1 %v4660_v9  ;;  %1615 = vmatpush.msra.mxu3 %v4686_v1  ;;  %v4750_v15 = vld [vmem:[%s5837_s0 + $0x30] sm:$0xff]  ;;  %v4756_v11 = vld [vmem:[%s5837_s0 + $0x48] sm:$0xff] }
 0x1db   : > { %3342 = vmatmul.msk.f32.gmra.mxu3 %vm279_vm1, %v4756_v11 }
 0x1dc   : > { %v1009_v35 = vpop.f32.mrf.mxu3  ;;  %1124 = vmatmul.f32.gmra.mxu0 %v907_v19  ;;  %1545 = vmatpush.msra.mxu1 %v4680_v0  ;;  %v4764_v19 = vld [vmem:[%s5838_s1 + $0x18] sm:$0xff] }
 0x1dd   : > { %v1010_v48 = vadd.f32 %v1009_v35, %v950_v4 }
 0x1df   : > { %3267 = vmatmul.msk.f32.gmra.mxu2 %vm279_vm1, %v1010_v48  ;;  %v912_v49 = vpop.f32.mrf.mxu2  ;;  %v4698_v48 = vld [vmem:[%s5838_s1 + $0x48] sm:$0xff] }
 0x1e0   : > { %v956_v8 = vpop.f32.mrf.mxu1 }
 0x1e1   : > { %v850_v26 = vpop.f32.mrf.mxu0  ;;  %1285 = vmatmul.f32.gmra.mxu1 %v4711_v59 }
 0x1e2   : > { %v910_v28 = vadd.f32 %v909_v18, %v850_v26  ;;  %v4806_v18 = vld [vmem:[%s5837_s0 + $0x50] sm:$0xff] }
 0x1e3   : > { %3343 = vmatmul.msk.f32.gmra.mxu3 %vm279_vm1, %v4796_v10 }
 0x1e4   : > { %v1012_v3 = vpop.f32.mrf.mxu3  ;;  %1127 = vmatmul.f32.gmra.mxu0 %v910_v28  ;;  %v4812_v28 = vld [vmem:[%s5837_s0 + $0x68] sm:$0xff] }
 0x1e5   : > { %v1013_v62 = vadd.f32 %v1012_v3, %v953_v51  ;;  %v4692_v51 = vld [vmem:[%s5838_s1 + $0x50] sm:$0xff] }
 0x1e6   : > { %1546 = vmatpush.msra.mxu1 %v4692_v51  ;;  %v4731_v3 = vld [vmem:[%s5838_s1 + $0x30] sm:$0xff] }
 0x1e7   : > { %3268 = vmatmul.msk.f32.gmra.mxu2 %vm279_vm1, %v1013_v62 }
 0x1e8   : > { %v959_v6 = vpop.f32.mrf.mxu1  ;;  %1547 = vmatpush.msra.mxu1 %v4698_v48 }
 0x1e9   : > { %v853_v42 = vpop.f32.mrf.mxu0  ;;  %1288 = vmatmul.f32.gmra.mxu1 %v4750_v15 }
 0x1ea   : > { %v913_v29 = vadd.f32 %v912_v49, %v853_v42  ;;  %1548 = vmatpush.msra.mxu1 %v4705_v55  ;;  %v4839_v42 = vld [vmem:[%s5837_s0 + $0x70] sm:$0xff]  ;;  %v4845_v49 = vld [vmem:[%s5837_s0 + $0x88] sm:$0xff] }
 0x1eb   : > { %3344 = vmatmul.msk.f32.gmra.mxu3 %vm279_vm1, %v4812_v28 }
 0x1ec   : > { %v1015_v22 = vpop.f32.mrf.mxu3  ;;  %1130 = vmatmul.f32.gmra.mxu0 %v913_v29  ;;  %1549 = vmatpush.msra.mxu1 %v4725_v58 }
 0x1ed   : > { %v1016_v14 = vadd.f32 %v1015_v22, %v956_v8  ;;  %v4776_v22 = vld [vmem:[%s5838_s1 + $0x8] sm:$0xff] }
 0x1ee   : > { %1550 = vmatpush.msra.mxu1 %v4731_v3 }
 0x1ef   : > { %3269 = vmatmul.msk.f32.gmra.mxu2 %vm279_vm1, %v1016_v14 }
 0x1f0   : > { %v962_v34 = vpop.f32.mrf.mxu1  ;;  %1551 = vmatpush.msra.mxu1 %v4737_v12 }
 0x1f1   : > { %1291 = vmatmul.f32.gmra.mxu1 %v4790_v25 }
 0x1f2   : > { %1552 = vmatpush.msra.mxu1 %v4744_v2 }
 0x1f4   : > { %v1018_v13 = vpop.f32.mrf.mxu3  ;;  %1397 = vmatmul.f32.vlgmr.msrb.gmra.mxu0 %v4609_v37  ;;  %1553 = vmatpush.msra.mxu1 %v4764_v19 }
 0x1f5   : > { %v1019_v46 = vadd.f32 %v1018_v13, %v959_v6  ;;  %v4770_v6 = vld [vmem:[%s5838_s1 + $0x10] sm:$0xff] }
 0x1f6   : > { %1554 = vmatpush.msra.mxu1 %v4770_v6 }
 0x1f7   : > { %3270 = vmatmul.msk.f32.gmra.mxu2 %vm279_vm1, %v1019_v46  ;;  %v4828_v46 = vld [vmem:[%s5837_s0 + $0x78] sm:$0xff] }
 0x1f8   : > { %v965_v50 = vpop.f32.mrf.mxu1  ;;  %1555 = vmatpush.msra.mxu1 %v4776_v22  ;;  %3345 = vmatmul.msk.f32.gmra.mxu3 %vm279_vm1, %v4828_v46 }
 0x1f9   : > { %1294 = vmatmul.f32.gmra.mxu1 %v4806_v18 }
 0x1fa   : > { %1556 = vmatpush.msra.mxu1 %v4784_v24 }
 0x1fc   : > { %v1021_v44 = vpop.f32.mrf.mxu3  ;;  %1400 = vmatmul.f32.gmra.mxu0 %v4666_v60 }
 0x1fd   : > { %v1022_v41 = vadd.f32 %v1021_v44, %v962_v34  ;;  %v4822_v34 = vld [vmem:[%s5837_s0 + $0x60] sm:$0xff] }
 0x1fe   : > { %v4856_v44 = vld [vmem:[%s5837_s0 + $0x80] sm:$0xff] }
 0x1ff   : > { %3271 = vmatmul.msk.f32.gmra.mxu2 %vm279_vm1, %v1022_v41  ;;  %v4862_v41 = vld [vmem:[%s5837_s0 + $0x98] sm:$0xff] }
 0x200   : > { %v968_v57 = vpop.f32.mrf.mxu1  ;;  %3346 = vmatmul.msk.f32.gmra.mxu3 %vm279_vm1, %v4845_v49 }
 0x201   : > { %v1092_v56 = vpop.f32.mrf.mxu0  ;;  %1297 = vmatmul.f32.gmra.mxu1 %v4822_v34 }
 0x204   : > { %v1024_v54 = vpop.f32.mrf.mxu3  ;;  %1403 = vmatmul.f32.gmra.mxu0 %v4711_v59 }
 0x205   : > { %v1025_v4 = vadd.f32 %v1024_v54, %v965_v50 }
 0x207   : > { %3272 = vmatmul.msk.f32.gmra.mxu2 %vm279_vm1, %v1025_v4  ;;  %v4873_v4 = vld [vmem:[%s5837_s0 + $0x90] sm:$0xff] }
 0x208   : > { %v971_v63 = vpop.f32.mrf.mxu1  ;;  %3347 = vmatmul.msk.f32.gmra.mxu3 %vm279_vm1, %v4862_v41 }
 0x209   : > { %v1095_v7 = vpop.f32.mrf.mxu0  ;;  %1300 = vmatmul.f32.gmra.mxu1 %v4839_v42 }
 0x20c   : > { %v1027_v23 = vpop.f32.mrf.mxu3  ;;  %1406 = vmatmul.f32.gmra.mxu0 %v4750_v15 }
 0x20d   : > { %v1028_v35 = vadd.f32 %v1027_v23, %v968_v57  ;;  %v4879_v57 = vld [vmem:[%s5837_s0 + $0xa8] sm:$0xff] }
 0x20f   : > { %3273 = vmatmul.msk.f32.gmra.mxu2 %vm279_vm1, %v1028_v35 }
 0x210   : > { %3348 = vmatmul.msk.f32.gmra.mxu3 %vm279_vm1, %v4879_v57 }
 0x211   : > { %v1098_v14 = vpop.f32.mrf.mxu0  ;;  %1303 = vmatmul.f32.gmra.mxu1 %v4856_v44 }
 0x214   : > { %v1030_v8 = vpop.f32.mrf.mxu3  ;;  %1409 = vmatmul.f32.gmra.mxu0 %v4790_v25 }
 0x215   : > { %v1031_v62 = vadd.f32 %v1030_v8, %v971_v63  ;;  %v4890_v63 = vld [vmem:[%s5837_s0 + $0xa0] sm:$0xff]  ;;  %v4896_v8 = vld [vmem:[%s5837_s0 + $0xb8] sm:$0xff] }
 0x216   : > { %5881 = vst [vmem:[#allocation2_spill] sm:$0xff] %v4896_v8 }
 0x217   : > { %3274 = vmatmul.msk.f32.gmra.mxu2 %vm279_vm1, %v1031_v62 }
 0x218   : > { %3349 = vmatmul.msk.f32.gmra.mxu3 %vm279_vm1, %v4896_v8 }
 0x219   : > { %v1101_v26 = vpop.f32.mrf.mxu0  ;;  %1306 = vmatmul.f32.gmra.mxu1 %v4873_v4 }
 0x21c   : > { %1412 = vmatmul.f32.gmra.mxu0 %v4806_v18 }
 0x21f   : > { %3353 = vmatmul.msk.f32.vlgmr.msrb.gmra.mxu2 %vm279_vm1, %v4575_v31 }
 0x221   : > { %v1104_v13 = vpop.f32.mrf.mxu0  ;;  %1309 = vmatmul.f32.gmra.mxu1 %v4890_v63 }
 0x224   : > { %1415 = vmatmul.f32.gmra.mxu0 %v4822_v34 }
 0x227   : > { %3354 = vmatmul.msk.f32.gmra.mxu2 %vm279_vm1, %v4615_v43 }
 0x229   : > { %v1107_v17 = vpop.f32.mrf.mxu0 }
 0x22c   : > { %1418 = vmatmul.f32.gmra.mxu0 %v4839_v42 }
 0x22f   : > { %3355 = vmatmul.msk.f32.gmra.mxu2 %vm279_vm1, %v4672_v16 }
 0x231   : > { %v1110_v30 = vpop.f32.mrf.mxu0 }
 0x232   : > { %v1151_v38 = vpop.f32.mrf.mxu2 }
 0x233   : > { %v1152_v21 = vadd.f32 %v1151_v38, %v1092_v56  ;;  %v4913_v38 = vld [vmem:[%s5837_s0 + $0xc8] sm:$0xff] }
 0x234   : > { %1421 = vmatmul.f32.gmra.mxu0 %v4856_v44  ;;  %5883 = vst [vmem:[#allocation3_spill] sm:$0xff] %v4913_v38  ;;  %3350 = vmatmul.msk.f32.gmra.mxu3 %vm279_vm1, %v4913_v38 }
 0x235   : > { %3275 = vst [vmem:[%s4445_s30 + $0x70] sm:$0xff] %v1152_v21 }
 0x237   : > { %3356 = vmatmul.msk.f32.gmra.mxu2 %vm279_vm1, %v4717_v5 }
 0x239   : > { %v1113_v54 = vpop.f32.mrf.mxu0 }
 0x23a   : > { %v1154_v20 = vpop.f32.mrf.mxu2 }
 0x23b   : > { %v1155_v29 = vadd.f32 %v1154_v20, %v1095_v7 }
 0x23c   : > { %1424 = vmatmul.f32.gmra.mxu0 %v4873_v4 }
 0x23d   : > { %3276 = vst [vmem:[%s4445_s30 + $0x78] sm:$0xff] %v1155_v29  ;;  %v4924_v29 = vld [vmem:[%s5837_s0 + $0xc0] sm:$0xff] }
 0x23e   : > { %5884 = vst [vmem:[#allocation5_spill] sm:$0xff] %v4924_v29 }
 0x23f   : > { %3357 = vmatmul.msk.f32.gmra.mxu2 %vm279_vm1, %v4756_v11 }
 0x241   : > { %v1116_v56 = vpop.f32.mrf.mxu0 }
 0x242   : > { %v1157_v50 = vpop.f32.mrf.mxu2 }
 0x243   : > { %v1158_v47 = vadd.f32 %v1157_v50, %v1098_v14  ;;  %v4930_v50 = vld [vmem:[%s5837_s0 + $0xd8] sm:$0xff] }
 0x244   : > { %1427 = vmatmul.f32.gmra.mxu0 %v4890_v63  ;;  %5885 = vst [vmem:[#allocation6_spill] sm:$0xff] %v4930_v50  ;;  %3351 = vmatmul.msk.f32.gmra.mxu3 %vm279_vm1, %v4930_v50 }
 0x245   : > { %3277 = vst [vmem:[%s4445_s30 + $0x80] sm:$0xff] %v1158_v47 }
 0x247   : > { %3358 = vmatmul.msk.f32.gmra.mxu2 %vm279_vm1, %v4796_v10 }
 0x249   : > { %v1119_v14 = vpop.f32.mrf.mxu0 }
 0x24a   : > { %v1160_v23 = vpop.f32.mrf.mxu2 }
 0x24b   : > { %v1161_v35 = vadd.f32 %v1160_v23, %v1101_v26  ;;  %v4907_v26 = vld [vmem:[%s5837_s0 + $0xb0] sm:$0xff] }
 0x24c   : > { %5882 = vst [vmem:[#allocation4_spill] sm:$0xff] %v4907_v26  ;;  %1312 = vmatmul.f32.gmra.mxu1 %v4907_v26  ;;  %1430 = vmatmul.f32.gmra.mxu0 %v4907_v26  ;;  %v3423_v26 = vld [vmem:[%s3899_s18 + $0x558] sm:$0xff] }
 0x24d   : > { %3278 = vst [vmem:[%s4445_s30 + $0x88] sm:$0xff] %v1161_v35  ;;  %v4941_v35 = vld [vmem:[%s5837_s0 + $0xd0] sm:$0xff] }
 0x24e   : > { %5886 = vst [vmem:[#allocation7_spill] sm:$0xff] %v4941_v35 }
 0x24f   : > { %3359 = vmatmul.msk.f32.gmra.mxu2 %vm279_vm1, %v4812_v28 }
 0x251   : > { %v1122_v20 = vpop.f32.mrf.mxu0 }
 0x252   : > { %v1163_v62 = vpop.f32.mrf.mxu2 }
 0x253   : > { %v1164_v7 = vadd.f32 %v1163_v62, %v1104_v13 }
 0x254   : > { %1315 = vmatmul.f32.gmra.mxu1 %v4924_v29  ;;  %1433 = vmatmul.f32.gmra.mxu0 %v4924_v29 }
 0x255   : > { %3279 = vst [vmem:[%s4445_s30 + $0x90] sm:$0xff] %v1164_v7 }
 0x257   : > { %3360 = vmatmul.msk.f32.gmra.mxu2 %vm279_vm1, %v4828_v46 }
 0x259   : > { %v1125_v23 = vpop.f32.mrf.mxu0 }
 0x25a   : > { %v1166_v13 = vpop.f32.mrf.mxu2 }
 0x25b   : > { %v1167_v21 = vadd.f32 %v1166_v13, %v1107_v17 }
 0x25c   : > { %1318 = vmatmul.f32.gmra.mxu1 %v4941_v35  ;;  %1436 = vmatmul.f32.gmra.mxu0 %v4941_v35  ;;  %v1280_v35 = vpop.f32.mrf.mxu1 }
 0x25d   : > { %3280 = vst [vmem:[%s4445_s30 + $0x98] sm:$0xff] %v1167_v21 }
 0x25f   : > { %3361 = vmatmul.msk.f32.gmra.mxu2 %vm279_vm1, %v4845_v49 }
 0x261   : > { %v1128_v13 = vpop.f32.mrf.mxu0 }
 0x262   : > { %v1169_v17 = vpop.f32.mrf.mxu2 }
 0x263   : > { %v1170_v47 = vadd.f32 %v1169_v17, %v1110_v30 }
 0x265   : > { %3281 = vst [vmem:[%s4445_s30 + $0xa0] sm:$0xff] %v1170_v47 }
 0x267   : > { %3362 = vmatmul.msk.f32.gmra.mxu2 %vm279_vm1, %v4862_v41 }
 0x269   : > { %v1131_v29 = vpop.f32.mrf.mxu0 }
 0x26a   : > { %v1172_v62 = vpop.f32.mrf.mxu2 }
 0x26b   : > { %v1173_v7 = vadd.f32 %v1172_v62, %v1113_v54 }
 0x26d   : > { %3282 = vst [vmem:[%s4445_s30 + $0xa8] sm:$0xff] %v1173_v7  ;;  %v3443_v7 = vld [vmem:[%s3899_s18 + $0x5f8] sm:$0xf] }
 0x26e   : > { %3459 = vmatpush.msk.msrb.mxu3 %vm322_vm0, %v3443_v7 }
 0x26f   : > { %3363 = vmatmul.msk.f32.gmra.mxu2 %vm279_vm1, %v4879_v57 }
 0x272   : > { %v1175_v30 = vpop.f32.mrf.mxu2 }
 0x273   : > { %v1176_v21 = vadd.f32 %v1175_v30, %v1116_v56  ;;  %v1339_v56 = vpop.f32.mrf.mxu3  ;;  %v1398_v30 = vpop.f32.mrf.mxu0 }
 0x275   : > { %3283 = vst [vmem:[%s4445_s30 + $0xb0] sm:$0xff] %v1176_v21  ;;  %v1340_v21 = vadd.f32 %v1339_v56, %v1280_v35  ;;  %v3426_v35 = vld [vmem:[%s3899_s18 + $0x570] sm:$0xff] }
 0x276   : > { %1729 = vmatpush.msra.mxu0 %v3426_v35 }
 0x277   : > { %3364 = vmatmul.msk.f32.gmra.mxu2 %vm279_vm1, %v4896_v8  ;;  %1557 = vmatmul.f32.vlgmr.msra.gmra.mxu1 %v1340_v21 }
 0x27a   : > { %v1178_v17 = vpop.f32.mrf.mxu2 }
 0x27b   : > { %v1179_v47 = vadd.f32 %v1178_v17, %v1119_v14  ;;  %v1401_v56 = vpop.f32.mrf.mxu0 }
 0x27d   : > { %3284 = vst [vmem:[%s4445_s30 + $0xb8] sm:$0xff] %v1179_v47  ;;  %v3442_v47 = vld [vmem:[%s3899_s18 + $0x5f0] sm:$0xf] }
 0x27e   : > { %3444 = vmatpush.msk.msra.mxu2 %vm322_vm0, %v3442_v47 }
 0x27f   : > { %3365 = vmatmul.msk.f32.gmra.mxu2 %vm279_vm1, %v4913_v38  ;;  %v3440_v38 = vld [vmem:[%s3899_s18 + $0x5e0] sm:$0xff] }
 0x280   : > { %1797 = vmatpush.msra.mxu2 %v3440_v38 }
 0x282   : > { %v1181_v54 = vpop.f32.mrf.mxu2 }
 0x283   : > { %v1182_v62 = vadd.f32 %v1181_v54, %v1122_v20  ;;  %v3427_v20 = vld [vmem:[%s3899_s18 + $0x578] sm:$0xff]  ;;  %v1283_v54 = vpop.f32.mrf.mxu1 }
 0x284   : > { %1847 = vmatpush.msrb.mxu1 %v3427_v20  ;;  %v3424_v20 = vld [vmem:[%s3899_s18 + $0x560] sm:$0xff] }
 0x285   : > { %3285 = vst [vmem:[%s4445_s30 + $0xc0] sm:$0xff] %v1182_v62  ;;  %v1342_v62 = vpop.f32.mrf.mxu3  ;;  %1730 = vmatpush.msra.mxu0 %v3424_v20  ;;  %v3419_v20 = vld [vmem:[%s3899_s18 + $0x538] sm:$0xff] }
 0x286   : > { %v1343_v7 = vadd.f32 %v1342_v62, %v1283_v54  ;;  %v1404_v62 = vpop.f32.mrf.mxu0 }
 0x287   : > { %3366 = vmatmul.msk.f32.gmra.mxu2 %vm279_vm1, %v4930_v50  ;;  %v3441_v50 = vld [vmem:[%s3899_s18 + $0x5e8] sm:$0xff] }
 0x288   : > { %1560 = vmatmul.f32.gmra.mxu1 %v1343_v7  ;;  %1915 = vmatpush.msrb.mxu3 %v3441_v50  ;;  %v3422_v50 = vld [vmem:[%s3899_s18 + $0x550] sm:$0xff] }
 0x289   : > { %1731 = vmatpush.msra.mxu0 %v3422_v50 }
 0x28a   : > { %v1184_v14 = vpop.f32.mrf.mxu2 }
 0x28b   : > { %v1185_v17 = vadd.f32 %v1184_v14, %v1125_v23  ;;  %v3425_v14 = vld [vmem:[%s3899_s18 + $0x568] sm:$0xff] }
 0x28c   : > { %1848 = vmatpush.msrb.mxu1 %v3425_v14  ;;  %v3439_v14 = vld [vmem:[%s3899_s18 + $0x5d8] sm:$0xff] }
 0x28d   : > { %3286 = vst [vmem:[%s4445_s30 + $0xc8] sm:$0xff] %v1185_v17  ;;  %v1286_v17 = vpop.f32.mrf.mxu1  ;;  %v1345_v47 = vpop.f32.mrf.mxu3  ;;  %1916 = vmatpush.msrb.mxu3 %v3439_v14 }
 0x28e   : > { %v1346_v54 = vadd.f32 %v1345_v47, %v1286_v17  ;;  %1849 = vmatpush.msrb.mxu1 %v3423_v26  ;;  %v1407_v17 = vpop.f32.mrf.mxu0  ;;  %v3438_v47 = vld [vmem:[%s3899_s18 + $0x5d0] sm:$0xff] }
 0x28f   : > { %1798 = vmatpush.msra.mxu2 %v3438_v47 }
 0x290   : > { %1563 = vmatmul.f32.gmra.mxu1 %v1346_v54 }
 0x292   : > { %v1187_v21 = vpop.f32.mrf.mxu2 }
 0x293   : > { %v1188_v23 = vadd.f32 %v1187_v21, %v1128_v13 }
 0x295   : > { %3287 = vst [vmem:[%s4445_s30 + $0xd0] sm:$0xff] %v1188_v23  ;;  %v1289_v7 = vpop.f32.mrf.mxu1  ;;  %v1348_v21 = vpop.f32.mrf.mxu3  ;;  %v3421_v23 = vld [vmem:[%s3899_s18 + $0x548] sm:$0xff] }
 0x296   : > { %v1349_v8 = vadd.f32 %v1348_v21, %v1289_v7  ;;  %1850 = vmatpush.msrb.mxu1 %v3421_v23  ;;  %v3417_v7 = vld [vmem:[%s3899_s18 + $0x528] sm:$0xff] }
 0x297   : > { %v3437_v21 = vld [vmem:[%s3899_s18 + $0x5c8] sm:$0xff] }
 0x298   : > { %1566 = vmatmul.f32.gmra.mxu1 %v1349_v8  ;;  %1917 = vmatpush.msrb.mxu3 %v3437_v21  ;;  %v3413_v21 = vld [vmem:[%s3899_s18 + $0x508] sm:$0xff] }
 0x299   : > { %1851 = vmatpush.msrb.mxu1 %v3419_v20  ;;  %v3436_v20 = vld [vmem:[%s3899_s18 + $0x5c0] sm:$0xff] }
 0x29a   : > { %v1190_v13 = vpop.f32.mrf.mxu2  ;;  %1799 = vmatpush.msra.mxu2 %v3436_v20 }
 0x29b   : > { %v1191_v35 = vadd.f32 %v1190_v13, %v1131_v29  ;;  %v3420_v29 = vld [vmem:[%s3899_s18 + $0x540] sm:$0xff]  ;;  %1852 = vmatpush.msrb.mxu1 %v3417_v7 }
 0x29c   : > { %1732 = vmatpush.msra.mxu0 %v3420_v29 }
 0x29d   : > { %3288 = vst [vmem:[%s4445_s30 + $0xd8] sm:$0xff] %v1191_v35  ;;  %v1292_v54 = vpop.f32.mrf.mxu1  ;;  %v1351_v13 = vpop.f32.mrf.mxu3 }
 0x29e   : > { %v1352_v35 = vadd.f32 %v1351_v13, %v1292_v54  ;;  %v3415_v54 = vld [vmem:[%s3899_s18 + $0x518] sm:$0xff] }
 0x29f   : > { %1853 = vmatpush.msrb.mxu1 %v3415_v54  ;;  %v3434_v54 = vld [vmem:[%s3899_s18 + $0x5b0] sm:$0xff] }
 0x2a0   : > { %1569 = vmatmul.f32.gmra.mxu1 %v1352_v35  ;;  %1800 = vmatpush.msra.mxu2 %v3434_v54 }
 0x2a1   : > { %1854 = vmatpush.msrb.mxu1 %v3413_v21  ;;  %v3409_v21 = vld [vmem:[%s3899_s18 + $0x4e8] sm:$0xff] }
 0x2a2   : > { %v1457_v38 = vpop.f32.mrf.mxu2 }
 0x2a3   : > { %v1458_v26 = vadd.f32 %v1457_v38, %v1398_v30  ;;  %v3418_v30 = vld [vmem:[%s3899_s18 + $0x530] sm:$0xff]  ;;  %v1410_v38 = vpop.f32.mrf.mxu0 }
 0x2a4   : > { %1733 = vmatpush.msra.mxu0 %v3418_v30 }
 0x2a5   : > { %3368 = vmatmul.msk.f32.vlgmr.msra.gmra.mxu3 %vm279_vm1, %v1458_v26  ;;  %v1295_v23 = vpop.f32.mrf.mxu1  ;;  %v1354_v14 = vpop.f32.mrf.mxu3 }
 0x2a6   : > { %v1355_v26 = vadd.f32 %v1354_v14, %v1295_v23  ;;  %v3435_v23 = vld [vmem:[%s3899_s18 + $0x5b8] sm:$0xff] }
 0x2a7   : > { %1918 = vmatpush.msrb.mxu3 %v3435_v23  ;;  %v3433_v23 = vld [vmem:[%s3899_s18 + $0x5a8] sm:$0xff] }
 0x2a8   : > { %1572 = vmatmul.f32.gmra.mxu1 %v1355_v26 }
 0x2a9   : > { %1919 = vmatpush.msrb.mxu3 %v3433_v23 }
 0x2aa   : > { %v1460_v50 = vpop.f32.mrf.mxu2 }
 0x2ab   : > { %v1461_v8 = vadd.f32 %v1460_v50, %v1401_v56  ;;  %v3416_v56 = vld [vmem:[%s3899_s18 + $0x520] sm:$0xff] }
 0x2ac   : > { %1734 = vmatpush.msra.mxu0 %v3416_v56 }
 0x2ad   : > { %3369 = vmatmul.msk.f32.gmra.mxu3 %vm279_vm1, %v1461_v8  ;;  %v1298_v13 = vpop.f32.mrf.mxu1  ;;  %v1357_v35 = vpop.f32.mrf.mxu3 }
 0x2ae   : > { %v1358_v50 = vadd.f32 %v1357_v35, %v1298_v13  ;;  %v1413_v8 = vpop.f32.mrf.mxu0  ;;  %v3411_v13 = vld [vmem:[%s3899_s18 + $0x4f8] sm:$0xff] }
 0x2af   : > { %1855 = vmatpush.msrb.mxu1 %v3411_v13 }
 0x2b0   : > { %1575 = vmatmul.f32.gmra.mxu1 %v1358_v50 }
 0x2b1   : > { %1856 = vmatpush.msrb.mxu1 %v3409_v21 }
 0x2b2   : > { %v1463_v29 = vpop.f32.mrf.mxu2 }
 0x2b3   : > { %v1464_v47 = vadd.f32 %v1463_v29, %v1404_v62  ;;  %v3414_v62 = vld [vmem:[%s3899_s18 + $0x510] sm:$0xff] }
 0x2b4   : > { %1735 = vmatpush.msra.mxu0 %v3414_v62 }
 0x2b5   : > { %3370 = vmatmul.msk.f32.gmra.mxu3 %vm279_vm1, %v1464_v47  ;;  %v1301_v14 = vpop.f32.mrf.mxu1  ;;  %v1360_v26 = vpop.f32.mrf.mxu3 }
 0x2b6   : > { %v1361_v29 = vadd.f32 %v1360_v26, %v1301_v14  ;;  %v1416_v56 = vpop.f32.mrf.mxu0 }
 0x2b8   : > { %1578 = vmatmul.f32.gmra.mxu1 %v1361_v29 }
 0x2ba   : > { %v1466_v30 = vpop.f32.mrf.mxu2 }
 0x2bb   : > { %v1467_v7 = vadd.f32 %v1466_v30, %v1407_v17  ;;  %v3412_v17 = vld [vmem:[%s3899_s18 + $0x500] sm:$0xff]  ;;  %v3410_v30 = vld [vmem:[%s3899_s18 + $0x4f0] sm:$0xff] }
 0x2bc   : > { %1736 = vmatpush.msra.mxu0 %v3412_v17  ;;  %v3407_v17 = vld [vmem:[%s3899_s18 + $0x4d8] sm:$0xff] }
 0x2bd   : > { %3371 = vmatmul.msk.f32.gmra.mxu3 %vm279_vm1, %v1467_v7  ;;  %v1304_v35 = vpop.f32.mrf.mxu1  ;;  %v1363_v50 = vpop.f32.mrf.mxu3  ;;  %1857 = vmatpush.msrb.mxu1 %v3407_v17 }
 0x2be   : > { %v1364_v7 = vadd.f32 %v1363_v50, %v1304_v35  ;;  %1737 = vmatpush.msra.mxu0 %v3410_v30  ;;  %v1419_v14 = vpop.f32.mrf.mxu0  ;;  %v3406_v35 = vld [vmem:[%s3899_s18 + $0x4d0] sm:$0xff] }
 0x2c0   : > { %1581 = vmatmul.f32.gmra.mxu1 %v1364_v7  ;;  %v3405_v7 = vld [vmem:[%s3899_s18 + $0x4c8] sm:$0xff] }
 0x2c1   : > { %1858 = vmatpush.msrb.mxu1 %v3405_v7 }
 0x2c2   : > { %v1469_v47 = vpop.f32.mrf.mxu2 }
 0x2c3   : > { %v1470_v20 = vadd.f32 %v1469_v47, %v1410_v38  ;;  %v3408_v47 = vld [vmem:[%s3899_s18 + $0x4e0] sm:$0xff] }
 0x2c4   : > { %1738 = vmatpush.msra.mxu0 %v3408_v47  ;;  %v3403_v47 = vld [vmem:[%s3899_s18 + $0x4b8] sm:$0xff] }
 0x2c5   : > { %3372 = vmatmul.msk.f32.gmra.mxu3 %vm279_vm1, %v1470_v20  ;;  %v1307_v26 = vpop.f32.mrf.mxu1  ;;  %v1366_v29 = vpop.f32.mrf.mxu3  ;;  %v3432_v20 = vld [vmem:[%s3899_s18 + $0x5a0] sm:$0xff]  ;;  %1859 = vmatpush.msrb.mxu1 %v3403_v47  ;;  %v3399_v47 = vld [vmem:[%s3899_s18 + $0x498] sm:$0xff] }
 0x2c6   : > { %v1367_v54 = vadd.f32 %v1366_v29, %v1307_v26  ;;  %1801 = vmatpush.msra.mxu2 %v3432_v20  ;;  %1739 = vmatpush.msra.mxu0 %v3406_v35  ;;  %v3430_v29 = vld [vmem:[%s3899_s18 + $0x590] sm:$0xff] }
 0x2c8   : > { %1584 = vmatmul.f32.gmra.mxu1 %v1367_v54  ;;  %1802 = vmatpush.msra.mxu2 %v3430_v29  ;;  %v3428_v29 = vld [vmem:[%s3899_s18 + $0x580] sm:$0xff] }
 0x2ca   : > { %v1472_v38 = vpop.f32.mrf.mxu2  ;;  %1803 = vmatpush.msra.mxu2 %v3428_v29 }
 0x2cb   : > { %v1473_v62 = vadd.f32 %v1472_v38, %v1413_v8  ;;  %v3431_v38 = vld [vmem:[%s3899_s18 + $0x598] sm:$0xff]  ;;  %3445 = vmatmul.msk.f32.vlgmr.msra.gmra.mxu2 %vm279_vm1, %v4575_v31 }
 0x2cc   : > { %1920 = vmatpush.msrb.mxu3 %v3431_v38  ;;  %3474 = vmatpush.msk.msrb.mxu2 %vm322_vm0, %v4582_v27 }
 0x2cd   : > { %3373 = vmatmul.msk.f32.gmra.mxu3 %vm279_vm1, %v1473_v62  ;;  %v1310_v50 = vpop.f32.mrf.mxu1  ;;  %v1369_v30 = vpop.f32.mrf.mxu3 }
 0x2ce   : > { %v1422_v62 = vpop.f32.mrf.mxu0  ;;  %v1370_v21 = vadd.f32 %v1369_v30, %v1310_v50  ;;  %v3401_v50 = vld [vmem:[%s3899_s18 + $0x4a8] sm:$0xff]  ;;  %2075 = vmatpush.msrb.mxu2 %v4589_v32 }
 0x2cf   : > { %v3429_v30 = vld [vmem:[%s3899_s18 + $0x588] sm:$0xff]  ;;  %1860 = vmatpush.msrb.mxu1 %v3401_v50 }
 0x2d0   : > { %1587 = vmatmul.f32.gmra.mxu1 %v1370_v21  ;;  %1921 = vmatpush.msrb.mxu3 %v3429_v30  ;;  %v3396_v30 = vld [vmem:[%s3899_s18 + $0x480] sm:$0xff] }
 0x2d1   : > { %1861 = vmatpush.msrb.mxu1 %v3399_v47  ;;  %2076 = vmatpush.msrb.mxu2 %v4595_v36 }
 0x2d2   : > { %v1475_v8 = vpop.f32.mrf.mxu2 }
 0x2d3   : > { %v1476_v13 = vadd.f32 %v1475_v8, %v1416_v56  ;;  %v3404_v56 = vld [vmem:[%s3899_s18 + $0x4c0] sm:$0xff]  ;;  %2077 = vmatpush.msrb.mxu2 %v4603_v52 }
 0x2d4   : > { %1740 = vmatpush.msra.mxu0 %v3404_v56  ;;  %3446 = vmatmul.msk.f32.gmra.mxu2 %vm279_vm1, %v4615_v43 }
 0x2d5   : > { %3374 = vmatmul.msk.f32.gmra.mxu3 %vm279_vm1, %v1476_v13  ;;  %v1313_v20 = vpop.f32.mrf.mxu1  ;;  %v1372_v17 = vpop.f32.mrf.mxu3  ;;  %2078 = vmatpush.msrb.mxu2 %v4629_v40 }
 0x2d6   : > { %v1373_v54 = vadd.f32 %v1372_v17, %v1313_v20  ;;  %v1425_v8 = vpop.f32.mrf.mxu0 }
 0x2d7   : > { %2079 = vmatpush.msrb.mxu2 %v4641_v33 }
 0x2d8   : > { %1590 = vmatmul.f32.gmra.mxu1 %v1373_v54  ;;  %v3398_v54 = vld [vmem:[%s3899_s18 + $0x490] sm:$0xff] }
 0x2d9   : > { %2080 = vmatpush.msrb.mxu2 %v4654_v53 }
 0x2da   : > { %v1478_v23 = vpop.f32.mrf.mxu2 }
 0x2db   : > { %v1479_v26 = vadd.f32 %v1478_v23, %v1419_v14  ;;  %v3402_v14 = vld [vmem:[%s3899_s18 + $0x4b0] sm:$0xff]  ;;  %2081 = vmatpush.msrb.mxu2 %v4686_v1 }
 0x2dc   : > { %1741 = vmatpush.msra.mxu0 %v3402_v14  ;;  %3447 = vmatmul.msk.f32.gmra.mxu2 %vm279_vm1, %v4672_v16 }
 0x2dd   : > { %3375 = vmatmul.msk.f32.gmra.mxu3 %vm279_vm1, %v1479_v26  ;;  %v1316_v7 = vpop.f32.mrf.mxu1  ;;  %v1375_v38 = vpop.f32.mrf.mxu3 }
 0x2de   : > { %v1376_v21 = vadd.f32 %v1375_v38, %v1316_v7  ;;  %v1428_v26 = vpop.f32.mrf.mxu0 }
 0x2e0   : > { %1593 = vmatmul.f32.gmra.mxu1 %v1376_v21 }
 0x2e2   : > { %v1481_v13 = vpop.f32.mrf.mxu2 }
 0x2e3   : > { %v1482_v35 = vadd.f32 %v1481_v13, %v1422_v62  ;;  %v3400_v62 = vld [vmem:[%s3899_s18 + $0x4a0] sm:$0xff] }
 0x2e4   : > { %1742 = vmatpush.msra.mxu0 %v3400_v62  ;;  %3448 = vmatmul.msk.f32.gmra.mxu2 %vm279_vm1, %v4717_v5 }
 0x2e5   : > { %3376 = vmatmul.msk.f32.gmra.mxu3 %vm279_vm1, %v1482_v35  ;;  %v1319_v20 = vpop.f32.mrf.mxu1  ;;  %v1378_v17 = vpop.f32.mrf.mxu3  ;;  %v3397_v35 = vld [vmem:[%s3899_s18 + $0x488] sm:$0xff] }
 0x2e6   : > { %v1379_v13 = vadd.f32 %v1378_v17, %v1319_v20  ;;  %1743 = vmatpush.msra.mxu0 %v3398_v54  ;;  %1862 = vmatpush.msrb.mxu1 %v3397_v35  ;;  %v1431_v50 = vpop.f32.mrf.mxu0  ;;  %v3549_v54 = vld [vmem:[%s3899_s18 + $0x770] sm:$0xf] }
 0x2e7   : > { %3551 = vmatpush.msk.msra.mxu3 %vm322_vm0, %v3549_v54  ;;  %v3519_v54 = vld [vmem:[%s3899_s18 + $0x680] sm:$0xff] }
 0x2e8   : > { %1596 = vmatmul.f32.gmra.mxu1 %v1379_v13  ;;  %1744 = vmatpush.msra.mxu0 %v3396_v30  ;;  %v3534_v13 = vld [vmem:[%s3899_s18 + $0x6f8] sm:$0xff] }
 0x2e9   : > { %1745 = vmatmul.f32.vlgmr.msra.gmra.mxu0 %v4609_v37 }
 0x2ea   : > { %v1484_v23 = vpop.f32.mrf.mxu2  ;;  %2007 = vmatpush.msrb.mxu0 %v4623_v39 }
 0x2eb   : > { %v1485_v56 = vadd.f32 %v1484_v23, %v1425_v8 }
 0x2ec   : > { %2008 = vmatpush.msrb.mxu0 %v4635_v61  ;;  %3449 = vmatmul.msk.f32.gmra.mxu2 %vm279_vm1, %v4756_v11 }
 0x2ed   : > { %3377 = vmatmul.msk.f32.gmra.mxu3 %vm279_vm1, %v1485_v56 }
 0x2ee   : > { %2009 = vmatpush.msrb.mxu0 %v4647_v45  ;;  %v1434_v36 = vpop.f32.mrf.mxu0 }
 0x2f0   : > { %1863 = vmatmul.f32.vlgmr.msrb.gmra.mxu1 %v4609_v37  ;;  %2010 = vmatpush.msrb.mxu0 %v4660_v9 }
 0x2f1   : > { %1748 = vmatmul.f32.gmra.mxu0 %v4666_v60 }
 0x2f2   : > { %v1487_v8 = vpop.f32.mrf.mxu2  ;;  %2011 = vmatpush.msrb.mxu0 %v4680_v0 }
 0x2f3   : > { %v1488_v14 = vadd.f32 %v1487_v8, %v1428_v26 }
 0x2f4   : > { %2012 = vmatpush.msrb.mxu0 %v4692_v51  ;;  %v1558_v39 = vpop.f32.mrf.mxu1  ;;  %3450 = vmatmul.msk.f32.gmra.mxu2 %vm279_vm1, %v4796_v10 }
 0x2f5   : > { %3378 = vmatmul.msk.f32.gmra.mxu3 %vm279_vm1, %v1488_v14  ;;  %v3533_v14 = vld [vmem:[%s3899_s18 + $0x6f0] sm:$0xff] }
 0x2f6   : > { %2013 = vmatpush.msrb.mxu0 %v4698_v48  ;;  %v1437_v40 = vpop.f32.mrf.mxu0  ;;  %2195 = vmatpush.msra.mxu1 %v3533_v14 }
 0x2f8   : > { %1866 = vmatmul.f32.gmra.mxu1 %v4666_v60  ;;  %2014 = vmatpush.msrb.mxu0 %v4705_v55 }
 0x2f9   : > { %1751 = vmatmul.f32.gmra.mxu0 %v4711_v59 }
 0x2fa   : > { %v1490_v27 = vpop.f32.mrf.mxu2  ;;  %2015 = vmatpush.msrb.mxu0 %v4725_v58 }
 0x2fb   : > { %v1491_v32 = vadd.f32 %v1490_v27, %v1431_v50 }
 0x2fc   : > { %2016 = vmatpush.msrb.mxu0 %v4731_v3  ;;  %3451 = vmatmul.msk.f32.gmra.mxu2 %vm279_vm1, %v4812_v28 }
 0x2fd   : > { %3379 = vmatmul.msk.f32.gmra.mxu3 %vm279_vm1, %v1491_v32 }
 0x2fe   : > { %2017 = vmatpush.msrb.mxu0 %v4737_v12  ;;  %v5887_v12 = vld [vmem:[#allocation2_spill] sm:$0xff] }
 0x300   : > { %1869 = vmatmul.f32.gmra.mxu1 %v4711_v59  ;;  %2018 = vmatpush.msrb.mxu0 %v4744_v2 }
 0x301   : > { %1754 = vmatmul.f32.gmra.mxu0 %v4750_v15 }
 0x302   : > { %v1493_v52 = vpop.f32.mrf.mxu2  ;;  %2019 = vmatpush.msrb.mxu0 %v4764_v19  ;;  %v5888_v19 = vld [vmem:[#allocation4_spill] sm:$0xff] }
 0x303   : > { %v1494_v37 = vadd.f32 %v1493_v52, %v1434_v36  ;;  %v3532_v36 = vld [vmem:[%s3899_s18 + $0x6e8] sm:$0xff] }
 0x304   : > { %2020 = vmatpush.msrb.mxu0 %v4770_v6  ;;  %3452 = vmatmul.msk.f32.gmra.mxu2 %vm279_vm1, %v4828_v46  ;;  %v5889_v6 = vld [vmem:[#allocation3_spill] sm:$0xff] }
 0x305   : > { %3380 = vmatmul.msk.f32.gmra.mxu3 %vm279_vm1, %v1494_v37  ;;  %v1561_v45 = vpop.f32.mrf.mxu1  ;;  %v3548_v52 = vld [vmem:[%s3899_s18 + $0x768] sm:$0xff] }
 0x306   : > { %2021 = vmatpush.msrb.mxu0 %v4776_v22 }
 0x308   : > { %1872 = vmatmul.f32.gmra.mxu1 %v4750_v15  ;;  %2022 = vmatpush.msrb.mxu0 %v4784_v24 }
 0x309   : > { %1757 = vmatmul.f32.gmra.mxu0 %v4790_v25 }
 0x30a   : > { %v1496_v61 = vpop.f32.mrf.mxu2  ;;  %2313 = vmatpush.msra.mxu0 %v3534_v13  ;;  %v3541_v13 = vld [vmem:[%s3899_s18 + $0x730] sm:$0xff] }
 0x30b   : > { %v1497_v33 = vadd.f32 %v1496_v61, %v1437_v40  ;;  %v3531_v40 = vld [vmem:[%s3899_s18 + $0x6e0] sm:$0xff] }
 0x30c   : > { %3453 = vmatmul.msk.f32.gmra.mxu2 %vm279_vm1, %v4845_v49  ;;  %2314 = vmatpush.msra.mxu0 %v3532_v36  ;;  %v3547_v61 = vld [vmem:[%s3899_s18 + $0x760] sm:$0xff]  ;;  %v3516_v36 = vld [vmem:[%s3899_s18 + $0x668] sm:$0xff] }
 0x30d   : > { %3381 = vmatmul.msk.f32.gmra.mxu3 %vm279_vm1, %v1497_v33  ;;  %v1564_v53 = vpop.f32.mrf.mxu1  ;;  %v3530_v33 = vld [vmem:[%s3899_s18 + $0x6d8] sm:$0xff]  ;;  %2196 = vmatpush.msra.mxu1 %v3531_v40 }
 0x30e   : > { %2263 = vmatpush.msra.mxu3 %v3547_v61  ;;  %2315 = vmatpush.msra.mxu0 %v3530_v33  ;;  %v3515_v61 = vld [vmem:[%s3899_s18 + $0x660] sm:$0xff] }
 0x30f   : > { %v3539_v33 = vld [vmem:[%s3899_s18 + $0x720] sm:$0xff] }
 0x310   : > { %1875 = vmatmul.f32.gmra.mxu1 %v4790_v25 }
 0x311   : > { %1760 = vmatmul.f32.gmra.mxu0 %v4806_v18 }
 0x314   : > { %3454 = vmatmul.msk.f32.gmra.mxu2 %vm279_vm1, %v4862_v41 }
 0x315   : > { %3460 = vmatmul.msk.f32.vlgmr.msrb.gmra.mxu3 %vm279_vm1, %v4575_v31  ;;  %v1567_v9 = vpop.f32.mrf.mxu1 }
 0x318   : > { %1878 = vmatmul.f32.gmra.mxu1 %v4806_v18  ;;  %v5891_v18 = vld [vmem:[#allocation6_spill] sm:$0xff] }
 0x319   : > { %1763 = vmatmul.f32.gmra.mxu0 %v4822_v34 }
 0x31c   : > { %3455 = vmatmul.msk.f32.gmra.mxu2 %vm279_vm1, %v4879_v57 }
 0x31d   : > { %3461 = vmatmul.msk.f32.gmra.mxu3 %vm279_vm1, %v4615_v43  ;;  %v1570_v31 = vpop.f32.mrf.mxu1 }
 0x320   : > { %1881 = vmatmul.f32.gmra.mxu1 %v4822_v34 }
 0x321   : > { %1766 = vmatmul.f32.gmra.mxu0 %v4839_v42 }
 0x324   : > { %3456 = vmatmul.msk.f32.gmra.mxu2 %vm279_vm1, %v5887_v12 }
 0x325   : > { %3462 = vmatmul.msk.f32.gmra.mxu3 %vm279_vm1, %v4672_v16  ;;  %v1573_v0 = vpop.f32.mrf.mxu1 }
 0x328   : > { %v1617_v60 = vpop.f32.mrf.mxu3  ;;  %1884 = vmatmul.f32.gmra.mxu1 %v4839_v42  ;;  %v5892_v42 = vld [vmem:[#allocation7_spill] sm:$0xff] }
 0x329   : > { %v1618_v43 = vadd.f32 %v1617_v60, %v1558_v39  ;;  %1769 = vmatmul.f32.gmra.mxu0 %v4856_v44  ;;  %v3529_v60 = vld [vmem:[%s3899_s18 + $0x6d0] sm:$0xff] }
 0x32a   : > { %2197 = vmatpush.msra.mxu1 %v3529_v60  ;;  %v3513_v60 = vld [vmem:[%s3899_s18 + $0x650] sm:$0xff] }
 0x32b   : > { %3382 = vst [vmem:[%s4445_s30 + $0xe0] sm:$0xff] %v1618_v43 }
 0x32c   : > { %3457 = vmatmul.msk.f32.gmra.mxu2 %vm279_vm1, %v5889_v6 }
 0x32d   : > { %3463 = vmatmul.msk.f32.gmra.mxu3 %vm279_vm1, %v4717_v5  ;;  %v1576_v51 = vpop.f32.mrf.mxu1 }
 0x330   : > { %v1620_v16 = vpop.f32.mrf.mxu3  ;;  %1887 = vmatmul.f32.gmra.mxu1 %v4856_v44 }
 0x331   : > { %v1621_v1 = vadd.f32 %v1620_v16, %v1561_v45  ;;  %1772 = vmatmul.f32.gmra.mxu0 %v4873_v4  ;;  %v3528_v16 = vld [vmem:[%s3899_s18 + $0x6c8] sm:$0xff] }
 0x332   : > { %2316 = vmatpush.msra.mxu0 %v3528_v16  ;;  %v3512_v16 = vld [vmem:[%s3899_s18 + $0x648] sm:$0xff] }
 0x333   : > { %3383 = vst [vmem:[%s4445_s30 + $0xe8] sm:$0xff] %v1621_v1  ;;  %v3546_v1 = vld [vmem:[%s3899_s18 + $0x758] sm:$0xff] }
 0x334   : > { %3458 = vmatmul.msk.f32.gmra.mxu2 %vm279_vm1, %v5891_v18 }
 0x335   : > { %3464 = vmatmul.msk.f32.gmra.mxu3 %vm279_vm1, %v4756_v11  ;;  %v1579_v59 = vpop.f32.mrf.mxu1 }
 0x338   : > { %v1623_v48 = vpop.f32.mrf.mxu3  ;;  %1890 = vmatmul.f32.gmra.mxu1 %v4873_v4 }
 0x339   : > { %v1624_v55 = vadd.f32 %v1623_v48, %v1564_v53  ;;  %1775 = vmatmul.f32.gmra.mxu0 %v4890_v63 }
 0x33b   : > { %3384 = vst [vmem:[%s4445_s30 + $0xf0] sm:$0xff] %v1624_v55 }
 0x33d   : > { %3465 = vmatmul.msk.f32.gmra.mxu3 %vm279_vm1, %v4796_v10  ;;  %v1582_v3 = vpop.f32.mrf.mxu1  ;;  %v5890_v10 = vld [vmem:[#allocation5_spill] sm:$0xff] }
 0x340   : > { %v1626_v5 = vpop.f32.mrf.mxu3  ;;  %1893 = vmatmul.f32.gmra.mxu1 %v4890_v63 }
 0x341   : > { %v1627_v58 = vadd.f32 %v1626_v5, %v1567_v9  ;;  %1778 = vmatmul.f32.gmra.mxu0 %v5888_v19  ;;  %v3527_v5 = vld [vmem:[%s3899_s18 + $0x6c0] sm:$0xff] }
 0x342   : > { %2198 = vmatpush.msra.mxu1 %v3527_v5  ;;  %v3511_v5 = vld [vmem:[%s3899_s18 + $0x640] sm:$0xff] }
 0x343   : > { %3385 = vst [vmem:[%s4445_s30 + $0xf8] sm:$0xff] %v1627_v58  ;;  %v3545_v58 = vld [vmem:[%s3899_s18 + $0x750] sm:$0xff] }
 0x344   : > { %2264 = vmatpush.msra.mxu3 %v3545_v58  ;;  %v3537_v58 = vld [vmem:[%s3899_s18 + $0x710] sm:$0xff] }
 0x345   : > { %3466 = vmatmul.msk.f32.gmra.mxu3 %vm279_vm1, %v4812_v28  ;;  %v1585_v11 = vpop.f32.mrf.mxu1 }
 0x348   : > { %v1629_v2 = vpop.f32.mrf.mxu3  ;;  %1896 = vmatmul.f32.gmra.mxu1 %v5888_v19 }
 0x349   : > { %v1630_v15 = vadd.f32 %v1629_v2, %v1570_v31  ;;  %1781 = vmatmul.f32.gmra.mxu0 %v5890_v10 }
 0x34b   : > { %3386 = vst [vmem:[%s4445_s30 + $0x100] sm:$0xff] %v1630_v15 }
 0x34d   : > { %3467 = vmatmul.msk.f32.gmra.mxu3 %vm279_vm1, %v4828_v46  ;;  %v1588_v25 = vpop.f32.mrf.mxu1 }
 0x34e   : > { %v1805_v62 = vpop.f32.mrf.mxu2 }
 0x350   : > { %v1632_v22 = vpop.f32.mrf.mxu3  ;;  %1899 = vmatmul.f32.gmra.mxu1 %v5890_v10 }
 0x351   : > { %v1633_v24 = vadd.f32 %v1632_v22, %v1573_v0  ;;  %1784 = vmatmul.f32.gmra.mxu0 %v5892_v42  ;;  %v3524_v22 = vld [vmem:[%s3899_s18 + $0x6a8] sm:$0xff] }
 0x353   : > { %3387 = vst [vmem:[%s4445_s30 + $0x108] sm:$0xff] %v1633_v24  ;;  %v3544_v24 = vld [vmem:[%s3899_s18 + $0x748] sm:$0xff] }
 0x355   : > { %3468 = vmatmul.msk.f32.gmra.mxu3 %vm279_vm1, %v4845_v49  ;;  %v1591_v46 = vpop.f32.mrf.mxu1 }
 0x357   : > { %v1808_v8 = vpop.f32.mrf.mxu2 }
 0x358   : > { %v1635_v28 = vpop.f32.mrf.mxu3  ;;  %1902 = vmatmul.f32.gmra.mxu1 %v5892_v42  ;;  %v3523_v42 = vld [vmem:[%s3899_s18 + $0x6a0] sm:$0xff] }
 0x359   : > { %v1636_v34 = vadd.f32 %v1635_v28, %v1576_v51 }
 0x35b   : > { %3388 = vst [vmem:[%s4445_s30 + $0x110] sm:$0xff] %v1636_v34 }
 0x35d   : > { %3469 = vmatmul.msk.f32.gmra.mxu3 %vm279_vm1, %v4862_v41  ;;  %v1594_v63 = vpop.f32.mrf.mxu1 }
 0x35f   : > { %v1811_v39 = vpop.f32.mrf.mxu2 }
 0x360   : > { %v1638_v49 = vpop.f32.mrf.mxu3 }
 0x361   : > { %v1639_v44 = vadd.f32 %v1638_v49, %v1579_v59  ;;  %v3543_v49 = vld [vmem:[%s3899_s18 + $0x740] sm:$0xff] }
 0x362   : > { %2265 = vmatpush.msra.mxu3 %v3543_v49  ;;  %v3507_v49 = vld [vmem:[%s3899_s18 + $0x620] sm:$0xff] }
 0x363   : > { %3389 = vst [vmem:[%s4445_s30 + $0x118] sm:$0xff] %v1639_v44  ;;  %v3522_v44 = vld [vmem:[%s3899_s18 + $0x698] sm:$0xff] }
 0x364   : > { %2266 = vmatpush.msra.mxu3 %v3541_v13  ;;  %v5249_v13 = vld [vmem:[%s5837_s0 + $0x18] sm:$0xff] }
 0x365   : > { %3470 = vmatmul.msk.f32.gmra.mxu3 %vm279_vm1, %v4879_v57  ;;  %v1597_v21 = vpop.f32.mrf.mxu1  ;;  %v3550_v57 = vld [vmem:[%s3899_s18 + $0x778] sm:$0xf] }
 0x366   : > { %v1746_v56 = vpop.f32.mrf.mxu0  ;;  %3566 = vmatpush.msk.msra.mxu2 %vm322_vm0, %v3550_v57  ;;  %v3542_v57 = vld [vmem:[%s3899_s18 + $0x738] sm:$0xff]  ;;  %2267 = vmatpush.msra.mxu3 %v3539_v33  ;;  %v5320_v33 = vld [vmem:[%s5838_s1 + $0x80] sm:$0xff] }
 0x367   : > { %v1806_v47 = vadd.f32 %v1805_v62, %v1746_v56  ;;  %v1814_v0 = vpop.f32.mrf.mxu2 }
 0x368   : > { %v1641_v4 = vpop.f32.mrf.mxu3  ;;  %2381 = vmatpush.msra.mxu2 %v3548_v52  ;;  %v3540_v52 = vld [vmem:[%s3899_s18 + $0x728] sm:$0xff]  ;;  %2268 = vmatpush.msra.mxu3 %v3537_v58 }
 0x369   : > { %v1642_v7 = vadd.f32 %v1641_v4, %v1582_v3  ;;  %2023 = vmatmul.f32.vlgmr.msrb.gmra.mxu0 %v1806_v47  ;;  %v3526_v3 = vld [vmem:[%s3899_s18 + $0x6b8] sm:$0xff] }
 0x36a   : > { %2382 = vmatpush.msra.mxu2 %v3546_v1  ;;  %2317 = vmatpush.msra.mxu0 %v3526_v3  ;;  %v3538_v1 = vld [vmem:[%s3899_s18 + $0x718] sm:$0xff] }
 0x36b   : > { %3390 = vst [vmem:[%s4445_s30 + $0x120] sm:$0xff] %v1642_v7  ;;  %v3510_v3 = vld [vmem:[%s3899_s18 + $0x638] sm:$0xff] }
 0x36c   : > { %2318 = vmatpush.msra.mxu0 %v3524_v22  ;;  %2383 = vmatpush.msra.mxu2 %v3544_v24  ;;  %v3509_v22 = vld [vmem:[%s3899_s18 + $0x630] sm:$0xff]  ;;  %v3508_v24 = vld [vmem:[%s3899_s18 + $0x628] sm:$0xff] }
 0x36d   : > { %3471 = vmatmul.msk.f32.gmra.mxu3 %vm279_vm1, %v5887_v12  ;;  %v1864_v29 = vpop.f32.mrf.mxu1 }
 0x36e   : > { %v1749_v35 = vpop.f32.mrf.mxu0  ;;  %2319 = vmatpush.msra.mxu0 %v3522_v44  ;;  %2384 = vmatpush.msra.mxu2 %v3542_v57  ;;  %v3535_v44 = vld [vmem:[%s3899_s18 + $0x700] sm:$0xff] }
 0x36f   : > { %v1809_v50 = vadd.f32 %v1808_v8, %v1749_v35  ;;  %v1817_v2 = vpop.f32.mrf.mxu2  ;;  %v3518_v35 = vld [vmem:[%s3899_s18 + $0x678] sm:$0xff]  ;;  %2269 = vmatpush.msra.mxu3 %v3535_v44 }
 0x370   : > { %v1644_v41 = vpop.f32.mrf.mxu3  ;;  %2385 = vmatpush.msra.mxu2 %v3540_v52 }
 0x371   : > { %v1645_v38 = vadd.f32 %v1644_v41, %v1585_v11  ;;  %2026 = vmatmul.f32.gmra.mxu0 %v1809_v50  ;;  %v3517_v50 = vld [vmem:[%s3899_s18 + $0x670] sm:$0xff] }
 0x372   : > { %2386 = vmatpush.msra.mxu2 %v3538_v1 }
 0x373   : > { %3391 = vst [vmem:[%s4445_s30 + $0x128] sm:$0xff] %v1645_v38 }
 0x375   : > { %3472 = vmatmul.msk.f32.gmra.mxu3 %vm279_vm1, %v5889_v6  ;;  %v1867_v30 = vpop.f32.mrf.mxu1  ;;  %v3525_v6 = vld [vmem:[%s3899_s18 + $0x6b0] sm:$0xff] }
 0x376   : > { %v1752_v37 = vpop.f32.mrf.mxu0  ;;  %2199 = vmatpush.msra.mxu1 %v3525_v6 }
 0x377   : > { %v1812_v45 = vadd.f32 %v1811_v39, %v1752_v37  ;;  %v1820_v10 = vpop.f32.mrf.mxu2 }
 0x378   : > { %v1647_v23 = vpop.f32.mrf.mxu3  ;;  %2200 = vmatpush.msra.mxu1 %v3523_v42 }
 0x379   : > { %v1648_v26 = vadd.f32 %v1647_v23, %v1588_v25  ;;  %2029 = vmatmul.f32.gmra.mxu0 %v1812_v45  ;;  %v3521_v23 = vld [vmem:[%s3899_s18 + $0x690] sm:$0xff]  ;;  %v3514_v45 = vld [vmem:[%s3899_s18 + $0x658] sm:$0xff] }
 0x37a   : > { %2201 = vmatpush.msra.mxu1 %v3521_v23  ;;  %v5209_v23 = vld [vmem:[%s5837_s0 + $0x8] sm:$0xff] }
 0x37b   : > { %3392 = vst [vmem:[%s4445_s30 + $0x130] sm:$0xff] %v1648_v26  ;;  %v3520_v26 = vld [vmem:[%s3899_s18 + $0x688] sm:$0xff] }
 0x37c   : > { %2320 = vmatpush.msra.mxu0 %v3520_v26  ;;  %2202 = vmatpush.msra.mxu1 %v3519_v54  ;;  %v5216_v26 = vld [vmem:[%s5838_s1 + $0xb8] sm:$0xf]  ;;  %v5243_v54 = vld [vmem:[%s5837_s0] sm:$0xff] }
 0x37d   : > { %3473 = vmatmul.msk.f32.gmra.mxu3 %vm279_vm1, %v5891_v18  ;;  %v1870_v9 = vpop.f32.mrf.mxu1 }
 0x37e   : > { %v1755_v43 = vpop.f32.mrf.mxu0  ;;  %2321 = vmatpush.msra.mxu0 %v3518_v35  ;;  %2203 = vmatpush.msra.mxu1 %v3517_v50  ;;  %v5257_v35 = vld [vmem:[%s5838_s1 + $0x78] sm:$0xff]  ;;  %v5269_v50 = vld [vmem:[%s5838_s1 + $0x70] sm:$0xff] }
 0x37f   : > { %v1815_v51 = vadd.f32 %v1814_v0, %v1755_v43  ;;  %3581 = vmatpush.msk.msrb.mxu3 %vm322_vm0, %v5216_v26 }
 0x380   : > { %v1650_v20 = vpop.f32.mrf.mxu3  ;;  %2322 = vmatpush.msra.mxu0 %v3516_v36  ;;  %2204 = vmatpush.msra.mxu1 %v3515_v61  ;;  %v5288_v36 = vld [vmem:[%s5838_s1 + $0x88] sm:$0xff]  ;;  %v5314_v61 = vld [vmem:[%s5838_s1 + $0x58] sm:$0xff] }
 0x381   : > { %v1651_v17 = vadd.f32 %v1650_v20, %v1591_v46  ;;  %2032 = vmatmul.f32.gmra.mxu0 %v1815_v51 }
 0x382   : > { %2323 = vmatpush.msra.mxu0 %v3514_v45  ;;  %2205 = vmatpush.msra.mxu1 %v3513_v60 }
 0x383   : > { %3393 = vst [vmem:[%s4445_s30 + $0x138] sm:$0xff] %v1651_v17 }
 0x384   : > { %2324 = vmatpush.msra.mxu0 %v3512_v16  ;;  %2206 = vmatpush.msra.mxu1 %v3511_v5  ;;  %v5351_v16 = vld [vmem:[%s5837_s0 + $0x38] sm:$0xff]  ;;  %v5371_v5 = vld [vmem:[%s5838_s1 + $0x28] sm:$0xff] }
 0x385   : > { %v1873_v59 = vpop.f32.mrf.mxu1  ;;  %3552 = vmatmul.msk.f32.vlgmr.msra.gmra.mxu3 %vm279_vm1, %v5209_v23 }
 0x386   : > { %v1758_v12 = vpop.f32.mrf.mxu0  ;;  %2325 = vmatpush.msra.mxu0 %v3510_v3  ;;  %2207 = vmatpush.msra.mxu1 %v3509_v22  ;;  %v5378_v3 = vld [vmem:[%s5838_s1 + $0x20] sm:$0xff] }
 0x387   : > { %v1818_v15 = vadd.f32 %v1817_v2, %v1758_v12  ;;  %v5418_v22 = vld [vmem:[%s5838_s1] sm:$0xff] }
 0x388   : > { %v1653_v27 = vpop.f32.mrf.mxu3  ;;  %2326 = vmatpush.msra.mxu0 %v3508_v24  ;;  %2208 = vmatpush.msra.mxu1 %v3507_v49  ;;  %v5424_v24 = vld [vmem:[%s5837_s0 + $0x40] sm:$0xff] }
 0x389   : > { %v1654_v32 = vadd.f32 %v1653_v27, %v1594_v63  ;;  %2035 = vmatmul.f32.gmra.mxu0 %v1818_v15  ;;  %v1823_v63 = vpop.f32.mrf.mxu2 }
 0x38b   : > { %3394 = vst [vmem:[%s4445_s30 + $0x140] sm:$0xff] %v1654_v32 }
 0x38d   : > { %v1876_v18 = vpop.f32.mrf.mxu1  ;;  %3553 = vmatmul.msk.f32.gmra.mxu3 %vm279_vm1, %v5249_v13 }
 0x38e   : > { %v1761_v25 = vpop.f32.mrf.mxu0 }
 0x38f   : > { %v1821_v28 = vadd.f32 %v1820_v10, %v1761_v25  ;;  %v3536_v25 = vld [vmem:[%s3899_s18 + $0x708] sm:$0xff] }
 0x390   : > { %v1656_v53 = vpop.f32.mrf.mxu3  ;;  %2387 = vmatpush.msra.mxu2 %v3536_v25  ;;  %v5430_v25 = vld [vmem:[%s5837_s0 + $0x58] sm:$0xff] }
 0x391   : > { %v1657_v31 = vadd.f32 %v1656_v53, %v1597_v21  ;;  %2038 = vmatmul.f32.gmra.mxu0 %v1821_v28  ;;  %v1826_v62 = vpop.f32.mrf.mxu2 }
 0x393   : > { %3395 = vst [vmem:[%s4445_s30 + $0x148] sm:$0xff] %v1657_v31 }
 0x395   : > { %v1879_v41 = vpop.f32.mrf.mxu1 }
 0x396   : > { %v1764_v4 = vpop.f32.mrf.mxu0 }
 0x397   : > { %v1824_v7 = vadd.f32 %v1823_v63, %v1764_v4  ;;  %v3506_v4 = vld [vmem:[%s3899_s18 + $0x618] sm:$0xff] }
 0x398   : > { %v1923_v48 = vpop.f32.mrf.mxu3  ;;  %2327 = vmatpush.msra.mxu0 %v3506_v4 }
 0x399   : > { %v1924_v55 = vadd.f32 %v1923_v48, %v1864_v29  ;;  %2041 = vmatmul.f32.gmra.mxu0 %v1824_v7  ;;  %v1829_v14 = vpop.f32.mrf.mxu2 }
 0x39b   : > { %3475 = vmatmul.msk.f32.vlgmr.msrb.gmra.mxu2 %vm279_vm1, %v1924_v55 }
 0x39d   : > { %v1882_v20 = vpop.f32.mrf.mxu1 }
 0x39e   : > { %v1767_v56 = vpop.f32.mrf.mxu0 }
 0x39f   : > { %v1827_v29 = vadd.f32 %v1826_v62, %v1767_v56  ;;  %v5223_v56 = vld [vmem:[%s5838_s1 + $0xb0] sm:$0xff] }
 0x3a0   : > { %v1926_v11 = vpop.f32.mrf.mxu3  ;;  %2541 = vmatpush.msrb.mxu3 %v5223_v56 }
 0x3a1   : > { %v1927_v19 = vadd.f32 %v1926_v11, %v1867_v30  ;;  %2044 = vmatmul.f32.gmra.mxu0 %v1827_v29  ;;  %v1832_v40 = vpop.f32.mrf.mxu2 }
 0x3a3   : > { %3476 = vmatmul.msk.f32.gmra.mxu2 %vm279_vm1, %v1927_v19 }
 0x3a5   : > { %v1885_v37 = vpop.f32.mrf.mxu1 }
 0x3a6   : > { %v1770_v8 = vpop.f32.mrf.mxu0 }
 0x3a7   : > { %v1830_v30 = vadd.f32 %v1829_v14, %v1770_v8  ;;  %v5263_v8 = vld [vmem:[%s5838_s1 + $0x98] sm:$0xff] }
 0x3a8   : > { %v1929_v34 = vpop.f32.mrf.mxu3 }
 0x3a9   : > { %v1930_v46 = vadd.f32 %v1929_v34, %v1870_v9  ;;  %2047 = vmatmul.f32.gmra.mxu0 %v1830_v30  ;;  %v1835_v0 = vpop.f32.mrf.mxu2 }
 0x3ab   : > { %3477 = vmatmul.msk.f32.gmra.mxu2 %vm279_vm1, %v1930_v46 }
 0x3ad   : > { %v1888_v51 = vpop.f32.mrf.mxu1 }
 0x3ae   : > { %v1773_v39 = vpop.f32.mrf.mxu0 }
 0x3af   : > { %v1833_v53 = vadd.f32 %v1832_v40, %v1773_v39  ;;  %v5300_v39 = vld [vmem:[%s5837_s0 + $0x10] sm:$0xff]  ;;  %v5306_v40 = vld [vmem:[%s5837_s0 + $0x28] sm:$0xff] }
 0x3b0   : > { %v1932_v38 = vpop.f32.mrf.mxu3  ;;  %3554 = vmatmul.msk.f32.gmra.mxu3 %vm279_vm1, %v5306_v40 }
 0x3b1   : > { %v1933_v21 = vadd.f32 %v1932_v38, %v1873_v59  ;;  %2050 = vmatmul.f32.gmra.mxu0 %v1833_v53  ;;  %v1838_v2 = vpop.f32.mrf.mxu2  ;;  %v5326_v53 = vld [vmem:[%s5838_s1 + $0x50] sm:$0xff] }
 0x3b3   : > { %3478 = vmatmul.msk.f32.gmra.mxu2 %vm279_vm1, %v1933_v21  ;;  %v3504_v21 = vld [vmem:[%s3899_s18 + $0x608] sm:$0xff] }
 0x3b4   : > { %2328 = vmatpush.msra.mxu0 %v3504_v21 }
 0x3b5   : > { %v1891_v11 = vpop.f32.mrf.mxu1 }
 0x3b6   : > { %v1776_v43 = vpop.f32.mrf.mxu0 }
 0x3b7   : > { %v1836_v48 = vadd.f32 %v1835_v0, %v1776_v43  ;;  %v5339_v43 = vld [vmem:[%s5838_s1 + $0x40] sm:$0xff] }
 0x3b8   : > { %v1935_v47 = vpop.f32.mrf.mxu3  ;;  %v5345_v0 = vld [vmem:[%s5837_s0 + $0x20] sm:$0xff]  ;;  %3555 = vmatmul.msk.f32.gmra.mxu3 %vm279_vm1, %v5351_v16 }
 0x3b9   : > { %v1936_v17 = vadd.f32 %v1935_v47, %v1876_v18  ;;  %2053 = vmatmul.f32.gmra.mxu0 %v1836_v48  ;;  %v1841_v18 = vpop.f32.mrf.mxu2  ;;  %v5229_v47 = vld [vmem:[%s5838_s1 + $0xa8] sm:$0xff] }
 0x3ba   : > { %2542 = vmatpush.msrb.mxu3 %v5229_v47 }
 0x3bb   : > { %3479 = vmatmul.msk.f32.gmra.mxu2 %vm279_vm1, %v1936_v17  ;;  %v5237_v17 = vld [vmem:[%s5838_s1 + $0xa0] sm:$0xff] }
 0x3bc   : > { %2543 = vmatpush.msrb.mxu3 %v5237_v17 }
 0x3bd   : > { %v1894_v46 = vpop.f32.mrf.mxu1 }
 0x3be   : > { %v1779_v12 = vpop.f32.mrf.mxu0  ;;  %2544 = vmatpush.msrb.mxu3 %v5263_v8 }
 0x3bf   : > { %v1839_v15 = vadd.f32 %v1838_v2, %v1779_v12  ;;  %v5384_v12 = vld [vmem:[%s5837_s0 + $0x30] sm:$0xff]  ;;  %v5390_v2 = vld [vmem:[%s5837_s0 + $0x48] sm:$0xff] }
 0x3c0   : > { %v1938_v27 = vpop.f32.mrf.mxu3  ;;  %3556 = vmatmul.msk.f32.gmra.mxu3 %vm279_vm1, %v5390_v2 }
 0x3c1   : > { %v1939_v32 = vadd.f32 %v1938_v27, %v1879_v41  ;;  %2056 = vmatmul.f32.gmra.mxu0 %v1839_v15  ;;  %v1844_v7 = vpop.f32.mrf.mxu2  ;;  %v3505_v41 = vld [vmem:[%s3899_s18 + $0x610] sm:$0xff]  ;;  %v5398_v15 = vld [vmem:[%s5838_s1 + $0x18] sm:$0xff] }
 0x3c2   : > { %2209 = vmatpush.msra.mxu1 %v3505_v41  ;;  %v5275_v27 = vld [vmem:[%s5838_s1 + $0x90] sm:$0xff] }
 0x3c3   : > { %3480 = vmatmul.msk.f32.gmra.mxu2 %vm279_vm1, %v1939_v32  ;;  %2545 = vmatpush.msrb.mxu3 %v5275_v27  ;;  %v5281_v32 = vld [vmem:[%s5838_s1 + $0x68] sm:$0xff] }
 0x3c5   : > { %v1897_v29 = vpop.f32.mrf.mxu1  ;;  %2546 = vmatpush.msrb.mxu3 %v5288_v36 }
 0x3c6   : > { %v1782_v10 = vpop.f32.mrf.mxu0 }
 0x3c7   : > { %v1842_v28 = vadd.f32 %v1841_v18, %v1782_v10  ;;  %2547 = vmatpush.msrb.mxu3 %v5320_v33  ;;  %v5440_v18 = vld [vmem:[%s5837_s0 + $0x50] sm:$0xff] }
 0x3c8   : > { %v1941_v9 = vpop.f32.mrf.mxu3  ;;  %3557 = vmatmul.msk.f32.gmra.mxu3 %vm279_vm1, %v5430_v25 }
 0x3c9   : > { %v1942_v31 = vadd.f32 %v1941_v9, %v1882_v20  ;;  %2059 = vmatmul.f32.gmra.mxu0 %v1842_v28  ;;  %v3503_v20 = vld [vmem:[%s3899_s18 + $0x600] sm:$0xff]  ;;  %v5446_v28 = vld [vmem:[%s5837_s0 + $0x68] sm:$0xff] }
 0x3ca   : > { %2210 = vmatpush.msra.mxu1 %v3503_v20 }
 0x3cb   : > { %3481 = vmatmul.msk.f32.gmra.mxu2 %vm279_vm1, %v1942_v31  ;;  %2211 = vmatmul.f32.vlgmr.msra.gmra.mxu1 %v5243_v54  ;;  %v5332_v31 = vld [vmem:[%s5838_s1 + $0x48] sm:$0xff] }
 0x3cc   : > { %2473 = vmatpush.msrb.mxu1 %v5257_v35 }
 0x3cd   : > { %v1900_v52 = vpop.f32.mrf.mxu1 }
 0x3ce   : > { %v1785_v63 = vpop.f32.mrf.mxu0  ;;  %2474 = vmatpush.msrb.mxu1 %v5269_v50 }
 0x3cf   : > { %v1845_v38 = vadd.f32 %v1844_v7, %v1785_v63  ;;  %v5473_v63 = vld [vmem:[%s5837_s0 + $0x70] sm:$0xff]  ;;  %v5479_v7 = vld [vmem:[%s5837_s0 + $0x88] sm:$0xff] }
 0x3d0   : > { %v1944_v55 = vpop.f32.mrf.mxu3  ;;  %2475 = vmatpush.msrb.mxu1 %v5281_v32  ;;  %3558 = vmatmul.msk.f32.gmra.mxu3 %vm279_vm1, %v5446_v28 }
 0x3d1   : > { %v1945_v59 = vadd.f32 %v1944_v55, %v1885_v37  ;;  %2062 = vmatmul.f32.gmra.mxu0 %v1845_v38  ;;  %v5294_v37 = vld [vmem:[%s5838_s1 + $0x60] sm:$0xff]  ;;  %v5365_v55 = vld [vmem:[%s5838_s1 + $0x30] sm:$0xff] }
 0x3d2   : > { %2476 = vmatpush.msrb.mxu1 %v5294_v37 }
 0x3d3   : > { %3482 = vmatmul.msk.f32.gmra.mxu2 %vm279_vm1, %v1945_v59  ;;  %2214 = vmatmul.f32.gmra.mxu1 %v5300_v39 }
 0x3d4   : > { %2477 = vmatpush.msrb.mxu1 %v5314_v61 }
 0x3d5   : > { %v1903_v1 = vpop.f32.mrf.mxu1 }
 0x3d6   : > { %2478 = vmatpush.msrb.mxu1 %v5326_v53 }
 0x3d8   : > { %v1947_v19 = vpop.f32.mrf.mxu3  ;;  %2479 = vmatpush.msrb.mxu1 %v5332_v31 }
 0x3d9   : > { %v1948_v6 = vadd.f32 %v1947_v19, %v1888_v51  ;;  %2329 = vmatmul.f32.vlgmr.msra.gmra.mxu0 %v5243_v54  ;;  %v5359_v51 = vld [vmem:[%s5838_s1 + $0x38] sm:$0xff]  ;;  %v5410_v19 = vld [vmem:[%s5838_s1 + $0x8] sm:$0xff] }
 0x3da   : > { %2480 = vmatpush.msrb.mxu1 %v5339_v43 }
 0x3db   : > { %3483 = vmatmul.msk.f32.gmra.mxu2 %vm279_vm1, %v1948_v6  ;;  %2217 = vmatmul.f32.gmra.mxu1 %v5345_v0 }
 0x3dc   : > { %2481 = vmatpush.msrb.mxu1 %v5359_v51 }
 0x3de   : > { %2482 = vmatpush.msrb.mxu1 %v5365_v55 }
 0x3e0   : > { %v1950_v34 = vpop.f32.mrf.mxu3  ;;  %2483 = vmatpush.msrb.mxu1 %v5371_v5 }
 0x3e1   : > { %v1951_v42 = vadd.f32 %v1950_v34, %v1891_v11  ;;  %2332 = vmatmul.f32.gmra.mxu0 %v5300_v39  ;;  %v5404_v11 = vld [vmem:[%s5838_s1 + $0x10] sm:$0xff] }
 0x3e2   : > { %2484 = vmatpush.msrb.mxu1 %v5378_v3 }
 0x3e3   : > { %3484 = vmatmul.msk.f32.gmra.mxu2 %vm279_vm1, %v1951_v42  ;;  %2220 = vmatmul.f32.gmra.mxu1 %v5384_v12  ;;  %v5462_v42 = vld [vmem:[%s5837_s0 + $0x78] sm:$0xff] }
 0x3e4   : > { %2485 = vmatpush.msrb.mxu1 %v5398_v15  ;;  %3559 = vmatmul.msk.f32.gmra.mxu3 %vm279_vm1, %v5462_v42 }
 0x3e6   : > { %v2024_v60 = vpop.f32.mrf.mxu0  ;;  %2486 = vmatpush.msrb.mxu1 %v5404_v11 }
 0x3e8   : > { %v1953_v57 = vpop.f32.mrf.mxu3  ;;  %2487 = vmatpush.msrb.mxu1 %v5410_v19 }
 0x3e9   : > { %v1954_v62 = vadd.f32 %v1953_v57, %v1894_v46  ;;  %2335 = vmatmul.f32.gmra.mxu0 %v5345_v0  ;;  %v5456_v46 = vld [vmem:[%s5837_s0 + $0x60] sm:$0xff] }
 0x3ea   : > { %2488 = vmatpush.msrb.mxu1 %v5418_v22  ;;  %v5490_v57 = vld [vmem:[%s5837_s0 + $0x80] sm:$0xff] }
 0x3eb   : > { %3485 = vmatmul.msk.f32.gmra.mxu2 %vm279_vm1, %v1954_v62  ;;  %2223 = vmatmul.f32.gmra.mxu1 %v5424_v24  ;;  %v5496_v62 = vld [vmem:[%s5837_s0 + $0x98] sm:$0xff] }
 0x3ec   : > { %3560 = vmatmul.msk.f32.gmra.mxu3 %vm279_vm1, %v5479_v7 }
 0x3ee   : > { %v2027_v58 = vpop.f32.mrf.mxu0 }
 0x3f0   : > { %v1956_v14 = vpop.f32.mrf.mxu3 }
 0x3f1   : > { %v1957_v30 = vadd.f32 %v1956_v14, %v1897_v29  ;;  %2338 = vmatmul.f32.gmra.mxu0 %v5384_v12 }
 0x3f3   : > { %3486 = vmatmul.msk.f32.gmra.mxu2 %vm279_vm1, %v1957_v30  ;;  %2226 = vmatmul.f32.gmra.mxu1 %v5440_v18  ;;  %v5507_v30 = vld [vmem:[%s5837_s0 + $0x90] sm:$0xff] }
 0x3f4   : > { %3561 = vmatmul.msk.f32.gmra.mxu3 %vm279_vm1, %v5496_v62 }
 0x3f6   : > { %v2030_v6 = vpop.f32.mrf.mxu0 }
 0x3f8   : > { %v1959_v45 = vpop.f32.mrf.mxu3 }
 0x3f9   : > { %v1960_v9 = vadd.f32 %v1959_v45, %v1900_v52  ;;  %2341 = vmatmul.f32.gmra.mxu0 %v5424_v24  ;;  %v5513_v52 = vld [vmem:[%s5837_s0 + $0xa8] sm:$0xff] }
 0x3fb   : > { %3487 = vmatmul.msk.f32.gmra.mxu2 %vm279_vm1, %v1960_v9  ;;  %2229 = vmatmul.f32.gmra.mxu1 %v5456_v46 }
 0x3fc   : > { %3562 = vmatmul.msk.f32.gmra.mxu3 %vm279_vm1, %v5513_v52 }
 0x3fe   : > { %v2033_v10 = vpop.f32.mrf.mxu0 }
 0x400   : > { %v1962_v48 = vpop.f32.mrf.mxu3 }
 0x401   : > { %v1963_v59 = vadd.f32 %v1962_v48, %v1903_v1  ;;  %2344 = vmatmul.f32.gmra.mxu0 %v5440_v18  ;;  %v5524_v1 = vld [vmem:[%s5837_s0 + $0xa0] sm:$0xff]  ;;  %v5530_v48 = vld [vmem:[%s5837_s0 + $0xb8] sm:$0xff] }
 0x402   : > { %5893 = vst [vmem:[#allocation2_spill] sm:$0xff] %v5530_v48 }
 0x403   : > { %3488 = vmatmul.msk.f32.gmra.mxu2 %vm279_vm1, %v1963_v59  ;;  %2232 = vmatmul.f32.gmra.mxu1 %v5473_v63 }
 0x404   : > { %3563 = vmatmul.msk.f32.gmra.mxu3 %vm279_vm1, %v5530_v48 }
 0x406   : > { %v2036_v34 = vpop.f32.mrf.mxu0 }
 0x409   : > { %2347 = vmatmul.f32.gmra.mxu0 %v5456_v46 }
 0x40b   : > { %3567 = vmatmul.msk.f32.vlgmr.msra.gmra.mxu2 %vm279_vm1, %v5209_v23  ;;  %2235 = vmatmul.f32.gmra.mxu1 %v5490_v57 }
 0x40e   : > { %v2039_v4 = vpop.f32.mrf.mxu0 }
 0x411   : > { %2350 = vmatmul.f32.gmra.mxu0 %v5473_v63 }
 0x413   : > { %3568 = vmatmul.msk.f32.gmra.mxu2 %vm279_vm1, %v5249_v13  ;;  %2238 = vmatmul.f32.gmra.mxu1 %v5507_v30 }
 0x416   : > { %v2042_v21 = vpop.f32.mrf.mxu0 }
 0x419   : > { %2353 = vmatmul.f32.gmra.mxu0 %v5490_v57 }
 0x41b   : > { %3569 = vmatmul.msk.f32.gmra.mxu2 %vm279_vm1, %v5306_v40  ;;  %2241 = vmatmul.f32.gmra.mxu1 %v5524_v1 }
 0x41e   : > { %v2083_v49 = vpop.f32.mrf.mxu2  ;;  %v2045_v14 = vpop.f32.mrf.mxu0 }
 0x41f   : > { %v2084_v44 = vadd.f32 %v2083_v49, %v2024_v60  ;;  %v5547_v49 = vld [vmem:[%s5837_s0 + $0xc8] sm:$0xff] }
 0x420   : > { %5895 = vst [vmem:[#allocation3_spill] sm:$0xff] %v5547_v49  ;;  %3564 = vmatmul.msk.f32.gmra.mxu3 %vm279_vm1, %v5547_v49 }
 0x421   : > { %3489 = vst [vmem:[%s4445_s30 + $0x150] sm:$0xff] %v2084_v44  ;;  %2356 = vmatmul.f32.gmra.mxu0 %v5507_v30 }
 0x423   : > { %3570 = vmatmul.msk.f32.gmra.mxu2 %vm279_vm1, %v5351_v16 }
 0x426   : > { %v2086_v41 = vpop.f32.mrf.mxu2  ;;  %v2048_v60 = vpop.f32.mrf.mxu0 }
 0x427   : > { %v2087_v38 = vadd.f32 %v2086_v41, %v2027_v58 }
 0x429   : > { %3490 = vst [vmem:[%s4445_s30 + $0x158] sm:$0xff] %v2087_v38  ;;  %2359 = vmatmul.f32.gmra.mxu0 %v5524_v1  ;;  %v5558_v38 = vld [vmem:[%s5837_s0 + $0xc0] sm:$0xff] }
 0x42a   : > { %5896 = vst [vmem:[#allocation5_spill] sm:$0xff] %v5558_v38 }
 0x42b   : > { %3571 = vmatmul.msk.f32.gmra.mxu2 %vm279_vm1, %v5390_v2 }
 0x42e   : > { %v2089_v29 = vpop.f32.mrf.mxu2 }
 0x42f   : > { %v2090_v20 = vadd.f32 %v2089_v29, %v2030_v6  ;;  %v2051_v6 = vpop.f32.mrf.mxu0  ;;  %v5564_v29 = vld [vmem:[%s5837_s0 + $0xd8] sm:$0xff] }
 0x430   : > { %5897 = vst [vmem:[#allocation6_spill] sm:$0xff] %v5564_v29  ;;  %3565 = vmatmul.msk.f32.gmra.mxu3 %vm279_vm1, %v5564_v29 }
 0x431   : > { %3491 = vst [vmem:[%s4445_s30 + $0x160] sm:$0xff] %v2090_v20 }
 0x433   : > { %3572 = vmatmul.msk.f32.gmra.mxu2 %vm279_vm1, %v5430_v25 }
 0x436   : > { %v2092_v45 = vpop.f32.mrf.mxu2 }
 0x437   : > { %v2093_v9 = vadd.f32 %v2092_v45, %v2033_v10  ;;  %v5541_v10 = vld [vmem:[%s5837_s0 + $0xb0] sm:$0xff]  ;;  %v2054_v41 = vpop.f32.mrf.mxu0 }
 0x438   : > { %5894 = vst [vmem:[#allocation4_spill] sm:$0xff] %v5541_v10  ;;  %2244 = vmatmul.f32.gmra.mxu1 %v5541_v10  ;;  %2362 = vmatmul.f32.gmra.mxu0 %v5541_v10  ;;  %v3637_v10 = vld [vmem:[%s3899_s18 + $0x858] sm:$0xff] }
 0x439   : > { %3492 = vst [vmem:[%s4445_s30 + $0x168] sm:$0xff] %v2093_v9  ;;  %v5575_v9 = vld [vmem:[%s5837_s0 + $0xd0] sm:$0xff] }
 0x43a   : > { %5898 = vst [vmem:[#allocation7_spill] sm:$0xff] %v5575_v9 }
 0x43b   : > { %3573 = vmatmul.msk.f32.gmra.mxu2 %vm279_vm1, %v5446_v28 }
 0x43e   : > { %v2095_v59 = vpop.f32.mrf.mxu2 }
 0x43f   : > { %v2096_v58 = vadd.f32 %v2095_v59, %v2036_v34  ;;  %v2057_v45 = vpop.f32.mrf.mxu0 }
 0x440   : > { %2247 = vmatmul.f32.gmra.mxu1 %v5558_v38  ;;  %2365 = vmatmul.f32.gmra.mxu0 %v5558_v38 }
 0x441   : > { %3493 = vst [vmem:[%s4445_s30 + $0x170] sm:$0xff] %v2096_v58 }
 0x443   : > { %3574 = vmatmul.msk.f32.gmra.mxu2 %vm279_vm1, %v5462_v42 }
 0x446   : > { %v2098_v34 = vpop.f32.mrf.mxu2 }
 0x447   : > { %v2099_v44 = vadd.f32 %v2098_v34, %v2039_v4  ;;  %v2060_v34 = vpop.f32.mrf.mxu0 }
 0x448   : > { %2250 = vmatmul.f32.gmra.mxu1 %v5575_v9  ;;  %2368 = vmatmul.f32.gmra.mxu0 %v5575_v9  ;;  %v2212_v9 = vpop.f32.mrf.mxu1 }
 0x449   : > { %3494 = vst [vmem:[%s4445_s30 + $0x178] sm:$0xff] %v2099_v44 }
 0x44b   : > { %3575 = vmatmul.msk.f32.gmra.mxu2 %vm279_vm1, %v5479_v7 }
 0x44e   : > { %v2101_v4 = vpop.f32.mrf.mxu2 }
 0x44f   : > { %v2102_v20 = vadd.f32 %v2101_v4, %v2042_v21  ;;  %v2063_v38 = vpop.f32.mrf.mxu0 }
 0x451   : > { %3495 = vst [vmem:[%s4445_s30 + $0x180] sm:$0xff] %v2102_v20 }
 0x453   : > { %3576 = vmatmul.msk.f32.gmra.mxu2 %vm279_vm1, %v5496_v62 }
 0x456   : > { %v2104_v59 = vpop.f32.mrf.mxu2 }
 0x457   : > { %v2105_v58 = vadd.f32 %v2104_v59, %v2045_v14 }
 0x459   : > { %3496 = vst [vmem:[%s4445_s30 + $0x188] sm:$0xff] %v2105_v58  ;;  %v3657_v58 = vld [vmem:[%s3899_s18 + $0x8f8] sm:$0xf] }
 0x45a   : > { %3673 = vmatpush.msk.msra.mxu3 %vm322_vm0, %v3657_v58 }
 0x45b   : > { %3577 = vmatmul.msk.f32.gmra.mxu2 %vm279_vm1, %v5513_v52 }
 0x45e   : > { %v2107_v21 = vpop.f32.mrf.mxu2 }
 0x45f   : > { %v2108_v44 = vadd.f32 %v2107_v21, %v2048_v60  ;;  %v2271_v60 = vpop.f32.mrf.mxu3  ;;  %v2330_v21 = vpop.f32.mrf.mxu0 }
 0x461   : > { %3497 = vst [vmem:[%s4445_s30 + $0x190] sm:$0xff] %v2108_v44  ;;  %v2272_v44 = vadd.f32 %v2271_v60, %v2212_v9  ;;  %v3640_v9 = vld [vmem:[%s3899_s18 + $0x870] sm:$0xff] }
 0x462   : > { %2661 = vmatpush.msrb.mxu0 %v3640_v9 }
 0x463   : > { %3578 = vmatmul.msk.f32.gmra.mxu2 %vm279_vm1, %v5530_v48  ;;  %2489 = vmatmul.f32.vlgmr.msrb.gmra.mxu1 %v2272_v44 }
 0x466   : > { %v2110_v4 = vpop.f32.mrf.mxu2 }
 0x467   : > { %v2111_v20 = vadd.f32 %v2110_v4, %v2051_v6  ;;  %v2333_v60 = vpop.f32.mrf.mxu0 }
 0x469   : > { %3498 = vst [vmem:[%s4445_s30 + $0x198] sm:$0xff] %v2111_v20  ;;  %v3656_v20 = vld [vmem:[%s3899_s18 + $0x8f0] sm:$0xf] }
 0x46a   : > { %3658 = vmatpush.msk.msrb.mxu2 %vm322_vm0, %v3656_v20 }
 0x46b   : > { %3579 = vmatmul.msk.f32.gmra.mxu2 %vm279_vm1, %v5547_v49  ;;  %v3654_v49 = vld [vmem:[%s3899_s18 + $0x8e0] sm:$0xff] }
 0x46c   : > { %2729 = vmatpush.msrb.mxu2 %v3654_v49 }
 0x46e   : > { %v2113_v14 = vpop.f32.mrf.mxu2 }
 0x46f   : > { %v2114_v59 = vadd.f32 %v2113_v14, %v2054_v41  ;;  %v3641_v41 = vld [vmem:[%s3899_s18 + $0x878] sm:$0xff]  ;;  %v2215_v14 = vpop.f32.mrf.mxu1 }
 0x470   : > { %2779 = vmatpush.msra.mxu1 %v3641_v41  ;;  %v3638_v41 = vld [vmem:[%s3899_s18 + $0x860] sm:$0xff] }
 0x471   : > { %3499 = vst [vmem:[%s4445_s30 + $0x1a0] sm:$0xff] %v2114_v59  ;;  %v2274_v59 = vpop.f32.mrf.mxu3  ;;  %2662 = vmatpush.msrb.mxu0 %v3638_v41  ;;  %v3633_v41 = vld [vmem:[%s3899_s18 + $0x838] sm:$0xff] }
 0x472   : > { %v2275_v58 = vadd.f32 %v2274_v59, %v2215_v14  ;;  %v2336_v59 = vpop.f32.mrf.mxu0 }
 0x473   : > { %3580 = vmatmul.msk.f32.gmra.mxu2 %vm279_vm1, %v5564_v29  ;;  %v3655_v29 = vld [vmem:[%s3899_s18 + $0x8e8] sm:$0xff] }
 0x474   : > { %2492 = vmatmul.f32.gmra.mxu1 %v2275_v58  ;;  %2847 = vmatpush.msra.mxu3 %v3655_v29  ;;  %v3636_v29 = vld [vmem:[%s3899_s18 + $0x850] sm:$0xff] }
 0x475   : > { %2663 = vmatpush.msrb.mxu0 %v3636_v29 }
 0x476   : > { %v2116_v6 = vpop.f32.mrf.mxu2 }
 0x477   : > { %v2117_v4 = vadd.f32 %v2116_v6, %v2057_v45  ;;  %v3639_v6 = vld [vmem:[%s3899_s18 + $0x868] sm:$0xff] }
 0x478   : > { %2780 = vmatpush.msra.mxu1 %v3639_v6  ;;  %v3653_v6 = vld [vmem:[%s3899_s18 + $0x8d8] sm:$0xff] }
 0x479   : > { %3500 = vst [vmem:[%s4445_s30 + $0x1a8] sm:$0xff] %v2117_v4  ;;  %v2218_v4 = vpop.f32.mrf.mxu1  ;;  %v2277_v20 = vpop.f32.mrf.mxu3  ;;  %2848 = vmatpush.msra.mxu3 %v3653_v6 }
 0x47a   : > { %v2278_v14 = vadd.f32 %v2277_v20, %v2218_v4  ;;  %2781 = vmatpush.msra.mxu1 %v3637_v10  ;;  %v2339_v4 = vpop.f32.mrf.mxu0  ;;  %v3652_v20 = vld [vmem:[%s3899_s18 + $0x8d0] sm:$0xff] }
 0x47b   : > { %2730 = vmatpush.msrb.mxu2 %v3652_v20 }
 0x47c   : > { %2495 = vmatmul.f32.gmra.mxu1 %v2278_v14 }
 0x47e   : > { %v2119_v44 = vpop.f32.mrf.mxu2 }
 0x47f   : > { %v2120_v45 = vadd.f32 %v2119_v44, %v2060_v34 }
 0x481   : > { %3501 = vst [vmem:[%s4445_s30 + $0x1b0] sm:$0xff] %v2120_v45  ;;  %v2221_v58 = vpop.f32.mrf.mxu1  ;;  %v2280_v44 = vpop.f32.mrf.mxu3  ;;  %v3635_v45 = vld [vmem:[%s3899_s18 + $0x848] sm:$0xff] }
 0x482   : > { %v2281_v48 = vadd.f32 %v2280_v44, %v2221_v58  ;;  %2782 = vmatpush.msra.mxu1 %v3635_v45  ;;  %v3631_v58 = vld [vmem:[%s3899_s18 + $0x828] sm:$0xff] }
 0x483   : > { %v3651_v44 = vld [vmem:[%s3899_s18 + $0x8c8] sm:$0xff] }
 0x484   : > { %2498 = vmatmul.f32.gmra.mxu1 %v2281_v48  ;;  %2849 = vmatpush.msra.mxu3 %v3651_v44  ;;  %v3627_v44 = vld [vmem:[%s3899_s18 + $0x808] sm:$0xff] }
 0x485   : > { %2783 = vmatpush.msra.mxu1 %v3633_v41  ;;  %v3650_v41 = vld [vmem:[%s3899_s18 + $0x8c0] sm:$0xff] }
 0x486   : > { %v2122_v34 = vpop.f32.mrf.mxu2  ;;  %2731 = vmatpush.msrb.mxu2 %v3650_v41 }
 0x487   : > { %v2123_v9 = vadd.f32 %v2122_v34, %v2063_v38  ;;  %v3634_v38 = vld [vmem:[%s3899_s18 + $0x840] sm:$0xff]  ;;  %2784 = vmatpush.msra.mxu1 %v3631_v58 }
 0x488   : > { %2664 = vmatpush.msrb.mxu0 %v3634_v38 }
 0x489   : > { %3502 = vst [vmem:[%s4445_s30 + $0x1b8] sm:$0xff] %v2123_v9  ;;  %v2224_v14 = vpop.f32.mrf.mxu1  ;;  %v2283_v34 = vpop.f32.mrf.mxu3 }
 0x48a   : > { %v2284_v9 = vadd.f32 %v2283_v34, %v2224_v14  ;;  %v3629_v14 = vld [vmem:[%s3899_s18 + $0x818] sm:$0xff] }
 0x48b   : > { %2785 = vmatpush.msra.mxu1 %v3629_v14  ;;  %v3648_v14 = vld [vmem:[%s3899_s18 + $0x8b0] sm:$0xff] }
 0x48c   : > { %2501 = vmatmul.f32.gmra.mxu1 %v2284_v9  ;;  %2732 = vmatpush.msrb.mxu2 %v3648_v14 }
 0x48d   : > { %2786 = vmatpush.msra.mxu1 %v3627_v44  ;;  %v3623_v44 = vld [vmem:[%s3899_s18 + $0x7e8] sm:$0xff] }
 0x48e   : > { %v2389_v49 = vpop.f32.mrf.mxu2 }
 0x48f   : > { %v2390_v10 = vadd.f32 %v2389_v49, %v2330_v21  ;;  %v3632_v21 = vld [vmem:[%s3899_s18 + $0x830] sm:$0xff]  ;;  %v2342_v49 = vpop.f32.mrf.mxu0 }
 0x490   : > { %2665 = vmatpush.msrb.mxu0 %v3632_v21 }
 0x491   : > { %3582 = vmatmul.msk.f32.vlgmr.msrb.gmra.mxu3 %vm279_vm1, %v2390_v10  ;;  %v2227_v45 = vpop.f32.mrf.mxu1  ;;  %v2286_v6 = vpop.f32.mrf.mxu3 }
 0x492   : > { %v2287_v10 = vadd.f32 %v2286_v6, %v2227_v45  ;;  %v3649_v45 = vld [vmem:[%s3899_s18 + $0x8b8] sm:$0xff] }
 0x493   : > { %2850 = vmatpush.msra.mxu3 %v3649_v45  ;;  %v3647_v45 = vld [vmem:[%s3899_s18 + $0x8a8] sm:$0xff] }
 0x494   : > { %2504 = vmatmul.f32.gmra.mxu1 %v2287_v10 }
 0x495   : > { %2851 = vmatpush.msra.mxu3 %v3647_v45 }
 0x496   : > { %v2392_v29 = vpop.f32.mrf.mxu2 }
 0x497   : > { %v2393_v48 = vadd.f32 %v2392_v29, %v2333_v60  ;;  %v3630_v60 = vld [vmem:[%s3899_s18 + $0x820] sm:$0xff] }
 0x498   : > { %2666 = vmatpush.msrb.mxu0 %v3630_v60 }
 0x499   : > { %3583 = vmatmul.msk.f32.gmra.mxu3 %vm279_vm1, %v2393_v48  ;;  %v2230_v34 = vpop.f32.mrf.mxu1  ;;  %v2289_v9 = vpop.f32.mrf.mxu3 }
 0x49a   : > { %v2290_v29 = vadd.f32 %v2289_v9, %v2230_v34  ;;  %v2345_v48 = vpop.f32.mrf.mxu0  ;;  %v3625_v34 = vld [vmem:[%s3899_s18 + $0x7f8] sm:$0xff] }
 0x49b   : > { %2787 = vmatpush.msra.mxu1 %v3625_v34 }
 0x49c   : > { %2507 = vmatmul.f32.gmra.mxu1 %v2290_v29 }
 0x49d   : > { %2788 = vmatpush.msra.mxu1 %v3623_v44 }
 0x49e   : > { %v2395_v38 = vpop.f32.mrf.mxu2 }
 0x49f   : > { %v2396_v20 = vadd.f32 %v2395_v38, %v2336_v59  ;;  %v3628_v59 = vld [vmem:[%s3899_s18 + $0x810] sm:$0xff] }
 0x4a0   : > { %2667 = vmatpush.msrb.mxu0 %v3628_v59 }
 0x4a1   : > { %3584 = vmatmul.msk.f32.gmra.mxu3 %vm279_vm1, %v2396_v20  ;;  %v2233_v6 = vpop.f32.mrf.mxu1  ;;  %v2292_v10 = vpop.f32.mrf.mxu3 }
 0x4a2   : > { %v2293_v38 = vadd.f32 %v2292_v10, %v2233_v6  ;;  %v2348_v60 = vpop.f32.mrf.mxu0 }
 0x4a4   : > { %2510 = vmatmul.f32.gmra.mxu1 %v2293_v38 }
 0x4a6   : > { %v2398_v21 = vpop.f32.mrf.mxu2 }
 0x4a7   : > { %v2399_v58 = vadd.f32 %v2398_v21, %v2339_v4  ;;  %v3626_v4 = vld [vmem:[%s3899_s18 + $0x800] sm:$0xff]  ;;  %v3624_v21 = vld [vmem:[%s3899_s18 + $0x7f0] sm:$0xff] }
 0x4a8   : > { %2668 = vmatpush.msrb.mxu0 %v3626_v4  ;;  %v3621_v4 = vld [vmem:[%s3899_s18 + $0x7d8] sm:$0xff] }
 0x4a9   : > { %3585 = vmatmul.msk.f32.gmra.mxu3 %vm279_vm1, %v2399_v58  ;;  %v2236_v9 = vpop.f32.mrf.mxu1  ;;  %v2295_v29 = vpop.f32.mrf.mxu3  ;;  %2789 = vmatpush.msra.mxu1 %v3621_v4 }
 0x4aa   : > { %v2296_v58 = vadd.f32 %v2295_v29, %v2236_v9  ;;  %2669 = vmatpush.msrb.mxu0 %v3624_v21  ;;  %v2351_v6 = vpop.f32.mrf.mxu0  ;;  %v3620_v9 = vld [vmem:[%s3899_s18 + $0x7d0] sm:$0xff] }
 0x4ac   : > { %2513 = vmatmul.f32.gmra.mxu1 %v2296_v58  ;;  %v3619_v58 = vld [vmem:[%s3899_s18 + $0x7c8] sm:$0xff] }
 0x4ad   : > { %2790 = vmatpush.msra.mxu1 %v3619_v58 }
 0x4ae   : > { %v2401_v20 = vpop.f32.mrf.mxu2 }
 0x4af   : > { %v2402_v41 = vadd.f32 %v2401_v20, %v2342_v49  ;;  %v3622_v20 = vld [vmem:[%s3899_s18 + $0x7e0] sm:$0xff] }
 0x4b0   : > { %2670 = vmatpush.msrb.mxu0 %v3622_v20  ;;  %v3617_v20 = vld [vmem:[%s3899_s18 + $0x7b8] sm:$0xff] }
 0x4b1   : > { %3586 = vmatmul.msk.f32.gmra.mxu3 %vm279_vm1, %v2402_v41  ;;  %v2239_v10 = vpop.f32.mrf.mxu1  ;;  %v2298_v38 = vpop.f32.mrf.mxu3  ;;  %v3646_v41 = vld [vmem:[%s3899_s18 + $0x8a0] sm:$0xff]  ;;  %2791 = vmatpush.msra.mxu1 %v3617_v20  ;;  %v3613_v20 = vld [vmem:[%s3899_s18 + $0x798] sm:$0xff] }
 0x4b2   : > { %v2299_v14 = vadd.f32 %v2298_v38, %v2239_v10  ;;  %2733 = vmatpush.msrb.mxu2 %v3646_v41  ;;  %2671 = vmatpush.msrb.mxu0 %v3620_v9  ;;  %v3644_v38 = vld [vmem:[%s3899_s18 + $0x890] sm:$0xff] }
 0x4b4   : > { %2516 = vmatmul.f32.gmra.mxu1 %v2299_v14  ;;  %2734 = vmatpush.msrb.mxu2 %v3644_v38  ;;  %v3642_v38 = vld [vmem:[%s3899_s18 + $0x880] sm:$0xff] }
 0x4b6   : > { %v2404_v49 = vpop.f32.mrf.mxu2  ;;  %2735 = vmatpush.msrb.mxu2 %v3642_v38 }
 0x4b7   : > { %v2405_v59 = vadd.f32 %v2404_v49, %v2345_v48  ;;  %v3645_v49 = vld [vmem:[%s3899_s18 + $0x898] sm:$0xff]  ;;  %3659 = vmatmul.msk.f32.vlgmr.msrb.gmra.mxu2 %vm279_vm1, %v5209_v23 }
 0x4b8   : > { %2852 = vmatpush.msra.mxu3 %v3645_v49  ;;  %3688 = vmatpush.msk.msra.mxu2 %vm322_vm0, %v5216_v26 }
 0x4b9   : > { %3587 = vmatmul.msk.f32.gmra.mxu3 %vm279_vm1, %v2405_v59  ;;  %v2242_v29 = vpop.f32.mrf.mxu1  ;;  %v2301_v21 = vpop.f32.mrf.mxu3 }
 0x4ba   : > { %v2354_v59 = vpop.f32.mrf.mxu0  ;;  %v2302_v44 = vadd.f32 %v2301_v21, %v2242_v29  ;;  %v3615_v29 = vld [vmem:[%s3899_s18 + $0x7a8] sm:$0xff]  ;;  %3007 = vmatpush.msra.mxu2 %v5223_v56 }
 0x4bb   : > { %v3643_v21 = vld [vmem:[%s3899_s18 + $0x888] sm:$0xff]  ;;  %2792 = vmatpush.msra.mxu1 %v3615_v29 }
 0x4bc   : > { %2519 = vmatmul.f32.gmra.mxu1 %v2302_v44  ;;  %2853 = vmatpush.msra.mxu3 %v3643_v21  ;;  %v3610_v21 = vld [vmem:[%s3899_s18 + $0x780] sm:$0xff] }
 0x4bd   : > { %2793 = vmatpush.msra.mxu1 %v3613_v20  ;;  %3008 = vmatpush.msra.mxu2 %v5229_v47 }
 0x4be   : > { %v2407_v48 = vpop.f32.mrf.mxu2  ;;  %3735 = vmatpush.msk.msrb.mxu3 %vm322_vm0, %v5216_v26 }
 0x4bf   : > { %v2408_v34 = vadd.f32 %v2407_v48, %v2348_v60  ;;  %v3618_v60 = vld [vmem:[%s3899_s18 + $0x7c0] sm:$0xff]  ;;  %3009 = vmatpush.msra.mxu2 %v5237_v17 }
 0x4c0   : > { %2672 = vmatpush.msrb.mxu0 %v3618_v60  ;;  %3736 = vmatpush.msrb.mxu3 %v5223_v56  ;;  %v3614_v60 = vld [vmem:[%s3899_s18 + $0x7a0] sm:$0xff] }
 0x4c1   : > { %3588 = vmatmul.msk.f32.gmra.mxu3 %vm279_vm1, %v2408_v34  ;;  %v2245_v41 = vpop.f32.mrf.mxu1  ;;  %v2304_v4 = vpop.f32.mrf.mxu3  ;;  %3660 = vmatmul.msk.f32.gmra.mxu2 %vm279_vm1, %v5249_v13 }
 0x4c2   : > { %v2305_v14 = vadd.f32 %v2304_v4, %v2245_v41  ;;  %v2357_v48 = vpop.f32.mrf.mxu0  ;;  %3737 = vmatpush.msrb.mxu3 %v5229_v47  ;;  %3010 = vmatpush.msra.mxu2 %v5263_v8 }
 0x4c4   : > { %2522 = vmatmul.f32.gmra.mxu1 %v2305_v14  ;;  %v3612_v14 = vld [vmem:[%s3899_s18 + $0x790] sm:$0xff]  ;;  %3738 = vmatpush.msrb.mxu3 %v5237_v17 }
 0x4c5   : > { %3011 = vmatpush.msra.mxu2 %v5275_v27 }
 0x4c6   : > { %v2410_v45 = vpop.f32.mrf.mxu2  ;;  %3739 = vmatpush.msrb.mxu3 %v5263_v8 }
 0x4c7   : > { %v2411_v10 = vadd.f32 %v2410_v45, %v2351_v6  ;;  %v3616_v6 = vld [vmem:[%s3899_s18 + $0x7b0] sm:$0xff]  ;;  %3012 = vmatpush.msra.mxu2 %v5288_v36 }
 0x4c8   : > { %2673 = vmatpush.msrb.mxu0 %v3616_v6  ;;  %3740 = vmatpush.msrb.mxu3 %v5275_v27 }
 0x4c9   : > { %3589 = vmatmul.msk.f32.gmra.mxu3 %vm279_vm1, %v2411_v10  ;;  %v2248_v58 = vpop.f32.mrf.mxu1  ;;  %v2307_v49 = vpop.f32.mrf.mxu3  ;;  %3661 = vmatmul.msk.f32.gmra.mxu2 %vm279_vm1, %v5306_v40 }
 0x4ca   : > { %v2308_v44 = vadd.f32 %v2307_v49, %v2248_v58  ;;  %v2360_v45 = vpop.f32.mrf.mxu0  ;;  %2674 = vmatpush.msrb.mxu0 %v3614_v60  ;;  %3741 = vmatpush.msrb.mxu3 %v5288_v36 }
 0x4cb   : > { %3013 = vmatpush.msra.mxu2 %v5320_v33 }
 0x4cc   : > { %2525 = vmatmul.f32.gmra.mxu1 %v2308_v44  ;;  %2675 = vmatpush.msrb.mxu0 %v3612_v14 }
 0x4cd   : > { %3742 = vmatpush.msrb.mxu3 %v5320_v33 }
 0x4ce   : > { %v2413_v34 = vpop.f32.mrf.mxu2  ;;  %2676 = vmatpush.msrb.mxu0 %v3610_v21 }
 0x4cf   : > { %v2414_v9 = vadd.f32 %v2413_v34, %v2354_v59  ;;  %2677 = vmatmul.f32.vlgmr.msrb.gmra.mxu0 %v5243_v54 }
 0x4d0   : > { %2939 = vmatpush.msra.mxu0 %v5257_v35 }
 0x4d1   : > { %3590 = vmatmul.msk.f32.gmra.mxu3 %vm279_vm1, %v2414_v9  ;;  %v2251_v41 = vpop.f32.mrf.mxu1  ;;  %v2310_v4 = vpop.f32.mrf.mxu3  ;;  %v3611_v9 = vld [vmem:[%s3899_s18 + $0x788] sm:$0xff]  ;;  %3662 = vmatmul.msk.f32.gmra.mxu2 %vm279_vm1, %v5351_v16 }
 0x4d2   : > { %v2311_v34 = vadd.f32 %v2310_v4, %v2251_v41  ;;  %2794 = vmatpush.msra.mxu1 %v3611_v9  ;;  %v2363_v29 = vpop.f32.mrf.mxu0  ;;  %2940 = vmatpush.msra.mxu0 %v5269_v50 }
 0x4d4   : > { %2528 = vmatmul.f32.gmra.mxu1 %v2311_v34  ;;  %2941 = vmatpush.msra.mxu0 %v5281_v32 }
 0x4d5   : > { %3719 = vmatpush.msrb.mxu1 %v5257_v35 }
 0x4d6   : > { %v2416_v59 = vpop.f32.mrf.mxu2  ;;  %2942 = vmatpush.msra.mxu0 %v5294_v37 }
 0x4d7   : > { %v2417_v10 = vadd.f32 %v2416_v59, %v2357_v48  ;;  %3720 = vmatpush.msrb.mxu1 %v5269_v50  ;;  %2680 = vmatmul.f32.gmra.mxu0 %v5300_v39 }
 0x4d8   : > { %2943 = vmatpush.msra.mxu0 %v5314_v61 }
 0x4d9   : > { %3591 = vmatmul.msk.f32.gmra.mxu3 %vm279_vm1, %v2417_v10  ;;  %3721 = vmatpush.msrb.mxu1 %v5281_v32 }
 0x4da   : > { %v2366_v47 = vpop.f32.mrf.mxu0  ;;  %2944 = vmatpush.msra.mxu0 %v5326_v53  ;;  %3663 = vmatmul.msk.f32.gmra.mxu2 %vm279_vm1, %v5390_v2 }
 0x4db   : > { %3722 = vmatpush.msrb.mxu1 %v5294_v37 }
 0x4dc   : > { %2795 = vmatmul.f32.vlgmr.msra.gmra.mxu1 %v5243_v54  ;;  %2945 = vmatpush.msra.mxu0 %v5332_v31 }
 0x4dd   : > { %3723 = vmatpush.msrb.mxu1 %v5314_v61 }
 0x4de   : > { %v2419_v48 = vpop.f32.mrf.mxu2  ;;  %2946 = vmatpush.msra.mxu0 %v5339_v43 }
 0x4df   : > { %v2420_v6 = vadd.f32 %v2419_v48, %v2360_v45  ;;  %3724 = vmatpush.msrb.mxu1 %v5326_v53  ;;  %2683 = vmatmul.f32.gmra.mxu0 %v5345_v0 }
 0x4e0   : > { %v2490_v35 = vpop.f32.mrf.mxu1  ;;  %2947 = vmatpush.msra.mxu0 %v5359_v51 }
 0x4e1   : > { %3592 = vmatmul.msk.f32.gmra.mxu3 %vm279_vm1, %v2420_v6  ;;  %3725 = vmatpush.msrb.mxu1 %v5332_v31 }
 0x4e2   : > { %v2369_v8 = vpop.f32.mrf.mxu0  ;;  %2948 = vmatpush.msra.mxu0 %v5365_v55  ;;  %3664 = vmatmul.msk.f32.gmra.mxu2 %vm279_vm1, %v5430_v25 }
 0x4e3   : > { %3726 = vmatpush.msrb.mxu1 %v5339_v43 }
 0x4e4   : > { %2798 = vmatmul.f32.gmra.mxu1 %v5300_v39  ;;  %2949 = vmatpush.msra.mxu0 %v5371_v5 }
 0x4e5   : > { %3727 = vmatpush.msrb.mxu1 %v5359_v51 }
 0x4e6   : > { %v2422_v26 = vpop.f32.mrf.mxu2  ;;  %2950 = vmatpush.msra.mxu0 %v5378_v3 }
 0x4e7   : > { %v2423_v56 = vadd.f32 %v2422_v26, %v2363_v29  ;;  %3728 = vmatpush.msrb.mxu1 %v5365_v55  ;;  %2686 = vmatmul.f32.gmra.mxu0 %v5384_v12 }
 0x4e8   : > { %2951 = vmatpush.msra.mxu0 %v5398_v15 }
 0x4e9   : > { %3593 = vmatmul.msk.f32.gmra.mxu3 %vm279_vm1, %v2423_v56  ;;  %3729 = vmatpush.msrb.mxu1 %v5371_v5  ;;  %v5899_v5 = vld [vmem:[#allocation2_spill] sm:$0xff] }
 0x4ea   : > { %2952 = vmatpush.msra.mxu0 %v5404_v11  ;;  %3665 = vmatmul.msk.f32.gmra.mxu2 %vm279_vm1, %v5446_v28 }
 0x4eb   : > { %3730 = vmatpush.msrb.mxu1 %v5378_v3 }
 0x4ec   : > { %2801 = vmatmul.f32.gmra.mxu1 %v5345_v0  ;;  %2953 = vmatpush.msra.mxu0 %v5410_v19 }
 0x4ed   : > { %3731 = vmatpush.msrb.mxu1 %v5398_v15  ;;  %v5900_v15 = vld [vmem:[#allocation4_spill] sm:$0xff] }
 0x4ee   : > { %v2425_v17 = vpop.f32.mrf.mxu2  ;;  %2954 = vmatpush.msra.mxu0 %v5418_v22 }
 0x4ef   : > { %v2426_v54 = vadd.f32 %v2425_v17, %v2366_v47  ;;  %3732 = vmatpush.msrb.mxu1 %v5404_v11  ;;  %2689 = vmatmul.f32.gmra.mxu0 %v5424_v24  ;;  %v5901_v11 = vld [vmem:[#allocation3_spill] sm:$0xff] }
 0x4f1   : > { %3594 = vmatmul.msk.f32.gmra.mxu3 %vm279_vm1, %v2426_v54  ;;  %v2493_v32 = vpop.f32.mrf.mxu1  ;;  %3733 = vmatpush.msrb.mxu1 %v5410_v19 }
 0x4f2   : > { %3666 = vmatmul.msk.f32.gmra.mxu2 %vm279_vm1, %v5462_v42 }
 0x4f3   : > { %3734 = vmatpush.msrb.mxu1 %v5418_v22 }
 0x4f4   : > { %2804 = vmatmul.f32.gmra.mxu1 %v5384_v12 }
 0x4f6   : > { %v2428_v50 = vpop.f32.mrf.mxu2 }
 0x4f7   : > { %v2429_v27 = vadd.f32 %v2428_v50, %v2369_v8  ;;  %2692 = vmatmul.f32.gmra.mxu0 %v5440_v18 }
 0x4f9   : > { %3595 = vmatmul.msk.f32.gmra.mxu3 %vm279_vm1, %v2429_v27  ;;  %v2496_v36 = vpop.f32.mrf.mxu1 }
 0x4fa   : > { %3667 = vmatmul.msk.f32.gmra.mxu2 %vm279_vm1, %v5479_v7 }
 0x4fc   : > { %2807 = vmatmul.f32.gmra.mxu1 %v5424_v24 }
 0x4ff   : > { %2695 = vmatmul.f32.gmra.mxu0 %v5456_v46 }
 0x501   : > { %3674 = vmatmul.msk.f32.vlgmr.msra.gmra.mxu3 %vm279_vm1, %v5209_v23  ;;  %v2499_v23 = vpop.f32.mrf.mxu1 }
 0x502   : > { %3668 = vmatmul.msk.f32.gmra.mxu2 %vm279_vm1, %v5496_v62 }
 0x504   : > { %2810 = vmatmul.f32.gmra.mxu1 %v5440_v18  ;;  %v5903_v18 = vld [vmem:[#allocation6_spill] sm:$0xff] }
 0x507   : > { %2698 = vmatmul.f32.gmra.mxu0 %v5473_v63 }
 0x509   : > { %3675 = vmatmul.msk.f32.gmra.mxu3 %vm279_vm1, %v5249_v13  ;;  %v2502_v37 = vpop.f32.mrf.mxu1 }
 0x50a   : > { %3669 = vmatmul.msk.f32.gmra.mxu2 %vm279_vm1, %v5513_v52 }
 0x50c   : > { %2813 = vmatmul.f32.gmra.mxu1 %v5456_v46 }
 0x50f   : > { %2701 = vmatmul.f32.gmra.mxu0 %v5490_v57 }
 0x511   : > { %3676 = vmatmul.msk.f32.gmra.mxu3 %vm279_vm1, %v5306_v40  ;;  %v2505_v61 = vpop.f32.mrf.mxu1 }
 0x512   : > { %3670 = vmatmul.msk.f32.gmra.mxu2 %vm279_vm1, %v5899_v5 }
 0x514   : > { %v2549_v39 = vpop.f32.mrf.mxu3  ;;  %2816 = vmatmul.f32.gmra.mxu1 %v5473_v63  ;;  %v5904_v63 = vld [vmem:[#allocation7_spill] sm:$0xff] }
 0x515   : > { %v2550_v13 = vadd.f32 %v2549_v39, %v2490_v35 }
 0x517   : > { %3596 = vst [vmem:[%s4445_s30 + $0x1c0] sm:$0xff] %v2550_v13  ;;  %2704 = vmatmul.f32.gmra.mxu0 %v5507_v30 }
 0x519   : > { %3677 = vmatmul.msk.f32.gmra.mxu3 %vm279_vm1, %v5351_v16  ;;  %v2508_v53 = vpop.f32.mrf.mxu1 }
 0x51a   : > { %3671 = vmatmul.msk.f32.gmra.mxu2 %vm279_vm1, %v5901_v11 }
 0x51c   : > { %v2552_v40 = vpop.f32.mrf.mxu3  ;;  %2819 = vmatmul.f32.gmra.mxu1 %v5490_v57 }
 0x51d   : > { %v2553_v33 = vadd.f32 %v2552_v40, %v2493_v32 }
 0x51f   : > { %3597 = vst [vmem:[%s4445_s30 + $0x1c8] sm:$0xff] %v2553_v33  ;;  %2707 = vmatmul.f32.gmra.mxu0 %v5524_v1 }
 0x521   : > { %3678 = vmatmul.msk.f32.gmra.mxu3 %vm279_vm1, %v5390_v2  ;;  %v2511_v0 = vpop.f32.mrf.mxu1 }
 0x522   : > { %3672 = vmatmul.msk.f32.gmra.mxu2 %vm279_vm1, %v5903_v18 }
 0x524   : > { %v2555_v31 = vpop.f32.mrf.mxu3  ;;  %2822 = vmatmul.f32.gmra.mxu1 %v5507_v30 }
 0x525   : > { %v2556_v43 = vadd.f32 %v2555_v31, %v2496_v36 }
 0x527   : > { %3598 = vst [vmem:[%s4445_s30 + $0x1d0] sm:$0xff] %v2556_v43  ;;  %2710 = vmatmul.f32.gmra.mxu0 %v5900_v15 }
 0x529   : > { %3679 = vmatmul.msk.f32.gmra.mxu3 %vm279_vm1, %v5430_v25  ;;  %v2514_v55 = vpop.f32.mrf.mxu1  ;;  %v5902_v25 = vld [vmem:[#allocation5_spill] sm:$0xff] }
 0x52c   : > { %v2558_v16 = vpop.f32.mrf.mxu3  ;;  %2825 = vmatmul.f32.gmra.mxu1 %v5524_v1 }
 0x52d   : > { %v2559_v51 = vadd.f32 %v2558_v16, %v2499_v23 }
 0x52f   : > { %3599 = vst [vmem:[%s4445_s30 + $0x1d8] sm:$0xff] %v2559_v51  ;;  %2713 = vmatmul.f32.gmra.mxu0 %v5902_v25 }
 0x531   : > { %3680 = vmatmul.msk.f32.gmra.mxu3 %vm279_vm1, %v5446_v28  ;;  %v2517_v2 = vpop.f32.mrf.mxu1 }
 0x534   : > { %v2561_v3 = vpop.f32.mrf.mxu3  ;;  %2828 = vmatmul.f32.gmra.mxu1 %v5900_v15 }
 0x535   : > { %v2562_v12 = vadd.f32 %v2561_v3, %v2502_v37 }
 0x537   : > { %3600 = vst [vmem:[%s4445_s30 + $0x1e0] sm:$0xff] %v2562_v12  ;;  %2716 = vmatmul.f32.gmra.mxu0 %v5904_v63 }
 0x539   : > { %3681 = vmatmul.msk.f32.gmra.mxu3 %vm279_vm1, %v5462_v42  ;;  %v2520_v24 = vpop.f32.mrf.mxu1 }
 0x53c   : > { %v2564_v19 = vpop.f32.mrf.mxu3  ;;  %2831 = vmatmul.f32.gmra.mxu1 %v5902_v25 }
 0x53d   : > { %v2565_v22 = vadd.f32 %v2564_v19, %v2505_v61 }
 0x53f   : > { %3601 = vst [vmem:[%s4445_s30 + $0x1e8] sm:$0xff] %v2565_v22 }
 0x541   : > { %3682 = vmatmul.msk.f32.gmra.mxu3 %vm279_vm1, %v5479_v7  ;;  %v2523_v42 = vpop.f32.mrf.mxu1 }
 0x544   : > { %v2567_v28 = vpop.f32.mrf.mxu3  ;;  %2834 = vmatmul.f32.gmra.mxu1 %v5904_v63 }
 0x545   : > { %v2568_v46 = vadd.f32 %v2567_v28, %v2508_v53 }
 0x547   : > { %3602 = vst [vmem:[%s4445_s30 + $0x1f0] sm:$0xff] %v2568_v46 }
 0x549   : > { %3683 = vmatmul.msk.f32.gmra.mxu3 %vm279_vm1, %v5496_v62  ;;  %v2526_v1 = vpop.f32.mrf.mxu1 }
 0x54c   : > { %v2570_v7 = vpop.f32.mrf.mxu3  ;;  %v2678_v10 = vpop.f32.mrf.mxu0 }
 0x54d   : > { %v2571_v57 = vadd.f32 %v2570_v7, %v2511_v0 }
 0x54f   : > { %3603 = vst [vmem:[%s4445_s30 + $0x1f8] sm:$0xff] %v2571_v57 }
 0x551   : > { %3684 = vmatmul.msk.f32.gmra.mxu3 %vm279_vm1, %v5513_v52  ;;  %v2529_v44 = vpop.f32.mrf.mxu1  ;;  %v2737_v52 = vpop.f32.mrf.mxu2 }
 0x552   : > { %v2738_v38 = vadd.f32 %v2737_v52, %v2678_v10 }
 0x554   : > { %v2573_v30 = vpop.f32.mrf.mxu3  ;;  %2955 = vmatmul.f32.vlgmr.msra.gmra.mxu0 %v2738_v38  ;;  %v2681_v4 = vpop.f32.mrf.mxu0 }
 0x555   : > { %v2574_v58 = vadd.f32 %v2573_v30, %v2514_v55 }
 0x557   : > { %3604 = vst [vmem:[%s4445_s30 + $0x200] sm:$0xff] %v2574_v58 }
 0x559   : > { %3685 = vmatmul.msk.f32.gmra.mxu3 %vm279_vm1, %v5899_v5  ;;  %v2796_v60 = vpop.f32.mrf.mxu1  ;;  %v2740_v14 = vpop.f32.mrf.mxu2 }
 0x55a   : > { %v2741_v34 = vadd.f32 %v2740_v14, %v2681_v4 }
 0x55c   : > { %v2576_v62 = vpop.f32.mrf.mxu3  ;;  %2958 = vmatmul.f32.gmra.mxu0 %v2741_v34  ;;  %v2684_v29 = vpop.f32.mrf.mxu0 }
 0x55d   : > { %v2577_v49 = vadd.f32 %v2576_v62, %v2517_v2 }
 0x55f   : > { %3605 = vst [vmem:[%s4445_s30 + $0x208] sm:$0xff] %v2577_v49 }
 0x561   : > { %3686 = vmatmul.msk.f32.gmra.mxu3 %vm279_vm1, %v5901_v11  ;;  %v2799_v9 = vpop.f32.mrf.mxu1  ;;  %v2743_v21 = vpop.f32.mrf.mxu2 }
 0x562   : > { %v2744_v26 = vadd.f32 %v2743_v21, %v2684_v29 }
 0x564   : > { %v2579_v59 = vpop.f32.mrf.mxu3  ;;  %2961 = vmatmul.f32.gmra.mxu0 %v2744_v26  ;;  %v2687_v54 = vpop.f32.mrf.mxu0 }
 0x565   : > { %v2580_v45 = vadd.f32 %v2579_v59, %v2520_v24 }
 0x567   : > { %3606 = vst [vmem:[%s4445_s30 + $0x210] sm:$0xff] %v2580_v45 }
 0x569   : > { %3687 = vmatmul.msk.f32.gmra.mxu3 %vm279_vm1, %v5903_v18  ;;  %v2802_v47 = vpop.f32.mrf.mxu1  ;;  %v2746_v35 = vpop.f32.mrf.mxu2 }
 0x56a   : > { %v2747_v8 = vadd.f32 %v2746_v35, %v2687_v54 }
 0x56c   : > { %v2582_v20 = vpop.f32.mrf.mxu3  ;;  %2964 = vmatmul.f32.gmra.mxu0 %v2747_v8  ;;  %v2690_v36 = vpop.f32.mrf.mxu0 }
 0x56d   : > { %v2583_v41 = vadd.f32 %v2582_v20, %v2523_v42 }
 0x56f   : > { %3607 = vst [vmem:[%s4445_s30 + $0x218] sm:$0xff] %v2583_v41 }
 0x571   : > { %v2805_v32 = vpop.f32.mrf.mxu1  ;;  %v2749_v23 = vpop.f32.mrf.mxu2 }
 0x572   : > { %v2750_v37 = vadd.f32 %v2749_v23, %v2690_v36 }
 0x574   : > { %v2585_v48 = vpop.f32.mrf.mxu3  ;;  %2967 = vmatmul.f32.gmra.mxu0 %v2750_v37  ;;  %v2693_v61 = vpop.f32.mrf.mxu0 }
 0x575   : > { %v2586_v6 = vadd.f32 %v2585_v48, %v2526_v1 }
 0x577   : > { %3608 = vst [vmem:[%s4445_s30 + $0x220] sm:$0xff] %v2586_v6 }
 0x579   : > { %v2752_v40 = vpop.f32.mrf.mxu2  ;;  %v2808_v33 = vpop.f32.mrf.mxu1 }
 0x57a   : > { %v2753_v53 = vadd.f32 %v2752_v40, %v2693_v61 }
 0x57c   : > { %v2588_v56 = vpop.f32.mrf.mxu3  ;;  %2970 = vmatmul.f32.gmra.mxu0 %v2753_v53  ;;  %v2696_v0 = vpop.f32.mrf.mxu0 }
 0x57d   : > { %v2589_v17 = vadd.f32 %v2588_v56, %v2529_v44 }
 0x57f   : > { %3609 = vst [vmem:[%s4445_s30 + $0x228] sm:$0xff] %v2589_v17 }
 0x581   : > { %v2755_v16 = vpop.f32.mrf.mxu2  ;;  %v2811_v55 = vpop.f32.mrf.mxu1 }
 0x582   : > { %v2756_v51 = vadd.f32 %v2755_v16, %v2696_v0 }
 0x584   : > { %v2855_v50 = vpop.f32.mrf.mxu3  ;;  %2973 = vmatmul.f32.gmra.mxu0 %v2756_v51  ;;  %v2699_v12 = vpop.f32.mrf.mxu0 }
 0x585   : > { %v2856_v27 = vadd.f32 %v2855_v50, %v2796_v60 }
 0x587   : > { %3689 = vmatmul.msk.f32.vlgmr.msra.gmra.mxu2 %vm279_vm1, %v2856_v27 }
 0x589   : > { %v2758_v2 = vpop.f32.mrf.mxu2  ;;  %v2814_v19 = vpop.f32.mrf.mxu1 }
 0x58a   : > { %v2759_v15 = vadd.f32 %v2758_v2, %v2699_v12 }
 0x58c   : > { %v2858_v39 = vpop.f32.mrf.mxu3  ;;  %2976 = vmatmul.f32.gmra.mxu0 %v2759_v15  ;;  %v2702_v24 = vpop.f32.mrf.mxu0 }
 0x58d   : > { %v2859_v13 = vadd.f32 %v2858_v39, %v2799_v9 }
 0x58f   : > { %3690 = vmatmul.msk.f32.gmra.mxu2 %vm279_vm1, %v2859_v13 }
 0x591   : > { %v2761_v25 = vpop.f32.mrf.mxu2  ;;  %v2817_v42 = vpop.f32.mrf.mxu1 }
 0x592   : > { %v2762_v18 = vadd.f32 %v2761_v25, %v2702_v24 }
 0x594   : > { %v2861_v31 = vpop.f32.mrf.mxu3  ;;  %2979 = vmatmul.f32.gmra.mxu0 %v2762_v18  ;;  %v2705_v63 = vpop.f32.mrf.mxu0 }
 0x595   : > { %v2862_v43 = vadd.f32 %v2861_v31, %v2802_v47 }
 0x597   : > { %3691 = vmatmul.msk.f32.gmra.mxu2 %vm279_vm1, %v2862_v43 }
 0x599   : > { %v2764_v7 = vpop.f32.mrf.mxu2  ;;  %v2820_v49 = vpop.f32.mrf.mxu1 }
 0x59a   : > { %v2765_v57 = vadd.f32 %v2764_v7, %v2705_v63 }
 0x59c   : > { %v2864_v5 = vpop.f32.mrf.mxu3  ;;  %2982 = vmatmul.f32.gmra.mxu0 %v2765_v57  ;;  %v2708_v58 = vpop.f32.mrf.mxu0 }
 0x59d   : > { %v2865_v3 = vadd.f32 %v2864_v5, %v2805_v32 }
 0x59f   : > { %3692 = vmatmul.msk.f32.gmra.mxu2 %vm279_vm1, %v2865_v3 }
 0x5a1   : > { %v2767_v62 = vpop.f32.mrf.mxu2  ;;  %v2823_v38 = vpop.f32.mrf.mxu1 }
 0x5a2   : > { %v2768_v44 = vadd.f32 %v2767_v62, %v2708_v58 }
 0x5a4   : > { %v2867_v11 = vpop.f32.mrf.mxu3  ;;  %2985 = vmatmul.f32.gmra.mxu0 %v2768_v44  ;;  %v2711_v10 = vpop.f32.mrf.mxu0 }
 0x5a5   : > { %v2868_v22 = vadd.f32 %v2867_v11, %v2808_v33 }
 0x5a7   : > { %3693 = vmatmul.msk.f32.gmra.mxu2 %vm279_vm1, %v2868_v22 }
 0x5a9   : > { %v2770_v52 = vpop.f32.mrf.mxu2  ;;  %v2826_v48 = vpop.f32.mrf.mxu1 }
 0x5aa   : > { %v2771_v60 = vadd.f32 %v2770_v52, %v2711_v10 }
 0x5ac   : > { %v2870_v28 = vpop.f32.mrf.mxu3  ;;  %2988 = vmatmul.f32.gmra.mxu0 %v2771_v60  ;;  %v2714_v4 = vpop.f32.mrf.mxu0 }
 0x5ad   : > { %v2871_v46 = vadd.f32 %v2870_v28, %v2811_v55 }
 0x5af   : > { %3694 = vmatmul.msk.f32.gmra.mxu2 %vm279_vm1, %v2871_v46 }
 0x5b1   : > { %v2773_v14 = vpop.f32.mrf.mxu2  ;;  %v2829_v17 = vpop.f32.mrf.mxu1 }
 0x5b2   : > { %v2774_v34 = vadd.f32 %v2773_v14, %v2714_v4 }
 0x5b4   : > { %v2873_v30 = vpop.f32.mrf.mxu3  ;;  %2991 = vmatmul.f32.gmra.mxu0 %v2774_v34  ;;  %v2717_v29 = vpop.f32.mrf.mxu0 }
 0x5b5   : > { %v2874_v1 = vadd.f32 %v2873_v30, %v2814_v19 }
 0x5b7   : > { %3695 = vmatmul.msk.f32.gmra.mxu2 %vm279_vm1, %v2874_v1 }
 0x5b9   : > { %v2776_v21 = vpop.f32.mrf.mxu2  ;;  %v2832_v8 = vpop.f32.mrf.mxu1 }
 0x5ba   : > { %v2777_v26 = vadd.f32 %v2776_v21, %v2717_v29 }
 0x5bc   : > { %v2876_v59 = vpop.f32.mrf.mxu3  ;;  %2994 = vmatmul.f32.vlgmr.msrb.gmra.mxu1 %v2777_v26 }
 0x5bd   : > { %v2877_v45 = vadd.f32 %v2876_v59, %v2817_v42 }
 0x5bf   : > { %3696 = vmatmul.msk.f32.gmra.mxu2 %vm279_vm1, %v2877_v45 }
 0x5c1   : > { %v2835_v32 = vpop.f32.mrf.mxu1 }
 0x5c4   : > { %v2879_v20 = vpop.f32.mrf.mxu3 }
 0x5c5   : > { %v2880_v41 = vadd.f32 %v2879_v20, %v2820_v49 }
 0x5c7   : > { %3697 = vmatmul.msk.f32.gmra.mxu2 %vm279_vm1, %v2880_v41 }
 0x5cc   : > { %v2882_v9 = vpop.f32.mrf.mxu3 }
 0x5cd   : > { %v2883_v6 = vadd.f32 %v2882_v9, %v2823_v38 }
 0x5cf   : > { %3698 = vmatmul.msk.f32.gmra.mxu2 %vm279_vm1, %v2883_v6 }
 0x5d1   : > { %v2956_v37 = vpop.f32.mrf.mxu0 }
 0x5d4   : > { %v2885_v56 = vpop.f32.mrf.mxu3 }
 0x5d5   : > { %v2886_v47 = vadd.f32 %v2885_v56, %v2826_v48 }
 0x5d7   : > { %3699 = vmatmul.msk.f32.gmra.mxu2 %vm279_vm1, %v2886_v47 }
 0x5d9   : > { %v2959_v39 = vpop.f32.mrf.mxu0 }
 0x5dc   : > { %v2888_v54 = vpop.f32.mrf.mxu3 }
 0x5dd   : > { %v2889_v35 = vadd.f32 %v2888_v54, %v2829_v17 }
 0x5df   : > { %3700 = vmatmul.msk.f32.gmra.mxu2 %vm279_vm1, %v2889_v35 }
 0x5e1   : > { %v2962_v13 = vpop.f32.mrf.mxu0 }
 0x5e4   : > { %v2891_v50 = vpop.f32.mrf.mxu3 }
 0x5e5   : > { %v2892_v27 = vadd.f32 %v2891_v50, %v2832_v8 }
 0x5e7   : > { %3701 = vmatmul.msk.f32.gmra.mxu2 %vm279_vm1, %v2892_v27 }
 0x5e9   : > { %v2965_v33 = vpop.f32.mrf.mxu0 }
 0x5ec   : > { %v2894_v36 = vpop.f32.mrf.mxu3 }
 0x5ed   : > { %v2895_v23 = vadd.f32 %v2894_v36, %v2835_v32 }
 0x5ef   : > { %3702 = vmatmul.msk.f32.vlgmr.msrb.gmra.mxu3 %vm279_vm1, %v2895_v23 }
 0x5f1   : > { %v2968_v43 = vpop.f32.mrf.mxu0 }
 0x5f9   : > { %v2971_v55 = vpop.f32.mrf.mxu0 }
 0x601   : > { %v2974_v2 = vpop.f32.mrf.mxu0 }
 0x609   : > { %v2977_v19 = vpop.f32.mrf.mxu0 }
 0x60a   : > { %v3015_v61 = vpop.f32.mrf.mxu2 }
 0x60b   : > { %v3016_v40 = vadd.f32 %v3015_v61, %v2956_v37 }
 0x60d   : > { %3703 = vst [vmem:[%s4445_s30 + $0x230] sm:$0xff] %v3016_v40 }
 0x611   : > { %v2980_v25 = vpop.f32.mrf.mxu0 }
 0x612   : > { %v3018_v53 = vpop.f32.mrf.mxu2 }
 0x613   : > { %v3019_v31 = vadd.f32 %v3018_v53, %v2959_v39 }
 0x615   : > { %3704 = vst [vmem:[%s4445_s30 + $0x238] sm:$0xff] %v3019_v31 }
 0x619   : > { %v2983_v42 = vpop.f32.mrf.mxu0 }
 0x61a   : > { %v3021_v0 = vpop.f32.mrf.mxu2 }
 0x61b   : > { %v3022_v16 = vadd.f32 %v3021_v0, %v2962_v13 }
 0x61d   : > { %3705 = vst [vmem:[%s4445_s30 + $0x240] sm:$0xff] %v3022_v16 }
 0x621   : > { %v2986_v30 = vpop.f32.mrf.mxu0 }
 0x622   : > { %v3024_v51 = vpop.f32.mrf.mxu2 }
 0x623   : > { %v3025_v5 = vadd.f32 %v3024_v51, %v2965_v33 }
 0x625   : > { %3706 = vst [vmem:[%s4445_s30 + $0x248] sm:$0xff] %v3025_v5 }
 0x629   : > { %v2989_v62 = vpop.f32.mrf.mxu0 }
 0x62a   : > { %v3027_v3 = vpop.f32.mrf.mxu2 }
 0x62b   : > { %v3028_v12 = vadd.f32 %v3027_v3, %v2968_v43 }
 0x62d   : > { %3707 = vst [vmem:[%s4445_s30 + $0x250] sm:$0xff] %v3028_v12 }
 0x631   : > { %v2992_v59 = vpop.f32.mrf.mxu0 }
 0x632   : > { %v3030_v15 = vpop.f32.mrf.mxu2 }
 0x633   : > { %v3031_v11 = vadd.f32 %v3030_v15, %v2971_v55 }
 0x635   : > { %3708 = vst [vmem:[%s4445_s30 + $0x258] sm:$0xff] %v3031_v11 }
 0x639   : > { %v2995_v52 = vpop.f32.mrf.mxu1 }
 0x63a   : > { %v3033_v22 = vpop.f32.mrf.mxu2 }
 0x63b   : > { %v3034_v24 = vadd.f32 %v3033_v22, %v2974_v2 }
 0x63d   : > { %3709 = vst [vmem:[%s4445_s30 + $0x260] sm:$0xff] %v3034_v24 }
 0x642   : > { %v3036_v18 = vpop.f32.mrf.mxu2 }
 0x643   : > { %v3037_v28 = vadd.f32 %v3036_v18, %v2977_v19 }
 0x645   : > { %3710 = vst [vmem:[%s4445_s30 + $0x268] sm:$0xff] %v3037_v28 }
 0x64a   : > { %v3039_v46 = vpop.f32.mrf.mxu2 }
 0x64b   : > { %v3040_v63 = vadd.f32 %v3039_v46, %v2980_v25 }
 0x64d   : > { %3711 = vst [vmem:[%s4445_s30 + $0x270] sm:$0xff] %v3040_v63 }
 0x652   : > { %v3042_v7 = vpop.f32.mrf.mxu2 }
 0x653   : > { %v3043_v57 = vadd.f32 %v3042_v7, %v2983_v42 }
 0x655   : > { %3712 = vst [vmem:[%s4445_s30 + $0x278] sm:$0xff] %v3043_v57 }
 0x65a   : > { %v3045_v1 = vpop.f32.mrf.mxu2 }
 0x65b   : > { %v3046_v58 = vadd.f32 %v3045_v1, %v2986_v30 }
 0x65d   : > { %3713 = vst [vmem:[%s4445_s30 + $0x280] sm:$0xff] %v3046_v58 }
 0x662   : > { %v3048_v49 = vpop.f32.mrf.mxu2 }
 0x663   : > { %v3049_v44 = vadd.f32 %v3048_v49, %v2989_v62 }
 0x665   : > { %3714 = vst [vmem:[%s4445_s30 + $0x288] sm:$0xff] %v3049_v44 }
 0x66a   : > { %v3051_v45 = vpop.f32.mrf.mxu2 }
 0x66b   : > { %v3052_v10 = vadd.f32 %v3051_v45, %v2992_v59 }
 0x66d   : > { %3715 = vst [vmem:[%s4445_s30 + $0x290] sm:$0xff] %v3052_v10 }
 0x672   : > { %v3054_v60 = vpop.f32.mrf.mxu3 }
 0x673   : > { %v3055_v38 = vadd.f32 %v3054_v60, %v2995_v52 }
 0x675   : > { %3716 = vst [vmem:[%s4445_s30 + $0x298] sm:$0xff] %v3055_v38 }
 0x676 PF: > { %s13_s12 = sadd.s32 1, %s3863_s12  }
 0x677   : > { %p10_p4 = scmp.ge.s32.totalorder %s13_s12, 4  }
 0x679   :  { %12 = sbr.rel (!%p10_p4) target bundleno = 1 (0x1), region = 72 }

// kernel: id_loss.3
= control target key start
LH: loop header
LB: loop body
LE: loop exit
PB: predicated region body
PF: predicated region fallthrough
CT: control target
= control target key end

     0   :  { %7 = vsyncpa [#allocation3], 0  ;;  %s10804_s0 = inlined_call_operand.vmem [shape: bf16[4,37632], index: 0, kind: input, shape index: {}]   ;;  %s10805_s1 = inlined_call_operand.hbm [shape: bf16[37632,512], index: 1, kind: input, shape index: {}]   ;;  %s10806_s2 = inlined_call_operand.vmem [shape: f32[4,512], index: 2, kind: output, shape index: {}]  }
   0x1   :  { %9 = vsyncpa [#allocation3 + $0x1], 0  ;;  %s9133_s9 = smov 0   ;;  %s9135_s10 = smov 0  }
   0x2   :  { %s9137_s11 = smov 0   ;;  %s9139_s12 = smov 0  }
   0x3   :  { %s9141_s13 = smov 0   ;;  %s9143_s14 = smov 0  }
   0x4   :  { %s9145_s15 = smov 0   ;;  %s9147_s16 = smov 0  }
   0x5 LB: > { %s5558_s17 = sadd.s32 4294967295, %s9112_s16   ;;  %s24_s18 = sadd.s32 1, %s9104_s14  ;;  %s9112_s16 = sphi %s9147_s16, %s15_s16   ;;  %s9108_s15 = sphi %s9145_s15, %s10818_s15   ;;  %s9104_s14 = sphi %s9143_s14, %s10817_s14   ;;  %s9100_s13 = sphi %s9141_s13, %s10816_s13   ;;  %s9096_s12 = sphi %s9139_s12, %s10815_s12   ;;  %s9092_s11 = sphi %s9137_s11, %s10814_s11   ;;  %s9088_s10 = sphi %s9135_s10, %s10813_s10   ;;  %s9084_s9 = sphi %s9133_s9, %s10812_s9  }
   0x6   : > { %p25_p0 = scmp.ge.s32.totalorder %s24_s18, 7  ;;  %s27_s19 = sadd.s32 1, %s9108_s15 }
   0x7   : > { %s62_s20 = sadd.s32 1, %s9092_s11  ;;  %p69_p1 = scmp.ne.s32.totalorder %s9092_s11, %s9088_s10 }
   0x8   : > { %s10820_s18 = smov (%p25_p0, %s24_s18), 0  ;;  %s10822_s19 = smov (!%p25_p0, %s27_s19), %s9108_s15 }
   0x9   : > { %s57_s21 = ssub.s32 %s9104_s14, %s10820_s18  ;;  %p70_p2 = scmp.eq.s32.totalorder %s9112_s16, 0 }
   0xa   : > { %p29_p3 = scmp.ge.s32.totalorder %s10822_s19, 2  ;;  %p75_p4 = scmp.ne.s32.totalorder %s9088_s10, %s9084_s9 }
   0xb   : > { %p9184_p5 = por %p70_p2, %p69_p1  ;;  %p76_p6 = scmp.eq.s32.totalorder %s5558_s17, 0 }
   0xc   : > { %s10824_s19 = smov (%p29_p3, %s10822_s19), 0  ;;  %p8941_p8 = scmp.lt.s32.totalorder %s9112_s16, 14 }
   0xd   : > { %p9190_p7 = por %p76_p6, %p75_p4  ;;  %s58_s24 = ssub.s32 %s9108_s15, %s10824_s19 }
   0xe   : > { %s59_s25 = sor.u32 %s58_s24, %s57_s21  ;;  %s134_s26 = sand.u32 1, %s9092_s11  }
   0xf   : > { %p60_p9 = scmp.eq.s32.totalorder %s59_s25, 0  ;;  %s8933_s27 = smul.u32 5376, %s134_s26 }
  0x10   : > { %s5562_s28 = sshll.u32 %s9108_s15, 1  ;;  %s8260_s30 = smul.u32 2688, %s9104_s14 }
  0x11   : > { %s9200_s29 = scalar_select %p60_p9, %s9092_s11, %s62_s20  }
  0x12   : > { %s138_s3 = scalar_lea.vmem [#allocation2], %s8933_s27  ;;  %p8938_p10 = pnand %p8941_p8, %p9184_p5 }
  0x13   : > { %s149_s4 = sshll.u32 %s138_s3, 4  ;;  %s144_s5 = sadd.s32 %s8260_s30, %s5562_s28  ;;  %s150_s4 = int_to_ptr.vmem [resolvable:$true] %s149_s4 }
  0x14   : > { %s5564_s6 = sshll.u32 %s144_s5, 2  ;;  %s135_s21 = scalar_lea.sflag [#allocation3], %s134_s26 }
  0x15   : > { %s146_s9 = scalar_lea.hbm %s10805_s1, %s5564_s6  ;;  %s9114_s24 = smov 256  }
  0x16   : > { %s147_s17 = sshll.u32 %s146_s9, 4  ;;  %s9115_s20 = smov 128   ;;  %s148_s17 = int_to_ptr.hbm [resolvable:$true] %s147_s17 }
  0x17   : > { %s9116_s25 = smov 8   ;;  %p5565_p11 = scmp.ge.s32.totalorder %s9112_s16, 1 }
  0x18   : > { %8940 = dma.hbm_to_vmem [thread:$0]  (!%p8938_p10), %s148_s17, 86016, %s150_s4, %s135_s21, %s9114_s24, %s9115_s20, %s9116_s25  }
  0x19   : > { %p157_p12 = scmp.lt.s32.totalorder %s9112_s16, 15 }
  0x1b   : > { %p158_p13 = pnand %p5565_p11, %p157_p12 }
  0x1d   : > { %161 = sbr.rel (%p158_p13) target bundleno = 867 (0x363), region = 28 }
  0x22   : > { %s163_s22 = sand.u32 1, %s9088_s10  }
  0x23   : > { %s8934_s27 = smul.u32 5376, %s163_s22  ;;  %s164_s28 = scalar_lea.sflag [#allocation3], %s163_s22 }
  0x25   : > { %s9211_s30 = scalar_lea.vmem [#allocation2], %s8934_s27 }
  0x26   : > { %9079 = dma.done.wait (%p9190_p7), %s164_s28, 86016  }
  0x27   : > { %9081 = vsyncadd (%p9190_p7), %s164_s28, 4294881280  ;;  %s194_s26 = smul.u32 42, %s9096_s12  ;;  %s5567_s3 = sshll.u32 %s9100_s13, 1 }
  0x28   : > { %p203_p0 = scmp.lt.s32.totalorder %s5567_s3, 3  ;;  %p5569_p2 = scmp.ne.s32.totalorder %s9096_s12, 0 }
  0x29   : > { %p195_p1 = scmp.lt.s32.totalorder %s194_s26, 293 }
  0x2a   : > { %s10826_s3 = smov (!%p203_p0, %s5567_s3), 3  ;;  %211 = sbr.rel (%p5569_p2) target bundleno = 49 (0x31), region = 36 }
  0x2b   : > { %s10828_s26 = smov (!%p195_p1, %s194_s26), 293  ;;  %s5568_s4 = sshll.u32 %s10826_s3, 2 }
  0x2c   : > { %s5566_s5 = sshll.u32 %s10828_s26, 1  ;;  %s9222_s8 = scalar_lea.vmem %s10806_s2, %s5568_s4 }
  0x2d   : > { %s9227_s23 = scalar_lea.vmem %s10804_s0, %s5566_s5 }
  0x2f   : > { %v9117_v0 = vmov 0.0  }
  0x30   : > { %212 = vst [vmem:[%s9222_s8] sm:$0xff] %v9117_v0 }
  0x31 PF: > { %v5628_v1 = vld [vmem:[%s9211_s30 + $0x70] sm:$0xf]  ;;  %v8276_v2 = vld [vmem:[%s9211_s30 + $0x74] sm:$0xf0]  ;;  %v5620_v12 = vld [vmem:[%s9211_s30 + $0x60] sm:$0xf] }
  0x32   : > { %v5692_v3 = vld [vmem:[%s9211_s30 + $0xf0] sm:$0xf]  ;;  %v5629_v4 = vor.u32 %v8276_v2, %v5628_v1  ;;  %v8292_v5 = vld [vmem:[%s9211_s30 + $0xf4] sm:$0xf0]  ;;  %v8274_v14 = vld [vmem:[%s9211_s30 + $0x64] sm:$0xf0] }
  0x33   : > { %v5756_v6 = vld [vmem:[%s9211_s30 + $0x170] sm:$0xf]  ;;  %v8308_v7 = vld [vmem:[%s9211_s30 + $0x174] sm:$0xf0]  ;;  %v5693_v8 = vor.u32 %v8292_v5, %v5692_v3  ;;  %v5684_v15 = vld [vmem:[%s9211_s30 + $0xe0] sm:$0xf]  ;;  %v5621_v17 = vor.u32 %v8274_v14, %v5620_v12 }
  0x34   : > { %v5757_v9 = vor.u32 %v8308_v7, %v5756_v6  ;;  %v5820_v10 = vld [vmem:[%s9211_s30 + $0x1f0] sm:$0xf]  ;;  %v8324_v11 = vld [vmem:[%s9211_s30 + $0x1f4] sm:$0xf0]  ;;  %4364 = vmatpush.bf16.msra.mxu0 %v5629_v4  ;;  %v8290_v16 = vld [vmem:[%s9211_s30 + $0xe4] sm:$0xf0] }
  0x35   : > { %v5821_v13 = vor.u32 %v8324_v11, %v5820_v10  ;;  %4377 = vmatpush.bf16.msra.mxu1 %v5693_v8  ;;  %v5685_v18 = vor.u32 %v8290_v16, %v5684_v15  ;;  %v5748_v19 = vld [vmem:[%s9211_s30 + $0x160] sm:$0xf]  ;;  %v8306_v20 = vld [vmem:[%s9211_s30 + $0x164] sm:$0xf0]  ;;  %v5612_v24 = vld [vmem:[%s9211_s30 + $0x50] sm:$0xf] }
  0x36   : > { %4390 = vmatpush.bf16.msra.mxu2 %v5757_v9  ;;  %v5812_v21 = vld [vmem:[%s9211_s30 + $0x1e0] sm:$0xf]  ;;  %v5749_v22 = vor.u32 %v8306_v20, %v5748_v19  ;;  %v8322_v23 = vld [vmem:[%s9211_s30 + $0x1e4] sm:$0xf0]  ;;  %v8272_v25 = vld [vmem:[%s9211_s30 + $0x54] sm:$0xf0] }
  0x37   : > { %4403 = vmatpush.bf16.msra.mxu3 %v5821_v13  ;;  %v5813_v26 = vor.u32 %v8322_v23, %v5812_v21  ;;  %v5676_v27 = vld [vmem:[%s9211_s30 + $0xd0] sm:$0xf]  ;;  %v8288_v28 = vld [vmem:[%s9211_s30 + $0xd4] sm:$0xf0]  ;;  %v5613_v30 = vor.u32 %v8272_v25, %v5612_v24  ;;  %v5604_v36 = vld [vmem:[%s9211_s30 + $0x40] sm:$0xf] }
  0x38   : > { %v5740_v29 = vld [vmem:[%s9211_s30 + $0x150] sm:$0xf]  ;;  %4365 = vmatpush.bf16.msra.mxu0 %v5621_v17  ;;  %v8304_v31 = vld [vmem:[%s9211_s30 + $0x154] sm:$0xf0]  ;;  %v5677_v34 = vor.u32 %v8288_v28, %v5676_v27  ;;  %v8270_v37 = vld [vmem:[%s9211_s30 + $0x44] sm:$0xf0] }
  0x39   : > { %v5804_v32 = vld [vmem:[%s9211_s30 + $0x1d0] sm:$0xf]  ;;  %v8320_v33 = vld [vmem:[%s9211_s30 + $0x1d4] sm:$0xf0]  ;;  %4378 = vmatpush.bf16.msra.mxu1 %v5685_v18  ;;  %v5741_v35 = vor.u32 %v8304_v31, %v5740_v29  ;;  %v5668_v38 = vld [vmem:[%s9211_s30 + $0xc0] sm:$0xf]  ;;  %v5605_v45 = vor.u32 %v8270_v37, %v5604_v36 }
  0x3a   : > { %4391 = vmatpush.bf16.msra.mxu2 %v5749_v22  ;;  %v5805_v39 = vor.u32 %v8320_v33, %v5804_v32  ;;  %v8286_v40 = vld [vmem:[%s9211_s30 + $0xc4] sm:$0xf0]  ;;  %v5732_v41 = vld [vmem:[%s9211_s30 + $0x140] sm:$0xf]  ;;  %v5596_v48 = vld [vmem:[%s9211_s30 + $0x30] sm:$0xf] }
  0x3b   : > { %4404 = vmatpush.bf16.msra.mxu3 %v5813_v26  ;;  %v8302_v42 = vld [vmem:[%s9211_s30 + $0x144] sm:$0xf0]  ;;  %v5796_v43 = vld [vmem:[%s9211_s30 + $0x1c0] sm:$0xf]  ;;  %v5669_v46 = vor.u32 %v8286_v40, %v5668_v38  ;;  %v8268_v49 = vld [vmem:[%s9211_s30 + $0x34] sm:$0xf0] }
  0x3c   : > { %v8318_v44 = vld [vmem:[%s9211_s30 + $0x1c4] sm:$0xf0]  ;;  %4366 = vmatpush.bf16.msra.mxu0 %v5613_v30  ;;  %v5733_v47 = vor.u32 %v8302_v42, %v5732_v41  ;;  %v5660_v50 = vld [vmem:[%s9211_s30 + $0xb0] sm:$0xf]  ;;  %v8284_v52 = vld [vmem:[%s9211_s30 + $0xb4] sm:$0xf0]  ;;  %v5597_v57 = vor.u32 %v8268_v49, %v5596_v48 }
  0x3d   : > { %4379 = vmatpush.bf16.msra.mxu1 %v5677_v34  ;;  %v5797_v51 = vor.u32 %v8318_v44, %v5796_v43  ;;  %v5724_v53 = vld [vmem:[%s9211_s30 + $0x130] sm:$0xf]  ;;  %v8300_v54 = vld [vmem:[%s9211_s30 + $0x134] sm:$0xf0]  ;;  %v5661_v58 = vor.u32 %v8284_v52, %v5660_v50  ;;  %v5588_v60 = vld [vmem:[%s9211_s30 + $0x20] sm:$0xf] }
  0x3e   : > { %4392 = vmatpush.bf16.msra.mxu2 %v5741_v35  ;;  %v5788_v55 = vld [vmem:[%s9211_s30 + $0x1b0] sm:$0xf]  ;;  %v8316_v56 = vld [vmem:[%s9211_s30 + $0x1b4] sm:$0xf0]  ;;  %v5725_v59 = vor.u32 %v8300_v54, %v5724_v53  ;;  %v8266_v61 = vld [vmem:[%s9211_s30 + $0x24] sm:$0xf0] }
  0x3f   : > { %4405 = vmatpush.bf16.msra.mxu3 %v5805_v39  ;;  %v5652_v62 = vld [vmem:[%s9211_s30 + $0xa0] sm:$0xf]  ;;  %v5789_v63 = vor.u32 %v8316_v56, %v5788_v55  ;;  %v8282_v0 = vld [vmem:[%s9211_s30 + $0xa4] sm:$0xf0]  ;;  %v5589_v5 = vor.u32 %v8266_v61, %v5588_v60  ;;  %v5580_v8 = vld [vmem:[%s9211_s30 + $0x10] sm:$0xf] }
  0x40   : > { %4367 = vmatpush.bf16.msra.mxu0 %v5605_v45  ;;  %v5716_v1 = vld [vmem:[%s9211_s30 + $0x120] sm:$0xf]  ;;  %v8298_v2 = vld [vmem:[%s9211_s30 + $0x124] sm:$0xf0]  ;;  %v5653_v6 = vor.u32 %v8282_v0, %v5652_v62  ;;  %v8264_v9 = vld [vmem:[%s9211_s30 + $0x14] sm:$0xf0] }
  0x41   : > { %4380 = vmatpush.bf16.msra.mxu1 %v5669_v46  ;;  %v5780_v3 = vld [vmem:[%s9211_s30 + $0x1a0] sm:$0xf]  ;;  %v8314_v4 = vld [vmem:[%s9211_s30 + $0x1a4] sm:$0xf0]  ;;  %v5717_v7 = vor.u32 %v8298_v2, %v5716_v1  ;;  %v5644_v10 = vld [vmem:[%s9211_s30 + $0x90] sm:$0xf]  ;;  %v5581_v17 = vor.u32 %v8264_v9, %v5580_v8 }
  0x42   : > { %4393 = vmatpush.bf16.msra.mxu2 %v5733_v47  ;;  %v5781_v11 = vor.u32 %v8314_v4, %v5780_v3  ;;  %v8280_v12 = vld [vmem:[%s9211_s30 + $0x94] sm:$0xf0]  ;;  %v5708_v13 = vld [vmem:[%s9211_s30 + $0x110] sm:$0xf]  ;;  %v5572_v18 = vld [vmem:[%s9211_s30] sm:$0xf] }
  0x43   : > { %4406 = vmatpush.bf16.msra.mxu3 %v5797_v51  ;;  %v8296_v14 = vld [vmem:[%s9211_s30 + $0x114] sm:$0xf0]  ;;  %v5772_v15 = vld [vmem:[%s9211_s30 + $0x190] sm:$0xf]  ;;  %v8262_v19 = vld [vmem:[%s9211_s30 + $0x4] sm:$0xf0]  ;;  %v5645_v20 = vor.u32 %v8280_v12, %v5644_v10 }
  0x44   : > { %4368 = vmatpush.bf16.msra.mxu0 %v5597_v57  ;;  %v8312_v16 = vld [vmem:[%s9211_s30 + $0x194] sm:$0xf0]  ;;  %v5709_v21 = vor.u32 %v8296_v14, %v5708_v13  ;;  %v5636_v22 = vld [vmem:[%s9211_s30 + $0x80] sm:$0xf]  ;;  %v8278_v23 = vld [vmem:[%s9211_s30 + $0x84] sm:$0xf0]  ;;  %v5573_v32 = vor.u32 %v8262_v19, %v5572_v18 }
  0x45   : > { %4381 = vmatpush.bf16.msra.mxu1 %v5661_v58  ;;  %v5700_v24 = vld [vmem:[%s9211_s30 + $0x100] sm:$0xf]  ;;  %v5773_v25 = vor.u32 %v8312_v16, %v5772_v15  ;;  %v8294_v26 = vld [vmem:[%s9211_s30 + $0x104] sm:$0xf0]  ;;  %v5884_v29 = vld [vmem:[%s9211_s30 + $0x270] sm:$0xf]  ;;  %v5637_v36 = vor.u32 %v8278_v23, %v5636_v22 }
  0x46   : > { %4394 = vmatpush.bf16.msra.mxu2 %v5725_v59  ;;  %v5764_v27 = vld [vmem:[%s9211_s30 + $0x180] sm:$0xf]  ;;  %v8310_v28 = vld [vmem:[%s9211_s30 + $0x184] sm:$0xf0]  ;;  %v8340_v30 = vld [vmem:[%s9211_s30 + $0x274] sm:$0xf0]  ;;  %v5701_v37 = vor.u32 %v8294_v26, %v5700_v24 }
  0x47   : > { %4407 = vmatpush.bf16.msra.mxu3 %v5789_v63  ;;  %v5948_v31 = vld [vmem:[%s9211_s30 + $0x2f0] sm:$0xf]  ;;  %v8356_v33 = vld [vmem:[%s9211_s30 + $0x2f4] sm:$0xf0]  ;;  %v5765_v40 = vor.u32 %v8310_v28, %v5764_v27  ;;  %v5885_v41 = vor.u32 %v8340_v30, %v5884_v29  ;;  %v5876_v44 = vld [vmem:[%s9211_s30 + $0x260] sm:$0xf] }
  0x48   : > { %4369 = vmatpush.bf16.msra.mxu0 %v5589_v5  ;;  %v6012_v34 = vld [vmem:[%s9211_s30 + $0x370] sm:$0xf]  ;;  %v8372_v35 = vld [vmem:[%s9211_s30 + $0x374] sm:$0xf0]  ;;  %v5949_v42 = vor.u32 %v8356_v33, %v5948_v31  ;;  %v8338_v45 = vld [vmem:[%s9211_s30 + $0x264] sm:$0xf0] }
  0x49   : > { %4382 = vmatpush.bf16.msra.mxu1 %v5653_v6  ;;  %v6076_v38 = vld [vmem:[%s9211_s30 + $0x3f0] sm:$0xf]  ;;  %v8388_v39 = vld [vmem:[%s9211_s30 + $0x3f4] sm:$0xf0]  ;;  %v6013_v43 = vor.u32 %v8372_v35, %v6012_v34  ;;  %v5940_v46 = vld [vmem:[%s9211_s30 + $0x2e0] sm:$0xf]  ;;  %v5877_v53 = vor.u32 %v8338_v45, %v5876_v44 }
  0x4a   : > { %4395 = vmatpush.bf16.msra.mxu2 %v5717_v7  ;;  %v6077_v47 = vor.u32 %v8388_v39, %v6076_v38  ;;  %v8354_v48 = vld [vmem:[%s9211_s30 + $0x2e4] sm:$0xf0]  ;;  %v6004_v49 = vld [vmem:[%s9211_s30 + $0x360] sm:$0xf]  ;;  %v5868_v54 = vld [vmem:[%s9211_s30 + $0x250] sm:$0xf] }
  0x4b   : > { %4408 = vmatpush.bf16.msra.mxu3 %v5781_v11  ;;  %v8370_v50 = vld [vmem:[%s9211_s30 + $0x364] sm:$0xf0]  ;;  %v6068_v51 = vld [vmem:[%s9211_s30 + $0x3e0] sm:$0xf]  ;;  %v8336_v55 = vld [vmem:[%s9211_s30 + $0x254] sm:$0xf0]  ;;  %v5941_v56 = vor.u32 %v8354_v48, %v5940_v46 }
  0x4c   : > { %4370 = vmatpush.bf16.msra.mxu0 %v5581_v17  ;;  %v8386_v52 = vld [vmem:[%s9211_s30 + $0x3e4] sm:$0xf0]  ;;  %v6005_v57 = vor.u32 %v8370_v50, %v6004_v49  ;;  %v5932_v58 = vld [vmem:[%s9211_s30 + $0x2d0] sm:$0xf]  ;;  %v8352_v59 = vld [vmem:[%s9211_s30 + $0x2d4] sm:$0xf0]  ;;  %v5869_v2 = vor.u32 %v8336_v55, %v5868_v54 }
  0x4d   : > { %4383 = vmatpush.bf16.msra.mxu1 %v5645_v20  ;;  %v214_v60 = vld [vmem:[%s9227_s23] sm:$0xff]  ;;  %v6069_v61 = vor.u32 %v8386_v52, %v6068_v51  ;;  %v5996_v62 = vld [vmem:[%s9211_s30 + $0x350] sm:$0xf]  ;;  %v5860_v3 = vld [vmem:[%s9211_s30 + $0x240] sm:$0xf]  ;;  %v5933_v4 = vor.u32 %v8352_v59, %v5932_v58  ;;  %vm5459_vm0 = vcmask 1043456  }
  0x4e   : > { %4396 = vmatpush.bf16.msra.mxu2 %v5709_v21  ;;  %v8368_v63 = vld [vmem:[%s9211_s30 + $0x354] sm:$0xf0]  ;;  %898 = vst [vmem:[#allocation1] ss:$4 sm:$0xff] %v214_v60  ;;  %v6060_v0 = vld [vmem:[%s9211_s30 + $0x3d0] sm:$0xf] }
  0x4f   : > { %4409 = vmatpush.bf16.msra.mxu3 %v5773_v25  ;;  %v8384_v1 = vld [vmem:[%s9211_s30 + $0x3d4] sm:$0xf0]  ;;  %v5997_v5 = vor.u32 %v8368_v63, %v5996_v62  ;;  %v8334_v6 = vld [vmem:[%s9211_s30 + $0x244] sm:$0xf0]  ;;  %v5924_v7 = vld [vmem:[%s9211_s30 + $0x2c0] sm:$0xf] }
  0x50   : > { %4371 = vmatpush.bf16.msra.mxu0 %v5573_v32  ;;  %v8350_v8 = vld [vmem:[%s9211_s30 + $0x2c4] sm:$0xf0]  ;;  %v6061_v9 = vor.u32 %v8384_v1, %v6060_v0  ;;  %v5988_v10 = vld [vmem:[%s9211_s30 + $0x340] sm:$0xf]  ;;  %v5852_v14 = vld [vmem:[%s9211_s30 + $0x230] sm:$0xf]  ;;  %v5861_v16 = vor.u32 %v8334_v6, %v5860_v3 }
  0x51   : > { %4384 = vmatpush.bf16.msra.mxu1 %v5637_v36  ;;  %v8366_v11 = vld [vmem:[%s9211_s30 + $0x344] sm:$0xf0]  ;;  %v6052_v12 = vld [vmem:[%s9211_s30 + $0x3c0] sm:$0xf]  ;;  %v8332_v15 = vld [vmem:[%s9211_s30 + $0x234] sm:$0xf0]  ;;  %v5925_v22 = vor.u32 %v8350_v8, %v5924_v7 }
  0x52   : > { %4397 = vmatpush.bf16.msra.mxu2 %v5701_v37  ;;  %v8382_v13 = vld [vmem:[%s9211_s30 + $0x3c4] sm:$0xf0]  ;;  %v5916_v17 = vld [vmem:[%s9211_s30 + $0x2b0] sm:$0xf]  ;;  %v8348_v18 = vld [vmem:[%s9211_s30 + $0x2b4] sm:$0xf0]  ;;  %v5989_v23 = vor.u32 %v8366_v11, %v5988_v10  ;;  %v5853_v31 = vor.u32 %v8332_v15, %v5852_v14 }
  0x53   : > { %4410 = vmatpush.bf16.msra.mxu3 %v5765_v40  ;;  %v5980_v19 = vld [vmem:[%s9211_s30 + $0x330] sm:$0xf]  ;;  %v8364_v20 = vld [vmem:[%s9211_s30 + $0x334] sm:$0xf0]  ;;  %v216_v21 = vld [vmem:[%s9227_s23 + $0x10] sm:$0xff]  ;;  %v6053_v26 = vor.u32 %v8382_v13, %v6052_v12  ;;  %v5917_v32 = vor.u32 %v8348_v18, %v5916_v17 }
  0x54   : > { %4416 = vmatpush.bf16.msrb.mxu0 %v5885_v41  ;;  %v6044_v29 = vld [vmem:[%s9211_s30 + $0x3b0] sm:$0xf]  ;;  %v8380_v30 = vld [vmem:[%s9211_s30 + $0x3b4] sm:$0xf0]  ;;  %v5981_v33 = vor.u32 %v8364_v20, %v5980_v19  ;;  %v5844_v34 = vld [vmem:[%s9211_s30 + $0x220] sm:$0xf] }
  0x55   : > { %4429 = vmatpush.bf16.msrb.mxu1 %v5949_v42  ;;  %v9335_v24 = vld.sshfl [vmem:[#allocation1 + $0x10] sm:$0xff pattern:$0x73625140]  ;;  %v9337_v25 = vld.sshfl [vmem:[#allocation1] sm:$0xff pattern:$0x73625140]  ;;  %v6045_v37 = vor.u32 %v8380_v30, %v6044_v29 }
  0x56   : > { %4442 = vmatpush.bf16.msrb.mxu2 %v6013_v43  ;;  %v9340_v27 = vld.sshfl [vmem:[#allocation1 + $0x18] sm:$0xff pattern:$0x73625140]  ;;  %v9342_v28 = vld.sshfl [vmem:[#allocation1 + $0x8] sm:$0xff pattern:$0x73625140]  ;;  %4372 = vmatmul.bf16.vlgmr.msra.gmra.mxu0 %v9337_v25 }
  0x57   : > { %4455 = vmatpush.bf16.msrb.mxu3 %v6077_v47  ;;  %4398 = vmatmul.bf16.vlgmr.msra.gmra.mxu2 %v9335_v24  ;;  %911 = vst [vmem:[#allocation1] ss:$4 sm:$0xff] %v216_v21  ;;  %v8330_v35 = vld [vmem:[%s9211_s30 + $0x224] sm:$0xf0]  ;;  %v5908_v36 = vld [vmem:[%s9211_s30 + $0x2a0] sm:$0xf] }
  0x58   : > { %4417 = vmatpush.bf16.msrb.mxu0 %v5877_v53  ;;  %4411 = vmatmul.bf16.vlgmr.msra.gmra.mxu3 %v9340_v27  ;;  %v8346_v38 = vld [vmem:[%s9211_s30 + $0x2a4] sm:$0xf0]  ;;  %v5972_v39 = vld [vmem:[%s9211_s30 + $0x320] sm:$0xf]  ;;  %v5845_v43 = vor.u32 %v8330_v35, %v5844_v34  ;;  %v5836_v44 = vld [vmem:[%s9211_s30 + $0x210] sm:$0xf] }
  0x59   : > { %4430 = vmatpush.bf16.msrb.mxu1 %v5941_v56  ;;  %v8362_v40 = vld [vmem:[%s9211_s30 + $0x324] sm:$0xf0]  ;;  %v6036_v41 = vld [vmem:[%s9211_s30 + $0x3a0] sm:$0xf]  ;;  %v8328_v45 = vld [vmem:[%s9211_s30 + $0x214] sm:$0xf0]  ;;  %v5909_v46 = vor.u32 %v8346_v38, %v5908_v36 }
  0x5a   : > { %4443 = vmatpush.bf16.msrb.mxu2 %v6005_v57  ;;  %4385 = vmatmul.bf16.vlgmr.msra.gmra.mxu1 %v9342_v28  ;;  %v8378_v42 = vld [vmem:[%s9211_s30 + $0x3a4] sm:$0xf0]  ;;  %v5973_v47 = vor.u32 %v8362_v40, %v5972_v39  ;;  %v5900_v48 = vld [vmem:[%s9211_s30 + $0x290] sm:$0xf]  ;;  %v8344_v49 = vld [vmem:[%s9211_s30 + $0x294] sm:$0xf0]  ;;  %v5837_v57 = vor.u32 %v8328_v45, %v5836_v44 }
  0x5b   : > { %4456 = vmatpush.bf16.msrb.mxu3 %v6069_v61  ;;  %v5964_v50 = vld [vmem:[%s9211_s30 + $0x310] sm:$0xf]  ;;  %v6037_v51 = vor.u32 %v8378_v42, %v6036_v41  ;;  %v8360_v52 = vld [vmem:[%s9211_s30 + $0x314] sm:$0xf0]  ;;  %v215_v54 = vld [vmem:[%s9227_s23 + $0x8] sm:$0xff]  ;;  %v5901_v61 = vor.u32 %v8344_v49, %v5900_v48 }
  0x5c   : > { %4418 = vmatpush.bf16.msrb.mxu0 %v5869_v2  ;;  %v6028_v53 = vld [vmem:[%s9211_s30 + $0x390] sm:$0xf]  ;;  %v8376_v55 = vld [vmem:[%s9211_s30 + $0x394] sm:$0xf0]  ;;  %v5828_v56 = vld [vmem:[%s9211_s30 + $0x200] sm:$0xf]  ;;  %v5965_v62 = vor.u32 %v8360_v52, %v5964_v50 }
  0x5d   : > { %4431 = vmatpush.bf16.msrb.mxu1 %v5933_v4  ;;  %901 = vst [vmem:[#allocation1 + $0x20] ss:$4 sm:$0xff] %v215_v54  ;;  %v8326_v58 = vld [vmem:[%s9211_s30 + $0x204] sm:$0xf0]  ;;  %v5892_v59 = vld [vmem:[%s9211_s30 + $0x280] sm:$0xf]  ;;  %v6029_v2 = vor.u32 %v8376_v55, %v6028_v53 }
  0x5e   : > { %4444 = vmatpush.bf16.msrb.mxu2 %v5997_v5  ;;  %v8342_v60 = vld [vmem:[%s9211_s30 + $0x284] sm:$0xf0]  ;;  %v5956_v63 = vld [vmem:[%s9211_s30 + $0x300] sm:$0xf]  ;;  %v6140_v4 = vld [vmem:[%s9211_s30 + $0x470] sm:$0xf] }
  0x5f   : > { %4457 = vmatpush.bf16.msrb.mxu3 %v6061_v9  ;;  %v8358_v0 = vld [vmem:[%s9211_s30 + $0x304] sm:$0xf0]  ;;  %v6020_v1 = vld [vmem:[%s9211_s30 + $0x380] sm:$0xf]  ;;  %v8404_v5 = vld [vmem:[%s9211_s30 + $0x474] sm:$0xf0]  ;;  %v5829_v9 = vor.u32 %v8326_v58, %v5828_v56  ;;  %v5893_v13 = vor.u32 %v8342_v60, %v5892_v59 }
  0x60   : > { %4419 = vmatpush.bf16.msrb.mxu0 %v5861_v16  ;;  %v8374_v3 = vld [vmem:[%s9211_s30 + $0x384] sm:$0xf0]  ;;  %v6204_v6 = vld [vmem:[%s9211_s30 + $0x4f0] sm:$0xf]  ;;  %v8420_v7 = vld [vmem:[%s9211_s30 + $0x4f4] sm:$0xf0]  ;;  %v5957_v14 = vor.u32 %v8358_v0, %v5956_v63  ;;  %v6141_v19 = vor.u32 %v8404_v5, %v6140_v4 }
  0x61   : > { %4432 = vmatpush.bf16.msrb.mxu1 %v5925_v22  ;;  %v6268_v8 = vld [vmem:[%s9211_s30 + $0x570] sm:$0xf]  ;;  %v8436_v10 = vld [vmem:[%s9211_s30 + $0x574] sm:$0xf0]  ;;  %v6132_v15 = vld [vmem:[%s9211_s30 + $0x460] sm:$0xf]  ;;  %v6021_v18 = vor.u32 %v8374_v3, %v6020_v1 }
  0x62   : > { %4445 = vmatpush.bf16.msrb.mxu2 %v5989_v23  ;;  %v6332_v11 = vld [vmem:[%s9211_s30 + $0x5f0] sm:$0xf]  ;;  %v8452_v12 = vld [vmem:[%s9211_s30 + $0x5f4] sm:$0xf0]  ;;  %v8402_v16 = vld [vmem:[%s9211_s30 + $0x464] sm:$0xf0]  ;;  %v6269_v29 = vor.u32 %v8436_v10, %v6268_v8 }
  0x63   : > { %4458 = vmatpush.bf16.msrb.mxu3 %v6053_v26  ;;  %v217_v17 = vld [vmem:[%s9227_s23 + $0x18] sm:$0xff]  ;;  %v6196_v20 = vld [vmem:[%s9211_s30 + $0x4e0] sm:$0xf]  ;;  %v8418_v21 = vld [vmem:[%s9211_s30 + $0x4e4] sm:$0xf0]  ;;  %v6205_v26 = vor.u32 %v8420_v7, %v6204_v6 }
  0x64   : > { %4420 = vmatpush.bf16.msrb.mxu0 %v5853_v31  ;;  %v9387_v22 = vld.sshfl [vmem:[#allocation1 + $0x30] sm:$0xff pattern:$0x73625140]  ;;  %v9389_v23 = vld.sshfl [vmem:[#allocation1 + $0x20] sm:$0xff pattern:$0x73625140]  ;;  %v6197_v38 = vor.u32 %v8418_v21, %v6196_v20 }
  0x65   : > { %4433 = vmatpush.bf16.msrb.mxu1 %v5917_v32  ;;  %v9391_v30 = vld.sshfl [vmem:[#allocation1 + $0x38] sm:$0xff pattern:$0x73625140]  ;;  %v9393_v31 = vld.sshfl [vmem:[#allocation1 + $0x28] sm:$0xff pattern:$0x73625140]  ;;  %v6333_v32 = vor.u32 %v8452_v12, %v6332_v11 }
  0x66   : > { %4446 = vmatpush.bf16.msrb.mxu2 %v5981_v33  ;;  %v6260_v33 = vld [vmem:[%s9211_s30 + $0x560] sm:$0xf]  ;;  %v8434_v34 = vld [vmem:[%s9211_s30 + $0x564] sm:$0xf0]  ;;  %913 = vst [vmem:[#allocation1 + $0x20] ss:$4 sm:$0xff] %v217_v17 }
  0x67   : > { %4459 = vmatpush.bf16.msrb.mxu3 %v6045_v37  ;;  %v6324_v35 = vld [vmem:[%s9211_s30 + $0x5e0] sm:$0xf]  ;;  %v8450_v36 = vld [vmem:[%s9211_s30 + $0x5e4] sm:$0xf0]  ;;  %v6133_v37 = vor.u32 %v8402_v16, %v6132_v15  ;;  %v6261_v39 = vor.u32 %v8434_v34, %v6260_v33  ;;  %v6124_v40 = vld [vmem:[%s9211_s30 + $0x450] sm:$0xf] }
  0x68   : > { %4421 = vmatpush.bf16.msrb.mxu0 %v5845_v43  ;;  %v8400_v41 = vld [vmem:[%s9211_s30 + $0x454] sm:$0xf0]  ;;  %v6188_v42 = vld [vmem:[%s9211_s30 + $0x4d0] sm:$0xf]  ;;  %v6325_v43 = vor.u32 %v8450_v36, %v6324_v35  ;;  %v6116_v52 = vld [vmem:[%s9211_s30 + $0x440] sm:$0xf] }
  0x69   : > { %4434 = vmatpush.bf16.msrb.mxu1 %v5909_v46  ;;  %v8416_v44 = vld [vmem:[%s9211_s30 + $0x4d4] sm:$0xf0]  ;;  %v6252_v45 = vld [vmem:[%s9211_s30 + $0x550] sm:$0xf]  ;;  %v6125_v49 = vor.u32 %v8400_v41, %v6124_v40  ;;  %v8398_v53 = vld [vmem:[%s9211_s30 + $0x444] sm:$0xf0] }
  0x6a   : > { %4447 = vmatpush.bf16.msrb.mxu2 %v5973_v47  ;;  %v8432_v46 = vld [vmem:[%s9211_s30 + $0x554] sm:$0xf0]  ;;  %v6316_v47 = vld [vmem:[%s9211_s30 + $0x5d0] sm:$0xf]  ;;  %v6189_v50 = vor.u32 %v8416_v44, %v6188_v42  ;;  %v6180_v54 = vld [vmem:[%s9211_s30 + $0x4c0] sm:$0xf] }
  0x6b   : > { %4460 = vmatpush.bf16.msrb.mxu3 %v6037_v51  ;;  %v8448_v48 = vld [vmem:[%s9211_s30 + $0x5d4] sm:$0xf0]  ;;  %v6253_v51 = vor.u32 %v8432_v46, %v6252_v45  ;;  %v8414_v56 = vld [vmem:[%s9211_s30 + $0x4c4] sm:$0xf0]  ;;  %v6308_v59 = vld [vmem:[%s9211_s30 + $0x5c0] sm:$0xf] }
  0x6c   : > { %4422 = vmatpush.bf16.msrb.mxu0 %v5837_v57  ;;  %v6317_v55 = vor.u32 %v8448_v48, %v6316_v47  ;;  %v6244_v57 = vld [vmem:[%s9211_s30 + $0x540] sm:$0xf]  ;;  %v8430_v58 = vld [vmem:[%s9211_s30 + $0x544] sm:$0xf0]  ;;  %v8396_v63 = vld [vmem:[%s9211_s30 + $0x434] sm:$0xf0]  ;;  %v6181_v1 = vor.u32 %v8414_v56, %v6180_v54 }
  0x6d   : > { %4435 = vmatpush.bf16.msrb.mxu1 %v5901_v61  ;;  %v8446_v60 = vld [vmem:[%s9211_s30 + $0x5c4] sm:$0xf0]  ;;  %v6117_v61 = vor.u32 %v8398_v53, %v6116_v52  ;;  %v6172_v0 = vld [vmem:[%s9211_s30 + $0x4b0] sm:$0xf]  ;;  %v8412_v3 = vld [vmem:[%s9211_s30 + $0x4b4] sm:$0xf0] }
  0x6e   : > { %4448 = vmatpush.bf16.msrb.mxu2 %v5965_v62  ;;  %v6108_v62 = vld [vmem:[%s9211_s30 + $0x430] sm:$0xf]  ;;  %v8428_v5 = vld [vmem:[%s9211_s30 + $0x534] sm:$0xf0]  ;;  %v6309_v6 = vor.u32 %v8446_v60, %v6308_v59  ;;  %v6100_v10 = vld [vmem:[%s9211_s30 + $0x420] sm:$0xf]  ;;  %v6173_v16 = vor.u32 %v8412_v3, %v6172_v0 }
  0x6f   : > { %4461 = vmatpush.bf16.msrb.mxu3 %v6029_v2  ;;  %v6245_v2 = vor.u32 %v8430_v58, %v6244_v57  ;;  %v6236_v4 = vld [vmem:[%s9211_s30 + $0x530] sm:$0xf]  ;;  %v8444_v8 = vld [vmem:[%s9211_s30 + $0x5b4] sm:$0xf0]  ;;  %v8410_v21 = vld [vmem:[%s9211_s30 + $0x4a4] sm:$0xf0] }
  0x70   : > { %4423 = vmatpush.bf16.msrb.mxu0 %v5829_v9  ;;  %v6300_v7 = vld [vmem:[%s9211_s30 + $0x5b0] sm:$0xf]  ;;  %v218_v9 = vld [vmem:[%s9227_s23 + $0x20] sm:$0xff]  ;;  %v9431_v12 = vld.sshfl [vmem:[#allocation1 + $0x10] sm:$0xff pattern:$0x73625140]  ;;  %v6237_v17 = vor.u32 %v8428_v5, %v6236_v4 }
  0x71   : > { %4436 = vmatpush.bf16.msrb.mxu1 %v5893_v13  ;;  %v9429_v11 = vld.sshfl [vmem:[#allocation1] sm:$0xff pattern:$0x73625140]  ;;  %v6109_v13 = vor.u32 %v8396_v63, %v6108_v62  ;;  %v9435_v15 = vld.sshfl [vmem:[#allocation1 + $0x18] sm:$0xff pattern:$0x73625140]  ;;  %v6301_v20 = vor.u32 %v8444_v8, %v6300_v7 }
  0x72   : > { %4449 = vmatpush.bf16.msrb.mxu2 %v5957_v14  ;;  %v9433_v14 = vld.sshfl [vmem:[#allocation1 + $0x8] sm:$0xff pattern:$0x73625140]  ;;  %v8442_v33 = vld [vmem:[%s9211_s30 + $0x5a4] sm:$0xf0] }
  0x73   : > { %4462 = vmatpush.bf16.msrb.mxu3 %v6021_v18  ;;  %4424 = vmatmul.bf16.vlgmr.msrb.gmra.mxu0 %v9389_v23  ;;  %v8394_v18 = vld [vmem:[%s9211_s30 + $0x424] sm:$0xf0]  ;;  %923 = vst [vmem:[#allocation1] ss:$4 sm:$0xff] %v218_v9  ;;  %v8408_v41 = vld [vmem:[%s9211_s30 + $0x494] sm:$0xf0] }
  0x74   : > { %4468 = vmatpush.bf16.msra.mxu0 %v6141_v19  ;;  %4437 = vmatmul.bf16.vlgmr.msrb.gmra.mxu1 %v9393_v31  ;;  %v6164_v19 = vld [vmem:[%s9211_s30 + $0x4a0] sm:$0xf]  ;;  %v6101_v34 = vor.u32 %v8394_v18, %v6100_v10  ;;  %v6220_v42 = vld [vmem:[%s9211_s30 + $0x510] sm:$0xf]  ;;  %v8440_v45 = vld [vmem:[%s9211_s30 + $0x594] sm:$0xf0] }
  0x75   : > { %4481 = vmatpush.bf16.msra.mxu1 %v6205_v26  ;;  %4450 = vmatmul.bf16.vlgmr.msrb.gmra.mxu2 %v9387_v22  ;;  %v6228_v26 = vld [vmem:[%s9211_s30 + $0x520] sm:$0xf]  ;;  %v6165_v35 = vor.u32 %v8410_v21, %v6164_v19  ;;  %v6284_v44 = vld [vmem:[%s9211_s30 + $0x590] sm:$0xf]  ;;  %v8390_v48 = vld [vmem:[%s9211_s30 + $0x404] sm:$0xf0] }
  0x76   : > { %4494 = vmatpush.bf16.msra.mxu2 %v6269_v29  ;;  %4463 = vmatmul.bf16.vlgmr.msrb.gmra.mxu3 %v9391_v30  ;;  %v8426_v29 = vld [vmem:[%s9211_s30 + $0x524] sm:$0xf0]  ;;  %v6084_v47 = vld [vmem:[%s9211_s30 + $0x400] sm:$0xf]  ;;  %v6285_v54 = vor.u32 %v8440_v45, %v6284_v44  ;;  %v6396_v58 = vld [vmem:[%s9211_s30 + $0x670] sm:$0xf] }
  0x77   : > { %4507 = vmatpush.bf16.msra.mxu3 %v6333_v32  ;;  %v6292_v32 = vld [vmem:[%s9211_s30 + $0x5a0] sm:$0xf]  ;;  %v6229_v36 = vor.u32 %v8426_v29, %v6228_v26  ;;  %v8406_v52 = vld [vmem:[%s9211_s30 + $0x484] sm:$0xf0]  ;;  %v8468_v59 = vld [vmem:[%s9211_s30 + $0x674] sm:$0xf0] }
  0x78   : > { %4469 = vmatpush.bf16.msra.mxu0 %v6133_v37  ;;  %v6092_v37 = vld [vmem:[%s9211_s30 + $0x410] sm:$0xf]  ;;  %v6293_v40 = vor.u32 %v8442_v33, %v6292_v32  ;;  %v6212_v53 = vld [vmem:[%s9211_s30 + $0x500] sm:$0xf]  ;;  %v8438_v57 = vld [vmem:[%s9211_s30 + $0x584] sm:$0xf0] }
  0x79   : > { %4482 = vmatpush.bf16.msra.mxu1 %v6197_v38  ;;  %v8392_v38 = vld [vmem:[%s9211_s30 + $0x414] sm:$0xf0]  ;;  %v6276_v56 = vld [vmem:[%s9211_s30 + $0x580] sm:$0xf]  ;;  %v6460_v60 = vld [vmem:[%s9211_s30 + $0x6f0] sm:$0xf] }
  0x7a   : > { %4495 = vmatpush.bf16.msra.mxu2 %v6261_v39  ;;  %v6156_v39 = vld [vmem:[%s9211_s30 + $0x490] sm:$0xf]  ;;  %v6093_v46 = vor.u32 %v8392_v38, %v6092_v37  ;;  %v8484_v62 = vld [vmem:[%s9211_s30 + $0x6f4] sm:$0xf0]  ;;  %v6277_v5 = vor.u32 %v8438_v57, %v6276_v56  ;;  %v6388_v9 = vld [vmem:[%s9211_s30 + $0x660] sm:$0xf] }
  0x7b   : > { %4508 = vmatpush.bf16.msra.mxu3 %v6325_v43  ;;  %v8424_v43 = vld [vmem:[%s9211_s30 + $0x514] sm:$0xf0]  ;;  %v6524_v63 = vld [vmem:[%s9211_s30 + $0x770] sm:$0xf]  ;;  %v6461_v7 = vor.u32 %v8484_v62, %v6460_v60  ;;  %v8466_v10 = vld [vmem:[%s9211_s30 + $0x664] sm:$0xf0] }
  0x7c   : > { %4470 = vmatpush.bf16.msra.mxu0 %v6125_v49  ;;  %v6157_v49 = vor.u32 %v8408_v41, %v6156_v39  ;;  %v8500_v0 = vld [vmem:[%s9211_s30 + $0x774] sm:$0xf0]  ;;  %v6588_v3 = vld [vmem:[%s9211_s30 + $0x7f0] sm:$0xf]  ;;  %v6516_v18 = vld [vmem:[%s9211_s30 + $0x760] sm:$0xf]  ;;  %v6389_v26 = vor.u32 %v8466_v10, %v6388_v9 }
  0x7d   : > { %4483 = vmatpush.bf16.msra.mxu1 %v6189_v50  ;;  %v6221_v50 = vor.u32 %v8424_v43, %v6220_v42  ;;  %v8516_v4 = vld [vmem:[%s9211_s30 + $0x7f4] sm:$0xf0]  ;;  %v6525_v8 = vor.u32 %v8500_v0, %v6524_v63  ;;  %v8498_v19 = vld [vmem:[%s9211_s30 + $0x764] sm:$0xf0]  ;;  %v6380_v29 = vld [vmem:[%s9211_s30 + $0x650] sm:$0xf] }
  0x7e   : > { %4496 = vmatpush.bf16.msra.mxu2 %v6253_v51  ;;  %v6148_v51 = vld [vmem:[%s9211_s30 + $0x480] sm:$0xf]  ;;  %v8514_v21 = vld [vmem:[%s9211_s30 + $0x7e4] sm:$0xf0]  ;;  %v6517_v33 = vor.u32 %v8498_v19, %v6516_v18  ;;  %v6508_v38 = vld [vmem:[%s9211_s30 + $0x750] sm:$0xf] }
  0x7f   : > { %4509 = vmatpush.bf16.msra.mxu3 %v6317_v55  ;;  %v8422_v55 = vld [vmem:[%s9211_s30 + $0x504] sm:$0xf0]  ;;  %v8496_v39 = vld [vmem:[%s9211_s30 + $0x754] sm:$0xf0]  ;;  %v6372_v42 = vld [vmem:[%s9211_s30 + $0x640] sm:$0xf] }
  0x80   : > { %4471 = vmatpush.bf16.msra.mxu0 %v6117_v61  ;;  %v6085_v61 = vor.u32 %v8390_v48, %v6084_v47  ;;  %v8512_v41 = vld [vmem:[%s9211_s30 + $0x7d4] sm:$0xf0]  ;;  %v8462_v43 = vld [vmem:[%s9211_s30 + $0x644] sm:$0xf0]  ;;  %v6436_v45 = vld [vmem:[%s9211_s30 + $0x6c0] sm:$0xf] }
  0x81   : > { %4484 = vmatpush.bf16.msra.mxu1 %v6181_v1  ;;  %v6149_v1 = vor.u32 %v8406_v52, %v6148_v51  ;;  %v6500_v47 = vld [vmem:[%s9211_s30 + $0x740] sm:$0xf]  ;;  %v8494_v48 = vld [vmem:[%s9211_s30 + $0x744] sm:$0xf0]  ;;  %v6509_v51 = vor.u32 %v8496_v39, %v6508_v38  ;;  %v6364_v62 = vld [vmem:[%s9211_s30 + $0x630] sm:$0xf] }
  0x82   : > { %4497 = vmatpush.bf16.msra.mxu2 %v6245_v2  ;;  %v6213_v2 = vor.u32 %v8422_v55, %v6212_v53  ;;  %v9495_v52 = vld.sshfl [vmem:[#allocation1 + $0x20] sm:$0xff pattern:$0x73625140]  ;;  %v9497_v53 = vld.sshfl [vmem:[#allocation1 + $0x30] sm:$0xff pattern:$0x73625140] }
  0x83   : > { %4510 = vmatpush.bf16.msra.mxu3 %v6309_v6  ;;  %v6397_v6 = vor.u32 %v8468_v59, %v6396_v58  ;;  %v9499_v55 = vld.sshfl [vmem:[#allocation1 + $0x28] sm:$0xff pattern:$0x73625140]  ;;  %v9501_v56 = vld.sshfl [vmem:[#allocation1 + $0x38] sm:$0xff pattern:$0x73625140]  ;;  %v6373_v59 = vor.u32 %v8462_v43, %v6372_v42 }
  0x84   : > { %4472 = vmatpush.bf16.msra.mxu0 %v6109_v13  ;;  %v6452_v13 = vld [vmem:[%s9211_s30 + $0x6e0] sm:$0xf]  ;;  %v8510_v58 = vld [vmem:[%s9211_s30 + $0x7c4] sm:$0xf0]  ;;  %v8460_v63 = vld [vmem:[%s9211_s30 + $0x634] sm:$0xf0] }
  0x85   : > { %4485 = vmatpush.bf16.msra.mxu1 %v6173_v16  ;;  %v6589_v16 = vor.u32 %v8516_v4, %v6588_v3  ;;  %v6564_v57 = vld [vmem:[%s9211_s30 + $0x7c0] sm:$0xf]  ;;  %v6428_v0 = vld [vmem:[%s9211_s30 + $0x6b0] sm:$0xf]  ;;  %v8492_v4 = vld [vmem:[%s9211_s30 + $0x734] sm:$0xf0] }
  0x86   : > { %4498 = vmatpush.bf16.msra.mxu2 %v6237_v17  ;;  %v8482_v17 = vld [vmem:[%s9211_s30 + $0x6e4] sm:$0xf0]  ;;  %v6492_v3 = vld [vmem:[%s9211_s30 + $0x730] sm:$0xf]  ;;  %v6356_v10 = vld [vmem:[%s9211_s30 + $0x620] sm:$0xf] }
  0x87   : > { %4511 = vmatpush.bf16.msra.mxu3 %v6301_v20  ;;  %v6580_v20 = vld [vmem:[%s9211_s30 + $0x7e0] sm:$0xf]  ;;  %v6453_v32 = vor.u32 %v8482_v17, %v6452_v13  ;;  %v6493_v9 = vor.u32 %v8492_v4, %v6492_v3  ;;  %v8458_v13 = vld [vmem:[%s9211_s30 + $0x624] sm:$0xf0]  ;;  %v8472_v38 = vld [vmem:[%s9211_s30 + $0x694] sm:$0xf0] }
  0x88   : > { %4473 = vmatpush.bf16.msra.mxu0 %v6101_v34  ;;  %v8464_v34 = vld [vmem:[%s9211_s30 + $0x654] sm:$0xf0]  ;;  %v6581_v37 = vor.u32 %v8514_v21, %v6580_v20  ;;  %v8474_v18 = vld [vmem:[%s9211_s30 + $0x6a4] sm:$0xf0]  ;;  %v6484_v19 = vld [vmem:[%s9211_s30 + $0x720] sm:$0xf] }
  0x89   : > { %4486 = vmatpush.bf16.msra.mxu1 %v6165_v35  ;;  %v6444_v35 = vld [vmem:[%s9211_s30 + $0x6d0] sm:$0xf]  ;;  %v6381_v44 = vor.u32 %v8464_v34, %v6380_v29  ;;  %v8490_v20 = vld [vmem:[%s9211_s30 + $0x724] sm:$0xf0]  ;;  %v6548_v21 = vld [vmem:[%s9211_s30 + $0x7a0] sm:$0xf]  ;;  %v6357_v29 = vor.u32 %v8458_v13, %v6356_v10 }
  0x8a   : > { %4499 = vmatpush.bf16.msra.mxu2 %v6229_v36  ;;  %v8480_v36 = vld [vmem:[%s9211_s30 + $0x6d4] sm:$0xf0]  ;;  %v6348_v34 = vld [vmem:[%s9211_s30 + $0x610] sm:$0xf]  ;;  %v6644_v10 = vld [vmem:[%s9211_s30 + $0x860] sm:$0xf] }
  0x8b   : > { %4512 = vmatpush.bf16.msra.mxu3 %v6293_v40  ;;  %v6572_v40 = vld [vmem:[%s9211_s30 + $0x7d0] sm:$0xf]  ;;  %v8504_v42 = vld [vmem:[%s9211_s30 + $0x794] sm:$0xf0]  ;;  %v8530_v13 = vld [vmem:[%s9211_s30 + $0x864] sm:$0xf0] }
  0x8c   : > { %4474 = vmatpush.bf16.msra.mxu0 %v6093_v46  ;;  %v8478_v46 = vld [vmem:[%s9211_s30 + $0x6c4] sm:$0xf0]  ;;  %v6476_v39 = vld [vmem:[%s9211_s30 + $0x710] sm:$0xf] }
  0x8d   : > { %4487 = vmatpush.bf16.msra.mxu1 %v6157_v49  ;;  %v219_v49 = vld [vmem:[%s9227_s23 + $0x28] sm:$0xff]  ;;  %v6437_v60 = vor.u32 %v8478_v46, %v6436_v45  ;;  %v8454_v45 = vld [vmem:[%s9211_s30 + $0x604] sm:$0xf0]  ;;  %v6844_v4 = vld [vmem:[%s9211_s30 + $0x9f0] sm:$0xf] }
  0x8e   : > { %4500 = vmatpush.bf16.msra.mxu2 %v6221_v50  ;;  %v6445_v50 = vor.u32 %v8480_v36, %v6444_v35  ;;  %925 = vst [vmem:[#allocation1 + $0x20] ss:$4 sm:$0xff] %v219_v49  ;;  %v8456_v35 = vld [vmem:[%s9211_s30 + $0x614] sm:$0xf0]  ;;  %v6412_v36 = vld [vmem:[%s9211_s30 + $0x690] sm:$0xf] }
  0x8f   : > { %4513 = vmatpush.bf16.msra.mxu3 %v6285_v54  ;;  %v6573_v54 = vor.u32 %v8512_v41, %v6572_v40  ;;  %v8488_v40 = vld [vmem:[%s9211_s30 + $0x714] sm:$0xf0]  ;;  %v6540_v41 = vld [vmem:[%s9211_s30 + $0x790] sm:$0xf]  ;;  %v6349_v43 = vor.u32 %v8456_v35, %v6348_v34  ;;  %v6413_v46 = vor.u32 %v8472_v38, %v6412_v36  ;;  %v8470_v49 = vld [vmem:[%s9211_s30 + $0x684] sm:$0xf0] }
  0x90   : > { %4475 = vmatpush.bf16.msra.mxu0 %v6085_v61  ;;  %v6501_v61 = vor.u32 %v8494_v48, %v6500_v47  ;;  %v6477_v47 = vor.u32 %v8488_v40, %v6476_v39  ;;  %v6404_v48 = vld [vmem:[%s9211_s30 + $0x680] sm:$0xf]  ;;  %v6636_v34 = vld [vmem:[%s9211_s30 + $0x850] sm:$0xf]  ;;  %v8528_v35 = vld [vmem:[%s9211_s30 + $0x854] sm:$0xf0] }
  0x91   : > { %4488 = vmatpush.bf16.msra.mxu1 %v6149_v1  ;;  %v6565_v1 = vor.u32 %v8510_v58, %v6564_v57  ;;  %v6532_v57 = vld [vmem:[%s9211_s30 + $0x780] sm:$0xf]  ;;  %v8502_v58 = vld [vmem:[%s9211_s30 + $0x784] sm:$0xf0]  ;;  %v6700_v36 = vld [vmem:[%s9211_s30 + $0x8d0] sm:$0xf] }
  0x92   : > { %4501 = vmatpush.bf16.msra.mxu2 %v6213_v2  ;;  %v8476_v2 = vld [vmem:[%s9211_s30 + $0x6b4] sm:$0xf0]  ;;  %v6764_v39 = vld [vmem:[%s9211_s30 + $0x950] sm:$0xf] }
  0x93   : > { %4514 = vmatpush.bf16.msra.mxu3 %v6277_v5  ;;  %4476 = vmatmul.bf16.vlgmr.msra.gmra.mxu0 %v9429_v11  ;;  %v6556_v5 = vld [vmem:[%s9211_s30 + $0x7b0] sm:$0xf]  ;;  %v8544_v38 = vld [vmem:[%s9211_s30 + $0x8d4] sm:$0xf0] }
  0x94   : > { %4520 = vmatpush.bf16.msrb.mxu0 %v6397_v6  ;;  %4489 = vmatmul.bf16.vlgmr.msra.gmra.mxu1 %v9433_v14  ;;  %v8508_v6 = vld [vmem:[%s9211_s30 + $0x7b4] sm:$0xf0] }
  0x95   : > { %4533 = vmatpush.bf16.msrb.mxu1 %v6461_v7  ;;  %4502 = vmatmul.bf16.vlgmr.msra.gmra.mxu2 %v9431_v12  ;;  %v6365_v7 = vor.u32 %v8460_v63, %v6364_v62  ;;  %v6557_v17 = vor.u32 %v8508_v6, %v6556_v5  ;;  %v8548_v63 = vld [vmem:[%s9211_s30 + $0x8f4] sm:$0xf0]  ;;  %v6533_v6 = vor.u32 %v8502_v58, %v6532_v57  ;;  %v6820_v57 = vld [vmem:[%s9211_s30 + $0x9c0] sm:$0xf]  ;;  %v8574_v58 = vld [vmem:[%s9211_s30 + $0x9c4] sm:$0xf0] }
  0x96   : > { %4546 = vmatpush.bf16.msrb.mxu2 %v6525_v8  ;;  %4515 = vmatmul.bf16.vlgmr.msra.gmra.mxu3 %v9435_v15  ;;  %v6429_v8 = vor.u32 %v8476_v2, %v6428_v0  ;;  %v6780_v0 = vld [vmem:[%s9211_s30 + $0x970] sm:$0xf]  ;;  %v6405_v2 = vor.u32 %v8470_v49, %v6404_v48  ;;  %v8580_v5 = vld [vmem:[%s9211_s30 + $0x9f4] sm:$0xf0]  ;;  %v6692_v48 = vld [vmem:[%s9211_s30 + $0x8c0] sm:$0xf] }
  0x97   : > { %4559 = vmatpush.bf16.msrb.mxu3 %v6589_v16  ;;  %v6420_v16 = vld [vmem:[%s9211_s30 + $0x6a0] sm:$0xf]  ;;  %v8560_v40 = vld [vmem:[%s9211_s30 + $0x954] sm:$0xf0] }
  0x98   : > { %4521 = vmatpush.bf16.msrb.mxu0 %v6389_v26  ;;  %v8506_v26 = vld [vmem:[%s9211_s30 + $0x7a4] sm:$0xf0] }
  0x99   : > { %4534 = vmatpush.bf16.msrb.mxu1 %v6453_v32  ;;  %v6421_v32 = vor.u32 %v8474_v18, %v6420_v16  ;;  %v6708_v16 = vld [vmem:[%s9211_s30 + $0x8e0] sm:$0xf]  ;;  %v8546_v18 = vld [vmem:[%s9211_s30 + $0x8e4] sm:$0xf0] }
  0x9a   : > { %4547 = vmatpush.bf16.msrb.mxu2 %v6517_v33  ;;  %v6485_v33 = vor.u32 %v8490_v20, %v6484_v19  ;;  %v6772_v19 = vld [vmem:[%s9211_s30 + $0x960] sm:$0xf]  ;;  %v8562_v20 = vld [vmem:[%s9211_s30 + $0x964] sm:$0xf0] }
  0x9b   : > { %4560 = vmatpush.bf16.msrb.mxu3 %v6581_v37  ;;  %v6549_v37 = vor.u32 %v8506_v26, %v6548_v21  ;;  %v6836_v21 = vld [vmem:[%s9211_s30 + $0x9e0] sm:$0xf]  ;;  %v8578_v26 = vld [vmem:[%s9211_s30 + $0x9e4] sm:$0xf0] }
  0x9c   : > { %4522 = vmatpush.bf16.msrb.mxu0 %v6381_v44  ;;  %v6340_v44 = vld [vmem:[%s9211_s30 + $0x600] sm:$0xf] }
  0x9d   : > { %4535 = vmatpush.bf16.msrb.mxu1 %v6445_v50  ;;  %v6468_v50 = vld [vmem:[%s9211_s30 + $0x700] sm:$0xf]  ;;  %v6341_v62 = vor.u32 %v8454_v45, %v6340_v44  ;;  %v6701_v44 = vor.u32 %v8544_v38, %v6700_v36  ;;  %v6765_v45 = vor.u32 %v8560_v40, %v6764_v39  ;;  %v6668_v36 = vld [vmem:[%s9211_s30 + $0x890] sm:$0xf]  ;;  %v8536_v38 = vld [vmem:[%s9211_s30 + $0x894] sm:$0xf0] }
  0x9e   : > { %4548 = vmatpush.bf16.msrb.mxu2 %v6509_v51  ;;  %v6541_v51 = vor.u32 %v8504_v42, %v6540_v41  ;;  %v6828_v41 = vld [vmem:[%s9211_s30 + $0x9d0] sm:$0xf]  ;;  %v8576_v42 = vld [vmem:[%s9211_s30 + $0x9d4] sm:$0xf0] }
  0x9f   : > { %4561 = vmatpush.bf16.msrb.mxu3 %v6573_v54  ;;  %v8486_v54 = vld [vmem:[%s9211_s30 + $0x704] sm:$0xf0]  ;;  %v6829_v49 = vor.u32 %v8576_v42, %v6828_v41  ;;  %v6732_v39 = vld [vmem:[%s9211_s30 + $0x910] sm:$0xf]  ;;  %v8552_v40 = vld [vmem:[%s9211_s30 + $0x914] sm:$0xf0] }
  0xa0   : > { %4523 = vmatpush.bf16.msrb.mxu0 %v6373_v59  ;;  %v6652_v59 = vld [vmem:[%s9211_s30 + $0x870] sm:$0xf]  ;;  %v6469_v3 = vor.u32 %v8486_v54, %v6468_v50  ;;  %v8542_v50 = vld [vmem:[%s9211_s30 + $0x8c4] sm:$0xf0]  ;;  %v8568_v42 = vld [vmem:[%s9211_s30 + $0x994] sm:$0xf0] }
  0xa1   : > { %4536 = vmatpush.bf16.msrb.mxu1 %v6437_v60  ;;  %v8532_v60 = vld [vmem:[%s9211_s30 + $0x874] sm:$0xf0]  ;;  %v8558_v54 = vld [vmem:[%s9211_s30 + $0x944] sm:$0xf0]  ;;  %v6796_v41 = vld [vmem:[%s9211_s30 + $0x990] sm:$0xf] }
  0xa2   : > { %4549 = vmatpush.bf16.msrb.mxu2 %v6501_v61  ;;  %v6716_v61 = vld [vmem:[%s9211_s30 + $0x8f0] sm:$0xf] }
  0xa3   : > { %4562 = vmatpush.bf16.msrb.mxu3 %v6565_v1  ;;  %v8564_v1 = vld [vmem:[%s9211_s30 + $0x974] sm:$0xf0] }
  0xa4   : > { %4524 = vmatpush.bf16.msrb.mxu0 %v6365_v7  ;;  %v6653_v7 = vor.u32 %v8532_v60, %v6652_v59  ;;  %v6693_v60 = vor.u32 %v8542_v50, %v6692_v48  ;;  %v6660_v48 = vld [vmem:[%s9211_s30 + $0x880] sm:$0xf] }
  0xa5   : > { %4537 = vmatpush.bf16.msrb.mxu1 %v6429_v8  ;;  %v6717_v8 = vor.u32 %v8548_v63, %v6716_v61  ;;  %v8524_v63 = vld [vmem:[%s9211_s30 + $0x834] sm:$0xf0]  ;;  %v6724_v50 = vld [vmem:[%s9211_s30 + $0x900] sm:$0xf] }
  0xa6   : > { %4550 = vmatpush.bf16.msrb.mxu2 %v6493_v9  ;;  %v6781_v9 = vor.u32 %v8564_v1, %v6780_v0  ;;  %v6684_v0 = vld [vmem:[%s9211_s30 + $0x8b0] sm:$0xf]  ;;  %v6821_v1 = vor.u32 %v8574_v58, %v6820_v57  ;;  %v6788_v57 = vld [vmem:[%s9211_s30 + $0x980] sm:$0xf]  ;;  %v8566_v58 = vld [vmem:[%s9211_s30 + $0x984] sm:$0xf0] }
  0xa7   : > { %4563 = vmatpush.bf16.msrb.mxu3 %v6557_v17  ;;  %v6845_v17 = vor.u32 %v8580_v5, %v6844_v4  ;;  %v8556_v4 = vld [vmem:[%s9211_s30 + $0x934] sm:$0xf0]  ;;  %v6812_v5 = vld [vmem:[%s9211_s30 + $0x9b0] sm:$0xf] }
  0xa8   : > { %4525 = vmatpush.bf16.msrb.mxu0 %v6357_v29  ;;  %v6645_v29 = vor.u32 %v8530_v13, %v6644_v10  ;;  %v6612_v10 = vld [vmem:[%s9211_s30 + $0x820] sm:$0xf]  ;;  %v8522_v13 = vld [vmem:[%s9211_s30 + $0x824] sm:$0xf0] }
  0xa9   : > { %4538 = vmatpush.bf16.msrb.mxu1 %v6421_v32  ;;  %v6709_v32 = vor.u32 %v8546_v18, %v6708_v16  ;;  %v6676_v16 = vld [vmem:[%s9211_s30 + $0x8a0] sm:$0xf]  ;;  %v8538_v18 = vld [vmem:[%s9211_s30 + $0x8a4] sm:$0xf0] }
  0xaa   : > { %4551 = vmatpush.bf16.msrb.mxu2 %v6485_v33  ;;  %v6773_v33 = vor.u32 %v8562_v20, %v6772_v19  ;;  %v6740_v19 = vld [vmem:[%s9211_s30 + $0x920] sm:$0xf]  ;;  %v8554_v20 = vld [vmem:[%s9211_s30 + $0x924] sm:$0xf0] }
  0xab   : > { %4564 = vmatpush.bf16.msrb.mxu3 %v6549_v37  ;;  %v6837_v37 = vor.u32 %v8578_v26, %v6836_v21  ;;  %v6804_v21 = vld [vmem:[%s9211_s30 + $0x9a0] sm:$0xf]  ;;  %v8570_v26 = vld [vmem:[%s9211_s30 + $0x9a4] sm:$0xf0] }
  0xac   : > { %4526 = vmatpush.bf16.msrb.mxu0 %v6349_v43  ;;  %v6637_v43 = vor.u32 %v8528_v35, %v6636_v34  ;;  %v6604_v34 = vld [vmem:[%s9211_s30 + $0x810] sm:$0xf]  ;;  %v8520_v35 = vld [vmem:[%s9211_s30 + $0x814] sm:$0xf0] }
  0xad   : > { %4539 = vmatpush.bf16.msrb.mxu1 %v6413_v46  ;;  %v6628_v46 = vld [vmem:[%s9211_s30 + $0x840] sm:$0xf] }
  0xae   : > { %4552 = vmatpush.bf16.msrb.mxu2 %v6477_v47  ;;  %v8526_v47 = vld [vmem:[%s9211_s30 + $0x844] sm:$0xf0] }
  0xaf   : > { %4565 = vmatpush.bf16.msrb.mxu3 %v6541_v51  ;;  %v6756_v51 = vld [vmem:[%s9211_s30 + $0x940] sm:$0xf]  ;;  %v6629_v59 = vor.u32 %v8526_v47, %v6628_v46  ;;  %v6669_v46 = vor.u32 %v8536_v38, %v6668_v36  ;;  %v6733_v47 = vor.u32 %v8552_v40, %v6732_v39  ;;  %v6892_v38 = vld [vmem:[%s9211_s30 + $0xa50] sm:$0xf]  ;;  %v8592_v39 = vld [vmem:[%s9211_s30 + $0xa54] sm:$0xf0] }
  0xb0   : > { %4527 = vmatpush.bf16.msrb.mxu0 %v6341_v62  ;;  %v6757_v61 = vor.u32 %v8558_v54, %v6756_v51  ;;  %v6620_v62 = vld [vmem:[%s9211_s30 + $0x830] sm:$0xf]  ;;  %v6797_v51 = vor.u32 %v8568_v42, %v6796_v41  ;;  %v8550_v54 = vld [vmem:[%s9211_s30 + $0x904] sm:$0xf0]  ;;  %v8608_v42 = vld [vmem:[%s9211_s30 + $0xad4] sm:$0xf0] }
  0xb1   : > { %4540 = vmatpush.bf16.msrb.mxu1 %v6405_v2  ;;  %v8540_v2 = vld [vmem:[%s9211_s30 + $0x8b4] sm:$0xf0]  ;;  %v6956_v40 = vld [vmem:[%s9211_s30 + $0xad0] sm:$0xf] }
  0xb2   : > { %4553 = vmatpush.bf16.msrb.mxu2 %v6469_v3  ;;  %v6748_v3 = vld [vmem:[%s9211_s30 + $0x930] sm:$0xf] }
  0xb3   : > { %4566 = vmatpush.bf16.msrb.mxu3 %v6533_v6  ;;  %4528 = vmatmul.bf16.vlgmr.msrb.gmra.mxu0 %v9495_v52  ;;  %v8572_v6 = vld [vmem:[%s9211_s30 + $0x9b4] sm:$0xf0] }
  0xb4   : > { %4572 = vmatpush.bf16.msra.mxu0 %v6653_v7  ;;  %4541 = vmatmul.bf16.vlgmr.msrb.gmra.mxu1 %v9499_v55  ;;  %v6621_v7 = vor.u32 %v8524_v63, %v6620_v62  ;;  %v8612_v63 = vld [vmem:[%s9211_s30 + $0xaf4] sm:$0xf0] }
  0xb5   : > { %4585 = vmatpush.bf16.msra.mxu1 %v6717_v8  ;;  %4554 = vmatmul.bf16.vlgmr.msrb.gmra.mxu2 %v9497_v53  ;;  %v6685_v8 = vor.u32 %v8540_v2, %v6684_v0  ;;  %v7036_v0 = vld [vmem:[%s9211_s30 + $0xb70] sm:$0xf] }
  0xb6   : > { %4598 = vmatpush.bf16.msra.mxu2 %v6781_v9  ;;  %4567 = vmatmul.bf16.vlgmr.msrb.gmra.mxu3 %v9501_v56  ;;  %v6749_v9 = vor.u32 %v8556_v4, %v6748_v3  ;;  %v6725_v3 = vor.u32 %v8550_v54, %v6724_v50  ;;  %v7100_v4 = vld [vmem:[%s9211_s30 + $0xbf0] sm:$0xf]  ;;  %v6884_v50 = vld [vmem:[%s9211_s30 + $0xa40] sm:$0xf] }
  0xb7   : > { %4611 = vmatpush.bf16.msra.mxu3 %v6845_v17  ;;  %v6813_v17 = vor.u32 %v8572_v6, %v6812_v5  ;;  %v8644_v5 = vld [vmem:[%s9211_s30 + $0xbf4] sm:$0xf0]  ;;  %v6789_v6 = vor.u32 %v8566_v58, %v6788_v57  ;;  %v6948_v54 = vld [vmem:[%s9211_s30 + $0xac0] sm:$0xf]  ;;  %v8606_v58 = vld [vmem:[%s9211_s30 + $0xac4] sm:$0xf0] }
  0xb8   : > { %4573 = vmatpush.bf16.msra.mxu0 %v6645_v29  ;;  %v6613_v29 = vor.u32 %v8522_v13, %v6612_v10  ;;  %v9613_v10 = vld.sshfl [vmem:[#allocation1] sm:$0xff pattern:$0x73625140]  ;;  %v6900_v13 = vld [vmem:[%s9211_s30 + $0xa60] sm:$0xf] }
  0xb9   : > { %4586 = vmatpush.bf16.msra.mxu1 %v6709_v32  ;;  %v6677_v32 = vor.u32 %v8538_v18, %v6676_v16  ;;  %v8594_v16 = vld [vmem:[%s9211_s30 + $0xa64] sm:$0xf0]  ;;  %v7101_v18 = vor.u32 %v8644_v5, %v7100_v4  ;;  %v6940_v4 = vld [vmem:[%s9211_s30 + $0xab0] sm:$0xf] }
  0xba   : > { %4599 = vmatpush.bf16.msra.mxu2 %v6773_v33  ;;  %v6741_v33 = vor.u32 %v8554_v20, %v6740_v19  ;;  %v9618_v19 = vld.sshfl [vmem:[#allocation1 + $0x10] sm:$0xff pattern:$0x73625140] }
  0xbb   : > { %4612 = vmatpush.bf16.msra.mxu3 %v6837_v37  ;;  %v6805_v37 = vor.u32 %v8570_v26, %v6804_v21  ;;  %v8610_v20 = vld [vmem:[%s9211_s30 + $0xae4] sm:$0xf0]  ;;  %v7028_v21 = vld [vmem:[%s9211_s30 + $0xb60] sm:$0xf] }
  0xbc   : > { %4574 = vmatpush.bf16.msra.mxu0 %v6637_v43  ;;  %v6605_v43 = vor.u32 %v8520_v35, %v6604_v34  ;;  %v8626_v26 = vld [vmem:[%s9211_s30 + $0xb64] sm:$0xf0]  ;;  %v9627_v34 = vld.sshfl [vmem:[#allocation1 + $0x18] sm:$0xff pattern:$0x73625140]  ;;  %v6901_v35 = vor.u32 %v8594_v16, %v6900_v13 }
  0xbd   : > { %4587 = vmatpush.bf16.msra.mxu1 %v6701_v44  ;;  %v6596_v44 = vld [vmem:[%s9211_s30 + $0x800] sm:$0xf]  ;;  %v8636_v13 = vld [vmem:[%s9211_s30 + $0xbb4] sm:$0xf0] }
  0xbe   : > { %4600 = vmatpush.bf16.msra.mxu2 %v6765_v45  ;;  %v8518_v45 = vld [vmem:[%s9211_s30 + $0x804] sm:$0xf0] }
  0xbf   : > { %4613 = vmatpush.bf16.msra.mxu3 %v6829_v49  ;;  %v8534_v49 = vld [vmem:[%s9211_s30 + $0x884] sm:$0xf0]  ;;  %v6597_v62 = vor.u32 %v8518_v45, %v6596_v44  ;;  %v8624_v44 = vld [vmem:[%s9211_s30 + $0xb54] sm:$0xf0]  ;;  %v7084_v45 = vld [vmem:[%s9211_s30 + $0xbd0] sm:$0xf] }
  0xc0   : > { %4575 = vmatpush.bf16.msra.mxu0 %v6629_v59  ;;  %v6908_v59 = vld [vmem:[%s9211_s30 + $0xa70] sm:$0xf]  ;;  %v6661_v2 = vor.u32 %v8534_v49, %v6660_v48  ;;  %v6957_v48 = vor.u32 %v8608_v42, %v6956_v40 }
  0xc1   : > { %4588 = vmatpush.bf16.msra.mxu1 %v6693_v60  ;;  %v8596_v60 = vld [vmem:[%s9211_s30 + $0xa74] sm:$0xf0] }
  0xc2   : > { %4601 = vmatpush.bf16.msra.mxu2 %v6757_v61  ;;  %v6972_v61 = vld [vmem:[%s9211_s30 + $0xaf0] sm:$0xf] }
  0xc3   : > { %4614 = vmatpush.bf16.msra.mxu3 %v6821_v1  ;;  %v8628_v1 = vld [vmem:[%s9211_s30 + $0xb74] sm:$0xf0] }
  0xc4   : > { %4576 = vmatpush.bf16.msra.mxu0 %v6621_v7  ;;  %v6909_v7 = vor.u32 %v8596_v60, %v6908_v59  ;;  %v7012_v59 = vld [vmem:[%s9211_s30 + $0xb40] sm:$0xf]  ;;  %v8622_v60 = vld [vmem:[%s9211_s30 + $0xb44] sm:$0xf0] }
  0xc5   : > { %4589 = vmatpush.bf16.msra.mxu1 %v6685_v8  ;;  %v6973_v8 = vor.u32 %v8612_v63, %v6972_v61  ;;  %v7076_v61 = vld [vmem:[%s9211_s30 + $0xbc0] sm:$0xf] }
  0xc6   : > { %4602 = vmatpush.bf16.msra.mxu2 %v6749_v9  ;;  %v7037_v9 = vor.u32 %v8628_v1, %v7036_v0  ;;  %v6949_v0 = vor.u32 %v8606_v58, %v6948_v54  ;;  %v7013_v1 = vor.u32 %v8622_v60, %v7012_v59  ;;  %v7052_v54 = vld [vmem:[%s9211_s30 + $0xb90] sm:$0xf]  ;;  %v6852_v58 = vld [vmem:[%s9211_s30 + $0xa00] sm:$0xf]  ;;  %v8582_v60 = vld [vmem:[%s9211_s30 + $0xa04] sm:$0xf0] }
  0xc7   : > { %4615 = vmatpush.bf16.msra.mxu3 %v6813_v17  ;;  %v6964_v17 = vld [vmem:[%s9211_s30 + $0xae0] sm:$0xf] }
  0xc8   : > { %4577 = vmatpush.bf16.msra.mxu0 %v6613_v29  ;;  %v7092_v29 = vld [vmem:[%s9211_s30 + $0xbe0] sm:$0xf]  ;;  %v6965_v36 = vor.u32 %v8610_v20, %v6964_v17 }
  0xc9   : > { %4590 = vmatpush.bf16.msra.mxu1 %v6677_v32  ;;  %v8642_v32 = vld [vmem:[%s9211_s30 + $0xbe4] sm:$0xf0]  ;;  %v6868_v20 = vld [vmem:[%s9211_s30 + $0xa20] sm:$0xf] }
  0xca   : > { %4603 = vmatpush.bf16.msra.mxu2 %v6741_v33  ;;  %v9625_v33 = vld.sshfl [vmem:[#allocation1 + $0x8] sm:$0xff pattern:$0x73625140]  ;;  %v7093_v41 = vor.u32 %v8642_v32, %v7092_v29  ;;  %v8602_v32 = vld [vmem:[%s9211_s30 + $0xaa4] sm:$0xf0] }
  0xcb   : > { %4616 = vmatpush.bf16.msra.mxu3 %v6805_v37  ;;  %v7029_v37 = vor.u32 %v8626_v26, %v7028_v21  ;;  %v8586_v21 = vld [vmem:[%s9211_s30 + $0xa24] sm:$0xf0]  ;;  %v6932_v26 = vld [vmem:[%s9211_s30 + $0xaa0] sm:$0xf] }
  0xcc   : > { %4578 = vmatpush.bf16.msra.mxu0 %v6605_v43  ;;  %v7020_v43 = vld [vmem:[%s9211_s30 + $0xb50] sm:$0xf] }
  0xcd   : > { %4591 = vmatpush.bf16.msra.mxu1 %v6669_v46  ;;  %v8640_v46 = vld [vmem:[%s9211_s30 + $0xbd4] sm:$0xf0]  ;;  %v7021_v49 = vor.u32 %v8624_v44, %v7020_v43  ;;  %v6860_v43 = vld [vmem:[%s9211_s30 + $0xa10] sm:$0xf] }
  0xce   : > { %4604 = vmatpush.bf16.msra.mxu2 %v6733_v47  ;;  %v6893_v47 = vor.u32 %v8592_v39, %v6892_v38  ;;  %v7085_v57 = vor.u32 %v8640_v46, %v7084_v45  ;;  %v8634_v38 = vld [vmem:[%s9211_s30 + $0xba4] sm:$0xf0]  ;;  %v6869_v39 = vor.u32 %v8586_v21, %v6868_v20  ;;  %v8584_v44 = vld [vmem:[%s9211_s30 + $0xa14] sm:$0xf0]  ;;  %v6924_v45 = vld [vmem:[%s9211_s30 + $0xa90] sm:$0xf]  ;;  %v6853_v20 = vor.u32 %v8582_v60, %v6852_v58 }
  0xcf   : > { %4617 = vmatpush.bf16.msra.mxu3 %v6797_v51  ;;  %v8590_v51 = vld [vmem:[%s9211_s30 + $0xa44] sm:$0xf0]  ;;  %v6861_v59 = vor.u32 %v8584_v44, %v6860_v43  ;;  %v7292_v21 = vld [vmem:[%s9211_s30 + $0xd70] sm:$0xf] }
  0xd0   : > { %4579 = vmatpush.bf16.msra.mxu0 %v6597_v62  ;;  %v8638_v62 = vld [vmem:[%s9211_s30 + $0xbc4] sm:$0xf0]  ;;  %v6885_v63 = vor.u32 %v8590_v51, %v6884_v50  ;;  %v8616_v50 = vld [vmem:[%s9211_s30 + $0xb14] sm:$0xf0] }
  0xd1   : > { %4592 = vmatpush.bf16.msra.mxu1 %v6661_v2  ;;  %v6876_v2 = vld [vmem:[%s9211_s30 + $0xa30] sm:$0xf]  ;;  %v7077_v5 = vor.u32 %v8638_v62, %v7076_v61  ;;  %v6916_v61 = vld [vmem:[%s9211_s30 + $0xa80] sm:$0xf]  ;;  %v8598_v62 = vld [vmem:[%s9211_s30 + $0xa84] sm:$0xf0] }
  0xd2   : > { %4605 = vmatpush.bf16.msra.mxu2 %v6725_v3  ;;  %v8588_v3 = vld [vmem:[%s9211_s30 + $0xa34] sm:$0xf0]  ;;  %v8706_v58 = vld [vmem:[%s9211_s30 + $0xde4] sm:$0xf0] }
  0xd3   : > { %4618 = vmatpush.bf16.msra.mxu3 %v6789_v6  ;;  %4580 = vmatmul.bf16.vlgmr.msra.gmra.mxu0 %v9613_v10  ;;  %v8604_v6 = vld [vmem:[%s9211_s30 + $0xab4] sm:$0xf0]  ;;  %v6877_v16 = vor.u32 %v8588_v3, %v6876_v2  ;;  %v4373_v40 = vpop.f32.mrf.mxu0  ;;  %v8614_v2 = vld [vmem:[%s9211_s30 + $0xb04] sm:$0xf0]  ;;  %v7044_v3 = vld [vmem:[%s9211_s30 + $0xb80] sm:$0xf] }
  0xd4   : > { %4624 = vmatpush.bf16.msrb.mxu0 %v6909_v7  ;;  %4593 = vmatmul.bf16.vlgmr.msra.gmra.mxu1 %v9625_v33  ;;  %v7004_v7 = vld [vmem:[%s9211_s30 + $0xb30] sm:$0xf]  ;;  %v6941_v17 = vor.u32 %v8604_v6, %v6940_v4  ;;  %v8630_v6 = vld [vmem:[%s9211_s30 + $0xb84] sm:$0xf0] }
  0xd5   : > { %4637 = vmatpush.bf16.msrb.mxu1 %v6973_v8  ;;  %4606 = vmatmul.bf16.vlgmr.msra.gmra.mxu2 %v9618_v19  ;;  %v8620_v8 = vld [vmem:[%s9211_s30 + $0xb34] sm:$0xf0]  ;;  %v9704_v60 = vld.sshfl [vmem:[#allocation1 + $0x28] sm:$0xff pattern:$0x73625140] }
  0xd6   : > { %4650 = vmatpush.bf16.msrb.mxu2 %v7037_v9  ;;  %4619 = vmatmul.bf16.vlgmr.msra.gmra.mxu3 %v9627_v34  ;;  %v7068_v9 = vld [vmem:[%s9211_s30 + $0xbb0] sm:$0xf]  ;;  %v9692_v44 = vld.sshfl [vmem:[#allocation1 + $0x20] sm:$0xff pattern:$0x73625140] }
  0xd7   : > { %4663 = vmatpush.bf16.msrb.mxu3 %v7101_v18  ;;  %v7005_v18 = vor.u32 %v8620_v8, %v7004_v7  ;;  %v7069_v29 = vor.u32 %v8636_v13, %v7068_v9  ;;  %v4386_v46 = vpop.f32.mrf.mxu1  ;;  %v7164_v7 = vld [vmem:[%s9211_s30 + $0xc70] sm:$0xf]  ;;  %v8660_v8 = vld [vmem:[%s9211_s30 + $0xc74] sm:$0xf0] }
  0xd8   : > { %4625 = vmatpush.bf16.msrb.mxu0 %v6901_v35  ;;  %v6996_v35 = vld [vmem:[%s9211_s30 + $0xb20] sm:$0xf]  ;;  %v4387_v51 = vadd.f32 %v4386_v46, %v4373_v40  ;;  %v7045_v40 = vor.u32 %v8630_v6, %v7044_v3  ;;  %v8658_v46 = vld [vmem:[%s9211_s30 + $0xc64] sm:$0xf0]  ;;  %v8656_v3 = vld [vmem:[%s9211_s30 + $0xc54] sm:$0xf0] }
  0xd9   : > { %4638 = vmatpush.bf16.msrb.mxu1 %v6965_v36  ;;  %v8618_v36 = vld [vmem:[%s9211_s30 + $0xb24] sm:$0xf0]  ;;  %v8672_v6 = vld [vmem:[%s9211_s30 + $0xcd4] sm:$0xf0] }
  0xda   : > { %4651 = vmatpush.bf16.msrb.mxu2 %v7029_v37  ;;  %v7060_v37 = vld [vmem:[%s9211_s30 + $0xba0] sm:$0xf]  ;;  %v6997_v42 = vor.u32 %v8618_v36, %v6996_v35  ;;  %v4399_v4 = vpop.f32.mrf.mxu2  ;;  %v6917_v35 = vor.u32 %v8598_v62, %v6916_v61  ;;  %v9706_v61 = vld.sshfl [vmem:[#allocation1 + $0x38] sm:$0xff pattern:$0x73625140] }
  0xdb   : > { %4664 = vmatpush.bf16.msrb.mxu3 %v7093_v41  ;;  %v6933_v41 = vor.u32 %v8602_v32, %v6932_v26  ;;  %v4400_v9 = vadd.f32 %v4399_v4, %v4387_v51  ;;  %v4412_v13 = vpop.f32.mrf.mxu3  ;;  %v8692_v26 = vld [vmem:[%s9211_s30 + $0xd74] sm:$0xf0]  ;;  %v4375_v32 = vpop.f32.mrf.mxu0  ;;  %v7284_v51 = vld [vmem:[%s9211_s30 + $0xd60] sm:$0xf]  ;;  %v7212_v4 = vld [vmem:[%s9211_s30 + $0xcd0] sm:$0xf] }
  0xdc   : > { %4626 = vmatpush.bf16.msrb.mxu0 %v6893_v47  ;;  %v7061_v47 = vor.u32 %v8634_v38, %v7060_v37  ;;  %v7356_v37 = vld [vmem:[%s9211_s30 + $0xdf0] sm:$0xf]  ;;  %v8708_v38 = vld [vmem:[%s9211_s30 + $0xdf4] sm:$0xf0]  ;;  %v7293_v43 = vor.u32 %v8692_v26, %v7292_v21  ;;  %v8654_v21 = vld [vmem:[%s9211_s30 + $0xc44] sm:$0xf0] }
  0xdd   : > { %4639 = vmatpush.bf16.msrb.mxu1 %v6957_v48  ;;  %v8600_v48 = vld [vmem:[%s9211_s30 + $0xa94] sm:$0xf0]  ;;  %v7204_v26 = vld [vmem:[%s9211_s30 + $0xcc0] sm:$0xf] }
  0xde   : > { %4652 = vmatpush.bf16.msrb.mxu2 %v7021_v49  ;;  %v6988_v49 = vld [vmem:[%s9211_s30 + $0xb10] sm:$0xf] }
  0xdf   : > { %4665 = vmatpush.bf16.msrb.mxu3 %v7085_v57  ;;  %v8632_v57 = vld [vmem:[%s9211_s30 + $0xb94] sm:$0xf0] }
  0xe0   : > { %4627 = vmatpush.bf16.msrb.mxu0 %v6885_v63  ;;  %v6925_v63 = vor.u32 %v8600_v48, %v6924_v45  ;;  %v7156_v45 = vld [vmem:[%s9211_s30 + $0xc60] sm:$0xf]  ;;  %v7357_v48 = vor.u32 %v8708_v38, %v7356_v37  ;;  %v8686_v37 = vld [vmem:[%s9211_s30 + $0xd44] sm:$0xf0] }
  0xe1   : > { %4640 = vmatpush.bf16.msrb.mxu1 %v6949_v0  ;;  %v6989_v0 = vor.u32 %v8616_v50, %v6988_v49  ;;  %v9697_v49 = vld.sshfl [vmem:[#allocation1 + $0x30] sm:$0xff pattern:$0x73625140]  ;;  %v7157_v62 = vor.u32 %v8658_v46, %v7156_v45  ;;  %v7332_v38 = vld [vmem:[%s9211_s30 + $0xdc0] sm:$0xf] }
  0xe2   : > { %4653 = vmatpush.bf16.msrb.mxu2 %v7013_v1  ;;  %v6980_v1 = vld [vmem:[%s9211_s30 + $0xb00] sm:$0xf]  ;;  %v8674_v50 = vld [vmem:[%s9211_s30 + $0xce4] sm:$0xf0]  ;;  %v7132_v45 = vld [vmem:[%s9211_s30 + $0xc30] sm:$0xf] }
  0xe3   : > { %4666 = vmatpush.bf16.msrb.mxu3 %v7077_v5  ;;  %v7053_v5 = vor.u32 %v8632_v57, %v7052_v54  ;;  %v6981_v36 = vor.u32 %v8614_v2, %v6980_v1  ;;  %v8690_v54 = vld [vmem:[%s9211_s30 + $0xd64] sm:$0xf0]  ;;  %v7348_v57 = vld [vmem:[%s9211_s30 + $0xde0] sm:$0xf]  ;;  %v7148_v2 = vld [vmem:[%s9211_s30 + $0xc50] sm:$0xf] }
  0xe4   : > { %4628 = vmatpush.bf16.msrb.mxu0 %v6877_v16  ;;  %v7228_v16 = vld [vmem:[%s9211_s30 + $0xcf0] sm:$0xf]  ;;  %v7285_v1 = vor.u32 %v8690_v54, %v7284_v51  ;;  %v8652_v46 = vld [vmem:[%s9211_s30 + $0xc34] sm:$0xf0] }
  0xe5   : > { %4641 = vmatpush.bf16.msrb.mxu1 %v6941_v17  ;;  %v8676_v17 = vld [vmem:[%s9211_s30 + $0xcf4] sm:$0xf0] }
  0xe6   : > { %4654 = vmatpush.bf16.msrb.mxu2 %v7005_v18  ;;  %v220_v18 = vld [vmem:[%s9227_s23 + $0x30] sm:$0xff]  ;;  %v8668_v54 = vld [vmem:[%s9211_s30 + $0xcb4] sm:$0xf0] }
  0xe7   : > { %4667 = vmatpush.bf16.msrb.mxu3 %v7069_v29  ;;  %v9688_v29 = vadd.f32 %v4412_v13, %v4400_v9  ;;  %935 = vst [vmem:[#allocation1] ss:$4 sm:$0xff] %v220_v18  ;;  %v7340_v9 = vld [vmem:[%s9211_s30 + $0xdd0] sm:$0xf]  ;;  %v8704_v13 = vld [vmem:[%s9211_s30 + $0xdd4] sm:$0xf0] }
  0xe8   : > { %4629 = vmatpush.bf16.msrb.mxu0 %v6869_v39  ;;  %v4388_v39 = vpop.f32.mrf.mxu1  ;;  %v7341_v32 = vor.u32 %v8704_v13, %v7340_v9  ;;  %v8682_v9 = vld [vmem:[%s9211_s30 + $0xd24] sm:$0xf0] }
  0xe9   : > { %4642 = vmatpush.bf16.msrb.mxu1 %v6933_v41  ;;  %v7165_v41 = vor.u32 %v8660_v8, %v7164_v7  ;;  %v7276_v7 = vld [vmem:[%s9211_s30 + $0xd50] sm:$0xf]  ;;  %v8688_v8 = vld [vmem:[%s9211_s30 + $0xd54] sm:$0xf0]  ;;  %v8702_v39 = vld [vmem:[%s9211_s30 + $0xdc4] sm:$0xf0] }
  0xea   : > { %4655 = vmatpush.bf16.msrb.mxu2 %v6997_v42  ;;  %v7229_v42 = vor.u32 %v8676_v17, %v7228_v16  ;;  %v7149_v16 = vor.u32 %v8656_v3, %v7148_v2  ;;  %v7213_v17 = vor.u32 %v8672_v6, %v7212_v4  ;;  %v7277_v18 = vor.u32 %v8688_v8, %v7276_v7  ;;  %v7124_v2 = vld [vmem:[%s9211_s30 + $0xc20] sm:$0xf]  ;;  %v8650_v3 = vld [vmem:[%s9211_s30 + $0xc24] sm:$0xf0] }
  0xeb   : > { %4668 = vmatpush.bf16.msrb.mxu3 %v7061_v47  ;;  %v7220_v47 = vld [vmem:[%s9211_s30 + $0xce0] sm:$0xf]  ;;  %v7333_v51 = vor.u32 %v8702_v39, %v7332_v38  ;;  %v8666_v7 = vld [vmem:[%s9211_s30 + $0xca4] sm:$0xf0]  ;;  %v7180_v38 = vld [vmem:[%s9211_s30 + $0xc90] sm:$0xf] }
  0xec   : > { %4630 = vmatpush.bf16.msrb.mxu0 %v6861_v59  ;;  %v4401_v59 = vpop.f32.mrf.mxu2  ;;  %v7188_v4 = vld [vmem:[%s9211_s30 + $0xca0] sm:$0xf] }
  0xed   : > { %4643 = vmatpush.bf16.msrb.mxu1 %v6925_v63  ;;  %v4414_v63 = vpop.f32.mrf.mxu3  ;;  %v7324_v59 = vld [vmem:[%s9211_s30 + $0xdb0] sm:$0xf]  ;;  %v7252_v8 = vld [vmem:[%s9211_s30 + $0xd20] sm:$0xf] }
  0xee   : > { %4656 = vmatpush.bf16.msrb.mxu2 %v6989_v0  ;;  %v7221_v0 = vor.u32 %v8674_v50, %v7220_v47  ;;  %v7196_v47 = vld [vmem:[%s9211_s30 + $0xcb0] sm:$0xf] }
  0xef   : > { %4669 = vmatpush.bf16.msrb.mxu3 %v7053_v5  ;;  %v7349_v5 = vor.u32 %v8706_v58, %v7348_v57  ;;  %v7260_v57 = vld [vmem:[%s9211_s30 + $0xd30] sm:$0xf]  ;;  %v8684_v58 = vld [vmem:[%s9211_s30 + $0xd34] sm:$0xf0] }
  0xf0   : > { %4631 = vmatpush.bf16.msrb.mxu0 %v6853_v20  ;;  %v7140_v20 = vld [vmem:[%s9211_s30 + $0xc40] sm:$0xf] }
  0xf1   : > { %4644 = vmatpush.bf16.msrb.mxu1 %v6917_v35  ;;  %v8670_v35 = vld [vmem:[%s9211_s30 + $0xcc4] sm:$0xf0]  ;;  %v4438_v50 = vpop.f32.mrf.mxu1 }
  0xf2   : > { %4657 = vmatpush.bf16.msrb.mxu2 %v6981_v36  ;;  %v7268_v36 = vld [vmem:[%s9211_s30 + $0xd40] sm:$0xf] }
  0xf3   : > { %4670 = vmatpush.bf16.msrb.mxu3 %v7045_v40  ;;  %4632 = vmatmul.bf16.vlgmr.msrb.gmra.mxu0 %v9692_v44  ;;  %v7141_v40 = vor.u32 %v8654_v21, %v7140_v20  ;;  %v7125_v20 = vor.u32 %v8650_v3, %v7124_v2  ;;  %v7420_v2 = vld [vmem:[%s9211_s30 + $0xe70] sm:$0xf]  ;;  %v8724_v3 = vld [vmem:[%s9211_s30 + $0xe74] sm:$0xf0] }
  0xf4   : > { %4676 = vmatpush.bf16.msra.mxu0 %v7165_v41  ;;  %4645 = vmatmul.bf16.vlgmr.msrb.gmra.mxu1 %v9704_v60  ;;  %v4425_v41 = vpop.f32.mrf.mxu0 }
  0xf5   : > { %4689 = vmatpush.bf16.msra.mxu1 %v7229_v42  ;;  %4658 = vmatmul.bf16.vlgmr.msrb.gmra.mxu2 %v9697_v49  ;;  %v7205_v42 = vor.u32 %v8670_v35, %v7204_v26  ;;  %v7253_v35 = vor.u32 %v8682_v9, %v7252_v8  ;;  %v7548_v9 = vld [vmem:[%s9211_s30 + $0xf70] sm:$0xf] }
  0xf6   : > { %4702 = vmatpush.bf16.msra.mxu2 %v7293_v43  ;;  %4671 = vmatmul.bf16.vlgmr.msrb.gmra.mxu3 %v9706_v61  ;;  %v7269_v43 = vor.u32 %v8686_v37, %v7268_v36  ;;  %v7116_v36 = vld [vmem:[%s9211_s30 + $0xc10] sm:$0xf]  ;;  %v8648_v37 = vld [vmem:[%s9211_s30 + $0xc14] sm:$0xf0] }
  0xf7   : > { %4715 = vmatpush.bf16.msra.mxu3 %v7357_v48  ;;  %v4426_v48 = vadd.f32 %v4425_v41, %v9688_v29  ;;  %v7197_v29 = vor.u32 %v8668_v54, %v7196_v47  ;;  %v8664_v41 = vld [vmem:[%s9211_s30 + $0xc94] sm:$0xf0]  ;;  %v7108_v47 = vld [vmem:[%s9211_s30 + $0xc00] sm:$0xf]  ;;  %v8662_v54 = vld [vmem:[%s9211_s30 + $0xc84] sm:$0xf0] }
  0xf8   : > { %4677 = vmatpush.bf16.msra.mxu0 %v7157_v62  ;;  %v8700_v62 = vld [vmem:[%s9211_s30 + $0xdb4] sm:$0xf0] }
  0xf9   : > { %4690 = vmatpush.bf16.msra.mxu1 %v7221_v0  ;;  %v4439_v63 = vadd.f32 %v4438_v50, %v4426_v48  ;;  %v7133_v0 = vor.u32 %v8652_v46, %v7132_v45  ;;  %v7325_v6 = vor.u32 %v8700_v62, %v7324_v59  ;;  %v4440_v39 = vpop.f32.mrf.mxu1  ;;  %v7308_v45 = vld [vmem:[%s9211_s30 + $0xd90] sm:$0xf]  ;;  %v8696_v46 = vld [vmem:[%s9211_s30 + $0xd94] sm:$0xf0]  ;;  %v7117_v48 = vor.u32 %v8648_v37, %v7116_v36  ;;  %v8646_v50 = vld [vmem:[%s9211_s30 + $0xc04] sm:$0xf0] }
  0xfa   : > { %4703 = vmatpush.bf16.msra.mxu2 %v7285_v1  ;;  %v7261_v1 = vor.u32 %v8684_v58, %v7260_v57  ;;  %v7181_v57 = vor.u32 %v8664_v41, %v7180_v38  ;;  %v7236_v59 = vld [vmem:[%s9211_s30 + $0xd00] sm:$0xf]  ;;  %v8678_v62 = vld [vmem:[%s9211_s30 + $0xd04] sm:$0xf0]  ;;  %v7109_v8 = vor.u32 %v8646_v50, %v7108_v47 }
  0xfb   : > { %4716 = vmatpush.bf16.msra.mxu3 %v7349_v5  ;;  %v4451_v5 = vpop.f32.mrf.mxu2  ;;  %v9772_v37 = vld.sshfl [vmem:[#allocation1] sm:$0xff pattern:$0x73625140]  ;;  %v7412_v38 = vld [vmem:[%s9211_s30 + $0xe60] sm:$0xf] }
  0xfc   : > { %4678 = vmatpush.bf16.msra.mxu0 %v7149_v16  ;;  %v4452_v13 = vadd.f32 %v4451_v5, %v4439_v63  ;;  %v4464_v16 = vpop.f32.mrf.mxu3  ;;  %v4427_v26 = vpop.f32.mrf.mxu0  ;;  %v7300_v63 = vld [vmem:[%s9211_s30 + $0xd80] sm:$0xf]  ;;  %v7484_v5 = vld [vmem:[%s9211_s30 + $0xef0] sm:$0xf]  ;;  %v8722_v39 = vld [vmem:[%s9211_s30 + $0xe64] sm:$0xf0] }
  0xfd   : > { %4691 = vmatpush.bf16.msra.mxu1 %v7213_v17  ;;  %v7316_v17 = vld [vmem:[%s9211_s30 + $0xda0] sm:$0xf] }
  0xfe   : > { %4704 = vmatpush.bf16.msra.mxu2 %v7277_v18  ;;  %v8698_v18 = vld [vmem:[%s9211_s30 + $0xda4] sm:$0xf0]  ;;  %v9745_v21 = vadd.f32 %v4464_v16, %v4452_v13  ;;  %v8756_v13 = vld [vmem:[%s9211_s30 + $0xf74] sm:$0xf0]  ;;  %v7604_v47 = vld [vmem:[%s9211_s30 + $0xfe0] sm:$0xf] }
  0xff   : > { %4717 = vmatpush.bf16.msra.mxu3 %v7341_v32  ;;  %v7189_v32 = vor.u32 %v8666_v7, %v7188_v4  ;;  %v221_v7 = vld [vmem:[%s9227_s23 + $0x38] sm:$0xff]  ;;  %v7549_v36 = vor.u32 %v8756_v13, %v7548_v9  ;;  %v9784_v50 = vld.sshfl [vmem:[#allocation1 + $0x8] sm:$0xff pattern:$0x73625140]  ;;  %v8718_v9 = vld [vmem:[%s9211_s30 + $0xe44] sm:$0xf0] }
 0x100   : > { %4679 = vmatpush.bf16.msra.mxu0 %v7141_v40  ;;  %v7317_v40 = vor.u32 %v8698_v18, %v7316_v17  ;;  %937 = vst [vmem:[#allocation1 + $0x20] ss:$4 sm:$0xff] %v221_v7  ;;  %v7237_v17 = vor.u32 %v8678_v62, %v7236_v59  ;;  %v7612_v18 = vld [vmem:[%s9211_s30 + $0xff0] sm:$0xf]  ;;  %v8720_v62 = vld [vmem:[%s9211_s30 + $0xe54] sm:$0xf0] }
 0x101   : > { %4692 = vmatpush.bf16.msra.mxu1 %v7205_v42  ;;  %v7244_v42 = vld [vmem:[%s9211_s30 + $0xd10] sm:$0xf]  ;;  %v7460_v13 = vld [vmem:[%s9211_s30 + $0xec0] sm:$0xf] }
 0x102   : > { %4705 = vmatpush.bf16.msra.mxu2 %v7269_v43  ;;  %v8680_v43 = vld [vmem:[%s9211_s30 + $0xd14] sm:$0xf0]  ;;  %v7404_v59 = vld [vmem:[%s9211_s30 + $0xe50] sm:$0xf] }
 0x103   : > { %4718 = vmatpush.bf16.msra.mxu3 %v7333_v51  ;;  %v7172_v51 = vld [vmem:[%s9211_s30 + $0xc80] sm:$0xf]  ;;  %v7245_v58 = vor.u32 %v8680_v43, %v7244_v42  ;;  %v9777_v42 = vld.sshfl [vmem:[#allocation1 + $0x10] sm:$0xff pattern:$0x73625140] }
 0x104   : > { %4680 = vmatpush.bf16.msra.mxu0 %v7133_v0  ;;  %v4453_v0 = vpop.f32.mrf.mxu2  ;;  %v4466_v4 = vpop.f32.mrf.mxu3  ;;  %v7173_v16 = vor.u32 %v8662_v54, %v7172_v51  ;;  %v8738_v43 = vld [vmem:[%s9211_s30 + $0xee4] sm:$0xf0]  ;;  %v9786_v51 = vld.sshfl [vmem:[#allocation1 + $0x18] sm:$0xff pattern:$0x73625140]  ;;  %v7413_v54 = vor.u32 %v8722_v39, %v7412_v38 }
 0x105   : > { %4693 = vmatpush.bf16.msra.mxu1 %v7197_v29  ;;  %v7309_v29 = vor.u32 %v8696_v46, %v7308_v45  ;;  %v7540_v45 = vld [vmem:[%s9211_s30 + $0xf60] sm:$0xf]  ;;  %v8754_v46 = vld [vmem:[%s9211_s30 + $0xf64] sm:$0xf0]  ;;  %v8768_v4 = vld [vmem:[%s9211_s30 + $0xfd4] sm:$0xf0] }
 0x106   : > { %4706 = vmatpush.bf16.msra.mxu2 %v7261_v1  ;;  %v8694_v1 = vld [vmem:[%s9211_s30 + $0xd84] sm:$0xf0] }
 0x107   : > { %4719 = vmatpush.bf16.msra.mxu3 %v7325_v6  ;;  %v8740_v6 = vld [vmem:[%s9211_s30 + $0xef4] sm:$0xf0]  ;;  %v7301_v26 = vor.u32 %v8694_v1, %v7300_v63  ;;  %v7468_v63 = vld [vmem:[%s9211_s30 + $0xed0] sm:$0xf] }
 0x108   : > { %4681 = vmatpush.bf16.msra.mxu0 %v7125_v20  ;;  %v8772_v20 = vld [vmem:[%s9211_s30 + $0xff4] sm:$0xf0]  ;;  %v7532_v1 = vld [vmem:[%s9211_s30 + $0xf50] sm:$0xf] }
 0x109   : > { %4694 = vmatpush.bf16.msra.mxu1 %v7189_v32  ;;  %v7421_v32 = vor.u32 %v8724_v3, %v7420_v2  ;;  %v7613_v41 = vor.u32 %v8772_v20, %v7612_v18  ;;  %v8752_v2 = vld [vmem:[%s9211_s30 + $0xf54] sm:$0xf0]  ;;  %v7596_v3 = vld [vmem:[%s9211_s30 + $0xfd0] sm:$0xf]  ;;  %v7524_v18 = vld [vmem:[%s9211_s30 + $0xf40] sm:$0xf] }
 0x10a   : > { %4707 = vmatpush.bf16.msra.mxu2 %v7253_v35  ;;  %v7485_v35 = vor.u32 %v8740_v6, %v7484_v5  ;;  %v7405_v5 = vor.u32 %v8720_v62, %v7404_v59  ;;  %v7533_v7 = vor.u32 %v8752_v2, %v7532_v1  ;;  %v8750_v20 = vld [vmem:[%s9211_s30 + $0xf44] sm:$0xf0]  ;;  %v8764_v59 = vld [vmem:[%s9211_s30 + $0xfb4] sm:$0xf0]  ;;  %v7444_v2 = vld [vmem:[%s9211_s30 + $0xea0] sm:$0xf] }
 0x10b   : > { %4720 = vmatpush.bf16.msra.mxu3 %v7317_v40  ;;  %v7476_v40 = vld [vmem:[%s9211_s30 + $0xee0] sm:$0xf]  ;;  %v8714_v1 = vld [vmem:[%s9211_s30 + $0xe24] sm:$0xf0] }
 0x10c   : > { %4682 = vmatpush.bf16.msra.mxu0 %v7117_v48  ;;  %v8770_v48 = vld [vmem:[%s9211_s30 + $0xfe4] sm:$0xf0] }
 0x10d   : > { %4695 = vmatpush.bf16.msra.mxu1 %v7181_v57  ;;  %v7477_v57 = vor.u32 %v8738_v43, %v7476_v40  ;;  %v7605_v0 = vor.u32 %v8770_v48, %v7604_v47  ;;  %v7388_v43 = vld [vmem:[%s9211_s30 + $0xe30] sm:$0xf] }
 0x10e   : > { %4708 = vmatpush.bf16.msra.mxu2 %v7245_v58  ;;  %v7541_v58 = vor.u32 %v8754_v46, %v7540_v45  ;;  %v8716_v45 = vld [vmem:[%s9211_s30 + $0xe34] sm:$0xf0]  ;;  %v7452_v46 = vld [vmem:[%s9211_s30 + $0xeb0] sm:$0xf] }
 0x10f   : > { %4721 = vmatpush.bf16.msra.mxu3 %v7309_v29  ;;  %v8736_v29 = vld [vmem:[%s9211_s30 + $0xed4] sm:$0xf0]  ;;  %v7389_v62 = vor.u32 %v8716_v45, %v7388_v43  ;;  %v7500_v43 = vld [vmem:[%s9211_s30 + $0xf10] sm:$0xf] }
 0x110   : > { %4683 = vmatpush.bf16.msra.mxu0 %v7109_v8  ;;  %v7469_v6 = vor.u32 %v8736_v29, %v7468_v63  ;;  %v7396_v8 = vld [vmem:[%s9211_s30 + $0xe40] sm:$0xf]  ;;  %v8744_v45 = vld [vmem:[%s9211_s30 + $0xf14] sm:$0xf0] }
 0x111   : > { %4696 = vmatpush.bf16.msra.mxu1 %v7173_v16  ;;  %v7597_v16 = vor.u32 %v8768_v4, %v7596_v3  ;;  %v7397_v38 = vor.u32 %v8718_v9, %v7396_v8  ;;  %v4490_v39 = vpop.f32.mrf.mxu1  ;;  %v7380_v29 = vld [vmem:[%s9211_s30 + $0xe20] sm:$0xf] }
 0x112   : > { %4709 = vmatpush.bf16.msra.mxu2 %v7237_v17  ;;  %v8734_v17 = vld [vmem:[%s9211_s30 + $0xec4] sm:$0xf0] }
 0x113   : > { %4722 = vmatpush.bf16.msra.mxu3 %v7301_v26  ;;  %4684 = vmatmul.bf16.vlgmr.msra.gmra.mxu0 %v9772_v37  ;;  %v4477_v26 = vpop.f32.mrf.mxu0  ;;  %v7461_v40 = vor.u32 %v8734_v17, %v7460_v13  ;;  %v7572_v13 = vld [vmem:[%s9211_s30 + $0xfa0] sm:$0xf] }
 0x114   : > { %4728 = vmatpush.bf16.msrb.mxu0 %v7421_v32  ;;  %4697 = vmatmul.bf16.vlgmr.msra.gmra.mxu1 %v9784_v50  ;;  %v7588_v32 = vld [vmem:[%s9211_s30 + $0xfc0] sm:$0xf] }
 0x115   : > { %4741 = vmatpush.bf16.msrb.mxu1 %v7485_v35  ;;  %4710 = vmatmul.bf16.vlgmr.msra.gmra.mxu2 %v9777_v42  ;;  %v8766_v35 = vld [vmem:[%s9211_s30 + $0xfc4] sm:$0xf0] }
 0x116   : > { %4754 = vmatpush.bf16.msrb.mxu2 %v7549_v36  ;;  %4723 = vmatmul.bf16.vlgmr.msra.gmra.mxu3 %v9786_v51  ;;  %v4478_v36 = vadd.f32 %v4477_v26, %v9745_v21  ;;  %v7589_v47 = vor.u32 %v8766_v35, %v7588_v32  ;;  %v8748_v21 = vld [vmem:[%s9211_s30 + $0xf34] sm:$0xf0] }
 0x117   : > { %4767 = vmatpush.bf16.msrb.mxu3 %v7613_v41  ;;  %v7525_v41 = vor.u32 %v8750_v20, %v7524_v18  ;;  %v7381_v18 = vor.u32 %v8714_v1, %v7380_v29  ;;  %v7556_v29 = vld [vmem:[%s9211_s30 + $0xf80] sm:$0xf] }
 0x118   : > { %4729 = vmatpush.bf16.msrb.mxu0 %v7413_v54  ;;  %v4491_v48 = vadd.f32 %v4490_v39, %v4478_v36  ;;  %v8732_v54 = vld [vmem:[%s9211_s30 + $0xeb4] sm:$0xf0]  ;;  %v4503_v4 = vpop.f32.mrf.mxu2  ;;  %v7372_v36 = vld [vmem:[%s9211_s30 + $0xe10] sm:$0xf] }
 0x119   : > { %4742 = vmatpush.bf16.msrb.mxu1 %v7477_v57  ;;  %v7516_v57 = vld [vmem:[%s9211_s30 + $0xf30] sm:$0xf]  ;;  %v7453_v63 = vor.u32 %v8732_v54, %v7452_v46  ;;  %v4516_v9 = vpop.f32.mrf.mxu3  ;;  %v4492_v20 = vpop.f32.mrf.mxu1 }
 0x11a   : > { %4755 = vmatpush.bf16.msrb.mxu2 %v7541_v58  ;;  %v7580_v58 = vld [vmem:[%s9211_s30 + $0xfb0] sm:$0xf]  ;;  %v4504_v8 = vadd.f32 %v4503_v4, %v4491_v48  ;;  %v7364_v48 = vld [vmem:[%s9211_s30 + $0xe00] sm:$0xf]  ;;  %v8788_v4 = vld [vmem:[%s9211_s30 + $0x1074] sm:$0xf0] }
 0x11b   : > { %4768 = vmatpush.bf16.msrb.mxu3 %v7605_v0  ;;  %v7517_v0 = vor.u32 %v8748_v21, %v7516_v57  ;;  %v7581_v3 = vor.u32 %v8764_v59, %v7580_v58  ;;  %v4479_v17 = vpop.f32.mrf.mxu0  ;;  %v7436_v39 = vld [vmem:[%s9211_s30 + $0xe90] sm:$0xf]  ;;  %v8710_v57 = vld [vmem:[%s9211_s30 + $0xe04] sm:$0xf0]  ;;  %v7428_v21 = vld [vmem:[%s9211_s30 + $0xe80] sm:$0xf] }
 0x11c   : > { %4730 = vmatpush.bf16.msrb.mxu0 %v7405_v5  ;;  %v8730_v5 = vld [vmem:[%s9211_s30 + $0xea4] sm:$0xf0]  ;;  %v9825_v26 = vadd.f32 %v4516_v9, %v4504_v8  ;;  %v7564_v46 = vld [vmem:[%s9211_s30 + $0xf90] sm:$0xf]  ;;  %v222_v9 = vld [vmem:[%s9227_s23 + $0x40] sm:$0xff] }
 0x11d   : > { %4743 = vmatpush.bf16.msrb.mxu1 %v7469_v6  ;;  %v7508_v6 = vld [vmem:[%s9211_s30 + $0xf20] sm:$0xf]  ;;  %v7445_v32 = vor.u32 %v8730_v5, %v7444_v2  ;;  %v8726_v58 = vld [vmem:[%s9211_s30 + $0xe84] sm:$0xf0]  ;;  %v8820_v17 = vld [vmem:[%s9211_s30 + $0x1174] sm:$0xf0] }
 0x11e   : > { %4756 = vmatpush.bf16.msrb.mxu2 %v7533_v7  ;;  %v8746_v7 = vld [vmem:[%s9211_s30 + $0xf24] sm:$0xf0]  ;;  %947 = vst [vmem:[#allocation1] ss:$4 sm:$0xff] %v222_v9  ;;  %v7852_v9 = vld [vmem:[%s9211_s30 + $0x11d0] sm:$0xf] }
 0x11f   : > { %4769 = vmatpush.bf16.msrb.mxu3 %v7597_v16  ;;  %v8762_v16 = vld [vmem:[%s9211_s30 + $0xfa4] sm:$0xf0]  ;;  %v7509_v35 = vor.u32 %v8746_v7, %v7508_v6  ;;  %v7740_v6 = vld [vmem:[%s9211_s30 + $0x10f0] sm:$0xf]  ;;  %v8804_v7 = vld [vmem:[%s9211_s30 + $0x10f4] sm:$0xf0] }
 0x120   : > { %4731 = vmatpush.bf16.msrb.mxu0 %v7397_v38  ;;  %v8712_v38 = vld [vmem:[%s9211_s30 + $0xe14] sm:$0xf0]  ;;  %v8758_v2 = vld [vmem:[%s9211_s30 + $0xf84] sm:$0xf0]  ;;  %v4505_v5 = vpop.f32.mrf.mxu2 }
 0x121   : > { %4744 = vmatpush.bf16.msrb.mxu1 %v7461_v40  ;;  %v7573_v40 = vor.u32 %v8762_v16, %v7572_v13  ;;  %v7373_v54 = vor.u32 %v8712_v38, %v7372_v36  ;;  %v4518_v8 = vpop.f32.mrf.mxu3  ;;  %v7365_v13 = vor.u32 %v8710_v57, %v7364_v48  ;;  %v7804_v16 = vld [vmem:[%s9211_s30 + $0x1170] sm:$0xf]  ;;  %v7557_v36 = vor.u32 %v8758_v2, %v7556_v29  ;;  %v9857_v48 = vld.sshfl [vmem:[#allocation1 + $0x30] sm:$0xff pattern:$0x73625140] }
 0x122   : > { %4757 = vmatpush.bf16.msrb.mxu2 %v7525_v41  ;;  %v8728_v41 = vld [vmem:[%s9211_s30 + $0xe94] sm:$0xf0]  ;;  %v7796_v57 = vld [vmem:[%s9211_s30 + $0x1160] sm:$0xf]  ;;  %v7660_v2 = vld [vmem:[%s9211_s30 + $0x1050] sm:$0xf] }
 0x123   : > { %4770 = vmatpush.bf16.msrb.mxu3 %v7589_v47  ;;  %v8760_v47 = vld [vmem:[%s9211_s30 + $0xf94] sm:$0xf0]  ;;  %v7437_v59 = vor.u32 %v8728_v41, %v7436_v39  ;;  %v7741_v39 = vor.u32 %v8804_v7, %v7740_v6  ;;  %v7788_v7 = vld [vmem:[%s9211_s30 + $0x1150] sm:$0xf] }
 0x124   : > { %4732 = vmatpush.bf16.msrb.mxu0 %v7389_v62  ;;  %v7501_v62 = vor.u32 %v8744_v45, %v7500_v43  ;;  %v7565_v1 = vor.u32 %v8760_v47, %v7564_v46  ;;  %v9852_v41 = vld.sshfl [vmem:[#allocation1 + $0x20] sm:$0xff pattern:$0x73625140]  ;;  %v7668_v43 = vld [vmem:[%s9211_s30 + $0x1060] sm:$0xf] }
 0x125   : > { %4745 = vmatpush.bf16.msrb.mxu1 %v7453_v63  ;;  %v7492_v63 = vld [vmem:[%s9211_s30 + $0xf00] sm:$0xf]  ;;  %v8786_v45 = vld [vmem:[%s9211_s30 + $0x1064] sm:$0xf0]  ;;  %v8800_v6 = vld [vmem:[%s9211_s30 + $0x10d4] sm:$0xf0] }
 0x126   : > { %4758 = vmatpush.bf16.msrb.mxu2 %v7517_v0  ;;  %v8742_v0 = vld [vmem:[%s9211_s30 + $0xf04] sm:$0xf0]  ;;  %v7732_v46 = vld [vmem:[%s9211_s30 + $0x10e0] sm:$0xf]  ;;  %v8816_v8 = vld [vmem:[%s9211_s30 + $0x1154] sm:$0xf0] }
 0x127   : > { %4771 = vmatpush.bf16.msrb.mxu3 %v7581_v3  ;;  %v7676_v3 = vld [vmem:[%s9211_s30 + $0x1070] sm:$0xf]  ;;  %v7493_v20 = vor.u32 %v8742_v0, %v7492_v63  ;;  %v7669_v0 = vor.u32 %v8786_v45, %v7668_v43  ;;  %v7844_v45 = vld [vmem:[%s9211_s30 + $0x11c0] sm:$0xf] }
 0x128   : > { %4733 = vmatpush.bf16.msrb.mxu0 %v7381_v18  ;;  %v7429_v18 = vor.u32 %v8726_v58, %v7428_v21  ;;  %v7677_v38 = vor.u32 %v8788_v4, %v7676_v3  ;;  %v8818_v21 = vld [vmem:[%s9211_s30 + $0x1164] sm:$0xf0]  ;;  %v7860_v58 = vld [vmem:[%s9211_s30 + $0x11e0] sm:$0xf]  ;;  %v8784_v3 = vld [vmem:[%s9211_s30 + $0x1054] sm:$0xf0] }
 0x129   : > { %4746 = vmatpush.bf16.msrb.mxu1 %v7445_v32  ;;  %v7868_v32 = vld [vmem:[%s9211_s30 + $0x11f0] sm:$0xf] }
 0x12a   : > { %4759 = vmatpush.bf16.msrb.mxu2 %v7509_v35  ;;  %v8836_v35 = vld [vmem:[%s9211_s30 + $0x11f4] sm:$0xf0]  ;;  %v9866_v63 = vld.sshfl [vmem:[#allocation1 + $0x38] sm:$0xff pattern:$0x73625140] }
 0x12b   : > { %4772 = vmatpush.bf16.msrb.mxu3 %v7573_v40  ;;  %v7805_v40 = vor.u32 %v8820_v17, %v7804_v16  ;;  %v7869_v47 = vor.u32 %v8836_v35, %v7868_v32  ;;  %v7724_v4 = vld [vmem:[%s9211_s30 + $0x10d0] sm:$0xf]  ;;  %v7661_v16 = vor.u32 %v8784_v3, %v7660_v2  ;;  %v8782_v32 = vld [vmem:[%s9211_s30 + $0x1044] sm:$0xf0]  ;;  %v7716_v35 = vld [vmem:[%s9211_s30 + $0x10c0] sm:$0xf] }
 0x12c   : > { %4734 = vmatpush.bf16.msrb.mxu0 %v7373_v54  ;;  %v8802_v54 = vld [vmem:[%s9211_s30 + $0x10e4] sm:$0xf0]  ;;  %v7725_v17 = vor.u32 %v8800_v6, %v7724_v4  ;;  %v8796_v3 = vld [vmem:[%s9211_s30 + $0x10b4] sm:$0xf0]  ;;  %v7772_v4 = vld [vmem:[%s9211_s30 + $0x1130] sm:$0xf] }
 0x12d   : > { %4747 = vmatpush.bf16.msrb.mxu1 %v7437_v59  ;;  %v8834_v59 = vld [vmem:[%s9211_s30 + $0x11e4] sm:$0xf0]  ;;  %v7733_v29 = vor.u32 %v8802_v54, %v7732_v46  ;;  %v8828_v6 = vld [vmem:[%s9211_s30 + $0x11b4] sm:$0xf0] }
 0x12e   : > { %4760 = vmatpush.bf16.msrb.mxu2 %v7501_v62  ;;  %v9864_v62 = vld.sshfl [vmem:[#allocation1 + $0x28] sm:$0xff pattern:$0x73625140]  ;;  %v7861_v5 = vor.u32 %v8834_v59, %v7860_v58  ;;  %v8830_v46 = vld [vmem:[%s9211_s30 + $0x11c4] sm:$0xf0] }
 0x12f   : > { %4773 = vmatpush.bf16.msrb.mxu3 %v7565_v1  ;;  %v7797_v1 = vor.u32 %v8818_v21, %v7796_v57  ;;  %v7644_v59 = vld [vmem:[%s9211_s30 + $0x1030] sm:$0xf] }
 0x130   : > { %4735 = vmatpush.bf16.msrb.mxu0 %v7365_v13  ;;  %v8832_v13 = vld [vmem:[%s9211_s30 + $0x11d4] sm:$0xf0]  ;;  %v4529_v43 = vpop.f32.mrf.mxu0 }
 0x131   : > { %4748 = vmatpush.bf16.msrb.mxu1 %v7429_v18  ;;  %v7789_v18 = vor.u32 %v8816_v8, %v7788_v7  ;;  %v4542_v57 = vpop.f32.mrf.mxu1 }
 0x132   : > { %4761 = vmatpush.bf16.msrb.mxu2 %v7493_v20  ;;  %v7652_v20 = vld [vmem:[%s9211_s30 + $0x1040] sm:$0xf] }
 0x133   : > { %4774 = vmatpush.bf16.msrb.mxu3 %v7557_v36  ;;  %4736 = vmatmul.bf16.vlgmr.msrb.gmra.mxu0 %v9852_v41  ;;  %v7853_v36 = vor.u32 %v8832_v13, %v7852_v9  ;;  %v7653_v54 = vor.u32 %v8782_v32, %v7652_v20  ;;  %v7636_v13 = vld [vmem:[%s9211_s30 + $0x1020] sm:$0xf]  ;;  %v8794_v32 = vld [vmem:[%s9211_s30 + $0x10a4] sm:$0xf0] }
 0x134   : > { %4780 = vmatpush.bf16.msra.mxu0 %v7677_v38  ;;  %4749 = vmatmul.bf16.vlgmr.msrb.gmra.mxu1 %v9864_v62  ;;  %v8798_v38 = vld [vmem:[%s9211_s30 + $0x10c4] sm:$0xf0] }
 0x135   : > { %4793 = vmatpush.bf16.msra.mxu1 %v7741_v39  ;;  %4762 = vmatmul.bf16.vlgmr.msrb.gmra.mxu2 %v9857_v48  ;;  %v7780_v39 = vld [vmem:[%s9211_s30 + $0x1140] sm:$0xf]  ;;  %v7717_v21 = vor.u32 %v8798_v38, %v7716_v35 }
 0x136   : > { %4806 = vmatpush.bf16.msra.mxu2 %v7805_v40  ;;  %4775 = vmatmul.bf16.vlgmr.msrb.gmra.mxu3 %v9866_v63  ;;  %v8814_v40 = vld [vmem:[%s9211_s30 + $0x1144] sm:$0xf0]  ;;  %v7764_v35 = vld [vmem:[%s9211_s30 + $0x1120] sm:$0xf] }
 0x137   : > { %4819 = vmatpush.bf16.msra.mxu3 %v7869_v47  ;;  %v4530_v47 = vadd.f32 %v4529_v43, %v9825_v26  ;;  %v7781_v58 = vor.u32 %v8814_v40, %v7780_v39  ;;  %v8812_v26 = vld [vmem:[%s9211_s30 + $0x1134] sm:$0xf0]  ;;  %v7828_v40 = vld [vmem:[%s9211_s30 + $0x11a0] sm:$0xf]  ;;  %v8826_v43 = vld [vmem:[%s9211_s30 + $0x11a4] sm:$0xf0] }
 0x138   : > { %4781 = vmatpush.bf16.msra.mxu0 %v7669_v0  ;;  %v8780_v0 = vld [vmem:[%s9211_s30 + $0x1034] sm:$0xf0]  ;;  %v7773_v9 = vor.u32 %v8812_v26, %v7772_v4  ;;  %v4555_v20 = vpop.f32.mrf.mxu2  ;;  %v7820_v4 = vld [vmem:[%s9211_s30 + $0x1190] sm:$0xf] }
 0x139   : > { %4794 = vmatpush.bf16.msra.mxu1 %v7733_v29  ;;  %v7708_v29 = vld [vmem:[%s9211_s30 + $0x10b0] sm:$0xf]  ;;  %v4543_v2 = vadd.f32 %v4542_v57, %v4530_v47  ;;  %v7645_v7 = vor.u32 %v8780_v0, %v7644_v59  ;;  %v4568_v39 = vpop.f32.mrf.mxu3  ;;  %v4544_v47 = vpop.f32.mrf.mxu1  ;;  %v8776_v59 = vld [vmem:[%s9211_s30 + $0x1014] sm:$0xf0] }
 0x13a   : > { %4807 = vmatpush.bf16.msra.mxu2 %v7797_v1  ;;  %v7845_v1 = vor.u32 %v8830_v46, %v7844_v45  ;;  %v7709_v8 = vor.u32 %v8796_v3, %v7708_v29  ;;  %v4531_v45 = vpop.f32.mrf.mxu0  ;;  %v7692_v0 = vld [vmem:[%s9211_s30 + $0x1090] sm:$0xf]  ;;  %v7829_v29 = vor.u32 %v8826_v43, %v7828_v40  ;;  %v8808_v3 = vld [vmem:[%s9211_s30 + $0x1114] sm:$0xf0] }
 0x13b   : > { %4820 = vmatpush.bf16.msra.mxu3 %v7861_v5  ;;  %v7836_v5 = vld [vmem:[%s9211_s30 + $0x11b0] sm:$0xf]  ;;  %v4556_v38 = vadd.f32 %v4555_v20, %v4543_v2  ;;  %v8824_v26 = vld [vmem:[%s9211_s30 + $0x1194] sm:$0xf0]  ;;  %v7812_v20 = vld [vmem:[%s9211_s30 + $0x1180] sm:$0xf] }
 0x13c   : > { %4782 = vmatpush.bf16.msra.mxu0 %v7661_v16  ;;  %v8778_v16 = vld [vmem:[%s9211_s30 + $0x1024] sm:$0xf0]  ;;  %v7756_v2 = vld [vmem:[%s9211_s30 + $0x1110] sm:$0xf]  ;;  %v8868_v43 = vld [vmem:[%s9211_s30 + $0x12f4] sm:$0xf0] }
 0x13d   : > { %4795 = vmatpush.bf16.msra.mxu1 %v7725_v17  ;;  %v7700_v17 = vld [vmem:[%s9211_s30 + $0x10a0] sm:$0xf]  ;;  %v7637_v46 = vor.u32 %v8778_v16, %v7636_v13  ;;  %v7757_v16 = vor.u32 %v8808_v3, %v7756_v2  ;;  %v7996_v40 = vld [vmem:[%s9211_s30 + $0x12f0] sm:$0xf] }
 0x13e   : > { %4808 = vmatpush.bf16.msra.mxu2 %v7789_v18  ;;  %v7837_v18 = vor.u32 %v8828_v6, %v7836_v5  ;;  %v7701_v57 = vor.u32 %v8794_v32, %v7700_v17  ;;  %v7620_v5 = vld [vmem:[%s9211_s30 + $0x1000] sm:$0xf]  ;;  %v7821_v32 = vor.u32 %v8824_v26, %v7820_v4  ;;  %v7997_v3 = vor.u32 %v8868_v43, %v7996_v40  ;;  %v9932_v26 = vld.sshfl [vmem:[#allocation1] sm:$0xff pattern:$0x73625140] }
 0x13f   : > { %4821 = vmatpush.bf16.msra.mxu3 %v7853_v36  ;;  %v8810_v36 = vld [vmem:[%s9211_s30 + $0x1124] sm:$0xf0]  ;;  %v7748_v17 = vld [vmem:[%s9211_s30 + $0x1100] sm:$0xf]  ;;  %v7916_v40 = vld [vmem:[%s9211_s30 + $0x1250] sm:$0xf] }
 0x140   : > { %4783 = vmatpush.bf16.msra.mxu0 %v7653_v54  ;;  %v9905_v54 = vadd.f32 %v4568_v39, %v4556_v38  ;;  %v8852_v38 = vld [vmem:[%s9211_s30 + $0x1274] sm:$0xf0]  ;;  %v4557_v39 = vpop.f32.mrf.mxu2 }
 0x141   : > { %4796 = vmatpush.bf16.msra.mxu1 %v7717_v21  ;;  %v7765_v21 = vor.u32 %v8810_v36, %v7764_v35  ;;  %v8822_v35 = vld [vmem:[%s9211_s30 + $0x1184] sm:$0xf0]  ;;  %v7932_v36 = vld [vmem:[%s9211_s30 + $0x1270] sm:$0xf]  ;;  %v4570_v45 = vpop.f32.mrf.mxu3  ;;  %v8848_v43 = vld [vmem:[%s9211_s30 + $0x1254] sm:$0xf0] }
 0x142   : > { %4809 = vmatpush.bf16.msra.mxu2 %v7781_v58  ;;  %v7628_v58 = vld [vmem:[%s9211_s30 + $0x1010] sm:$0xf]  ;;  %v7933_v2 = vor.u32 %v8852_v38, %v7932_v36 }
 0x143   : > { %4822 = vmatpush.bf16.msra.mxu3 %v7845_v1  ;;  %v8792_v1 = vld [vmem:[%s9211_s30 + $0x1094] sm:$0xf0]  ;;  %v7629_v6 = vor.u32 %v8776_v59, %v7628_v58  ;;  %v7980_v45 = vld [vmem:[%s9211_s30 + $0x12d0] sm:$0xf] }
 0x144   : > { %4784 = vmatpush.bf16.msra.mxu0 %v7645_v7  ;;  %v8774_v7 = vld [vmem:[%s9211_s30 + $0x1004] sm:$0xf0]  ;;  %v7693_v13 = vor.u32 %v8792_v1, %v7692_v0  ;;  %v8124_v0 = vld [vmem:[%s9211_s30 + $0x13f0] sm:$0xf]  ;;  %v7813_v1 = vor.u32 %v8822_v35, %v7812_v20 }
 0x145   : > { %4797 = vmatpush.bf16.msra.mxu1 %v7709_v8  ;;  %v7684_v8 = vld [vmem:[%s9211_s30 + $0x1080] sm:$0xf]  ;;  %v7621_v47 = vor.u32 %v8774_v7, %v7620_v5  ;;  %v8898_v20 = vld [vmem:[%s9211_s30 + $0x13e4] sm:$0xf0] }
 0x146   : > { %4810 = vmatpush.bf16.msra.mxu2 %v7773_v9  ;;  %v8790_v9 = vld [vmem:[%s9211_s30 + $0x1084] sm:$0xf0]  ;;  %v7924_v5 = vld [vmem:[%s9211_s30 + $0x1260] sm:$0xf] }
 0x147   : > { %4823 = vmatpush.bf16.msra.mxu3 %v7837_v18  ;;  %v8806_v18 = vld [vmem:[%s9211_s30 + $0x1104] sm:$0xf0]  ;;  %v7685_v58 = vor.u32 %v8790_v9, %v7684_v8  ;;  %v7988_v7 = vld [vmem:[%s9211_s30 + $0x12e0] sm:$0xf] }
 0x148   : > { %4785 = vmatpush.bf16.msra.mxu0 %v7637_v46  ;;  %v223_v46 = vld [vmem:[%s9227_s23 + $0x48] sm:$0xff]  ;;  %v7749_v59 = vor.u32 %v8806_v18, %v7748_v17  ;;  %v9937_v9 = vld.sshfl [vmem:[#allocation1 + $0x10] sm:$0xff pattern:$0x73625140] }
 0x149   : > { %4798 = vmatpush.bf16.msra.mxu1 %v7701_v57  ;;  %v8060_v57 = vld [vmem:[%s9211_s30 + $0x1370] sm:$0xf]  ;;  %949 = vst [vmem:[#allocation1 + $0x20] ss:$4 sm:$0xff] %v223_v46  ;;  %v8882_v17 = vld [vmem:[%s9211_s30 + $0x1364] sm:$0xf0] }
 0x14a   : > { %4811 = vmatpush.bf16.msra.mxu2 %v7765_v21  ;;  %v8884_v21 = vld [vmem:[%s9211_s30 + $0x1374] sm:$0xf0]  ;;  %v8116_v18 = vld [vmem:[%s9211_s30 + $0x13e0] sm:$0xf] }
 0x14b   : > { %4824 = vmatpush.bf16.msra.mxu3 %v7829_v29  ;;  %v8900_v29 = vld [vmem:[%s9211_s30 + $0x13f4] sm:$0xf0]  ;;  %v8061_v4 = vor.u32 %v8884_v21, %v8060_v57  ;;  %v9946_v35 = vld.sshfl [vmem:[#allocation1 + $0x18] sm:$0xff pattern:$0x73625140]  ;;  %v8117_v46 = vor.u32 %v8898_v20, %v8116_v18 }
 0x14c   : > { %4786 = vmatpush.bf16.msra.mxu0 %v7629_v6  ;;  %v8850_v6 = vld [vmem:[%s9211_s30 + $0x1264] sm:$0xf0]  ;;  %v8125_v8 = vor.u32 %v8900_v29, %v8124_v0  ;;  %10810 = vst [vmem:[#allocation5_spill] sm:$0xff] %v9946_v35  ;;  %v8044_v57 = vld [vmem:[%s9211_s30 + $0x1350] sm:$0xf]  ;;  %v7917_v0 = vor.u32 %v8848_v43, %v7916_v40 }
 0x14d   : > { %4799 = vmatpush.bf16.msra.mxu1 %v7693_v13  ;;  %v8866_v13 = vld [vmem:[%s9211_s30 + $0x12e4] sm:$0xf0]  ;;  %v7925_v36 = vor.u32 %v8850_v6, %v7924_v5  ;;  %v8880_v21 = vld [vmem:[%s9211_s30 + $0x1354] sm:$0xf0]  ;;  %v7900_v40 = vld [vmem:[%s9211_s30 + $0x1230] sm:$0xf] }
 0x14e   : > { %4812 = vmatpush.bf16.msra.mxu2 %v7757_v16  ;;  %v8052_v16 = vld [vmem:[%s9211_s30 + $0x1360] sm:$0xf]  ;;  %v7989_v38 = vor.u32 %v8866_v13, %v7988_v7  ;;  %v8862_v6 = vld [vmem:[%s9211_s30 + $0x12c4] sm:$0xf0]  ;;  %v8844_v43 = vld [vmem:[%s9211_s30 + $0x1234] sm:$0xf0] }
 0x14f   : > { %4825 = vmatpush.bf16.msra.mxu3 %v7821_v32  ;;  %v9944_v32 = vld.sshfl [vmem:[#allocation1 + $0x8] sm:$0xff pattern:$0x73625140]  ;;  %v8053_v39 = vor.u32 %v8882_v17, %v8052_v16  ;;  %v8894_v17 = vld [vmem:[%s9211_s30 + $0x13c4] sm:$0xf0] }
 0x150   : > { %4787 = vmatpush.bf16.msra.mxu0 %v7621_v47  ;;  %v8864_v47 = vld [vmem:[%s9211_s30 + $0x12d4] sm:$0xf0]  ;;  %v8036_v7 = vld [vmem:[%s9211_s30 + $0x1340] sm:$0xf]  ;;  %v4581_v13 = vpop.f32.mrf.mxu0 }
 0x151   : > { %4800 = vmatpush.bf16.msra.mxu1 %v7685_v58  ;;  %v8108_v58 = vld [vmem:[%s9211_s30 + $0x13d0] sm:$0xf]  ;;  %v7981_v29 = vor.u32 %v8864_v47, %v7980_v45  ;;  %v8100_v16 = vld [vmem:[%s9211_s30 + $0x13c0] sm:$0xf]  ;;  %v4582_v18 = vadd.f32 %v4581_v13, %v9905_v54  ;;  %v8876_v54 = vld [vmem:[%s9211_s30 + $0x1334] sm:$0xf0] }
 0x152   : > { %4813 = vmatpush.bf16.msra.mxu2 %v7749_v59  ;;  %v8896_v59 = vld [vmem:[%s9211_s30 + $0x13d4] sm:$0xf0]  ;;  %v7964_v45 = vld [vmem:[%s9211_s30 + $0x12b0] sm:$0xf]  ;;  %v8874_v13 = vld [vmem:[%s9211_s30 + $0x1324] sm:$0xf0] }
 0x153   : > { %4826 = vmatpush.bf16.msra.mxu3 %v7813_v1  ;;  %4788 = vmatmul.bf16.vlgmr.msra.gmra.mxu0 %v9932_v26  ;;  %v8045_v1 = vor.u32 %v8880_v21, %v8044_v57  ;;  %v8109_v5 = vor.u32 %v8896_v59, %v8108_v58  ;;  %v8860_v57 = vld [vmem:[%s9211_s30 + $0x12b4] sm:$0xf0]  ;;  %v8028_v21 = vld [vmem:[%s9211_s30 + $0x1330] sm:$0xf] }
 0x154   : > { %4832 = vmatpush.bf16.msrb.mxu0 %v7933_v2  ;;  %4801 = vmatmul.bf16.vlgmr.msra.gmra.mxu1 %v9944_v32  ;;  %v7908_v2 = vld [vmem:[%s9211_s30 + $0x1240] sm:$0xf]  ;;  %v8092_v58 = vld [vmem:[%s9211_s30 + $0x13b0] sm:$0xf]  ;;  %v8892_v59 = vld [vmem:[%s9211_s30 + $0x13b4] sm:$0xf0] }
 0x155   : > { %4845 = vmatpush.bf16.msrb.mxu1 %v7997_v3  ;;  %4814 = vmatmul.bf16.vlgmr.msra.gmra.mxu2 %v9937_v9  ;;  %v8846_v3 = vld [vmem:[%s9211_s30 + $0x1244] sm:$0xf0] }
 0x156   : > { %4858 = vmatpush.bf16.msrb.mxu2 %v8061_v4  ;;  %4827 = vmatmul.bf16.vlgmr.msra.gmra.mxu3 %v9946_v35  ;;  %v7972_v4 = vld [vmem:[%s9211_s30 + $0x12c0] sm:$0xf]  ;;  %v7909_v20 = vor.u32 %v8846_v3, %v7908_v2  ;;  %v8842_v3 = vld [vmem:[%s9211_s30 + $0x1224] sm:$0xf0] }
 0x157   : > { %4871 = vmatpush.bf16.msrb.mxu3 %v8125_v8  ;;  %v8878_v8 = vld [vmem:[%s9211_s30 + $0x1344] sm:$0xf0]  ;;  %v7892_v2 = vld [vmem:[%s9211_s30 + $0x1220] sm:$0xf] }
 0x158   : > { %4833 = vmatpush.bf16.msrb.mxu0 %v7925_v36  ;;  %v4594_v36 = vpop.f32.mrf.mxu1  ;;  %v8914_v35 = vld [vmem:[%s9211_s30 + $0x1464] sm:$0xf0] }
 0x159   : > { %4846 = vmatpush.bf16.msrb.mxu1 %v7989_v38  ;;  %v7973_v38 = vor.u32 %v8862_v6, %v7972_v4  ;;  %v4595_v47 = vadd.f32 %v4594_v36, %v4582_v18  ;;  %v7956_v4 = vld [vmem:[%s9211_s30 + $0x12a0] sm:$0xf]  ;;  %v4607_v6 = vpop.f32.mrf.mxu2  ;;  %v4583_v36 = vpop.f32.mrf.mxu0 }
 0x15a   : > { %4859 = vmatpush.bf16.msrb.mxu2 %v8053_v39  ;;  %v8037_v39 = vor.u32 %v8878_v8, %v8036_v7  ;;  %v8858_v7 = vld [vmem:[%s9211_s30 + $0x12a4] sm:$0xf0]  ;;  %v8020_v8 = vld [vmem:[%s9211_s30 + $0x1320] sm:$0xf]  ;;  %v8916_v36 = vld [vmem:[%s9211_s30 + $0x1474] sm:$0xf0] }
 0x15b   : > { %4872 = vmatpush.bf16.msrb.mxu3 %v8117_v46  ;;  %v8101_v46 = vor.u32 %v8894_v17, %v8100_v16  ;;  %v4608_v16 = vadd.f32 %v4607_v6, %v4595_v47  ;;  %v4620_v17 = vpop.f32.mrf.mxu3  ;;  %v8084_v18 = vld [vmem:[%s9211_s30 + $0x13a0] sm:$0xf]  ;;  %v8840_v47 = vld [vmem:[%s9211_s30 + $0x1214] sm:$0xf0] }
 0x15c   : > { %4834 = vmatpush.bf16.msrb.mxu0 %v7917_v0  ;;  %v7901_v0 = vor.u32 %v8844_v43, %v7900_v40  ;;  %v7957_v43 = vor.u32 %v8858_v7, %v7956_v4  ;;  %v7940_v4 = vld [vmem:[%s9211_s30 + $0x1280] sm:$0xf] }
 0x15d   : > { %4847 = vmatpush.bf16.msrb.mxu1 %v7981_v29  ;;  %v7965_v29 = vor.u32 %v8860_v57, %v7964_v45  ;;  %v9985_v40 = vadd.f32 %v4620_v17, %v4608_v16  ;;  %v8021_v45 = vor.u32 %v8874_v13, %v8020_v8  ;;  %v7948_v57 = vld [vmem:[%s9211_s30 + $0x1290] sm:$0xf]  ;;  %v8004_v8 = vld [vmem:[%s9211_s30 + $0x1300] sm:$0xf]  ;;  %v8870_v13 = vld [vmem:[%s9211_s30 + $0x1304] sm:$0xf0] }
 0x15e   : > { %4860 = vmatpush.bf16.msrb.mxu2 %v8045_v1  ;;  %v8029_v1 = vor.u32 %v8876_v54, %v8028_v21  ;;  %v8856_v54 = vld [vmem:[%s9211_s30 + $0x1294] sm:$0xf0]  ;;  %v8068_v16 = vld [vmem:[%s9211_s30 + $0x1380] sm:$0xf] }
 0x15f   : > { %4873 = vmatpush.bf16.msrb.mxu3 %v8109_v5  ;;  %v8093_v5 = vor.u32 %v8892_v59, %v8092_v58  ;;  %v8012_v58 = vld [vmem:[%s9211_s30 + $0x1310] sm:$0xf]  ;;  %v8872_v59 = vld [vmem:[%s9211_s30 + $0x1314] sm:$0xf0]  ;;  %v7949_v6 = vor.u32 %v8856_v54, %v7948_v57  ;;  %v8275_v57 = vld [vmem:[%s9211_s30 + $0x74] sm:$0xf] }
 0x160   : > { %4835 = vmatpush.bf16.msrb.mxu0 %v7909_v20  ;;  %v8890_v20 = vld [vmem:[%s9211_s30 + $0x13a4] sm:$0xf0]  ;;  %v8013_v7 = vor.u32 %v8872_v59, %v8012_v58  ;;  %v5630_v54 = vld [vmem:[%s9211_s30 + $0x78] sm:$0xf0]  ;;  %v8005_v58 = vor.u32 %v8870_v13, %v8004_v8  ;;  %v8291_v59 = vld [vmem:[%s9211_s30 + $0xf4] sm:$0xf] }
 0x161   : > { %4848 = vmatpush.bf16.msrb.mxu1 %v7973_v38  ;;  %v7893_v38 = vor.u32 %v8842_v3, %v7892_v2  ;;  %v8085_v21 = vor.u32 %v8890_v20, %v8084_v18  ;;  %v8838_v3 = vld [vmem:[%s9211_s30 + $0x1204] sm:$0xf0]  ;;  %v8188_v20 = vld [vmem:[%s9211_s30 + $0x1470] sm:$0xf]  ;;  %v5622_v8 = vld [vmem:[%s9211_s30 + $0x68] sm:$0xf0] }
 0x162   : > { %4861 = vmatpush.bf16.msrb.mxu2 %v8037_v39  ;;  %v4596_v39 = vpop.f32.mrf.mxu1  ;;  %v8886_v18 = vld [vmem:[%s9211_s30 + $0x1384] sm:$0xf0]  ;;  %v8289_v13 = vld [vmem:[%s9211_s30 + $0xe4] sm:$0xf] }
 0x163   : > { %4874 = vmatpush.bf16.msrb.mxu3 %v8101_v46  ;;  %v7884_v46 = vld [vmem:[%s9211_s30 + $0x1210] sm:$0xf] }
 0x164   : > { %4836 = vmatpush.bf16.msrb.mxu0 %v7901_v0  ;;  %v8076_v0 = vld [vmem:[%s9211_s30 + $0x1390] sm:$0xf]  ;;  %v7885_v2 = vor.u32 %v8840_v47, %v7884_v46  ;;  %v8932_v46 = vld [vmem:[%s9211_s30 + $0x14f4] sm:$0xf0]  ;;  %v224_v47 = vld [vmem:[%s9227_s23 + $0x50] sm:$0xf] }
 0x165   : > { %4849 = vmatpush.bf16.msrb.mxu1 %v7965_v29  ;;  %v8888_v29 = vld [vmem:[%s9211_s30 + $0x1394] sm:$0xf0]  ;;  %v8252_v39 = vld [vmem:[%s9211_s30 + $0x14f0] sm:$0xf]  ;;  %959 = vst [vmem:[#allocation1] ss:$4 sm:$0xff] %v224_v47 }
 0x166   : > { %4862 = vmatpush.bf16.msrb.mxu2 %v8029_v1  ;;  %v7876_v1 = vld [vmem:[%s9211_s30 + $0x1200] sm:$0xf]  ;;  %v8077_v17 = vor.u32 %v8888_v29, %v8076_v0  ;;  %v5694_v0 = vld [vmem:[%s9211_s30 + $0xf8] sm:$0xf0]  ;;  %v8069_v29 = vor.u32 %v8886_v18, %v8068_v16  ;;  %v5686_v16 = vld [vmem:[%s9211_s30 + $0xe8] sm:$0xf0] }
 0x167   : > { %4875 = vmatpush.bf16.msrb.mxu3 %v8093_v5  ;;  %v8854_v5 = vld [vmem:[%s9211_s30 + $0x1284] sm:$0xf0]  ;;  %v8244_v47 = vld [vmem:[%s9211_s30 + $0x14e0] sm:$0xf] }
 0x168   : > { %4837 = vmatpush.bf16.msrb.mxu0 %v7893_v38  ;;  %v4609_v38 = vpop.f32.mrf.mxu2  ;;  %v957_v18 = vld.sshfl [vmem:[#allocation1 + $0x38] sm:$0xff pattern:$0x73625140] }
 0x169   : > { %4850 = vmatpush.bf16.msrb.mxu1 %v7957_v43  ;;  %v4622_v43 = vpop.f32.mrf.mxu3  ;;  %v954_v38 = vld.sshfl [vmem:[#allocation1 + $0x20] sm:$0xff pattern:$0x73625140] }
 0x16a   : > { %4863 = vmatpush.bf16.msrb.mxu2 %v8021_v45  ;;  %v7877_v45 = vor.u32 %v8838_v3, %v7876_v1  ;;  %v8253_v1 = vor.u32 %v8932_v46, %v8252_v39  ;;  %v5633_v3 = vor.u32 %v8275_v57, %v5630_v54  ;;  %v8180_v43 = vld [vmem:[%s9211_s30 + $0x1460] sm:$0xf]  ;;  %v8172_v46 = vld [vmem:[%s9211_s30 + $0x1450] sm:$0xf]  ;;  %v5689_v54 = vor.u32 %v8289_v13, %v5686_v16  ;;  %v5670_v13 = vld [vmem:[%s9211_s30 + $0xc8] sm:$0xf0] }
 0x16b   : > { %4876 = vmatpush.bf16.msrb.mxu3 %v8085_v21  ;;  %v7941_v21 = vor.u32 %v8854_v5, %v7940_v4  ;;  %v956_v4 = vld.sshfl [vmem:[#allocation1 + $0x30] sm:$0xff pattern:$0x73625140]  ;;  %v8236_v57 = vld [vmem:[%s9211_s30 + $0x14d0] sm:$0xf] }
 0x16c   : > { %4838 = vmatpush.bf16.msrb.mxu0 %v7885_v2  ;;  %v8189_v2 = vor.u32 %v8916_v36, %v8188_v20  ;;  %v8930_v5 = vld [vmem:[%s9211_s30 + $0x14e4] sm:$0xf0]  ;;  %v8181_v20 = vor.u32 %v8914_v35, %v8180_v43  ;;  %v8287_v35 = vld [vmem:[%s9211_s30 + $0xd4] sm:$0xf]  ;;  %v8228_v43 = vld [vmem:[%s9211_s30 + $0x14c0] sm:$0xf] }
 0x16d   : > { %4851 = vmatpush.bf16.msrb.mxu1 %v7949_v6  ;;  %v5697_v6 = vor.u32 %v8291_v59, %v5694_v0  ;;  %v8245_v36 = vor.u32 %v8930_v5, %v8244_v47  ;;  %v5614_v59 = vld [vmem:[%s9211_s30 + $0x58] sm:$0xf0]  ;;  %v5606_v5 = vld [vmem:[%s9211_s30 + $0x48] sm:$0xf0] }
 0x16e   : > { %4864 = vmatpush.bf16.msrb.mxu2 %v8013_v7  ;;  %v8273_v7 = vld [vmem:[%s9211_s30 + $0x64] sm:$0xf]  ;;  %v5678_v0 = vld [vmem:[%s9211_s30 + $0xd8] sm:$0xf0] }
 0x16f   : > { %4877 = vmatpush.bf16.msrb.mxu3 %v8077_v17  ;;  %v955_v17 = vld.sshfl [vmem:[#allocation1 + $0x28] sm:$0xff pattern:$0x73625140]  ;;  %v5625_v39 = vor.u32 %v8273_v7, %v5622_v8  ;;  %v5681_v47 = vor.u32 %v8287_v35, %v5678_v0  ;;  %v5662_v35 = vld [vmem:[%s9211_s30 + $0xb8] sm:$0xf0] }
 0x170   : > { %4839 = vmatpush.bf16.msrb.mxu0 %v7877_v45  ;;  %v8912_v45 = vld [vmem:[%s9211_s30 + $0x1454] sm:$0xf0]  ;;  %v4633_v7 = vpop.f32.mrf.mxu0  ;;  %v8285_v8 = vld [vmem:[%s9211_s30 + $0xc4] sm:$0xf] }
 0x171   : > { %4852 = vmatpush.bf16.msrb.mxu1 %v7941_v21  ;;  %v8928_v21 = vld [vmem:[%s9211_s30 + $0x14d4] sm:$0xf0]  ;;  %v4634_v16 = vadd.f32 %v4633_v7, %v9985_v40  ;;  %v5598_v40 = vld [vmem:[%s9211_s30 + $0x38] sm:$0xf0] }
 0x172   : > { %4865 = vmatpush.bf16.msrb.mxu2 %v8005_v58  ;;  %v8271_v58 = vld [vmem:[%s9211_s30 + $0x54] sm:$0xf] }
 0x173   : > { %4878 = vmatpush.bf16.msrb.mxu3 %v8069_v29  ;;  %4840 = vmatmul.bf16.vlgmr.msrb.gmra.mxu0 %v954_v38  ;;  %v8173_v29 = vor.u32 %v8912_v45, %v8172_v46  ;;  %v8910_v38 = vld [vmem:[%s9211_s30 + $0x1444] sm:$0xf0]  ;;  %v8908_v46 = vld [vmem:[%s9211_s30 + $0x1434] sm:$0xf0]  ;;  %v8220_v45 = vld [vmem:[%s9211_s30 + $0x14b0] sm:$0xf] }
 0x174   : > { %4884 = vmatpush.bf16.msra.mxu0 %v8189_v2  ;;  %4853 = vmatmul.bf16.vlgmr.msrb.gmra.mxu1 %v955_v17  ;;  %v8237_v2 = vor.u32 %v8928_v21, %v8236_v57  ;;  %v5673_v57 = vor.u32 %v8285_v8, %v5670_v13  ;;  %v8924_v21 = vld [vmem:[%s9211_s30 + $0x14b4] sm:$0xf0]  ;;  %v8281_v13 = vld [vmem:[%s9211_s30 + $0xa4] sm:$0xf] }
 0x175   : > { %4897 = vmatpush.bf16.msra.mxu1 %v8253_v1  ;;  %4866 = vmatmul.bf16.vlgmr.msrb.gmra.mxu2 %v956_v4  ;;  %v5617_v1 = vor.u32 %v8271_v58, %v5614_v59  ;;  %v8269_v4 = vld [vmem:[%s9211_s30 + $0x44] sm:$0xf]  ;;  %v8267_v58 = vld [vmem:[%s9211_s30 + $0x34] sm:$0xf] }
 0x176   : > { %4910 = vmatpush.bf16.msra.mxu2 %v5633_v3  ;;  %4879 = vmatmul.bf16.vlgmr.msrb.gmra.mxu3 %v957_v18  ;;  %v8164_v3 = vld [vmem:[%s9211_s30 + $0x1440] sm:$0xf]  ;;  %v4646_v18 = vpop.f32.mrf.mxu1  ;;  %v8283_v59 = vld [vmem:[%s9211_s30 + $0xb4] sm:$0xf] }
 0x177   : > { %4923 = vmatpush.bf16.msra.mxu3 %v5697_v6  ;;  %v8926_v6 = vld [vmem:[%s9211_s30 + $0x14c4] sm:$0xf0]  ;;  %v8165_v17 = vor.u32 %v8910_v38, %v8164_v3  ;;  %v8212_v38 = vld [vmem:[%s9211_s30 + $0x14a0] sm:$0xf] }
 0x178   : > { %4885 = vmatpush.bf16.msra.mxu0 %v8181_v20  ;;  %v8229_v20 = vor.u32 %v8926_v6, %v8228_v43  ;;  %v8906_v3 = vld [vmem:[%s9211_s30 + $0x1424] sm:$0xf0]  ;;  %v5665_v43 = vor.u32 %v8283_v59, %v5662_v35  ;;  %v5582_v59 = vld [vmem:[%s9211_s30 + $0x18] sm:$0xf0]  ;;  %v8279_v35 = vld [vmem:[%s9211_s30 + $0x94] sm:$0xf] }
 0x179   : > { %4898 = vmatpush.bf16.msra.mxu1 %v8245_v36  ;;  %v5609_v36 = vor.u32 %v8269_v4, %v5606_v5  ;;  %v8922_v6 = vld [vmem:[%s9211_s30 + $0x14a4] sm:$0xf0]  ;;  %v8265_v4 = vld [vmem:[%s9211_s30 + $0x24] sm:$0xf]  ;;  %v5590_v5 = vld [vmem:[%s9211_s30 + $0x28] sm:$0xf0]  ;;  %v4672_v8 = vpop.f32.mrf.mxu3 }
 0x17a   : > { %4911 = vmatpush.bf16.msra.mxu2 %v5625_v39  ;;  %v8156_v39 = vld [vmem:[%s9211_s30 + $0x1430] sm:$0xf] }
 0x17b   : > { %4924 = vmatpush.bf16.msra.mxu3 %v5689_v54  ;;  %v4647_v54 = vadd.f32 %v4646_v18, %v4634_v16  ;;  %v8157_v0 = vor.u32 %v8908_v46, %v8156_v39  ;;  %v5654_v16 = vld [vmem:[%s9211_s30 + $0xa8] sm:$0xf0]  ;;  %v8213_v39 = vor.u32 %v8922_v6, %v8212_v38  ;;  %v5593_v46 = vor.u32 %v8265_v4, %v5590_v5  ;;  %v8261_v6 = vld [vmem:[%s9211_s30 + $0x4] sm:$0xf] }
 0x17c   : > { %4886 = vmatpush.bf16.msra.mxu0 %v8173_v29  ;;  %v8221_v29 = vor.u32 %v8924_v21, %v8220_v45  ;;  %v8140_v45 = vld [vmem:[%s9211_s30 + $0x1410] sm:$0xf]  ;;  %v5657_v21 = vor.u32 %v8281_v13, %v5654_v16  ;;  %v5574_v5 = vld [vmem:[%s9211_s30 + $0x8] sm:$0xf0]  ;;  %v8307_v16 = vld [vmem:[%s9211_s30 + $0x174] sm:$0xf] }
 0x17d   : > { %4899 = vmatpush.bf16.msra.mxu1 %v8237_v2  ;;  %v5601_v2 = vor.u32 %v8267_v58, %v5598_v40  ;;  %v8920_v58 = vld [vmem:[%s9211_s30 + $0x1494] sm:$0xf0]  ;;  %v8263_v40 = vld [vmem:[%s9211_s30 + $0x14] sm:$0xf] }
 0x17e   : > { %4912 = vmatpush.bf16.msra.mxu2 %v5617_v1  ;;  %v8148_v1 = vld [vmem:[%s9211_s30 + $0x1420] sm:$0xf]  ;;  %v5585_v38 = vor.u32 %v8263_v40, %v5582_v59  ;;  %v5950_v40 = vld [vmem:[%s9211_s30 + $0x2f8] sm:$0xf0] }
 0x17f   : > { %4925 = vmatpush.bf16.msra.mxu3 %v5681_v47  ;;  %v4659_v47 = vpop.f32.mrf.mxu2  ;;  %v8149_v18 = vor.u32 %v8906_v3, %v8148_v1  ;;  %v8902_v1 = vld [vmem:[%s9211_s30 + $0x1404] sm:$0xf0] }
 0x180   : > { %4887 = vmatpush.bf16.msra.mxu0 %v8165_v17  ;;  %v4660_v7 = vadd.f32 %v4659_v47, %v4647_v54  ;;  %v4635_v17 = vpop.f32.mrf.mxu0  ;;  %v8204_v54 = vld [vmem:[%s9211_s30 + $0x1490] sm:$0xf]  ;;  %v8918_v47 = vld [vmem:[%s9211_s30 + $0x1484] sm:$0xf0] }
 0x181   : > { %4900 = vmatpush.bf16.msra.mxu1 %v8229_v20  ;;  %v4648_v20 = vpop.f32.mrf.mxu1  ;;  %v8205_v3 = vor.u32 %v8920_v58, %v8204_v54  ;;  %v5758_v17 = vld [vmem:[%s9211_s30 + $0x178] sm:$0xf0]  ;;  %v8355_v58 = vld [vmem:[%s9211_s30 + $0x2f4] sm:$0xf] }
 0x182   : > { %4913 = vmatpush.bf16.msra.mxu2 %v5609_v36  ;;  %v10053_v36 = vadd.f32 %v4672_v8, %v4660_v7  ;;  %v8277_v7 = vld [vmem:[%s9211_s30 + $0x84] sm:$0xf]  ;;  %v5638_v8 = vld [vmem:[%s9211_s30 + $0x88] sm:$0xf0]  ;;  %v4674_v20 = vpop.f32.mrf.mxu3 }
 0x183   : > { %4926 = vmatpush.bf16.msra.mxu3 %v5673_v57  ;;  %v8904_v57 = vld [vmem:[%s9211_s30 + $0x1414] sm:$0xf0]  ;;  %v5641_v59 = vor.u32 %v8277_v7, %v5638_v8  ;;  %v8321_v20 = vld [vmem:[%s9211_s30 + $0x1e4] sm:$0xf] }
 0x184   : > { %4888 = vmatpush.bf16.msra.mxu0 %v8157_v0  ;;  %v5646_v0 = vld [vmem:[%s9211_s30 + $0x98] sm:$0xf0] }
 0x185   : > { %4901 = vmatpush.bf16.msra.mxu1 %v8221_v29  ;;  %v8141_v29 = vor.u32 %v8904_v57, %v8140_v45  ;;  %v5649_v4 = vor.u32 %v8279_v35, %v5646_v0  ;;  %v8339_v45 = vld [vmem:[%s9211_s30 + $0x274] sm:$0xf]  ;;  %v5886_v57 = vld [vmem:[%s9211_s30 + $0x278] sm:$0xf0]  ;;  %v5761_v35 = vor.u32 %v8307_v16, %v5758_v17 }
 0x186   : > { %4914 = vmatpush.bf16.msra.mxu2 %v5601_v2  ;;  %v8132_v2 = vld [vmem:[%s9211_s30 + $0x1400] sm:$0xf]  ;;  %v8303_v17 = vld [vmem:[%s9211_s30 + $0x154] sm:$0xf] }
 0x187   : > { %4927 = vmatpush.bf16.msra.mxu3 %v5665_v43  ;;  %v8196_v43 = vld [vmem:[%s9211_s30 + $0x1480] sm:$0xf]  ;;  %v4661_v13 = vpop.f32.mrf.mxu2 }
 0x188   : > { %4889 = vmatpush.bf16.msra.mxu0 %v8149_v18  ;;  %v8323_v18 = vld [vmem:[%s9211_s30 + $0x1f4] sm:$0xf]  ;;  %v8197_v54 = vor.u32 %v8918_v47, %v8196_v43  ;;  %v5750_v13 = vld [vmem:[%s9211_s30 + $0x168] sm:$0xf0]  ;;  %v8337_v43 = vld [vmem:[%s9211_s30 + $0x264] sm:$0xf] }
 0x189   : > { %4902 = vmatpush.bf16.msra.mxu1 %v8213_v39  ;;  %v8133_v39 = vor.u32 %v8902_v1, %v8132_v2  ;;  %v960_v2 = vld.sshfl [vmem:[#allocation1] sm:$0xff pattern:$0x73625140]  ;;  %v8305_v1 = vld [vmem:[%s9211_s30 + $0x164] sm:$0xf] }
 0x18a   : > { %4915 = vmatpush.bf16.msra.mxu2 %v5593_v46  ;;  %v5822_v46 = vld [vmem:[%s9211_s30 + $0x1f8] sm:$0xf0]  ;;  %v5878_v47 = vld [vmem:[%s9211_s30 + $0x268] sm:$0xf0]  ;;  %v5753_v7 = vor.u32 %v8305_v1, %v5750_v13 }
 0x18b   : > { %4928 = vmatpush.bf16.msra.mxu3 %v5657_v21  ;;  %v5577_v21 = vor.u32 %v8261_v6, %v5574_v5  ;;  %v5825_v0 = vor.u32 %v8323_v18, %v5822_v46  ;;  %v8353_v6 = vld [vmem:[%s9211_s30 + $0x2e4] sm:$0xf]  ;;  %v5881_v16 = vor.u32 %v8337_v43, %v5878_v47  ;;  %v5742_v18 = vld [vmem:[%s9211_s30 + $0x158] sm:$0xf0]  ;;  %v5798_v13 = vld [vmem:[%s9211_s30 + $0x1c8] sm:$0xf0] }
 0x18c   : > { %4890 = vmatpush.bf16.msra.mxu0 %v8141_v29  ;;  %v5889_v29 = vor.u32 %v8339_v45, %v5886_v57  ;;  %v961_v5 = vld.sshfl [vmem:[#allocation1 + $0x8] sm:$0xff pattern:$0x73625140]  ;;  %v5806_v45 = vld [vmem:[%s9211_s30 + $0x1d8] sm:$0xf0] }
 0x18d   : > { %4903 = vmatpush.bf16.msra.mxu1 %v8205_v3  ;;  %v5953_v3 = vor.u32 %v8355_v58, %v5950_v40  ;;  %v8335_v57 = vld [vmem:[%s9211_s30 + $0x254] sm:$0xf]  ;;  %v5934_v58 = vld [vmem:[%s9211_s30 + $0x2d8] sm:$0xf0]  ;;  %v5745_v40 = vor.u32 %v8303_v17, %v5742_v18  ;;  %v5926_v43 = vld [vmem:[%s9211_s30 + $0x2c8] sm:$0xf0] }
 0x18e   : > { %4916 = vmatpush.bf16.msra.mxu2 %v5585_v38  ;;  %v5814_v38 = vld [vmem:[%s9211_s30 + $0x1e8] sm:$0xf0] }
 0x18f   : > { %4929 = vmatpush.bf16.msra.mxu3 %v5649_v4  ;;  %v5942_v4 = vld [vmem:[%s9211_s30 + $0x2e8] sm:$0xf0]  ;;  %v5817_v8 = vor.u32 %v8321_v20, %v5814_v38  ;;  %v8349_v38 = vld [vmem:[%s9211_s30 + $0x2c4] sm:$0xf] }
 0x190   : > { %4891 = vmatpush.bf16.msra.mxu0 %v8133_v39  ;;  %v8319_v39 = vld [vmem:[%s9211_s30 + $0x1d4] sm:$0xf]  ;;  %v5945_v46 = vor.u32 %v8353_v6, %v5942_v4  ;;  %v5862_v20 = vld [vmem:[%s9211_s30 + $0x248] sm:$0xf0]  ;;  %v5929_v17 = vor.u32 %v8349_v38, %v5926_v43 }
 0x191   : > { %4904 = vmatpush.bf16.msra.mxu1 %v8197_v54  ;;  %v5870_v54 = vld [vmem:[%s9211_s30 + $0x258] sm:$0xf0]  ;;  %v4698_v6 = vpop.f32.mrf.mxu1  ;;  %v5910_v38 = vld [vmem:[%s9211_s30 + $0x2a8] sm:$0xf0] }
 0x192   : > { %4917 = vmatpush.bf16.msra.mxu2 %v5577_v21  ;;  %v8351_v21 = vld [vmem:[%s9211_s30 + $0x2d4] sm:$0xf] }
 0x193   : > { %4930 = vmatpush.bf16.msra.mxu3 %v5641_v59  ;;  %4892 = vmatmul.bf16.vlgmr.msra.gmra.mxu0 %v960_v2  ;;  %v5809_v59 = vor.u32 %v8319_v39, %v5806_v45  ;;  %v8317_v2 = vld [vmem:[%s9211_s30 + $0x1c4] sm:$0xf]  ;;  %v5937_v1 = vor.u32 %v8351_v21, %v5934_v58  ;;  %v5790_v39 = vld [vmem:[%s9211_s30 + $0x1b8] sm:$0xf0]  ;;  %v8347_v45 = vld [vmem:[%s9211_s30 + $0x2b4] sm:$0xf] }
 0x194   : > { %4936 = vmatpush.bf16.msrb.mxu0 %v5761_v35  ;;  %4905 = vmatmul.bf16.vlgmr.msra.gmra.mxu1 %v961_v5  ;;  %v5873_v35 = vor.u32 %v8335_v57, %v5870_v54  ;;  %v5801_v4 = vor.u32 %v8317_v2, %v5798_v13  ;;  %v5918_v57 = vld [vmem:[%s9211_s30 + $0x2b8] sm:$0xf0]  ;;  %v5782_v2 = vld [vmem:[%s9211_s30 + $0x1a8] sm:$0xf0] }
 0x195   : > { %4949 = vmatpush.bf16.msrb.mxu1 %v5825_v0  ;;  %4918 = vmatmul.bf16.vlgmr.msra.gmra.mxu2 %v9337_v25  ;;  %v8301_v0 = vld [vmem:[%s9211_s30 + $0x144] sm:$0xf]  ;;  %v5846_v13 = vld [vmem:[%s9211_s30 + $0x228] sm:$0xf0] }
 0x196   : > { %4962 = vmatpush.bf16.msrb.mxu2 %v5889_v29  ;;  %4931 = vmatmul.bf16.vlgmr.msra.gmra.mxu3 %v9342_v28  ;;  %v5734_v29 = vld [vmem:[%s9211_s30 + $0x148] sm:$0xf0]  ;;  %v8333_v25 = vld [vmem:[%s9211_s30 + $0x244] sm:$0xf] }
 0x197   : > { %4975 = vmatpush.bf16.msrb.mxu3 %v5953_v3  ;;  %v4685_v3 = vpop.f32.mrf.mxu0  ;;  %v5737_v47 = vor.u32 %v8301_v0, %v5734_v29  ;;  %v5865_v5 = vor.u32 %v8333_v25, %v5862_v20  ;;  %v5921_v0 = vor.u32 %v8347_v45, %v5918_v57  ;;  %v5902_v45 = vld [vmem:[%s9211_s30 + $0x298] sm:$0xf0] }
 0x198   : > { %4937 = vmatpush.bf16.msrb.mxu0 %v5753_v7  ;;  %v4686_v28 = vadd.f32 %v4685_v3, %v10053_v36  ;;  %v8299_v7 = vld [vmem:[%s9211_s30 + $0x134] sm:$0xf]  ;;  %v5854_v36 = vld [vmem:[%s9211_s30 + $0x238] sm:$0xf0]  ;;  %v4711_v29 = vpop.f32.mrf.mxu2  ;;  %v8345_v3 = vld [vmem:[%s9211_s30 + $0x2a4] sm:$0xf] }
 0x199   : > { %4950 = vmatpush.bf16.msrb.mxu1 %v5817_v8  ;;  %v5726_v8 = vld [vmem:[%s9211_s30 + $0x138] sm:$0xf0]  ;;  %v4724_v20 = vpop.f32.mrf.mxu3 }
 0x19a   : > { %4963 = vmatpush.bf16.msrb.mxu2 %v5881_v16  ;;  %v8315_v16 = vld [vmem:[%s9211_s30 + $0x1b4] sm:$0xf]  ;;  %v4699_v18 = vadd.f32 %v4698_v6, %v4686_v28  ;;  %v5729_v54 = vor.u32 %v8299_v7, %v5726_v8  ;;  %v5710_v8 = vld [vmem:[%s9211_s30 + $0x118] sm:$0xf0] }
 0x19b   : > { %4976 = vmatpush.bf16.msrb.mxu3 %v5945_v46  ;;  %v8331_v46 = vld [vmem:[%s9211_s30 + $0x234] sm:$0xf]  ;;  %v5793_v21 = vor.u32 %v8315_v16, %v5790_v39 }
 0x19c   : > { %4938 = vmatpush.bf16.msrb.mxu0 %v5745_v40  ;;  %v5857_v58 = vor.u32 %v8331_v46, %v5854_v36  ;;  %v8297_v40 = vld [vmem:[%s9211_s30 + $0x124] sm:$0xf]  ;;  %v4712_v25 = vadd.f32 %v4711_v29, %v4699_v18  ;;  %v8295_v7 = vld [vmem:[%s9211_s30 + $0x114] sm:$0xf]  ;;  %v5774_v18 = vld [vmem:[%s9211_s30 + $0x198] sm:$0xf0] }
 0x19d   : > { %4951 = vmatpush.bf16.msrb.mxu1 %v5809_v59  ;;  %v5718_v59 = vld [vmem:[%s9211_s30 + $0x128] sm:$0xf0]  ;;  %v8311_v16 = vld [vmem:[%s9211_s30 + $0x194] sm:$0xf]  ;;  %v5838_v46 = vld [vmem:[%s9211_s30 + $0x218] sm:$0xf0]  ;;  %v5713_v57 = vor.u32 %v8295_v7, %v5710_v8 }
 0x19e   : > { %4964 = vmatpush.bf16.msrb.mxu2 %v5873_v35  ;;  %v8313_v35 = vld [vmem:[%s9211_s30 + $0x1a4] sm:$0xf]  ;;  %v5721_v28 = vor.u32 %v8297_v40, %v5718_v59  ;;  %v10122_v6 = vadd.f32 %v4724_v20, %v4712_v25  ;;  %v8327_v39 = vld [vmem:[%s9211_s30 + $0x214] sm:$0xf] }
 0x19f   : > { %4977 = vmatpush.bf16.msrb.mxu3 %v5937_v1  ;;  %v8329_v1 = vld [vmem:[%s9211_s30 + $0x224] sm:$0xf]  ;;  %v4687_v43 = vpop.f32.mrf.mxu0  ;;  %v8343_v36 = vld [vmem:[%s9211_s30 + $0x294] sm:$0xf]  ;;  %v5841_v40 = vor.u32 %v8327_v39, %v5838_v46 }
 0x1a0   : > { %4939 = vmatpush.bf16.msrb.mxu0 %v5737_v47  ;;  %v4700_v47 = vpop.f32.mrf.mxu1  ;;  %v8309_v59 = vld [vmem:[%s9211_s30 + $0x184] sm:$0xf]  ;;  %v5905_v29 = vor.u32 %v8343_v36, %v5902_v45  ;;  %v4713_v25 = vpop.f32.mrf.mxu2  ;;  %v8371_v20 = vld [vmem:[%s9211_s30 + $0x374] sm:$0xf] }
 0x1a1   : > { %4952 = vmatpush.bf16.msrb.mxu1 %v5801_v4  ;;  %v5785_v4 = vor.u32 %v8313_v35, %v5782_v2  ;;  %v5766_v35 = vld [vmem:[%s9211_s30 + $0x188] sm:$0xf0]  ;;  %v4726_v43 = vpop.f32.mrf.mxu3  ;;  %v6078_v47 = vld [vmem:[%s9211_s30 + $0x3f8] sm:$0xf0]  ;;  %v8369_v45 = vld [vmem:[%s9211_s30 + $0x364] sm:$0xf] }
 0x1a2   : > { %4965 = vmatpush.bf16.msrb.mxu2 %v5865_v5  ;;  %v5849_v5 = vor.u32 %v8329_v1, %v5846_v13  ;;  %v5830_v2 = vld [vmem:[%s9211_s30 + $0x208] sm:$0xf0]  ;;  %v8341_v1 = vld [vmem:[%s9211_s30 + $0x284] sm:$0xf]  ;;  %v5769_v7 = vor.u32 %v8309_v59, %v5766_v35  ;;  %v5998_v25 = vld [vmem:[%s9211_s30 + $0x358] sm:$0xf0] }
 0x1a3   : > { %4978 = vmatpush.bf16.msrb.mxu3 %v5929_v17  ;;  %v5913_v17 = vor.u32 %v8345_v3, %v5910_v38  ;;  %v5894_v13 = vld [vmem:[%s9211_s30 + $0x288] sm:$0xf0]  ;;  %v6014_v3 = vld [vmem:[%s9211_s30 + $0x378] sm:$0xf0]  ;;  %v8387_v38 = vld [vmem:[%s9211_s30 + $0x3f4] sm:$0xf] }
 0x1a4   : > { %4940 = vmatpush.bf16.msrb.mxu0 %v5729_v54  ;;  %v8293_v54 = vld [vmem:[%s9211_s30 + $0x104] sm:$0xf]  ;;  %v6017_v39 = vor.u32 %v8371_v20, %v6014_v3  ;;  %v6081_v46 = vor.u32 %v8387_v38, %v6078_v47  ;;  %v6134_v59 = vld [vmem:[%s9211_s30 + $0x468] sm:$0xf0]  ;;  %v8383_v20 = vld [vmem:[%s9211_s30 + $0x3d4] sm:$0xf] }
 0x1a5   : > { %4953 = vmatpush.bf16.msrb.mxu1 %v5793_v21  ;;  %v5702_v21 = vld [vmem:[%s9211_s30 + $0x108] sm:$0xf0]  ;;  %v8417_v35 = vld [vmem:[%s9211_s30 + $0x4e4] sm:$0xf]  ;;  %v6062_v38 = vld [vmem:[%s9211_s30 + $0x3d8] sm:$0xf0] }
 0x1a6   : > { %4966 = vmatpush.bf16.msrb.mxu2 %v5857_v58  ;;  %v5777_v58 = vor.u32 %v8311_v16, %v5774_v18  ;;  %v8419_v16 = vld [vmem:[%s9211_s30 + $0x4f4] sm:$0xf]  ;;  %v5897_v18 = vor.u32 %v8341_v1, %v5894_v13 }
 0x1a7   : > { %4979 = vmatpush.bf16.msrb.mxu3 %v5921_v0  ;;  %v8325_v0 = vld [vmem:[%s9211_s30 + $0x204] sm:$0xf]  ;;  %v8367_v13 = vld [vmem:[%s9211_s30 + $0x354] sm:$0xf] }
 0x1a8   : > { %4941 = vmatpush.bf16.msrb.mxu0 %v5721_v28  ;;  %v5705_v28 = vor.u32 %v8293_v54, %v5702_v21  ;;  %v5833_v8 = vor.u32 %v8325_v0, %v5830_v2  ;;  %v8385_v54 = vld [vmem:[%s9211_s30 + $0x3e4] sm:$0xf]  ;;  %v6198_v0 = vld [vmem:[%s9211_s30 + $0x4e8] sm:$0xf0]  ;;  %v8399_v43 = vld [vmem:[%s9211_s30 + $0x454] sm:$0xf] }
 0x1a9   : > { %4954 = vmatpush.bf16.msrb.mxu1 %v5785_v4  ;;  %v8403_v4 = vld [vmem:[%s9211_s30 + $0x474] sm:$0xf]  ;;  %v6201_v3 = vor.u32 %v8417_v35, %v6198_v0 }
 0x1aa   : > { %4967 = vmatpush.bf16.msrb.mxu2 %v5849_v5  ;;  %v6142_v5 = vld [vmem:[%s9211_s30 + $0x478] sm:$0xf0]  ;;  %v8415_v47 = vld [vmem:[%s9211_s30 + $0x4d4] sm:$0xf] }
 0x1ab   : > { %4980 = vmatpush.bf16.msrb.mxu3 %v5913_v17  ;;  %v6206_v17 = vld [vmem:[%s9211_s30 + $0x4f8] sm:$0xf0]  ;;  %v6145_v36 = vor.u32 %v8403_v4, %v6142_v5  ;;  %v6001_v5 = vor.u32 %v8367_v13, %v5998_v25  ;;  %v8379_v35 = vld [vmem:[%s9211_s30 + $0x3b4] sm:$0xf] }
 0x1ac   : > { %4942 = vmatpush.bf16.msrb.mxu0 %v5713_v57  ;;  %v6006_v57 = vld [vmem:[%s9211_s30 + $0x368] sm:$0xf0]  ;;  %v6209_v21 = vor.u32 %v8419_v16, %v6206_v17  ;;  %v6190_v4 = vld [vmem:[%s9211_s30 + $0x4d8] sm:$0xf0]  ;;  %v8411_v13 = vld [vmem:[%s9211_s30 + $0x4b4] sm:$0xf] }
 0x1ad   : > { %4955 = vmatpush.bf16.msrb.mxu1 %v5777_v58  ;;  %v6070_v58 = vld [vmem:[%s9211_s30 + $0x3e8] sm:$0xf0]  ;;  %v6174_v25 = vld [vmem:[%s9211_s30 + $0x4b8] sm:$0xf0] }
 0x1ae   : > { %4968 = vmatpush.bf16.msrb.mxu2 %v5841_v40  ;;  %v8401_v40 = vld [vmem:[%s9211_s30 + $0x464] sm:$0xf]  ;;  %v6073_v2 = vor.u32 %v8385_v54, %v6070_v58  ;;  %v5990_v16 = vld [vmem:[%s9211_s30 + $0x348] sm:$0xf0] }
 0x1af   : > { %4981 = vmatpush.bf16.msrb.mxu3 %v5905_v29  ;;  %v6009_v29 = vor.u32 %v8369_v45, %v6006_v57  ;;  %v6137_v1 = vor.u32 %v8401_v40, %v6134_v59  ;;  %v6054_v17 = vld [vmem:[%s9211_s30 + $0x3c8] sm:$0xf0]  ;;  %v8363_v40 = vld [vmem:[%s9211_s30 + $0x334] sm:$0xf]  ;;  %v5982_v59 = vld [vmem:[%s9211_s30 + $0x338] sm:$0xf0] }
 0x1b0   : > { %4943 = vmatpush.bf16.msrb.mxu0 %v5705_v28  ;;  %v6126_v28 = vld [vmem:[%s9211_s30 + $0x458] sm:$0xf0]  ;;  %v6182_v45 = vld [vmem:[%s9211_s30 + $0x4c8] sm:$0xf0] }
 0x1b1   : > { %4956 = vmatpush.bf16.msrb.mxu1 %v5769_v7  ;;  %v6129_v7 = vor.u32 %v8399_v43, %v6126_v28  ;;  %v4750_v54 = vpop.f32.mrf.mxu1  ;;  %v8361_v43 = vld [vmem:[%s9211_s30 + $0x324] sm:$0xf]  ;;  %v5974_v28 = vld [vmem:[%s9211_s30 + $0x328] sm:$0xf0] }
 0x1b2   : > { %4969 = vmatpush.bf16.msrb.mxu2 %v5833_v8  ;;  %v8365_v8 = vld [vmem:[%s9211_s30 + $0x344] sm:$0xf] }
 0x1b3   : > { %4982 = vmatpush.bf16.msrb.mxu3 %v5897_v18  ;;  %4944 = vmatmul.bf16.vlgmr.msrb.gmra.mxu0 %v9335_v24  ;;  %v8381_v24 = vld [vmem:[%s9211_s30 + $0x3c4] sm:$0xf]  ;;  %v5993_v57 = vor.u32 %v8365_v8, %v5990_v16  ;;  %v6102_v8 = vld [vmem:[%s9211_s30 + $0x428] sm:$0xf0] }
 0x1b4   : > { %4988 = vmatpush.bf16.msra.mxu0 %v6017_v39  ;;  %4957 = vmatmul.bf16.vlgmr.msrb.gmra.mxu1 %v9340_v27  ;;  %v8397_v18 = vld [vmem:[%s9211_s30 + $0x444] sm:$0xf]  ;;  %v6118_v39 = vld [vmem:[%s9211_s30 + $0x448] sm:$0xf0] }
 0x1b5   : > { %5001 = vmatpush.bf16.msra.mxu1 %v6081_v46  ;;  %4970 = vmatmul.bf16.vlgmr.msrb.gmra.mxu2 %v9389_v23  ;;  %v6065_v23 = vor.u32 %v8383_v20, %v6062_v38  ;;  %v4737_v46 = vpop.f32.mrf.mxu0  ;;  %v6121_v58 = vor.u32 %v8397_v18, %v6118_v39  ;;  %v5985_v20 = vor.u32 %v8363_v40, %v5982_v59  ;;  %v6030_v40 = vld [vmem:[%s9211_s30 + $0x398] sm:$0xf0]  ;;  %v8391_v59 = vld [vmem:[%s9211_s30 + $0x414] sm:$0xf] }
 0x1b6   : > { %5014 = vmatpush.bf16.msra.mxu2 %v6145_v36  ;;  %4983 = vmatmul.bf16.vlgmr.msrb.gmra.mxu3 %v9393_v31  ;;  %v6193_v31 = vor.u32 %v8415_v47, %v6190_v4  ;;  %v8413_v36 = vld [vmem:[%s9211_s30 + $0x4c4] sm:$0xf]  ;;  %v4738_v27 = vadd.f32 %v4737_v46, %v10122_v6  ;;  %v6110_v6 = vld [vmem:[%s9211_s30 + $0x438] sm:$0xf0]  ;;  %v6177_v4 = vor.u32 %v8411_v13, %v6174_v25 }
 0x1b7   : > { %5027 = vmatpush.bf16.msra.mxu3 %v6209_v21  ;;  %v6057_v21 = vor.u32 %v8381_v24, %v6054_v17  ;;  %v6185_v0 = vor.u32 %v8413_v36, %v6182_v45  ;;  %v8377_v47 = vld [vmem:[%s9211_s30 + $0x3a4] sm:$0xf]  ;;  %v6166_v17 = vld [vmem:[%s9211_s30 + $0x4a8] sm:$0xf0]  ;;  %v5977_v39 = vor.u32 %v8361_v43, %v5974_v28 }
 0x1b8   : > { %4989 = vmatpush.bf16.msra.mxu0 %v6009_v29  ;;  %v4751_v29 = vadd.f32 %v4750_v54, %v4738_v27  ;;  %v5966_v54 = vld [vmem:[%s9211_s30 + $0x318] sm:$0xf0]  ;;  %v6086_v28 = vld [vmem:[%s9211_s30 + $0x408] sm:$0xf0] }
 0x1b9   : > { %5002 = vmatpush.bf16.msra.mxu1 %v6073_v2  ;;  %v6046_v2 = vld [vmem:[%s9211_s30 + $0x3b8] sm:$0xf0]  ;;  %v4776_v24 = vpop.f32.mrf.mxu3  ;;  %v4752_v46 = vpop.f32.mrf.mxu1 }
 0x1ba   : > { %5015 = vmatpush.bf16.msra.mxu2 %v6137_v1  ;;  %v8395_v1 = vld [vmem:[%s9211_s30 + $0x434] sm:$0xf] }
 0x1bb   : > { %5028 = vmatpush.bf16.msra.mxu3 %v6201_v3  ;;  %v6049_v3 = vor.u32 %v8379_v35, %v6046_v2  ;;  %v6113_v38 = vor.u32 %v8395_v1, %v6110_v6  ;;  %v6094_v35 = vld [vmem:[%s9211_s30 + $0x418] sm:$0xf0]  ;;  %v8357_v1 = vld [vmem:[%s9211_s30 + $0x304] sm:$0xf]  ;;  %v5958_v6 = vld [vmem:[%s9211_s30 + $0x308] sm:$0xf0] }
 0x1bc   : > { %4990 = vmatpush.bf16.msra.mxu0 %v6001_v5  ;;  %v4763_v5 = vpop.f32.mrf.mxu2  ;;  %v6097_v25 = vor.u32 %v8391_v59, %v6094_v35  ;;  %v6262_v59 = vld [vmem:[%s9211_s30 + $0x568] sm:$0xf0]  ;;  %v8449_v35 = vld [vmem:[%s9211_s30 + $0x5e4] sm:$0xf] }
 0x1bd   : > { %5003 = vmatpush.bf16.msra.mxu1 %v6065_v23  ;;  %v6038_v23 = vld [vmem:[%s9211_s30 + $0x3a8] sm:$0xf0]  ;;  %v4764_v16 = vadd.f32 %v4763_v5, %v4751_v29  ;;  %v4739_v18 = vpop.f32.mrf.mxu0  ;;  %v6158_v29 = vld [vmem:[%s9211_s30 + $0x498] sm:$0xf0] }
 0x1be   : > { %5016 = vmatpush.bf16.msra.mxu2 %v6129_v7  ;;  %v8393_v7 = vld [vmem:[%s9211_s30 + $0x424] sm:$0xf]  ;;  %v6041_v45 = vor.u32 %v8377_v47, %v6038_v23  ;;  %v8435_v23 = vld [vmem:[%s9211_s30 + $0x574] sm:$0xf]  ;;  %v6398_v18 = vld [vmem:[%s9211_s30 + $0x678] sm:$0xf0] }
 0x1bf   : > { %5029 = vmatpush.bf16.msra.mxu3 %v6193_v31  ;;  %v8409_v31 = vld [vmem:[%s9211_s30 + $0x4a4] sm:$0xf]  ;;  %v10193_v36 = vadd.f32 %v4776_v24, %v4764_v16  ;;  %v6105_v27 = vor.u32 %v8393_v7, %v6102_v8  ;;  %v6270_v7 = vld [vmem:[%s9211_s30 + $0x578] sm:$0xf0]  ;;  %v8451_v8 = vld [vmem:[%s9211_s30 + $0x5f4] sm:$0xf]  ;;  %v5961_v24 = vor.u32 %v8357_v1, %v5958_v6 }
 0x1c0   : > { %4991 = vmatpush.bf16.msra.mxu0 %v5993_v57  ;;  %v8359_v57 = vld [vmem:[%s9211_s30 + $0x314] sm:$0xf]  ;;  %v8405_v47 = vld [vmem:[%s9211_s30 + $0x484] sm:$0xf]  ;;  %v6390_v1 = vld [vmem:[%s9211_s30 + $0x668] sm:$0xf0] }
 0x1c1   : > { %5004 = vmatpush.bf16.msra.mxu1 %v6057_v21  ;;  %v8375_v21 = vld [vmem:[%s9211_s30 + $0x394] sm:$0xf]  ;;  %v5969_v2 = vor.u32 %v8359_v57, %v5966_v54  ;;  %v4778_v16 = vpop.f32.mrf.mxu3  ;;  %v6273_v54 = vor.u32 %v8435_v23, %v6270_v7  ;;  %v8481_v6 = vld [vmem:[%s9211_s30 + $0x6e4] sm:$0xf]  ;;  %v6382_v23 = vld [vmem:[%s9211_s30 + $0x658] sm:$0xf0] }
 0x1c2   : > { %5017 = vmatpush.bf16.msra.mxu2 %v6121_v58  ;;  %v6169_v58 = vor.u32 %v8409_v31, %v6166_v17  ;;  %v6033_v13 = vor.u32 %v8375_v21, %v6030_v40  ;;  %v6334_v31 = vld [vmem:[%s9211_s30 + $0x5f8] sm:$0xf0]  ;;  %v8467_v17 = vld [vmem:[%s9211_s30 + $0x674] sm:$0xf]  ;;  %v8433_v40 = vld [vmem:[%s9211_s30 + $0x564] sm:$0xf] }
 0x1c3   : > { %5030 = vmatpush.bf16.msra.mxu3 %v6185_v0  ;;  %v8407_v0 = vld [vmem:[%s9211_s30 + $0x494] sm:$0xf]  ;;  %v6337_v21 = vor.u32 %v8451_v8, %v6334_v31  ;;  %v6446_v8 = vld [vmem:[%s9211_s30 + $0x6d8] sm:$0xf0]  ;;  %v8429_v31 = vld [vmem:[%s9211_s30 + $0x544] sm:$0xf] }
 0x1c4   : > { %4992 = vmatpush.bf16.msra.mxu0 %v5985_v20  ;;  %v8373_v20 = vld [vmem:[%s9211_s30 + $0x384] sm:$0xf]  ;;  %v6161_v43 = vor.u32 %v8407_v0, %v6158_v29  ;;  %v4765_v5 = vpop.f32.mrf.mxu2  ;;  %v6326_v29 = vld [vmem:[%s9211_s30 + $0x5e8] sm:$0xf0]  ;;  %v8479_v7 = vld [vmem:[%s9211_s30 + $0x6d4] sm:$0xf] }
 0x1c5   : > { %5005 = vmatpush.bf16.msra.mxu1 %v6049_v3  ;;  %v6022_v3 = vld [vmem:[%s9211_s30 + $0x388] sm:$0xf0]  ;;  %v8463_v5 = vld [vmem:[%s9211_s30 + $0x654] sm:$0xf] }
 0x1c6   : > { %5018 = vmatpush.bf16.msra.mxu2 %v6113_v38  ;;  %v8389_v38 = vld [vmem:[%s9211_s30 + $0x404] sm:$0xf] }
 0x1c7   : > { %5031 = vmatpush.bf16.msra.mxu3 %v6177_v4  ;;  %v6150_v4 = vld [vmem:[%s9211_s30 + $0x488] sm:$0xf0]  ;;  %v6089_v46 = vor.u32 %v8389_v38, %v6086_v28  ;;  %v8431_v38 = vld [vmem:[%s9211_s30 + $0x554] sm:$0xf] }
 0x1c8   : > { %4993 = vmatpush.bf16.msra.mxu0 %v5977_v39  ;;  %v6025_v39 = vor.u32 %v8373_v20, %v6022_v3  ;;  %v6153_v57 = vor.u32 %v8405_v47, %v6150_v4  ;;  %v6329_v20 = vor.u32 %v8449_v35, %v6326_v29  ;;  %v8447_v28 = vld [vmem:[%s9211_s30 + $0x5d4] sm:$0xf]  ;;  %v6318_v4 = vld [vmem:[%s9211_s30 + $0x5d8] sm:$0xf0] }
 0x1c9   : > { %5006 = vmatpush.bf16.msra.mxu1 %v6041_v45  ;;  %v8483_v45 = vld [vmem:[%s9211_s30 + $0x6f4] sm:$0xf]  ;;  %v6321_v16 = vor.u32 %v8447_v28, %v6318_v4  ;;  %v6238_v35 = vld [vmem:[%s9211_s30 + $0x538] sm:$0xf0]  ;;  %v6230_v28 = vld [vmem:[%s9211_s30 + $0x528] sm:$0xf0] }
 0x1ca   : > { %5019 = vmatpush.bf16.msra.mxu2 %v6105_v27  ;;  %v6462_v27 = vld [vmem:[%s9211_s30 + $0x6f8] sm:$0xf0] }
 0x1cb   : > { %5032 = vmatpush.bf16.msra.mxu3 %v6169_v58  ;;  %v6401_v58 = vor.u32 %v8467_v17, %v6398_v18  ;;  %v6465_v0 = vor.u32 %v8483_v45, %v6462_v27  ;;  %v6246_v17 = vld [vmem:[%s9211_s30 + $0x548] sm:$0xf0]  ;;  %v8477_v45 = vld [vmem:[%s9211_s30 + $0x6c4] sm:$0xf] }
 0x1cc   : > { %4994 = vmatpush.bf16.msra.mxu0 %v5969_v2  ;;  %v8465_v2 = vld [vmem:[%s9211_s30 + $0x664] sm:$0xf]  ;;  %v6310_v18 = vld [vmem:[%s9211_s30 + $0x5c8] sm:$0xf0] }
 0x1cd   : > { %5007 = vmatpush.bf16.msra.mxu1 %v6033_v13  ;;  %v6454_v13 = vld [vmem:[%s9211_s30 + $0x6e8] sm:$0xf0]  ;;  %v6393_v3 = vor.u32 %v8465_v2, %v6390_v1  ;;  %v6302_v1 = vld [vmem:[%s9211_s30 + $0x5b8] sm:$0xf0] }
 0x1ce   : > { %5020 = vmatpush.bf16.msra.mxu2 %v6097_v25  ;;  %v6265_v25 = vor.u32 %v8433_v40, %v6262_v59  ;;  %v6457_v47 = vor.u32 %v8481_v6, %v6454_v13  ;;  %v6438_v27 = vld [vmem:[%s9211_s30 + $0x6c8] sm:$0xf0]  ;;  %v8427_v59 = vld [vmem:[%s9211_s30 + $0x534] sm:$0xf] }
 0x1cf   : > { %5033 = vmatpush.bf16.msra.mxu3 %v6161_v43  ;;  %v6254_v43 = vld [vmem:[%s9211_s30 + $0x558] sm:$0xf0]  ;;  %v6441_v29 = vor.u32 %v8477_v45, %v6438_v27  ;;  %v8459_v6 = vld [vmem:[%s9211_s30 + $0x634] sm:$0xf] }
 0x1d0   : > { %4995 = vmatpush.bf16.msra.mxu0 %v5961_v24  ;;  %v6385_v24 = vor.u32 %v8463_v5, %v6382_v23  ;;  %v8475_v13 = vld [vmem:[%s9211_s30 + $0x6b4] sm:$0xf]  ;;  %v6294_v23 = vld [vmem:[%s9211_s30 + $0x5a8] sm:$0xf0]  ;;  %v6222_v45 = vld [vmem:[%s9211_s30 + $0x518] sm:$0xf0] }
 0x1d1   : > { %5008 = vmatpush.bf16.msra.mxu1 %v6025_v39  ;;  %v8461_v39 = vld [vmem:[%s9211_s30 + $0x644] sm:$0xf]  ;;  %v8439_v27 = vld [vmem:[%s9211_s30 + $0x594] sm:$0xf] }
 0x1d2   : > { %5021 = vmatpush.bf16.msra.mxu2 %v6089_v46  ;;  %v6374_v46 = vld [vmem:[%s9211_s30 + $0x648] sm:$0xf0] }
 0x1d3   : > { %5034 = vmatpush.bf16.msra.mxu3 %v6153_v57  ;;  %4996 = vmatmul.bf16.vlgmr.msra.gmra.mxu0 %v9387_v22  ;;  %v6257_v22 = vor.u32 %v8431_v38, %v6254_v43  ;;  %v6377_v40 = vor.u32 %v8461_v39, %v6374_v46  ;;  %v8425_v43 = vld [vmem:[%s9211_s30 + $0x524] sm:$0xf] }
 0x1d4   : > { %5040 = vmatpush.bf16.msrb.mxu0 %v6273_v54  ;;  %5009 = vmatmul.bf16.vlgmr.msra.gmra.mxu1 %v9391_v30  ;;  %v6449_v30 = vor.u32 %v8479_v7, %v6446_v8  ;;  %v6249_v54 = vor.u32 %v8429_v31, %v6246_v17  ;;  %v8457_v7 = vld [vmem:[%s9211_s30 + $0x624] sm:$0xf]  ;;  %v6358_v8 = vld [vmem:[%s9211_s30 + $0x628] sm:$0xf0] }
 0x1d5   : > { %5053 = vmatpush.bf16.msrb.mxu1 %v6337_v21  ;;  %5022 = vmatmul.bf16.vlgmr.msra.gmra.mxu2 %v9429_v11  ;;  %v8445_v11 = vld [vmem:[%s9211_s30 + $0x5c4] sm:$0xf]  ;;  %v4802_v21 = vpop.f32.mrf.mxu1  ;;  %v6422_v31 = vld [vmem:[%s9211_s30 + $0x6a8] sm:$0xf0]  ;;  %v6361_v46 = vor.u32 %v8457_v7, %v6358_v8  ;;  %v6590_v7 = vld [vmem:[%s9211_s30 + $0x7f8] sm:$0xf0] }
 0x1d6   : > { %5066 = vmatpush.bf16.msrb.mxu2 %v6401_v58  ;;  %5035 = vmatmul.bf16.vlgmr.msra.gmra.mxu3 %v9433_v14  ;;  %v4789_v14 = vpop.f32.mrf.mxu0  ;;  %v6313_v58 = vor.u32 %v8445_v11, %v6310_v18  ;;  %v6233_v11 = vor.u32 %v8425_v43, %v6230_v28  ;;  %v8499_v28 = vld [vmem:[%s9211_s30 + $0x774] sm:$0xf] }
 0x1d7   : > { %5079 = vmatpush.bf16.msrb.mxu3 %v6465_v0  ;;  %v4790_v57 = vadd.f32 %v4789_v14, %v10193_v36  ;;  %v8443_v0 = vld [vmem:[%s9211_s30 + $0x5b4] sm:$0xf]  ;;  %v6366_v36 = vld [vmem:[%s9211_s30 + $0x638] sm:$0xf0] }
 0x1d8   : > { %5041 = vmatpush.bf16.msrb.mxu0 %v6265_v25  ;;  %v6430_v25 = vld [vmem:[%s9211_s30 + $0x6b8] sm:$0xf0]  ;;  %v6369_v38 = vor.u32 %v8459_v6, %v6366_v36  ;;  %v4815_v5 = vpop.f32.mrf.mxu2  ;;  %v8423_v14 = vld [vmem:[%s9211_s30 + $0x514] sm:$0xf]  ;;  %v8437_v6 = vld [vmem:[%s9211_s30 + $0x584] sm:$0xf] }
 0x1d9   : > { %5054 = vmatpush.bf16.msrb.mxu1 %v6329_v20  ;;  %v4803_v2 = vadd.f32 %v4802_v21, %v4790_v57  ;;  %v6241_v20 = vor.u32 %v8427_v59, %v6238_v35  ;;  %v6433_v4 = vor.u32 %v8475_v13, %v6430_v25  ;;  %v8455_v21 = vld [vmem:[%s9211_s30 + $0x614] sm:$0xf]  ;;  %v6414_v59 = vld [vmem:[%s9211_s30 + $0x698] sm:$0xf0]  ;;  %v6225_v35 = vor.u32 %v8423_v14, %v6222_v45  ;;  %v6278_v36 = vld [vmem:[%s9211_s30 + $0x588] sm:$0xf0] }
 0x1da   : > { %5067 = vmatpush.bf16.msrb.mxu2 %v6393_v3  ;;  %v6305_v3 = vor.u32 %v8443_v0, %v6302_v1  ;;  %v8421_v0 = vld [vmem:[%s9211_s30 + $0x504] sm:$0xf]  ;;  %v8531_v8 = vld [vmem:[%s9211_s30 + $0x874] sm:$0xf]  ;;  %v6518_v45 = vld [vmem:[%s9211_s30 + $0x768] sm:$0xf0] }
 0x1db   : > { %5080 = vmatpush.bf16.msrb.mxu3 %v6457_v47  ;;  %v8441_v47 = vld [vmem:[%s9211_s30 + $0x5a4] sm:$0xf] }
 0x1dc   : > { %5042 = vmatpush.bf16.msrb.mxu0 %v6257_v22  ;;  %v4816_v22 = vadd.f32 %v4815_v5, %v4803_v2  ;;  %v6297_v39 = vor.u32 %v8441_v47, %v6294_v23  ;;  %v8453_v13 = vld [vmem:[%s9211_s30 + $0x604] sm:$0xf]  ;;  %v6526_v47 = vld [vmem:[%s9211_s30 + $0x778] sm:$0xf0] }
 0x1dd   : > { %5055 = vmatpush.bf16.msrb.mxu1 %v6321_v16  ;;  %v4828_v16 = vpop.f32.mrf.mxu3  ;;  %v8497_v14 = vld [vmem:[%s9211_s30 + $0x764] sm:$0xf] }
 0x1de   : > { %5068 = vmatpush.bf16.msrb.mxu2 %v6385_v24  ;;  %v8473_v24 = vld [vmem:[%s9211_s30 + $0x6a4] sm:$0xf]  ;;  %v4791_v17 = vpop.f32.mrf.mxu0  ;;  %v10264_v18 = vadd.f32 %v4828_v16, %v4816_v22  ;;  %v6654_v22 = vld [vmem:[%s9211_s30 + $0x878] sm:$0xf0]  ;;  %v6281_v16 = vor.u32 %v8437_v6, %v6278_v36  ;;  %v8511_v6 = vld [vmem:[%s9211_s30 + $0x7d4] sm:$0xf] }
 0x1df   : > { %5081 = vmatpush.bf16.msrb.mxu3 %v6449_v30  ;;  %v4804_v30 = vpop.f32.mrf.mxu1  ;;  %v6425_v57 = vor.u32 %v8473_v24, %v6422_v31  ;;  %v8547_v31 = vld [vmem:[%s9211_s30 + $0x8f4] sm:$0xf]  ;;  %v6718_v17 = vld [vmem:[%s9211_s30 + $0x8f8] sm:$0xf0] }
 0x1e0   : > { %5043 = vmatpush.bf16.msrb.mxu0 %v6249_v54  ;;  %v6286_v54 = vld [vmem:[%s9211_s30 + $0x598] sm:$0xf0]  ;;  %v4817_v43 = vpop.f32.mrf.mxu2  ;;  %v6529_v30 = vor.u32 %v8499_v28, %v6526_v47  ;;  %v8493_v47 = vld [vmem:[%s9211_s30 + $0x744] sm:$0xf] }
 0x1e1   : > { %5056 = vmatpush.bf16.msrb.mxu1 %v6313_v58  ;;  %v6350_v58 = vld [vmem:[%s9211_s30 + $0x618] sm:$0xf0]  ;;  %v6289_v2 = vor.u32 %v8439_v27, %v6286_v54  ;;  %v8513_v27 = vld [vmem:[%s9211_s30 + $0x7e4] sm:$0xf]  ;;  %v6582_v54 = vld [vmem:[%s9211_s30 + $0x7e8] sm:$0xf0] }
 0x1e2   : > { %5069 = vmatpush.bf16.msrb.mxu2 %v6377_v40  ;;  %v8471_v40 = vld [vmem:[%s9211_s30 + $0x694] sm:$0xf]  ;;  %v6353_v1 = vor.u32 %v8455_v21, %v6350_v58  ;;  %v8529_v21 = vld [vmem:[%s9211_s30 + $0x864] sm:$0xf]  ;;  %v6646_v58 = vld [vmem:[%s9211_s30 + $0x868] sm:$0xf0] }
 0x1e3   : > { %5082 = vmatpush.bf16.msrb.mxu3 %v6441_v29  ;;  %v6214_v29 = vld [vmem:[%s9211_s30 + $0x508] sm:$0xf0]  ;;  %v6417_v25 = vor.u32 %v8471_v40, %v6414_v59  ;;  %v8545_v40 = vld [vmem:[%s9211_s30 + $0x8e4] sm:$0xf] }
 0x1e4   : > { %5044 = vmatpush.bf16.msrb.mxu0 %v6241_v20  ;;  %v6342_v20 = vld [vmem:[%s9211_s30 + $0x608] sm:$0xf0]  ;;  %v6217_v23 = vor.u32 %v8421_v0, %v6214_v29  ;;  %v6585_v0 = vor.u32 %v8513_v27, %v6582_v54  ;;  %v6649_v29 = vor.u32 %v8529_v21, %v6646_v58  ;;  %v6558_v27 = vld [vmem:[%s9211_s30 + $0x7b8] sm:$0xf0]  ;;  %v8539_v54 = vld [vmem:[%s9211_s30 + $0x8b4] sm:$0xf] }
 0x1e5   : > { %5057 = vmatpush.bf16.msrb.mxu1 %v6305_v3  ;;  %v8469_v3 = vld [vmem:[%s9211_s30 + $0x684] sm:$0xf]  ;;  %v4830_v5 = vpop.f32.mrf.mxu3  ;;  %v6345_v24 = vor.u32 %v8453_v13, %v6342_v20  ;;  %v6710_v59 = vld [vmem:[%s9211_s30 + $0x8e8] sm:$0xf0]  ;;  %v6574_v13 = vld [vmem:[%s9211_s30 + $0x7d8] sm:$0xf0] }
 0x1e6   : > { %5070 = vmatpush.bf16.msrb.mxu2 %v6369_v38  ;;  %v6406_v38 = vld [vmem:[%s9211_s30 + $0x688] sm:$0xf0]  ;;  %v6713_v36 = vor.u32 %v8545_v40, %v6710_v59  ;;  %v6638_v20 = vld [vmem:[%s9211_s30 + $0x858] sm:$0xf0]  ;;  %v6577_v43 = vor.u32 %v8511_v6, %v6574_v13 }
 0x1e7   : > { %5083 = vmatpush.bf16.msrb.mxu3 %v6433_v4  ;;  %v8515_v4 = vld [vmem:[%s9211_s30 + $0x7f4] sm:$0xf]  ;;  %v6566_v5 = vld [vmem:[%s9211_s30 + $0x7c8] sm:$0xf0]  ;;  %v6686_v21 = vld [vmem:[%s9211_s30 + $0x8b8] sm:$0xf0] }
 0x1e8   : > { %5045 = vmatpush.bf16.msrb.mxu0 %v6233_v11  ;;  %v6409_v11 = vor.u32 %v8469_v3, %v6406_v38  ;;  %v8543_v3 = vld [vmem:[%s9211_s30 + $0x8d4] sm:$0xf]  ;;  %v6702_v38 = vld [vmem:[%s9211_s30 + $0x8d8] sm:$0xf0]  ;;  %v6550_v6 = vld [vmem:[%s9211_s30 + $0x7a8] sm:$0xf0] }
 0x1e9   : > { %5058 = vmatpush.bf16.msrb.mxu1 %v6297_v39  ;;  %v6593_v39 = vor.u32 %v8515_v4, %v6590_v7  ;;  %v6502_v4 = vld [vmem:[%s9211_s30 + $0x748] sm:$0xf0] }
 0x1ea   : > { %5071 = vmatpush.bf16.msrb.mxu2 %v6361_v46  ;;  %v6657_v46 = vor.u32 %v8531_v8, %v6654_v22  ;;  %v6630_v7 = vld [vmem:[%s9211_s30 + $0x848] sm:$0xf0]  ;;  %v8541_v8 = vld [vmem:[%s9211_s30 + $0x8c4] sm:$0xf] }
 0x1eb   : > { %5084 = vmatpush.bf16.msrb.mxu3 %v6425_v57  ;;  %v6721_v57 = vor.u32 %v8547_v31, %v6718_v17  ;;  %v6694_v22 = vld [vmem:[%s9211_s30 + $0x8c8] sm:$0xf0] }
 0x1ec   : > { %5046 = vmatpush.bf16.msrb.mxu0 %v6225_v35  ;;  %v6521_v35 = vor.u32 %v8497_v14, %v6518_v45  ;;  %v6697_v14 = vor.u32 %v8541_v8, %v6694_v22  ;;  %v6614_v13 = vld [vmem:[%s9211_s30 + $0x828] sm:$0xf0]  ;;  %v8519_v8 = vld [vmem:[%s9211_s30 + $0x814] sm:$0xf]  ;;  %v6606_v22 = vld [vmem:[%s9211_s30 + $0x818] sm:$0xf0] }
 0x1ed   : > { %5059 = vmatpush.bf16.msrb.mxu1 %v6289_v2  ;;  %v8495_v2 = vld [vmem:[%s9211_s30 + $0x754] sm:$0xf] }
 0x1ee   : > { %5072 = vmatpush.bf16.msrb.mxu2 %v6353_v1  ;;  %v6510_v1 = vld [vmem:[%s9211_s30 + $0x758] sm:$0xf0] }
 0x1ef   : > { %5085 = vmatpush.bf16.msrb.mxu3 %v6417_v25  ;;  %v8527_v25 = vld [vmem:[%s9211_s30 + $0x854] sm:$0xf] }
 0x1f0   : > { %5047 = vmatpush.bf16.msrb.mxu0 %v6217_v23  ;;  %v6641_v28 = vor.u32 %v8527_v25, %v6638_v20  ;;  %v8525_v23 = vld [vmem:[%s9211_s30 + $0x844] sm:$0xf] }
 0x1f1   : > { %5060 = vmatpush.bf16.msrb.mxu1 %v6281_v16  ;;  %v4854_v31 = vpop.f32.mrf.mxu1 }
 0x1f2   : > { %5073 = vmatpush.bf16.msrb.mxu2 %v6345_v24  ;;  %v6505_v24 = vor.u32 %v8493_v47, %v6502_v4 }
 0x1f3   : > { %5086 = vmatpush.bf16.msrb.mxu3 %v6409_v11  ;;  %5048 = vmatmul.bf16.vlgmr.msrb.gmra.mxu0 %v9431_v12  ;;  %v6513_v12 = vor.u32 %v8495_v2, %v6510_v1  ;;  %v6633_v11 = vor.u32 %v8525_v23, %v6630_v7  ;;  %v6689_v2 = vor.u32 %v8539_v54, %v6686_v21  ;;  %v8503_v23 = vld [vmem:[%s9211_s30 + $0x794] sm:$0xf]  ;;  %v6662_v54 = vld [vmem:[%s9211_s30 + $0x888] sm:$0xf0] }
 0x1f4   : > { %5092 = vmatpush.bf16.msra.mxu0 %v6529_v30  ;;  %5061 = vmatmul.bf16.vlgmr.msrb.gmra.mxu1 %v9435_v15  ;;  %v6705_v15 = vor.u32 %v8543_v3, %v6702_v38  ;;  %v8491_v30 = vld [vmem:[%s9211_s30 + $0x734] sm:$0xf]  ;;  %v8537_v3 = vld [vmem:[%s9211_s30 + $0x8a4] sm:$0xf]  ;;  %v6678_v38 = vld [vmem:[%s9211_s30 + $0x8a8] sm:$0xf0] }
 0x1f5   : > { %5105 = vmatpush.bf16.msra.mxu1 %v6593_v39  ;;  %5074 = vmatmul.bf16.vlgmr.msrb.gmra.mxu2 %v9495_v52  ;;  %v8509_v52 = vld [vmem:[%s9211_s30 + $0x7c4] sm:$0xf]  ;;  %v6494_v39 = vld [vmem:[%s9211_s30 + $0x738] sm:$0xf0]  ;;  %v6681_v7 = vor.u32 %v8537_v3, %v6678_v38 }
 0x1f6   : > { %5118 = vmatpush.bf16.msra.mxu2 %v6657_v46  ;;  %5087 = vmatmul.bf16.vlgmr.msrb.gmra.mxu3 %v9499_v55  ;;  %v4841_v55 = vpop.f32.mrf.mxu0  ;;  %v6569_v17 = vor.u32 %v8509_v52, %v6566_v5  ;;  %v8507_v46 = vld [vmem:[%s9211_s30 + $0x7b4] sm:$0xf]  ;;  %v6497_v58 = vor.u32 %v8491_v30, %v6494_v39  ;;  %v6478_v5 = vld [vmem:[%s9211_s30 + $0x718] sm:$0xf0]  ;;  %v6609_v39 = vor.u32 %v8519_v8, %v6606_v22 }
 0x1f7   : > { %5131 = vmatpush.bf16.msra.mxu3 %v6721_v57  ;;  %v4842_v16 = vadd.f32 %v4841_v55, %v10264_v18  ;;  %v8523_v57 = vld [vmem:[%s9211_s30 + $0x834] sm:$0xf]  ;;  %v6622_v18 = vld [vmem:[%s9211_s30 + $0x838] sm:$0xf0]  ;;  %v6561_v40 = vor.u32 %v8507_v46, %v6558_v27  ;;  %v8501_v46 = vld [vmem:[%s9211_s30 + $0x784] sm:$0xf] }
 0x1f8   : > { %5093 = vmatpush.bf16.msra.mxu0 %v6521_v35  ;;  %v6625_v59 = vor.u32 %v8523_v57, %v6622_v18  ;;  %v8489_v35 = vld [vmem:[%s9211_s30 + $0x724] sm:$0xf]  ;;  %v4867_v1 = vpop.f32.mrf.mxu2  ;;  %v6542_v55 = vld [vmem:[%s9211_s30 + $0x798] sm:$0xf0]  ;;  %v6598_v57 = vld [vmem:[%s9211_s30 + $0x808] sm:$0xf0] }
 0x1f9   : > { %5106 = vmatpush.bf16.msra.mxu1 %v6585_v0  ;;  %v4855_v45 = vadd.f32 %v4854_v31, %v4842_v16  ;;  %v6486_v0 = vld [vmem:[%s9211_s30 + $0x728] sm:$0xf0]  ;;  %v4880_v20 = vpop.f32.mrf.mxu3  ;;  %v8535_v16 = vld [vmem:[%s9211_s30 + $0x894] sm:$0xf]  ;;  %v6545_v30 = vor.u32 %v8503_v23, %v6542_v55  ;;  %v8533_v18 = vld [vmem:[%s9211_s30 + $0x884] sm:$0xf] }
 0x1fa   : > { %5119 = vmatpush.bf16.msra.mxu2 %v6649_v29  ;;  %v8505_v29 = vld [vmem:[%s9211_s30 + $0x7a4] sm:$0xf]  ;;  %v6902_v23 = vld [vmem:[%s9211_s30 + $0xa68] sm:$0xf0] }
 0x1fb   : > { %5132 = vmatpush.bf16.msra.mxu3 %v6713_v36  ;;  %v8521_v36 = vld [vmem:[%s9211_s30 + $0x824] sm:$0xf]  ;;  %v4868_v25 = vadd.f32 %v4867_v1, %v4855_v45  ;;  %v6553_v4 = vor.u32 %v8505_v29, %v6550_v6  ;;  %v6846_v29 = vld [vmem:[%s9211_s30 + $0x9f8] sm:$0xf0]  ;;  %v6966_v55 = vld [vmem:[%s9211_s30 + $0xae8] sm:$0xf0] }
 0x1fc   : > { %5094 = vmatpush.bf16.msra.mxu0 %v6513_v12  ;;  %v6617_v52 = vor.u32 %v8521_v36, %v6614_v13  ;;  %v8517_v45 = vld [vmem:[%s9211_s30 + $0x804] sm:$0xf]  ;;  %v6910_v1 = vld [vmem:[%s9211_s30 + $0xa78] sm:$0xf0]  ;;  %v8611_v13 = vld [vmem:[%s9211_s30 + $0xaf4] sm:$0xf] }
 0x1fd   : > { %5107 = vmatpush.bf16.msra.mxu1 %v6577_v43  ;;  %v6489_v43 = vor.u32 %v8489_v35, %v6486_v0  ;;  %v10335_v47 = vadd.f32 %v4880_v20, %v4868_v25  ;;  %v6601_v36 = vor.u32 %v8517_v45, %v6598_v57  ;;  %v6974_v25 = vld [vmem:[%s9211_s30 + $0xaf8] sm:$0xf0]  ;;  %v6665_v20 = vor.u32 %v8533_v18, %v6662_v54  ;;  %v8557_v18 = vld [vmem:[%s9211_s30 + $0x944] sm:$0xf]  ;;  %v6758_v54 = vld [vmem:[%s9211_s30 + $0x948] sm:$0xf0] }
 0x1fe   : > { %5120 = vmatpush.bf16.msra.mxu2 %v6641_v28  ;;  %v4843_v12 = vpop.f32.mrf.mxu0  ;;  %v4856_v28 = vpop.f32.mrf.mxu1  ;;  %v6958_v45 = vld [vmem:[%s9211_s30 + $0xad8] sm:$0xf0] }
 0x1ff   : > { %5133 = vmatpush.bf16.msra.mxu3 %v6705_v15  ;;  %v8487_v15 = vld [vmem:[%s9211_s30 + $0x714] sm:$0xf]  ;;  %v6774_v28 = vld [vmem:[%s9211_s30 + $0x968] sm:$0xf0] }
 0x200   : > { %5095 = vmatpush.bf16.msra.mxu0 %v6505_v24  ;;  %v6670_v24 = vld [vmem:[%s9211_s30 + $0x898] sm:$0xf0]  ;;  %v6481_v31 = vor.u32 %v8487_v15, %v6478_v5  ;;  %v4869_v21 = vpop.f32.mrf.mxu2  ;;  %v6838_v15 = vld [vmem:[%s9211_s30 + $0x9e8] sm:$0xf0]  ;;  %v8593_v5 = vld [vmem:[%s9211_s30 + $0xa64] sm:$0xf] }
 0x201   : > { %5108 = vmatpush.bf16.msra.mxu1 %v6569_v17  ;;  %v8485_v17 = vld [vmem:[%s9211_s30 + $0x704] sm:$0xf]  ;;  %v6673_v27 = vor.u32 %v8535_v16, %v6670_v24  ;;  %v4882_v35 = vpop.f32.mrf.mxu3  ;;  %v6905_v16 = vor.u32 %v8593_v5, %v6902_v23  ;;  %v8559_v24 = vld [vmem:[%s9211_s30 + $0x954] sm:$0xf]  ;;  %v6822_v21 = vld [vmem:[%s9211_s30 + $0x9c8] sm:$0xf0] }
 0x202   : > { %5121 = vmatpush.bf16.msra.mxu2 %v6633_v11  ;;  %v6470_v11 = vld [vmem:[%s9211_s30 + $0x708] sm:$0xf0]  ;;  %v8553_v5 = vld [vmem:[%s9211_s30 + $0x924] sm:$0xf] }
 0x203   : > { %5134 = vmatpush.bf16.msra.mxu3 %v6697_v14  ;;  %v6534_v14 = vld [vmem:[%s9211_s30 + $0x788] sm:$0xf0]  ;;  %v6473_v0 = vor.u32 %v8485_v17, %v6470_v11  ;;  %v8575_v17 = vld [vmem:[%s9211_s30 + $0x9d4] sm:$0xf] }
 0x204   : > { %5096 = vmatpush.bf16.msra.mxu0 %v6497_v58  ;;  %v8563_v58 = vld [vmem:[%s9211_s30 + $0x974] sm:$0xf]  ;;  %v6537_v6 = vor.u32 %v8501_v46, %v6534_v14  ;;  %v6894_v46 = vld [vmem:[%s9211_s30 + $0xa58] sm:$0xf0]  ;;  %v6950_v35 = vld [vmem:[%s9211_s30 + $0xac8] sm:$0xf0] }
 0x205   : > { %5109 = vmatpush.bf16.msra.mxu1 %v6561_v40  ;;  %v6782_v40 = vld [vmem:[%s9211_s30 + $0x978] sm:$0xf0]  ;;  %v8607_v14 = vld [vmem:[%s9211_s30 + $0xad4] sm:$0xf]  ;;  %v6742_v23 = vld [vmem:[%s9211_s30 + $0x928] sm:$0xf0] }
 0x206   : > { %5122 = vmatpush.bf16.msra.mxu2 %v6625_v59  ;;  %v8579_v59 = vld [vmem:[%s9211_s30 + $0x9f4] sm:$0xf]  ;;  %v6785_v3 = vor.u32 %v8563_v58, %v6782_v40  ;;  %v8589_v58 = vld [vmem:[%s9211_s30 + $0xa44] sm:$0xf]  ;;  %v6886_v40 = vld [vmem:[%s9211_s30 + $0xa48] sm:$0xf0] }
 0x207   : > { %5135 = vmatpush.bf16.msra.mxu3 %v6689_v2  ;;  %v8595_v2 = vld [vmem:[%s9211_s30 + $0xa74] sm:$0xf]  ;;  %v6849_v38 = vor.u32 %v8579_v59, %v6846_v29  ;;  %v8605_v59 = vld [vmem:[%s9211_s30 + $0xac4] sm:$0xf]  ;;  %v6761_v29 = vor.u32 %v8557_v18, %v6758_v54 }
 0x208   : > { %5097 = vmatpush.bf16.msra.mxu0 %v6489_v43  ;;  %v6913_v12 = vor.u32 %v8595_v2, %v6910_v1  ;;  %v8561_v43 = vld [vmem:[%s9211_s30 + $0x964] sm:$0xf]  ;;  %v8567_v18 = vld [vmem:[%s9211_s30 + $0x994] sm:$0xf] }
 0x209   : > { %5110 = vmatpush.bf16.msra.mxu1 %v6553_v4  ;;  %v8577_v4 = vld [vmem:[%s9211_s30 + $0x9e4] sm:$0xf]  ;;  %v6777_v8 = vor.u32 %v8561_v43, %v6774_v28  ;;  %v8603_v43 = vld [vmem:[%s9211_s30 + $0xab4] sm:$0xf]  ;;  %v6942_v28 = vld [vmem:[%s9211_s30 + $0xab8] sm:$0xf0] }
 0x20a   : > { %5123 = vmatpush.bf16.msra.mxu2 %v6617_v52  ;;  %v6977_v52 = vor.u32 %v8611_v13, %v6974_v25  ;;  %v6841_v22 = vor.u32 %v8577_v4, %v6838_v15  ;;  %v6750_v13 = vld [vmem:[%s9211_s30 + $0x938] sm:$0xf0]  ;;  %v8571_v25 = vld [vmem:[%s9211_s30 + $0x9b4] sm:$0xf] }
 0x20b   : > { %5136 = vmatpush.bf16.msra.mxu3 %v6681_v7  ;;  %v8609_v7 = vld [vmem:[%s9211_s30 + $0xae4] sm:$0xf] }
 0x20c   : > { %5098 = vmatpush.bf16.msra.mxu0 %v6481_v31  ;;  %v6766_v31 = vld [vmem:[%s9211_s30 + $0x958] sm:$0xf0]  ;;  %v6969_v11 = vor.u32 %v8609_v7, %v6966_v55  ;;  %v8569_v7 = vld [vmem:[%s9211_s30 + $0x9a4] sm:$0xf]  ;;  %v6945_v55 = vor.u32 %v8603_v43, %v6942_v28  ;;  %v8643_v43 = vld [vmem:[%s9211_s30 + $0xbf4] sm:$0xf] }
 0x20d   : > { %5111 = vmatpush.bf16.msra.mxu1 %v6545_v30  ;;  %v6830_v30 = vld [vmem:[%s9211_s30 + $0x9d8] sm:$0xf0] }
 0x20e   : > { %5124 = vmatpush.bf16.msra.mxu2 %v6609_v39  ;;  %v8591_v39 = vld [vmem:[%s9211_s30 + $0xa54] sm:$0xf] }
 0x20f   : > { %5137 = vmatpush.bf16.msra.mxu3 %v6673_v27  ;;  %v6833_v27 = vor.u32 %v8575_v17, %v6830_v30  ;;  %v6897_v57 = vor.u32 %v8591_v39, %v6894_v46  ;;  %v6934_v17 = vld [vmem:[%s9211_s30 + $0xaa8] sm:$0xf0]  ;;  %v6745_v39 = vor.u32 %v8553_v5, %v6742_v23  ;;  %v7166_v5 = vld [vmem:[%s9211_s30 + $0xc78] sm:$0xf0] }
 0x210   : > { %5099 = vmatpush.bf16.msra.mxu0 %v6473_v0 }
 0x211   : > { %5112 = vmatpush.bf16.msra.mxu1 %v6537_v6  ;;  %v4906_v2 = vpop.f32.mrf.mxu1  ;;  %v6889_v6 = vor.u32 %v8589_v58, %v6886_v40  ;;  %v8599_v58 = vld [vmem:[%s9211_s30 + $0xa94] sm:$0xf]  ;;  %v6926_v40 = vld [vmem:[%s9211_s30 + $0xa98] sm:$0xf0] }
 0x212   : > { %5125 = vmatpush.bf16.msra.mxu2 %v6601_v36  ;;  %v8555_v36 = vld [vmem:[%s9211_s30 + $0x934] sm:$0xf] }
 0x213   : > { %5138 = vmatpush.bf16.msra.mxu3 %v6665_v20  ;;  %5100 = vmatmul.bf16.vlgmr.msra.gmra.mxu0 %v9497_v53  ;;  %v6769_v53 = vor.u32 %v8559_v24, %v6766_v31  ;;  %v6953_v20 = vor.u32 %v8605_v59, %v6950_v35  ;;  %v6753_v4 = vor.u32 %v8555_v36, %v6750_v13  ;;  %v8601_v31 = vld [vmem:[%s9211_s30 + $0xaa4] sm:$0xf]  ;;  %v6726_v35 = vld [vmem:[%s9211_s30 + $0x908] sm:$0xf0] }
 0x214   : > { %5144 = vmatpush.bf16.msrb.mxu0 %v6785_v3  ;;  %5113 = vmatmul.bf16.vlgmr.msra.gmra.mxu1 %v9501_v56  ;;  %v6961_v56 = vor.u32 %v8607_v14, %v6958_v45  ;;  %v6937_v54 = vor.u32 %v8601_v31, %v6934_v17  ;;  %v8549_v59 = vld [vmem:[%s9211_s30 + $0x904] sm:$0xf]  ;;  %v6929_v36 = vor.u32 %v8599_v58, %v6926_v40  ;;  %v6854_v13 = vld [vmem:[%s9211_s30 + $0xa08] sm:$0xf0]  ;;  %v8639_v58 = vld [vmem:[%s9211_s30 + $0xbd4] sm:$0xf] }
 0x215   : > { %5157 = vmatpush.bf16.msrb.mxu1 %v6849_v38  ;;  %5126 = vmatmul.bf16.vlgmr.msra.gmra.mxu2 %v9613_v10  ;;  %v8573_v10 = vld [vmem:[%s9211_s30 + $0x9c4] sm:$0xf]  ;;  %v6814_v38 = vld [vmem:[%s9211_s30 + $0x9b8] sm:$0xf0] }
 0x216   : > { %5170 = vmatpush.bf16.msrb.mxu2 %v6913_v12  ;;  %5139 = vmatmul.bf16.vlgmr.msra.gmra.mxu3 %v9625_v33  ;;  %v4893_v33 = vpop.f32.mrf.mxu0  ;;  %v6825_v1 = vor.u32 %v8573_v10, %v6822_v21  ;;  %v6878_v12 = vld [vmem:[%s9211_s30 + $0xa38] sm:$0xf0]  ;;  %v8625_v17 = vld [vmem:[%s9211_s30 + $0xb64] sm:$0xf] }
 0x217   : > { %5183 = vmatpush.bf16.msrb.mxu3 %v6977_v52  ;;  %v4894_v0 = vadd.f32 %v4893_v33, %v10335_v47  ;;  %v8587_v47 = vld [vmem:[%s9211_s30 + $0xa34] sm:$0xf]  ;;  %v6817_v52 = vor.u32 %v8571_v25, %v6814_v38  ;;  %v6798_v10 = vld [vmem:[%s9211_s30 + $0x998] sm:$0xf0]  ;;  %v8597_v25 = vld [vmem:[%s9211_s30 + $0xa84] sm:$0xf] }
 0x218   : > { %5145 = vmatpush.bf16.msrb.mxu0 %v6777_v8  ;;  %v6881_v15 = vor.u32 %v8587_v47, %v6878_v12  ;;  %v6806_v8 = vld [vmem:[%s9211_s30 + $0x9a8] sm:$0xf0]  ;;  %v4919_v24 = vpop.f32.mrf.mxu2  ;;  %v6862_v21 = vld [vmem:[%s9211_s30 + $0xa18] sm:$0xf0]  ;;  %v8627_v47 = vld [vmem:[%s9211_s30 + $0xb74] sm:$0xf] }
 0x219   : > { %5158 = vmatpush.bf16.msrb.mxu1 %v6841_v22  ;;  %v10393_v3 = vadd.f32 %v4906_v2, %v4894_v0  ;;  %v8585_v22 = vld [vmem:[%s9211_s30 + $0xa24] sm:$0xf]  ;;  %v4908_v14 = vpop.f32.mrf.mxu1  ;;  %v6809_v45 = vor.u32 %v8569_v7, %v6806_v8  ;;  %v6801_v0 = vor.u32 %v8567_v18, %v6798_v10  ;;  %v7038_v12 = vld [vmem:[%s9211_s30 + $0xb78] sm:$0xf0] }
 0x21a   : > { %5171 = vmatpush.bf16.msrb.mxu2 %v6905_v16  ;;  %v6870_v16 = vld [vmem:[%s9211_s30 + $0xa28] sm:$0xf0]  ;;  %v8565_v2 = vld [vmem:[%s9211_s30 + $0x984] sm:$0xf]  ;;  %v7230_v8 = vld [vmem:[%s9211_s30 + $0xcf8] sm:$0xf0] }
 0x21b   : > { %5184 = vmatpush.bf16.msrb.mxu3 %v6969_v11  ;;  %v4932_v11 = vpop.f32.mrf.mxu3  ;;  %v7094_v14 = vld [vmem:[%s9211_s30 + $0xbe8] sm:$0xf0] }
 0x21c   : > { %5146 = vmatpush.bf16.msrb.mxu0 %v6769_v53  ;;  %v10408_v46 = vadd.f32 %v4932_v11, %v4919_v24  ;;  %v6873_v53 = vor.u32 %v8585_v22, %v6870_v16  ;;  %v7041_v16 = vor.u32 %v8627_v47, %v7038_v12  ;;  %v7030_v11 = vld [vmem:[%s9211_s30 + $0xb68] sm:$0xf0] }
 0x21d   : > { %5159 = vmatpush.bf16.msrb.mxu1 %v6833_v27  ;;  %v8551_v27 = vld [vmem:[%s9211_s30 + $0x914] sm:$0xf]  ;;  %v7033_v18 = vor.u32 %v8625_v17, %v7030_v11 }
 0x21e   : > { %5172 = vmatpush.bf16.msrb.mxu2 %v6897_v57  ;;  %v4895_v30 = vpop.f32.mrf.mxu0  ;;  %v6734_v57 = vld [vmem:[%s9211_s30 + $0x918] sm:$0xf0] }
 0x21f   : > { %5185 = vmatpush.bf16.msrb.mxu3 %v6961_v56  ;;  %v8583_v56 = vld [vmem:[%s9211_s30 + $0xa14] sm:$0xf]  ;;  %v6737_v33 = vor.u32 %v8551_v27, %v6734_v57  ;;  %v8641_v30 = vld [vmem:[%s9211_s30 + $0xbe4] sm:$0xf]  ;;  %v7222_v57 = vld [vmem:[%s9211_s30 + $0xce8] sm:$0xf0] }
 0x220   : > { %5147 = vmatpush.bf16.msrb.mxu0 %v6761_v29  ;;  %v6865_v29 = vor.u32 %v8583_v56, %v6862_v21  ;;  %v4921_v38 = vpop.f32.mrf.mxu2  ;;  %v8673_v27 = vld [vmem:[%s9211_s30 + $0xce4] sm:$0xf]  ;;  %v8623_v56 = vld [vmem:[%s9211_s30 + $0xb54] sm:$0xf]  ;;  %v7022_v21 = vld [vmem:[%s9211_s30 + $0xb58] sm:$0xf0] }
 0x221   : > { %5160 = vmatpush.bf16.msrb.mxu1 %v6825_v1  ;;  %v6790_v1 = vld [vmem:[%s9211_s30 + $0x988] sm:$0xf0]  ;;  %v7225_v40 = vor.u32 %v8673_v27, %v7222_v57  ;;  %v8669_v38 = vld [vmem:[%s9211_s30 + $0xcc4] sm:$0xf] }
 0x222   : > { %5173 = vmatpush.bf16.msrb.mxu2 %v6889_v6  ;;  %v8581_v6 = vld [vmem:[%s9211_s30 + $0xa04] sm:$0xf]  ;;  %v6793_v23 = vor.u32 %v8565_v2, %v6790_v1  ;;  %v7062_v27 = vld [vmem:[%s9211_s30 + $0xba8] sm:$0xf0] }
 0x223   : > { %5186 = vmatpush.bf16.msrb.mxu3 %v6953_v20  ;;  %v6918_v20 = vld [vmem:[%s9211_s30 + $0xa88] sm:$0xf0]  ;;  %v4934_v28 = vpop.f32.mrf.mxu3  ;;  %v6857_v7 = vor.u32 %v8581_v6, %v6854_v13  ;;  %v8621_v6 = vld [vmem:[%s9211_s30 + $0xb44] sm:$0xf] }
 0x224   : > { %5148 = vmatpush.bf16.msrb.mxu0 %v6753_v4  ;;  %v6729_v4 = vor.u32 %v8549_v59, %v6726_v35  ;;  %v6921_v22 = vor.u32 %v8597_v25, %v6918_v20  ;;  %v8655_v59 = vld [vmem:[%s9211_s30 + $0xc54] sm:$0xf]  ;;  %v7150_v35 = vld [vmem:[%s9211_s30 + $0xc58] sm:$0xf0]  ;;  %v7078_v13 = vld [vmem:[%s9211_s30 + $0xbc8] sm:$0xf0] }
 0x225   : > { %5161 = vmatpush.bf16.msrb.mxu1 %v6817_v52  ;;  %v7102_v52 = vld [vmem:[%s9211_s30 + $0xbf8] sm:$0xf0]  ;;  %v7153_v1 = vor.u32 %v8655_v59, %v7150_v35  ;;  %v8653_v25 = vld [vmem:[%s9211_s30 + $0xc44] sm:$0xf]  ;;  %v7142_v20 = vld [vmem:[%s9211_s30 + $0xc48] sm:$0xf0] }
 0x226   : > { %5174 = vmatpush.bf16.msrb.mxu2 %v6881_v15  ;;  %v8659_v15 = vld [vmem:[%s9211_s30 + $0xc74] sm:$0xf]  ;;  %v7105_v24 = vor.u32 %v8643_v43, %v7102_v52  ;;  %v7145_v28 = vor.u32 %v8653_v25, %v7142_v20  ;;  %v7006_v52 = vld [vmem:[%s9211_s30 + $0xb38] sm:$0xf0]  ;;  %v8649_v57 = vld [vmem:[%s9211_s30 + $0xc24] sm:$0xf] }
 0x227   : > { %5187 = vmatpush.bf16.msrb.mxu3 %v6945_v55  ;;  %v8675_v55 = vld [vmem:[%s9211_s30 + $0xcf4] sm:$0xf]  ;;  %v7169_v31 = vor.u32 %v8659_v15, %v7166_v5  ;;  %v8613_v20 = vld [vmem:[%s9211_s30 + $0xb04] sm:$0xf] }
 0x228   : > { %5149 = vmatpush.bf16.msrb.mxu0 %v6745_v39  ;;  %v7233_v39 = vor.u32 %v8675_v55, %v7230_v8  ;;  %v8635_v15 = vld [vmem:[%s9211_s30 + $0xbb4] sm:$0xf]  ;;  %v7070_v55 = vld [vmem:[%s9211_s30 + $0xbb8] sm:$0xf0] }
 0x229   : > { %5162 = vmatpush.bf16.msrb.mxu1 %v6809_v45  ;;  %v8657_v45 = vld [vmem:[%s9211_s30 + $0xc64] sm:$0xf]  ;;  %v8651_v8 = vld [vmem:[%s9211_s30 + $0xc34] sm:$0xf] }
 0x22a   : > { %5175 = vmatpush.bf16.msrb.mxu2 %v6873_v53  ;;  %v7158_v53 = vld [vmem:[%s9211_s30 + $0xc68] sm:$0xf0] }
 0x22b   : > { %5188 = vmatpush.bf16.msrb.mxu3 %v6937_v54  ;;  %v7097_v54 = vor.u32 %v8641_v30, %v7094_v14  ;;  %v7161_v10 = vor.u32 %v8657_v45, %v7158_v53  ;;  %v8617_v30 = vld [vmem:[%s9211_s30 + $0xb24] sm:$0xf] }
 0x22c   : > { %5150 = vmatpush.bf16.msrb.mxu0 %v6737_v33  ;;  %v7086_v33 = vld [vmem:[%s9211_s30 + $0xbd8] sm:$0xf0]  ;;  %v8633_v14 = vld [vmem:[%s9211_s30 + $0xba4] sm:$0xf] }
 0x22d   : > { %5163 = vmatpush.bf16.msrb.mxu1 %v6801_v0  ;;  %v8671_v0 = vld [vmem:[%s9211_s30 + $0xcd4] sm:$0xf]  ;;  %v7089_v2 = vor.u32 %v8639_v58, %v7086_v33  ;;  %v7065_v59 = vor.u32 %v8633_v14, %v7062_v27 }
 0x22e   : > { %5176 = vmatpush.bf16.msrb.mxu2 %v6865_v29  ;;  %v7214_v29 = vld [vmem:[%s9211_s30 + $0xcd8] sm:$0xf0] }
 0x22f   : > { %5189 = vmatpush.bf16.msrb.mxu3 %v6929_v36  ;;  %v7014_v36 = vld [vmem:[%s9211_s30 + $0xb48] sm:$0xf0] }
 0x230   : > { %5151 = vmatpush.bf16.msrb.mxu0 %v6729_v4  ;;  %v7017_v47 = vor.u32 %v8621_v6, %v7014_v36  ;;  %v4945_v12 = vpop.f32.mrf.mxu0  ;;  %v8619_v4 = vld [vmem:[%s9211_s30 + $0xb34] sm:$0xf]  ;;  %v7054_v6 = vld [vmem:[%s9211_s30 + $0xb98] sm:$0xf0] }
 0x231   : > { %5164 = vmatpush.bf16.msrb.mxu1 %v6793_v23  ;;  %v4946_v5 = vadd.f32 %v4945_v12, %v10408_v46  ;;  %v4958_v23 = vpop.f32.mrf.mxu1  ;;  %v7009_v17 = vor.u32 %v8619_v4, %v7006_v52  ;;  %v7073_v46 = vor.u32 %v8635_v15, %v7070_v55  ;;  %v8647_v36 = vld [vmem:[%s9211_s30 + $0xc14] sm:$0xf]  ;;  %v8629_v12 = vld [vmem:[%s9211_s30 + $0xb84] sm:$0xf]  ;;  %v7110_v15 = vld [vmem:[%s9211_s30 + $0xc08] sm:$0xf0] }
 0x232   : > { %5177 = vmatpush.bf16.msrb.mxu2 %v6857_v7  ;;  %v8691_v55 = vld [vmem:[%s9211_s30 + $0xd74] sm:$0xf] }
 0x233   : > { %5190 = vmatpush.bf16.msrb.mxu3 %v6921_v22  ;;  %5152 = vmatmul.bf16.vlgmr.msrb.gmra.mxu0 %v9618_v19  ;;  %v7025_v19 = vor.u32 %v8623_v56, %v7022_v21  ;;  %v7134_v22 = vld [vmem:[%s9211_s30 + $0xc38] sm:$0xf0]  ;;  %v8665_v56 = vld [vmem:[%s9211_s30 + $0xca4] sm:$0xf]  ;;  %v7190_v21 = vld [vmem:[%s9211_s30 + $0xca8] sm:$0xf0] }
 0x234   : > { %5196 = vmatpush.bf16.msra.mxu0 %v7041_v16  ;;  %5165 = vmatmul.bf16.vlgmr.msrb.gmra.mxu1 %v9627_v34  ;;  %v7217_v34 = vor.u32 %v8671_v0, %v7214_v29  ;;  %v8667_v16 = vld [vmem:[%s9211_s30 + $0xcb4] sm:$0xf]  ;;  %v7137_v11 = vor.u32 %v8651_v8, %v7134_v22  ;;  %v6990_v29 = vld [vmem:[%s9211_s30 + $0xb18] sm:$0xf0] }
 0x235   : > { %5209 = vmatpush.bf16.msra.mxu1 %v7105_v24  ;;  %5178 = vmatmul.bf16.vlgmr.msrb.gmra.mxu2 %v9692_v44  ;;  %v8637_v44 = vld [vmem:[%s9211_s30 + $0xbc4] sm:$0xf]  ;;  %v7198_v24 = vld [vmem:[%s9211_s30 + $0xcb8] sm:$0xf0]  ;;  %v8615_v0 = vld [vmem:[%s9211_s30 + $0xb14] sm:$0xf] }
 0x236   : > { %5222 = vmatpush.bf16.msra.mxu2 %v7169_v31  ;;  %5191 = vmatmul.bf16.vlgmr.msrb.gmra.mxu3 %v9704_v60  ;;  %v7206_v60 = vld [vmem:[%s9211_s30 + $0xcc8] sm:$0xf0]  ;;  %v7081_v43 = vor.u32 %v8637_v44, %v7078_v13  ;;  %v4959_v31 = vadd.f32 %v4958_v23, %v4946_v5  ;;  %v7201_v53 = vor.u32 %v8667_v16, %v7198_v24  ;;  %v7118_v44 = vld [vmem:[%s9211_s30 + $0xc18] sm:$0xf0]  ;;  %v8661_v5 = vld [vmem:[%s9211_s30 + $0xc84] sm:$0xf] }
 0x237   : > { %5235 = vmatpush.bf16.msra.mxu3 %v7233_v39  ;;  %v7209_v7 = vor.u32 %v8669_v38, %v7206_v60  ;;  %v6998_v39 = vld [vmem:[%s9211_s30 + $0xb28] sm:$0xf0]  ;;  %v7182_v13 = vld [vmem:[%s9211_s30 + $0xc98] sm:$0xf0]  ;;  %v6993_v25 = vor.u32 %v8615_v0, %v6990_v29  ;;  %v8707_v22 = vld [vmem:[%s9211_s30 + $0xdf4] sm:$0xf] }
 0x238   : > { %5197 = vmatpush.bf16.msra.mxu0 %v7033_v18  ;;  %v4971_v45 = vpop.f32.mrf.mxu2  ;;  %v7126_v18 = vld [vmem:[%s9211_s30 + $0xc28] sm:$0xf0]  ;;  %v7001_v58 = vor.u32 %v8617_v30, %v6998_v39  ;;  %v4947_v33 = vpop.f32.mrf.mxu0  ;;  %v7294_v8 = vld [vmem:[%s9211_s30 + $0xd78] sm:$0xf0]  ;;  %v8739_v30 = vld [vmem:[%s9211_s30 + $0xef4] sm:$0xf] }
 0x239   : > { %5210 = vmatpush.bf16.msra.mxu1 %v7097_v54  ;;  %v4972_v54 = vadd.f32 %v4971_v45, %v4959_v31  ;;  %v7129_v35 = vor.u32 %v8649_v57, %v7126_v18  ;;  %v6982_v38 = vld [vmem:[%s9211_s30 + $0xb08] sm:$0xf0]  ;;  %v7358_v24 = vld [vmem:[%s9211_s30 + $0xdf8] sm:$0xf0]  ;;  %v8723_v31 = vld [vmem:[%s9211_s30 + $0xe74] sm:$0xf]  ;;  %v7297_v45 = vor.u32 %v8691_v55, %v7294_v8 }
 0x23a   : > { %5223 = vmatpush.bf16.msra.mxu2 %v7161_v10  ;;  %v4984_v10 = vpop.f32.mrf.mxu3  ;;  %v7174_v23 = vld [vmem:[%s9211_s30 + $0xc88] sm:$0xf0]  ;;  %v6985_v16 = vor.u32 %v8613_v20, %v6982_v38  ;;  %v7486_v39 = vld [vmem:[%s9211_s30 + $0xef8] sm:$0xf0]  ;;  %v8689_v57 = vld [vmem:[%s9211_s30 + $0xd64] sm:$0xf] }
 0x23b   : > { %5236 = vmatpush.bf16.msra.mxu3 %v7225_v40  ;;  %v10479_v40 = vadd.f32 %v4984_v10, %v4972_v54  ;;  %v7177_v14 = vor.u32 %v8661_v5, %v7174_v23  ;;  %v7286_v18 = vld [vmem:[%s9211_s30 + $0xd68] sm:$0xf0]  ;;  %v8705_v54 = vld [vmem:[%s9211_s30 + $0xde4] sm:$0xf]  ;;  %v7489_v10 = vor.u32 %v8739_v30, %v7486_v39  ;;  %v8683_v8 = vld [vmem:[%s9211_s30 + $0xd34] sm:$0xf] }
 0x23c   : > { %5198 = vmatpush.bf16.msra.mxu0 %v7025_v19  ;;  %v8631_v19 = vld [vmem:[%s9211_s30 + $0xb94] sm:$0xf]  ;;  %v8737_v33 = vld [vmem:[%s9211_s30 + $0xee4] sm:$0xf]  ;;  %v7454_v30 = vld [vmem:[%s9211_s30 + $0xeb8] sm:$0xf0] }
 0x23d   : > { %5211 = vmatpush.bf16.msra.mxu1 %v7089_v2  ;;  %v4960_v2 = vpop.f32.mrf.mxu1  ;;  %v7057_v60 = vor.u32 %v8631_v19, %v7054_v6  ;;  %v8687_v19 = vld [vmem:[%s9211_s30 + $0xd54] sm:$0xf] }
 0x23e   : > { %5224 = vmatpush.bf16.msra.mxu2 %v7153_v1  ;;  %v7193_v1 = vor.u32 %v8665_v56, %v7190_v21  ;;  %v7350_v56 = vld [vmem:[%s9211_s30 + $0xde8] sm:$0xf0]  ;;  %v8721_v21 = vld [vmem:[%s9211_s30 + $0xe64] sm:$0xf]  ;;  %v7278_v2 = vld [vmem:[%s9211_s30 + $0xd58] sm:$0xf0] }
 0x23f   : > { %5237 = vmatpush.bf16.msra.mxu3 %v7217_v34  ;;  %v8663_v34 = vld [vmem:[%s9211_s30 + $0xc94] sm:$0xf]  ;;  %v7353_v0 = vor.u32 %v8705_v54, %v7350_v56  ;;  %v8713_v56 = vld [vmem:[%s9211_s30 + $0xe24] sm:$0xf] }
 0x240   : > { %5199 = vmatpush.bf16.msra.mxu0 %v7017_v47  ;;  %v7121_v47 = vor.u32 %v8647_v36, %v7118_v44  ;;  %v4973_v4 = vpop.f32.mrf.mxu2  ;;  %v7185_v52 = vor.u32 %v8663_v34, %v7182_v13  ;;  %v7342_v36 = vld [vmem:[%s9211_s30 + $0xdd8] sm:$0xf0]  ;;  %v8719_v44 = vld [vmem:[%s9211_s30 + $0xe54] sm:$0xf] }
 0x241   : > { %5212 = vmatpush.bf16.msra.mxu1 %v7081_v43  ;;  %v7046_v43 = vld [vmem:[%s9211_s30 + $0xb88] sm:$0xf0]  ;;  %v7406_v34 = vld [vmem:[%s9211_s30 + $0xe58] sm:$0xf0]  ;;  %v8735_v13 = vld [vmem:[%s9211_s30 + $0xed4] sm:$0xf] }
 0x242   : > { %5225 = vmatpush.bf16.msra.mxu2 %v7145_v28  ;;  %v8645_v28 = vld [vmem:[%s9211_s30 + $0xc04] sm:$0xf]  ;;  %v7409_v38 = vor.u32 %v8719_v44, %v7406_v34  ;;  %v7246_v44 = vld [vmem:[%s9211_s30 + $0xd18] sm:$0xf0]  ;;  %v8695_v34 = vld [vmem:[%s9211_s30 + $0xd94] sm:$0xf] }
 0x243   : > { %5238 = vmatpush.bf16.msra.mxu3 %v7209_v7  ;;  %v4986_v7 = vpop.f32.mrf.mxu3  ;;  %v8733_v4 = vld [vmem:[%s9211_s30 + $0xec4] sm:$0xf] }
 0x244   : > { %5200 = vmatpush.bf16.msra.mxu0 %v7009_v17  ;;  %v7422_v17 = vld [vmem:[%s9211_s30 + $0xe78] sm:$0xf0] }
 0x245   : > { %5213 = vmatpush.bf16.msra.mxu1 %v7073_v46  ;;  %v7049_v46 = vor.u32 %v8629_v12, %v7046_v43  ;;  %v7425_v27 = vor.u32 %v8723_v31, %v7422_v17  ;;  %v7334_v12 = vld [vmem:[%s9211_s30 + $0xdc8] sm:$0xf0]  ;;  %v8717_v43 = vld [vmem:[%s9211_s30 + $0xe44] sm:$0xf]  ;;  %v7326_v17 = vld [vmem:[%s9211_s30 + $0xdb8] sm:$0xf0] }
 0x246   : > { %5226 = vmatpush.bf16.msra.mxu2 %v7137_v11  ;;  %v7113_v11 = vor.u32 %v8645_v28, %v7110_v15  ;;  %v7398_v28 = vld [vmem:[%s9211_s30 + $0xe48] sm:$0xf0] }
 0x247   : > { %5239 = vmatpush.bf16.msra.mxu3 %v7201_v53  ;;  %v7361_v53 = vor.u32 %v8707_v22, %v7358_v24  ;;  %v7401_v55 = vor.u32 %v8717_v43, %v7398_v28  ;;  %v7262_v22 = vld [vmem:[%s9211_s30 + $0xd38] sm:$0xf0]  ;;  %v8693_v28 = vld [vmem:[%s9211_s30 + $0xd84] sm:$0xf] }
 0x248   : > { %5201 = vmatpush.bf16.msra.mxu0 %v7001_v58  ;;  %v7414_v58 = vld [vmem:[%s9211_s30 + $0xe68] sm:$0xf0]  ;;  %v7265_v39 = vor.u32 %v8683_v8, %v7262_v22  ;;  %v7550_v8 = vld [vmem:[%s9211_s30 + $0xf78] sm:$0xf0]  ;;  %v8771_v22 = vld [vmem:[%s9211_s30 + $0xff4] sm:$0xf] }
 0x249   : > { %5214 = vmatpush.bf16.msra.mxu1 %v7065_v59  ;;  %v7478_v59 = vld [vmem:[%s9211_s30 + $0xee8] sm:$0xf0]  ;;  %v7417_v29 = vor.u32 %v8721_v21, %v7414_v58 }
 0x24a   : > { %5227 = vmatpush.bf16.msra.mxu2 %v7129_v35  ;;  %v7289_v35 = vor.u32 %v8689_v57, %v7286_v18  ;;  %v7481_v6 = vor.u32 %v8737_v33, %v7478_v59  ;;  %v8697_v57 = vld [vmem:[%s9211_s30 + $0xda4] sm:$0xf]  ;;  %v7382_v21 = vld [vmem:[%s9211_s30 + $0xe28] sm:$0xf0] }
 0x24b   : > { %5240 = vmatpush.bf16.msra.mxu3 %v7193_v1  ;;  %v8703_v1 = vld [vmem:[%s9211_s30 + $0xdd4] sm:$0xf]  ;;  %v8729_v59 = vld [vmem:[%s9211_s30 + $0xea4] sm:$0xf] }
 0x24c   : > { %5202 = vmatpush.bf16.msra.mxu0 %v6993_v25  ;;  %v7470_v25 = vld [vmem:[%s9211_s30 + $0xed8] sm:$0xf0]  ;;  %v7345_v20 = vor.u32 %v8703_v1, %v7342_v36  ;;  %v8679_v36 = vld [vmem:[%s9211_s30 + $0xd14] sm:$0xf] }
 0x24d   : > { %5215 = vmatpush.bf16.msra.mxu1 %v7057_v60  ;;  %v8685_v60 = vld [vmem:[%s9211_s30 + $0xd44] sm:$0xf] }
 0x24e   : > { %5228 = vmatpush.bf16.msra.mxu2 %v7121_v47  ;;  %v7270_v47 = vld [vmem:[%s9211_s30 + $0xd48] sm:$0xf0] }
 0x24f   : > { %5241 = vmatpush.bf16.msra.mxu3 %v7185_v52  ;;  %v7462_v52 = vld [vmem:[%s9211_s30 + $0xec8] sm:$0xf0]  ;;  %v7273_v5 = vor.u32 %v8685_v60, %v7270_v47  ;;  %v7438_v60 = vld [vmem:[%s9211_s30 + $0xe98] sm:$0xf0]  ;;  %v7249_v47 = vor.u32 %v8679_v36, %v7246_v44 }
 0x250   : > { %5203 = vmatpush.bf16.msra.mxu0 %v6985_v16  ;;  %v8699_v16 = vld [vmem:[%s9211_s30 + $0xdb4] sm:$0xf]  ;;  %v7465_v24 = vor.u32 %v8733_v4, %v7462_v52  ;;  %v8709_v4 = vld [vmem:[%s9211_s30 + $0xe04] sm:$0xf]  ;;  %v7598_v44 = vld [vmem:[%s9211_s30 + $0xfd8] sm:$0xf0] }
 0x251   : > { %5216 = vmatpush.bf16.msra.mxu1 %v7049_v46  ;;  %v5010_v23 = vpop.f32.mrf.mxu1  ;;  %v8715_v46 = vld [vmem:[%s9211_s30 + $0xe34] sm:$0xf] }
 0x252   : > { %5229 = vmatpush.bf16.msra.mxu2 %v7113_v11  ;;  %v8731_v11 = vld [vmem:[%s9211_s30 + $0xeb4] sm:$0xf] }
 0x253   : > { %5242 = vmatpush.bf16.msra.mxu3 %v7177_v14  ;;  %5204 = vmatmul.bf16.vlgmr.msra.gmra.mxu0 %v9697_v49  ;;  %v7281_v49 = vor.u32 %v8687_v19, %v7278_v2  ;;  %v7329_v14 = vor.u32 %v8699_v16, %v7326_v17  ;;  %v7457_v18 = vor.u32 %v8731_v11, %v7454_v30  ;;  %v8787_v17 = vld [vmem:[%s9211_s30 + $0x1074] sm:$0xf] }
 0x254   : > { %5248 = vmatpush.bf16.msrb.mxu0 %v7297_v45  ;;  %5217 = vmatmul.bf16.vlgmr.msra.gmra.mxu1 %v9706_v61  ;;  %v7473_v61 = vor.u32 %v8735_v13, %v7470_v25  ;;  %v7310_v25 = vld [vmem:[%s9211_s30 + $0xd98] sm:$0xf0]  ;;  %v8803_v30 = vld [vmem:[%s9211_s30 + $0x10f4] sm:$0xf] }
 0x255   : > { %5261 = vmatpush.bf16.msrb.mxu1 %v7361_v53  ;;  %5230 = vmatmul.bf16.vlgmr.msra.gmra.mxu2 %v9772_v37  ;;  %v8701_v37 = vld [vmem:[%s9211_s30 + $0xdc4] sm:$0xf] }
 0x256   : > { %5274 = vmatpush.bf16.msrb.mxu2 %v7425_v27  ;;  %5243 = vmatmul.bf16.vlgmr.msra.gmra.mxu3 %v9784_v50  ;;  %v4997_v50 = vpop.f32.mrf.mxu0  ;;  %v7337_v7 = vor.u32 %v8701_v37, %v7334_v12  ;;  %v8681_v53 = vld [vmem:[%s9211_s30 + $0xd24] sm:$0xf]  ;;  %v7254_v27 = vld [vmem:[%s9211_s30 + $0xd28] sm:$0xf0]  ;;  %v7313_v12 = vor.u32 %v8695_v34, %v7310_v25  ;;  %v8783_v34 = vld [vmem:[%s9211_s30 + $0x1054] sm:$0xf] }
 0x257   : > { %5287 = vmatpush.bf16.msrb.mxu3 %v7489_v10  ;;  %v4998_v15 = vadd.f32 %v4997_v50, %v10479_v40  ;;  %v7390_v40 = vld [vmem:[%s9211_s30 + $0xe38] sm:$0xf0]  ;;  %v7318_v10 = vld [vmem:[%s9211_s30 + $0xda8] sm:$0xf0]  ;;  %v8677_v37 = vld [vmem:[%s9211_s30 + $0xd04] sm:$0xf] }
 0x258   : > { %5249 = vmatpush.bf16.msrb.mxu0 %v7289_v35  ;;  %v7393_v45 = vor.u32 %v8715_v46, %v7390_v40  ;;  %v5023_v54 = vpop.f32.mrf.mxu2  ;;  %v7446_v35 = vld [vmem:[%s9211_s30 + $0xea8] sm:$0xf0]  ;;  %v7321_v1 = vor.u32 %v8697_v57, %v7318_v10  ;;  %v7678_v46 = vld [vmem:[%s9211_s30 + $0x1078] sm:$0xf0]  ;;  %v8753_v57 = vld [vmem:[%s9211_s30 + $0xf64] sm:$0xf] }
 0x259   : > { %5262 = vmatpush.bf16.msrb.mxu1 %v7353_v0  ;;  %v5011_v31 = vadd.f32 %v5010_v23, %v4998_v15  ;;  %v5036_v33 = vpop.f32.mrf.mxu3  ;;  %v5012_v19 = vpop.f32.mrf.mxu1  ;;  %v7449_v13 = vor.u32 %v8729_v59, %v7446_v35  ;;  %v7302_v50 = vld [vmem:[%s9211_s30 + $0xd88] sm:$0xf0]  ;;  %v8799_v25 = vld [vmem:[%s9211_s30 + $0x10d4] sm:$0xf] }
 0x25a   : > { %5275 = vmatpush.bf16.msrb.mxu2 %v7417_v29  ;;  %v7257_v29 = vor.u32 %v8681_v53, %v7254_v27  ;;  %v7366_v15 = vld [vmem:[%s9211_s30 + $0xe08] sm:$0xf0]  ;;  %v7305_v40 = vor.u32 %v8693_v28, %v7302_v50  ;;  %v7681_v27 = vor.u32 %v8787_v17, %v7678_v46  ;;  %v8751_v19 = vld [vmem:[%s9211_s30 + $0xf54] sm:$0xf]  ;;  %v7710_v17 = vld [vmem:[%s9211_s30 + $0x10b8] sm:$0xf0] }
 0x25b   : > { %5288 = vmatpush.bf16.msrb.mxu3 %v7481_v6  ;;  %v5024_v58 = vadd.f32 %v5023_v54, %v5011_v31  ;;  %v7385_v6 = vor.u32 %v8713_v56, %v7382_v21  ;;  %v7430_v23 = vld [vmem:[%s9211_s30 + $0xe88] sm:$0xf0]  ;;  %v7614_v31 = vld [vmem:[%s9211_s30 + $0xff8] sm:$0xf0]  ;;  %v7369_v11 = vor.u32 %v8709_v4, %v7366_v15  ;;  %v8769_v54 = vld [vmem:[%s9211_s30 + $0xfe4] sm:$0xf] }
 0x25c   : > { %5250 = vmatpush.bf16.msrb.mxu0 %v7281_v49  ;;  %v8711_v49 = vld [vmem:[%s9211_s30 + $0xe14] sm:$0xf]  ;;  %v7617_v53 = vor.u32 %v8771_v22, %v7614_v31  ;;  %v7606_v56 = vld [vmem:[%s9211_s30 + $0xfe8] sm:$0xf0]  ;;  %v8785_v21 = vld [vmem:[%s9211_s30 + $0x1064] sm:$0xf] }
 0x25d   : > { %5263 = vmatpush.bf16.msrb.mxu1 %v7345_v20  ;;  %v10550_v2 = vadd.f32 %v5036_v33, %v5024_v58  ;;  %v7374_v20 = vld [vmem:[%s9211_s30 + $0xe18] sm:$0xf0]  ;;  %v7670_v58 = vld [vmem:[%s9211_s30 + $0x1068] sm:$0xf0]  ;;  %v8801_v33 = vld [vmem:[%s9211_s30 + $0x10e4] sm:$0xf] }
 0x25e   : > { %5276 = vmatpush.bf16.msrb.mxu2 %v7409_v38  ;;  %v4999_v0 = vpop.f32.mrf.mxu0  ;;  %v8727_v38 = vld [vmem:[%s9211_s30 + $0xe94] sm:$0xf]  ;;  %v7377_v43 = vor.u32 %v8711_v49, %v7374_v20  ;;  %v7734_v59 = vld [vmem:[%s9211_s30 + $0x10e8] sm:$0xf0]  ;;  %v7726_v49 = vld [vmem:[%s9211_s30 + $0x10d8] sm:$0xf0] }
 0x25f   : > { %5289 = vmatpush.bf16.msrb.mxu3 %v7473_v61  ;;  %v7238_v61 = vld [vmem:[%s9211_s30 + $0xd08] sm:$0xf0]  ;;  %v7441_v52 = vor.u32 %v8727_v38, %v7438_v60  ;;  %v7609_v0 = vor.u32 %v8769_v54, %v7606_v56  ;;  %v7737_v36 = vor.u32 %v8801_v33, %v7734_v59  ;;  %v8749_v60 = vld [vmem:[%s9211_s30 + $0xf44] sm:$0xf]  ;;  %v8795_v31 = vld [vmem:[%s9211_s30 + $0x10b4] sm:$0xf] }
 0x260   : > { %5251 = vmatpush.bf16.msrb.mxu0 %v7273_v5  ;;  %v8725_v5 = vld [vmem:[%s9211_s30 + $0xe84] sm:$0xf]  ;;  %v7718_v28 = vld [vmem:[%s9211_s30 + $0x10c8] sm:$0xf0] }
 0x261   : > { %5264 = vmatpush.bf16.msrb.mxu1 %v7337_v7  ;;  %v5025_v7 = vpop.f32.mrf.mxu2  ;;  %v5038_v16 = vpop.f32.mrf.mxu3  ;;  %v8793_v56 = vld [vmem:[%s9211_s30 + $0x10a4] sm:$0xf] }
 0x262   : > { %5277 = vmatpush.bf16.msrb.mxu2 %v7401_v55  ;;  %v8755_v55 = vld [vmem:[%s9211_s30 + $0xf74] sm:$0xf]  ;;  %v7518_v7 = vld [vmem:[%s9211_s30 + $0xf38] sm:$0xf0] }
 0x263   : > { %5290 = vmatpush.bf16.msrb.mxu3 %v7465_v24  ;;  %v7241_v24 = vor.u32 %v8677_v37, %v7238_v61  ;;  %v7590_v37 = vld [vmem:[%s9211_s30 + $0xfc8] sm:$0xf0]  ;;  %v8781_v61 = vld [vmem:[%s9211_s30 + $0x1044] sm:$0xf]  ;;  %v7582_v16 = vld [vmem:[%s9211_s30 + $0xfb8] sm:$0xf0] }
 0x264   : > { %5252 = vmatpush.bf16.msrb.mxu0 %v7265_v39  ;;  %v7742_v39 = vld [vmem:[%s9211_s30 + $0x10f8] sm:$0xf0] }
 0x265   : > { %5265 = vmatpush.bf16.msrb.mxu1 %v7329_v14  ;;  %v7433_v14 = vor.u32 %v8725_v5, %v7430_v23  ;;  %v7745_v10 = vor.u32 %v8803_v30, %v7742_v39  ;;  %v8747_v23 = vld [vmem:[%s9211_s30 + $0xf34] sm:$0xf]  ;;  %v8745_v30 = vld [vmem:[%s9211_s30 + $0xf24] sm:$0xf]  ;;  %v7510_v39 = vld [vmem:[%s9211_s30 + $0xf28] sm:$0xf0] }
 0x266   : > { %5278 = vmatpush.bf16.msrb.mxu2 %v7393_v45  ;;  %v7553_v45 = vor.u32 %v8755_v55, %v7550_v8  ;;  %v8763_v55 = vld [vmem:[%s9211_s30 + $0xfb4] sm:$0xf]  ;;  %v7521_v46 = vor.u32 %v8747_v23, %v7518_v7  ;;  %v7513_v33 = vor.u32 %v8745_v30, %v7510_v39  ;;  %v7870_v23 = vld [vmem:[%s9211_s30 + $0x11f8] sm:$0xf0]  ;;  %v8833_v30 = vld [vmem:[%s9211_s30 + $0x11e4] sm:$0xf] }
 0x267   : > { %5291 = vmatpush.bf16.msrb.mxu3 %v7457_v18  ;;  %v7542_v18 = vld [vmem:[%s9211_s30 + $0xf68] sm:$0xf0]  ;;  %v8851_v7 = vld [vmem:[%s9211_s30 + $0x1274] sm:$0xf] }
 0x268   : > { %5253 = vmatpush.bf16.msrb.mxu0 %v7257_v29  ;;  %v7545_v35 = vor.u32 %v8753_v57, %v7542_v18  ;;  %v7673_v29 = vor.u32 %v8785_v21, %v7670_v58  ;;  %v8777_v57 = vld [vmem:[%s9211_s30 + $0x1024] sm:$0xf]  ;;  %v7638_v18 = vld [vmem:[%s9211_s30 + $0x1028] sm:$0xf0] }
 0x269   : > { %5266 = vmatpush.bf16.msrb.mxu1 %v7321_v1  ;;  %v7534_v1 = vld [vmem:[%s9211_s30 + $0xf58] sm:$0xf0]  ;;  %v7702_v21 = vld [vmem:[%s9211_s30 + $0x10a8] sm:$0xf0] }
 0x26a   : > { %5279 = vmatpush.bf16.msrb.mxu2 %v7385_v6  ;;  %v8767_v6 = vld [vmem:[%s9211_s30 + $0xfd4] sm:$0xf] }
 0x26b   : > { %5292 = vmatpush.bf16.msrb.mxu3 %v7449_v13  ;;  %v7662_v13 = vld [vmem:[%s9211_s30 + $0x1058] sm:$0xf0]  ;;  %v7601_v20 = vor.u32 %v8767_v6, %v7598_v44  ;;  %v8759_v6 = vld [vmem:[%s9211_s30 + $0xf94] sm:$0xf] }
 0x26c   : > { %5254 = vmatpush.bf16.msrb.mxu0 %v7249_v47  ;;  %v7665_v38 = vor.u32 %v8783_v34, %v7662_v13  ;;  %v7526_v47 = vld [vmem:[%s9211_s30 + $0xf48] sm:$0xf0]  ;;  %v7566_v44 = vld [vmem:[%s9211_s30 + $0xf98] sm:$0xf0]  ;;  %v8775_v34 = vld [vmem:[%s9211_s30 + $0x1014] sm:$0xf] }
 0x26d   : > { %5267 = vmatpush.bf16.msrb.mxu1 %v7313_v12  ;;  %v7654_v12 = vld [vmem:[%s9211_s30 + $0x1048] sm:$0xf0]  ;;  %v7529_v4 = vor.u32 %v8749_v60, %v7526_v47  ;;  %v7630_v13 = vld [vmem:[%s9211_s30 + $0x1018] sm:$0xf0]  ;;  %v7569_v60 = vor.u32 %v8759_v6, %v7566_v44  ;;  %v8813_v44 = vld [vmem:[%s9211_s30 + $0x1144] sm:$0xf] }
 0x26e   : > { %5280 = vmatpush.bf16.msrb.mxu2 %v7377_v43  ;;  %v8797_v43 = vld [vmem:[%s9211_s30 + $0x10c4] sm:$0xf]  ;;  %v7657_v5 = vor.u32 %v8781_v61, %v7654_v12  ;;  %v7633_v47 = vor.u32 %v8775_v34, %v7630_v13  ;;  %v7622_v12 = vld [vmem:[%s9211_s30 + $0x1008] sm:$0xf0] }
 0x26f   : > { %5293 = vmatpush.bf16.msrb.mxu3 %v7441_v52  ;;  %v7721_v8 = vor.u32 %v8797_v43, %v7718_v28  ;;  %v7686_v43 = vld [vmem:[%s9211_s30 + $0x1088] sm:$0xf0] }
 0x270   : > { %5255 = vmatpush.bf16.msrb.mxu0 %v7241_v24  ;;  %v8779_v24 = vld [vmem:[%s9211_s30 + $0x1034] sm:$0xf]  ;;  %v7782_v34 = vld [vmem:[%s9211_s30 + $0x1148] sm:$0xf0] }
 0x271   : > { %5268 = vmatpush.bf16.msrb.mxu1 %v7305_v40  ;;  %v5062_v52 = vpop.f32.mrf.mxu1  ;;  %v7585_v40 = vor.u32 %v8763_v55, %v7582_v16  ;;  %v7934_v55 = vld [vmem:[%s9211_s30 + $0x1278] sm:$0xf0]  ;;  %v8867_v16 = vld [vmem:[%s9211_s30 + $0x12f4] sm:$0xf]  ;;  %v7846_v13 = vld [vmem:[%s9211_s30 + $0x11c8] sm:$0xf0] }
 0x272   : > { %5281 = vmatpush.bf16.msrb.mxu2 %v7369_v11 }
 0x273   : > { %5294 = vmatpush.bf16.msrb.mxu3 %v7433_v14  ;;  %5256 = vmatmul.bf16.vlgmr.msrb.gmra.mxu0 %v9777_v42  ;;  %v7537_v42 = vor.u32 %v8751_v19, %v7534_v1  ;;  %v8761_v14 = vld [vmem:[%s9211_s30 + $0xfa4] sm:$0xf]  ;;  %v8743_v19 = vld [vmem:[%s9211_s30 + $0xf14] sm:$0xf]  ;;  %v7502_v1 = vld [vmem:[%s9211_s30 + $0xf18] sm:$0xf0] }
 0x274   : > { %5300 = vmatpush.bf16.msra.mxu0 %v7553_v45  ;;  %5269 = vmatmul.bf16.vlgmr.msrb.gmra.mxu1 %v9786_v51  ;;  %v7729_v51 = vor.u32 %v8799_v25, %v7726_v49  ;;  %v7713_v45 = vor.u32 %v8795_v31, %v7710_v17  ;;  %v8791_v25 = vld [vmem:[%s9211_s30 + $0x1094] sm:$0xf]  ;;  %v7694_v49 = vld [vmem:[%s9211_s30 + $0x1098] sm:$0xf0] }
 0x275   : > { %5313 = vmatpush.bf16.msra.mxu1 %v7617_v53  ;;  %5282 = vmatmul.bf16.vlgmr.msrb.gmra.mxu2 %v9852_v41  ;;  %v8765_v41 = vld [vmem:[%s9211_s30 + $0xfc4] sm:$0xf]  ;;  %v7697_v61 = vor.u32 %v8791_v25, %v7694_v49  ;;  %v7910_v49 = vld [vmem:[%s9211_s30 + $0x1248] sm:$0xf0] }
 0x276   : > { %5326 = vmatpush.bf16.msra.mxu2 %v7681_v27  ;;  %5295 = vmatmul.bf16.vlgmr.msrb.gmra.mxu3 %v9864_v62  ;;  %v5049_v62 = vpop.f32.mrf.mxu0  ;;  %v7593_v15 = vor.u32 %v8765_v41, %v7590_v37  ;;  %v7574_v27 = vld [vmem:[%s9211_s30 + $0xfa8] sm:$0xf0]  ;;  %v8757_v41 = vld [vmem:[%s9211_s30 + $0xf84] sm:$0xf] }
 0x277   : > { %5339 = vmatpush.bf16.msra.mxu3 %v7745_v10  ;;  %v5050_v50 = vadd.f32 %v5049_v62, %v10550_v2  ;;  %v7646_v2 = vld [vmem:[%s9211_s30 + $0x1038] sm:$0xf0]  ;;  %v8773_v37 = vld [vmem:[%s9211_s30 + $0x1004] sm:$0xf] }
 0x278   : > { %5301 = vmatpush.bf16.msra.mxu0 %v7545_v35  ;;  %v7649_v11 = vor.u32 %v8779_v24, %v7646_v2  ;;  %v5075_v53 = vpop.f32.mrf.mxu2  ;;  %v8789_v62 = vld [vmem:[%s9211_s30 + $0x1084] sm:$0xf]  ;;  %v7998_v24 = vld [vmem:[%s9211_s30 + $0x12f8] sm:$0xf0] }
 0x279   : > { %5314 = vmatpush.bf16.msra.mxu1 %v7609_v0  ;;  %v5063_v22 = vadd.f32 %v5062_v52, %v5050_v50  ;;  %v5088_v10 = vpop.f32.mrf.mxu3  ;;  %v5064_v59 = vpop.f32.mrf.mxu1  ;;  %v7577_v0 = vor.u32 %v8761_v14, %v7574_v27  ;;  %v8819_v50 = vld [vmem:[%s9211_s30 + $0x1174] sm:$0xf]  ;;  %v7689_v2 = vor.u32 %v8789_v62, %v7686_v43  ;;  %v8001_v39 = vor.u32 %v8867_v16, %v7998_v24  ;;  %v7862_v14 = vld [vmem:[%s9211_s30 + $0x11e8] sm:$0xf0]  ;;  %v8865_v27 = vld [vmem:[%s9211_s30 + $0x12e4] sm:$0xf] }
 0x27a   : > { %5327 = vmatpush.bf16.msra.mxu2 %v7673_v29  ;;  %v7641_v29 = vor.u32 %v8777_v57, %v7638_v18  ;;  %v8835_v52 = vld [vmem:[%s9211_s30 + $0x11f4] sm:$0xf]  ;;  %v7990_v57 = vld [vmem:[%s9211_s30 + $0x12e8] sm:$0xf0]  ;;  %v7854_v59 = vld [vmem:[%s9211_s30 + $0x11d8] sm:$0xf0] }
 0x27b   : > { %5340 = vmatpush.bf16.msra.mxu3 %v7737_v36  ;;  %v5076_v54 = vadd.f32 %v5075_v53, %v5063_v22  ;;  %v7705_v36 = vor.u32 %v8793_v56, %v7702_v21  ;;  %v7625_v22 = vor.u32 %v8773_v37, %v7622_v12  ;;  %v7873_v17 = vor.u32 %v8835_v52, %v7870_v23  ;;  %v7926_v53 = vld [vmem:[%s9211_s30 + $0x1268] sm:$0xf0]  ;;  %v8815_v56 = vld [vmem:[%s9211_s30 + $0x1154] sm:$0xf]  ;;  %v7790_v21 = vld [vmem:[%s9211_s30 + $0x1158] sm:$0xf0] }
 0x27c   : > { %5302 = vmatpush.bf16.msra.mxu0 %v7537_v42  ;;  %v7505_v42 = vor.u32 %v8743_v19, %v7502_v1  ;;  %v8863_v19 = vld [vmem:[%s9211_s30 + $0x12d4] sm:$0xf]  ;;  %v7982_v1 = vld [vmem:[%s9211_s30 + $0x12d8] sm:$0xf0]  ;;  %v8845_v25 = vld [vmem:[%s9211_s30 + $0x1244] sm:$0xf] }
 0x27d   : > { %5315 = vmatpush.bf16.msra.mxu1 %v7601_v20  ;;  %v10621_v35 = vadd.f32 %v5088_v10, %v5076_v54  ;;  %v8741_v20 = vld [vmem:[%s9211_s30 + $0xf04] sm:$0xf]  ;;  %v7865_v54 = vor.u32 %v8833_v30, %v7862_v14  ;;  %v8811_v37 = vld [vmem:[%s9211_s30 + $0x1134] sm:$0xf]  ;;  %v7966_v52 = vld [vmem:[%s9211_s30 + $0x12b8] sm:$0xf0] }
 0x27e   : > { %5328 = vmatpush.bf16.msra.mxu2 %v7665_v38  ;;  %v5051_v58 = vpop.f32.mrf.mxu0  ;;  %v7494_v38 = vld [vmem:[%s9211_s30 + $0xf08] sm:$0xf0]  ;;  %v8827_v12 = vld [vmem:[%s9211_s30 + $0x11b4] sm:$0xf] }
 0x27f   : > { %5341 = vmatpush.bf16.msra.mxu3 %v7729_v51  ;;  %v7558_v51 = vld [vmem:[%s9211_s30 + $0xf88] sm:$0xf0]  ;;  %v8831_v58 = vld [vmem:[%s9211_s30 + $0x11d4] sm:$0xf] }
 0x280   : > { %5303 = vmatpush.bf16.msra.mxu0 %v7529_v4  ;;  %v5077_v28 = vpop.f32.mrf.mxu2  ;;  %v7806_v4 = vld [vmem:[%s9211_s30 + $0x1178] sm:$0xf0]  ;;  %v7857_v6 = vor.u32 %v8831_v58, %v7854_v59  ;;  %v7830_v24 = vld [vmem:[%s9211_s30 + $0x11a8] sm:$0xf0] }
 0x281   : > { %5316 = vmatpush.bf16.msra.mxu1 %v7593_v15  ;;  %v5090_v15 = vpop.f32.mrf.mxu3  ;;  %v7809_v31 = vor.u32 %v8819_v50, %v7806_v4  ;;  %v7838_v28 = vld [vmem:[%s9211_s30 + $0x11b8] sm:$0xf0]  ;;  %v8843_v50 = vld [vmem:[%s9211_s30 + $0x1234] sm:$0xf] }
 0x282   : > { %5329 = vmatpush.bf16.msra.mxu2 %v7657_v5  ;;  %v7497_v5 = vor.u32 %v8741_v20, %v7494_v38  ;;  %v7974_v20 = vld [vmem:[%s9211_s30 + $0x12c8] sm:$0xf0]  ;;  %v8859_v4 = vld [vmem:[%s9211_s30 + $0x12b4] sm:$0xf]  ;;  %v7886_v58 = vld [vmem:[%s9211_s30 + $0x1218] sm:$0xf0] }
 0x283   : > { %5342 = vmatpush.bf16.msra.mxu3 %v7721_v8  ;;  %v7561_v8 = vor.u32 %v8757_v41, %v7558_v51  ;;  %v7913_v51 = vor.u32 %v8845_v25, %v7910_v49  ;;  %v7950_v59 = vld [vmem:[%s9211_s30 + $0x1298] sm:$0xf0]  ;;  %v8883_v49 = vld [vmem:[%s9211_s30 + $0x1374] sm:$0xf] }
 0x284   : > { %5304 = vmatpush.bf16.msra.mxu0 %v7521_v46  ;;  %v7937_v46 = vor.u32 %v8851_v7, %v7934_v55  ;;  %v8809_v7 = vld [vmem:[%s9211_s30 + $0x1124] sm:$0xf]  ;;  %v7766_v55 = vld [vmem:[%s9211_s30 + $0x1128] sm:$0xf0] }
 0x285   : > { %5317 = vmatpush.bf16.msra.mxu1 %v7585_v40  ;;  %v8817_v40 = vld [vmem:[%s9211_s30 + $0x1164] sm:$0xf] }
 0x286   : > { %5330 = vmatpush.bf16.msra.mxu2 %v7649_v11  ;;  %v7798_v11 = vld [vmem:[%s9211_s30 + $0x1168] sm:$0xf0] }
 0x287   : > { %5343 = vmatpush.bf16.msra.mxu3 %v7713_v45  ;;  %v8849_v45 = vld [vmem:[%s9211_s30 + $0x1264] sm:$0xf]  ;;  %v7801_v18 = vor.u32 %v8817_v40, %v7798_v11  ;;  %v7958_v11 = vld [vmem:[%s9211_s30 + $0x12a8] sm:$0xf0] }
 0x288   : > { %5305 = vmatpush.bf16.msra.mxu0 %v7513_v33  ;;  %v7929_v10 = vor.u32 %v8849_v45, %v7926_v53  ;;  %v7993_v33 = vor.u32 %v8865_v27, %v7990_v57  ;;  %v8857_v40 = vld [vmem:[%s9211_s30 + $0x12a4] sm:$0xf]  ;;  %v8807_v57 = vld [vmem:[%s9211_s30 + $0x1114] sm:$0xf] }
 0x289   : > { %5318 = vmatpush.bf16.msra.mxu1 %v7577_v0  ;;  %v8847_v0 = vld [vmem:[%s9211_s30 + $0x1254] sm:$0xf] }
 0x28a   : > { %5331 = vmatpush.bf16.msra.mxu2 %v7641_v29  ;;  %v7918_v29 = vld [vmem:[%s9211_s30 + $0x1258] sm:$0xf0] }
 0x28b   : > { %5344 = vmatpush.bf16.msra.mxu3 %v7705_v36  ;;  %v7921_v36 = vor.u32 %v8847_v0, %v7918_v29  ;;  %v8805_v29 = vld [vmem:[%s9211_s30 + $0x1104] sm:$0xf] }
 0x28c   : > { %5306 = vmatpush.bf16.msra.mxu0 %v7505_v42  ;;  %v8861_v42 = vld [vmem:[%s9211_s30 + $0x12c4] sm:$0xf] }
 0x28d   : > { %5319 = vmatpush.bf16.msra.mxu1 %v7569_v60  ;;  %v7785_v60 = vor.u32 %v8813_v44, %v7782_v34  ;;  %v7977_v62 = vor.u32 %v8861_v42, %v7974_v20  ;;  %v8837_v44 = vld [vmem:[%s9211_s30 + $0x1204] sm:$0xf]  ;;  %v8899_v42 = vld [vmem:[%s9211_s30 + $0x13f4] sm:$0xf] }
 0x28e   : > { %5332 = vmatpush.bf16.msra.mxu2 %v7633_v47 }
 0x28f   : > { %5345 = vmatpush.bf16.msra.mxu3 %v7697_v61  ;;  %v7774_v61 = vld [vmem:[%s9211_s30 + $0x1138] sm:$0xf0] }
 0x290   : > { %5307 = vmatpush.bf16.msra.mxu0 %v7497_v5  ;;  %v7777_v15 = vor.u32 %v8811_v37, %v7774_v61  ;;  %v7841_v5 = vor.u32 %v8827_v12, %v7838_v28  ;;  %v8931_v61 = vld [vmem:[%s9211_s30 + $0x14f4] sm:$0xf]  ;;  %v8254_v12 = vld [vmem:[%s9211_s30 + $0x14f8] sm:$0xf0] }
 0x291   : > { %5320 = vmatpush.bf16.msra.mxu1 %v7561_v8  ;;  %v5114_v47 = vpop.f32.mrf.mxu1  ;;  %v8825_v8 = vld [vmem:[%s9211_s30 + $0x11a4] sm:$0xf] }
 0x292   : > { %5333 = vmatpush.bf16.msra.mxu2 %v7625_v22  ;;  %v7969_v22 = vor.u32 %v8859_v4, %v7966_v52  ;;  %v7833_v53 = vor.u32 %v8825_v8, %v7830_v24  ;;  %v8054_v4 = vld [vmem:[%s9211_s30 + $0x1368] sm:$0xf0]  ;;  %v8897_v52 = vld [vmem:[%s9211_s30 + $0x13e4] sm:$0xf] }
 0x293   : > { %5346 = vmatpush.bf16.msra.mxu3 %v7689_v2  ;;  %5308 = vmatmul.bf16.vlgmr.msra.gmra.mxu0 %v9857_v48  ;;  %v7793_v48 = vor.u32 %v8815_v56, %v7790_v21  ;;  %v8841_v2 = vld [vmem:[%s9211_s30 + $0x1224] sm:$0xf]  ;;  %v7822_v56 = vld [vmem:[%s9211_s30 + $0x1198] sm:$0xf0]  ;;  %v8839_v21 = vld [vmem:[%s9211_s30 + $0x1214] sm:$0xf] }
 0x294   : > { %5352 = vmatpush.bf16.msrb.mxu0 %v7809_v31  ;;  %5321 = vmatmul.bf16.vlgmr.msra.gmra.mxu1 %v9866_v63  ;;  %v7985_v63 = vor.u32 %v8863_v19, %v7982_v1  ;;  %v7894_v31 = vld [vmem:[%s9211_s30 + $0x1228] sm:$0xf0] }
 0x295   : > { %5365 = vmatpush.bf16.msrb.mxu1 %v7873_v17  ;;  %5334 = vmatmul.bf16.vlgmr.msra.gmra.mxu2 %v9932_v26  ;;  %v8829_v26 = vld [vmem:[%s9211_s30 + $0x11c4] sm:$0xf]  ;;  %v7897_v27 = vor.u32 %v8841_v2, %v7894_v31  ;;  %v7750_v19 = vld [vmem:[%s9211_s30 + $0x1108] sm:$0xf0]  ;;  %v8879_v2 = vld [vmem:[%s9211_s30 + $0x1354] sm:$0xf] }
 0x296   : > { %5378 = vmatpush.bf16.msrb.mxu2 %v7937_v46  ;;  %5347 = vmatmul.bf16.vlgmr.msra.gmra.mxu3 %v9944_v32  ;;  %v5101_v32 = vpop.f32.mrf.mxu0  ;;  %v7849_v41 = vor.u32 %v8829_v26, %v7846_v13  ;;  %v7878_v26 = vld [vmem:[%s9211_s30 + $0x1208] sm:$0xf0]  ;;  %v8046_v31 = vld [vmem:[%s9211_s30 + $0x1358] sm:$0xf0] }
 0x297   : > { %5391 = vmatpush.bf16.msrb.mxu3 %v8001_v39  ;;  %v5102_v38 = vadd.f32 %v5101_v32, %v10621_v35  ;;  %v7902_v35 = vld [vmem:[%s9211_s30 + $0x1238] sm:$0xf0]  ;;  %v7769_v39 = vor.u32 %v8809_v7, %v7766_v55  ;;  %v7942_v13 = vld [vmem:[%s9211_s30 + $0x1288] sm:$0xf0]  ;;  %v7881_v37 = vor.u32 %v8837_v44, %v7878_v26  ;;  %v8929_v55 = vld [vmem:[%s9211_s30 + $0x14e4] sm:$0xf] }
 0x298   : > { %5353 = vmatpush.bf16.msrb.mxu0 %v7801_v18  ;;  %v7905_v23 = vor.u32 %v8843_v50, %v7902_v35  ;;  %v5127_v16 = vpop.f32.mrf.mxu2  ;;  %v7758_v18 = vld [vmem:[%s9211_s30 + $0x1118] sm:$0xf0]  ;;  %v8881_v35 = vld [vmem:[%s9211_s30 + $0x1364] sm:$0xf]  ;;  %v8182_v7 = vld [vmem:[%s9211_s30 + $0x1468] sm:$0xf0] }
 0x299   : > { %5366 = vmatpush.bf16.msrb.mxu1 %v7865_v54  ;;  %v5115_v43 = vadd.f32 %v5114_v47, %v5102_v38  ;;  %v5140_v46 = vpop.f32.mrf.mxu3  ;;  %v5116_v14 = vpop.f32.mrf.mxu1  ;;  %v8823_v54 = vld [vmem:[%s9211_s30 + $0x1194] sm:$0xf]  ;;  %v7761_v0 = vor.u32 %v8807_v57, %v7758_v18  ;;  %v8062_v32 = vld [vmem:[%s9211_s30 + $0x1378] sm:$0xf0]  ;;  %v7753_v38 = vor.u32 %v8805_v29, %v7750_v19  ;;  %v8246_v8 = vld [vmem:[%s9211_s30 + $0x14e8] sm:$0xf0] }
 0x29a   : > { %5379 = vmatpush.bf16.msrb.mxu2 %v7929_v10  ;;  %v7961_v10 = vor.u32 %v8857_v40, %v7958_v11  ;;  %v7825_v1 = vor.u32 %v8823_v54, %v7822_v56  ;;  %v8915_v47 = vld [vmem:[%s9211_s30 + $0x1474] sm:$0xf]  ;;  %v8110_v40 = vld [vmem:[%s9211_s30 + $0x13d8] sm:$0xf0]  ;;  %v10811_v14 = vld [vmem:[#allocation5_spill] sm:$0xff] }
 0x29b   : > { %5392 = vmatpush.bf16.msrb.mxu3 %v7993_v33  ;;  %v5128_v17 = vadd.f32 %v5127_v16, %v5115_v43  ;;  %v8855_v33 = vld [vmem:[%s9211_s30 + $0x1294] sm:$0xf]  ;;  %v8065_v43 = vor.u32 %v8883_v49, %v8062_v32  ;;  %v9011_v57 = vld.sshfl [vmem:[#allocation1 + $0x28] sm:$0xff pattern:$0x73625140] }
 0x29c   : > { %5354 = vmatpush.bf16.msrb.mxu0 %v7793_v48  ;;  %v7889_v48 = vor.u32 %v8839_v21, %v7886_v58  ;;  %v7953_v34 = vor.u32 %v8855_v33, %v7950_v59  ;;  %v8911_v11 = vld [vmem:[%s9211_s30 + $0x1454] sm:$0xf]  ;;  %v8038_v56 = vld [vmem:[%s9211_s30 + $0x1348] sm:$0xf0]  ;;  %v8893_v21 = vld [vmem:[%s9211_s30 + $0x13c4] sm:$0xf] }
 0x29d   : > { %5367 = vmatpush.bf16.msrb.mxu1 %v7857_v6  ;;  %v10692_v45 = vadd.f32 %v5140_v46, %v5128_v17  ;;  %v8821_v6 = vld [vmem:[%s9211_s30 + $0x1184] sm:$0xf]  ;;  %v8895_v17 = vld [vmem:[%s9211_s30 + $0x13d4] sm:$0xf]  ;;  %v8249_v46 = vor.u32 %v8929_v55, %v8246_v8  ;;  %v8102_v33 = vld [vmem:[%s9211_s30 + $0x13c8] sm:$0xf0] }
 0x29e   : > { %5380 = vmatpush.bf16.msrb.mxu2 %v7921_v36  ;;  %v5103_v30 = vpop.f32.mrf.mxu0  ;;  %v7814_v36 = vld [vmem:[%s9211_s30 + $0x1188] sm:$0xf0]  ;;  %v8113_v18 = vor.u32 %v8895_v17, %v8110_v40  ;;  %v8909_v59 = vld [vmem:[%s9211_s30 + $0x1444] sm:$0xf]  ;;  %v8105_v44 = vor.u32 %v8893_v21, %v8102_v33  ;;  %v8875_v26 = vld [vmem:[%s9211_s30 + $0x1334] sm:$0xf] }
 0x29f   : > { %5393 = vmatpush.bf16.msrb.mxu3 %v7985_v63  ;;  %v8853_v63 = vld [vmem:[%s9211_s30 + $0x1284] sm:$0xf]  ;;  %v8174_v30 = vld [vmem:[%s9211_s30 + $0x1458] sm:$0xf0]  ;;  %v8198_v33 = vld [vmem:[%s9211_s30 + $0x1488] sm:$0xf0] }
 0x2a0   : > { %5355 = vmatpush.bf16.msrb.mxu0 %v7785_v60  ;;  %v5129_v25 = vpop.f32.mrf.mxu2  ;;  %v8126_v60 = vld [vmem:[%s9211_s30 + $0x13f8] sm:$0xf0]  ;;  %v8177_v54 = vor.u32 %v8911_v11, %v8174_v30  ;;  %v8925_v19 = vld [vmem:[%s9211_s30 + $0x14c4] sm:$0xf]  ;;  %v8919_v11 = vld [vmem:[%s9211_s30 + $0x1494] sm:$0xf] }
 0x2a1   : > { %5368 = vmatpush.bf16.msrb.mxu1 %v7849_v41  ;;  %v5142_v20 = vpop.f32.mrf.mxu3  ;;  %v8190_v41 = vld [vmem:[%s9211_s30 + $0x1478] sm:$0xf0]  ;;  %v8129_v28 = vor.u32 %v8899_v42, %v8126_v60  ;;  %v8907_v42 = vld [vmem:[%s9211_s30 + $0x1434] sm:$0xf] }
 0x2a2   : > { %5381 = vmatpush.bf16.msrb.mxu2 %v7913_v51  ;;  %v7817_v51 = vor.u32 %v8821_v6, %v7814_v36  ;;  %v8193_v50 = vor.u32 %v8915_v47, %v8190_v41  ;;  %v8094_v32 = vld [vmem:[%s9211_s30 + $0x13b8] sm:$0xf0]  ;;  %v8923_v20 = vld [vmem:[%s9211_s30 + $0x14b4] sm:$0xf] }
 0x2a3   : > { %5394 = vmatpush.bf16.msrb.mxu3 %v7977_v62  ;;  %v7945_v62 = vor.u32 %v8853_v63, %v7942_v13  ;;  %v8030_v63 = vld [vmem:[%s9211_s30 + $0x1338] sm:$0xf0]  ;;  %v8891_v13 = vld [vmem:[%s9211_s30 + $0x13b4] sm:$0xf] }
 0x2a4   : > { %5356 = vmatpush.bf16.msrb.mxu0 %v7777_v15  ;;  %v8257_v15 = vor.u32 %v8931_v61, %v8254_v12  ;;  %v8033_v60 = vor.u32 %v8875_v26, %v8030_v63  ;;  %v8097_v47 = vor.u32 %v8891_v13, %v8094_v32  ;;  %v8889_v61 = vld [vmem:[%s9211_s30 + $0x13a4] sm:$0xf]  ;;  %v8078_v17 = vld [vmem:[%s9211_s30 + $0x1398] sm:$0xf0] }
 0x2a5   : > { %5369 = vmatpush.bf16.msrb.mxu1 %v7841_v5  ;;  %v8118_v5 = vld [vmem:[%s9211_s30 + $0x13e8] sm:$0xf0]  ;;  %v8142_v40 = vld [vmem:[%s9211_s30 + $0x1418] sm:$0xf0] }
 0x2a6   : > { %5382 = vmatpush.bf16.msrb.mxu2 %v7905_v23  ;;  %v8913_v23 = vld [vmem:[%s9211_s30 + $0x1464] sm:$0xf]  ;;  %v8121_v16 = vor.u32 %v8897_v52, %v8118_v5  ;;  %v8206_v30 = vld [vmem:[%s9211_s30 + $0x1498] sm:$0xf0] }
 0x2a7   : > { %5395 = vmatpush.bf16.msrb.mxu3 %v7969_v22  ;;  %v8057_v22 = vor.u32 %v8881_v35, %v8054_v4  ;;  %v8185_v24 = vor.u32 %v8913_v23, %v8182_v7  ;;  %v8921_v52 = vld [vmem:[%s9211_s30 + $0x14a4] sm:$0xf] }
 0x2a8   : > { %5357 = vmatpush.bf16.msrb.mxu0 %v7769_v39  ;;  %v9010_v39 = vld.sshfl [vmem:[#allocation1 + $0x20] sm:$0xff pattern:$0x73625140] }
 0x2a9   : > { %5370 = vmatpush.bf16.msrb.mxu1 %v7833_v53  ;;  %v8927_v53 = vld [vmem:[%s9211_s30 + $0x14d4] sm:$0xf] }
 0x2aa   : > { %5383 = vmatpush.bf16.msrb.mxu2 %v7897_v27  ;;  %v8238_v27 = vld [vmem:[%s9211_s30 + $0x14d8] sm:$0xf0] }
 0x2ab   : > { %5396 = vmatpush.bf16.msrb.mxu3 %v7961_v10  ;;  %v8877_v10 = vld [vmem:[%s9211_s30 + $0x1344] sm:$0xf]  ;;  %v8241_v58 = vor.u32 %v8927_v53, %v8238_v27 }
 0x2ac   : > { %5358 = vmatpush.bf16.msrb.mxu0 %v7761_v0  ;;  %v8166_v0 = vld [vmem:[%s9211_s30 + $0x1448] sm:$0xf0]  ;;  %v8041_v6 = vor.u32 %v8877_v10, %v8038_v56  ;;  %v8869_v27 = vld [vmem:[%s9211_s30 + $0x1304] sm:$0xf] }
 0x2ad   : > { %5371 = vmatpush.bf16.msrb.mxu1 %v7825_v1  ;;  %v8230_v1 = vld [vmem:[%s9211_s30 + $0x14c8] sm:$0xf0]  ;;  %v8901_v10 = vld [vmem:[%s9211_s30 + $0x1404] sm:$0xf] }
 0x2ae   : > { %5384 = vmatpush.bf16.msrb.mxu2 %v7889_v48  ;;  %v8233_v25 = vor.u32 %v8925_v19, %v8230_v1  ;;  %v8134_v56 = vld [vmem:[%s9211_s30 + $0x1408] sm:$0xf0] }
 0x2af   : > { %5397 = vmatpush.bf16.msrb.mxu3 %v7953_v34  ;;  %v8169_v34 = vor.u32 %v8909_v59, %v8166_v0  ;;  %v8137_v19 = vor.u32 %v8901_v10, %v8134_v56 }
 0x2b0   : > { %5359 = vmatpush.bf16.msrb.mxu0 %v7753_v38  ;;  %v5153_v29 = vpop.f32.mrf.mxu0  ;;  %v8222_v38 = vld [vmem:[%s9211_s30 + $0x14b8] sm:$0xf0] }
 0x2b1   : > { %5372 = vmatpush.bf16.msrb.mxu1 %v7817_v51  ;;  %v5154_v48 = vadd.f32 %v5153_v29, %v10692_v45  ;;  %v5166_v36 = vpop.f32.mrf.mxu1  ;;  %v8158_v45 = vld [vmem:[%s9211_s30 + $0x1438] sm:$0xf0]  ;;  %v8873_v51 = vld [vmem:[%s9211_s30 + $0x1324] sm:$0xf]  ;;  %v8225_v12 = vor.u32 %v8923_v20, %v8222_v38 }
 0x2b2   : > { %5385 = vmatpush.bf16.msrb.mxu2 %v7881_v37  ;;  %v8161_v41 = vor.u32 %v8907_v42, %v8158_v45  ;;  %v8022_v37 = vld [vmem:[%s9211_s30 + $0x1328] sm:$0xf0] }
 0x2b3   : > { %5398 = vmatpush.bf16.msrb.mxu3 %v7945_v62  ;;  %5360 = vmatmul.bf16.vlgmr.msrb.gmra.mxu0 %v9937_v9  ;;  %v8049_v9 = vor.u32 %v8879_v2, %v8046_v31  ;;  %v5167_v49 = vadd.f32 %v5166_v36, %v5154_v48  ;;  %v8025_v23 = vor.u32 %v8873_v51, %v8022_v37  ;;  %v8887_v2 = vld [vmem:[%s9211_s30 + $0x1394] sm:$0xf]  ;;  %v9012_v48 = vld.sshfl [vmem:[#allocation1 + $0x30] sm:$0xff pattern:$0x73625140] }
 0x2b4   : > { %5404 = vmatpush.bf16.msra.mxu0 %v8065_v43  ;;  %5373 = vmatmul.bf16.vlgmr.msrb.gmra.mxu1 %v10811_v14  ;;  %v8086_v43 = vld [vmem:[%s9211_s30 + $0x13a8] sm:$0xf0]  ;;  %v8081_v14 = vor.u32 %v8887_v2, %v8078_v17  ;;  %v9014_v36 = vld.sshfl [vmem:[#allocation1] sm:$0xff pattern:$0x73625140] }
 0x2b5   : > { %5417 = vmatpush.bf16.msra.mxu1 %v8129_v28  ;;  %5386 = vmatmul.bf16.vlgmr.msrb.gmra.mxu2 %v9010_v39  ;;  %v8905_v28 = vld [vmem:[%s9211_s30 + $0x1424] sm:$0xf]  ;;  %v8089_v8 = vor.u32 %v8889_v61, %v8086_v43 }
 0x2b6   : > { %5430 = vmatpush.bf16.msra.mxu2 %v8193_v50  ;;  %5399 = vmatmul.bf16.vlgmr.msrb.gmra.mxu3 %v9011_v57  ;;  %v8150_v50 = vld [vmem:[%s9211_s30 + $0x1428] sm:$0xf0] }
 0x2b7   : > { %5443 = vmatpush.bf16.msra.mxu3 %v8257_v15  ;;  %v8214_v15 = vld [vmem:[%s9211_s30 + $0x14a8] sm:$0xf0] }
 0x2b8   : > { %5405 = vmatpush.bf16.msra.mxu0 %v8057_v22  ;;  %v5179_v62 = vpop.f32.mrf.mxu2  ;;  %v5155_v5 = vpop.f32.mrf.mxu0  ;;  %v8153_v22 = vor.u32 %v8905_v28, %v8150_v50  ;;  %v8217_v31 = vor.u32 %v8921_v52, %v8214_v15  ;;  %v8006_v57 = vld [vmem:[%s9211_s30 + $0x1308] sm:$0xf0] }
 0x2b9   : > { %5418 = vmatpush.bf16.msra.mxu1 %v8121_v16  ;;  %v5180_v35 = vadd.f32 %v5179_v62, %v5167_v49  ;;  %v5192_v4 = vpop.f32.mrf.mxu3  ;;  %v5168_v7 = vpop.f32.mrf.mxu1  ;;  %v8871_v16 = vld [vmem:[%s9211_s30 + $0x1314] sm:$0xf]  ;;  %v8009_v0 = vor.u32 %v8869_v27, %v8006_v57 }
 0x2ba   : > { %5431 = vmatpush.bf16.msra.mxu2 %v8185_v24  ;;  %v8014_v24 = vld [vmem:[%s9211_s30 + $0x1318] sm:$0xf0] }
 0x2bb   : > { %5444 = vmatpush.bf16.msra.mxu3 %v8249_v46  ;;  %v5193_v55 = vadd.f32 %v5192_v4, %v5180_v35  ;;  %v8903_v46 = vld [vmem:[%s9211_s30 + $0x1414] sm:$0xf]  ;;  %v8017_v39 = vor.u32 %v8871_v16, %v8014_v24 }
 0x2bc   : > { %5406 = vmatpush.bf16.msra.mxu0 %v8049_v9  ;;  %v8145_v53 = vor.u32 %v8903_v46, %v8142_v40  ;;  %v8885_v9 = vld [vmem:[%s9211_s30 + $0x1384] sm:$0xf] }
 0x2bd   : > { %5419 = vmatpush.bf16.msra.mxu1 %v8113_v18  ;;  %v8209_v18 = vor.u32 %v8919_v11, %v8206_v30 }
 0x2be   : > { %5432 = vmatpush.bf16.msra.mxu2 %v8177_v54  ;;  %v8070_v54 = vld [vmem:[%s9211_s30 + $0x1388] sm:$0xf0] }
 0x2bf   : > { %5445 = vmatpush.bf16.msra.mxu3 %v8241_v58  ;;  %v8917_v58 = vld [vmem:[%s9211_s30 + $0x1484] sm:$0xf]  ;;  %v8073_v29 = vor.u32 %v8885_v9, %v8070_v54 }
 0x2c0   : > { %5407 = vmatpush.bf16.msra.mxu0 %v8041_v6  ;;  %v5181_v21 = vpop.f32.mrf.mxu2  ;;  %v8201_v1 = vor.u32 %v8917_v58, %v8198_v33  ;;  %v9013_v6 = vld.sshfl [vmem:[#allocation1 + $0x38] sm:$0xff pattern:$0x73625140] }
 0x2c1   : > { %5420 = vmatpush.bf16.msra.mxu1 %v8105_v44  ;;  %v5194_v59 = vpop.f32.mrf.mxu3  ;;  %v9015_v44 = vld.sshfl [vmem:[#allocation1 + $0x8] sm:$0xff pattern:$0x73625140] }
 0x2c2   : > { %5433 = vmatpush.bf16.msra.mxu2 %v8169_v34 }
 0x2c3   : > { %5446 = vmatpush.bf16.msra.mxu3 %v8233_v25 }
 0x2c4   : > { %5408 = vmatpush.bf16.msra.mxu0 %v8033_v60 }
 0x2c5   : > { %5421 = vmatpush.bf16.msra.mxu1 %v8097_v47 }
 0x2c6   : > { %5434 = vmatpush.bf16.msra.mxu2 %v8161_v41 }
 0x2c7   : > { %5447 = vmatpush.bf16.msra.mxu3 %v8225_v12 }
 0x2c8   : > { %5409 = vmatpush.bf16.msra.mxu0 %v8025_v23 }
 0x2c9   : > { %5422 = vmatpush.bf16.msra.mxu1 %v8089_v8 }
 0x2ca   : > { %5435 = vmatpush.bf16.msra.mxu2 %v8153_v22 }
 0x2cb   : > { %5448 = vmatpush.bf16.msra.mxu3 %v8217_v31 }
 0x2cc   : > { %5410 = vmatpush.bf16.msra.mxu0 %v8017_v39 }
 0x2cd   : > { %5423 = vmatpush.bf16.msra.mxu1 %v8081_v14 }
 0x2ce   : > { %5436 = vmatpush.bf16.msra.mxu2 %v8145_v53 }
 0x2cf   : > { %5449 = vmatpush.bf16.msra.mxu3 %v8209_v18 }
 0x2d0   : > { %5411 = vmatpush.bf16.msra.mxu0 %v8009_v0  ;;  %v5205_v34 = vpop.f32.mrf.mxu0 }
 0x2d1   : > { %5424 = vmatpush.bf16.msra.mxu1 %v8073_v29  ;;  %v5206_v26 = vadd.f32 %v5205_v34, %v5193_v55  ;;  %v5218_v63 = vpop.f32.mrf.mxu1 }
 0x2d2   : > { %5437 = vmatpush.bf16.msra.mxu2 %v8137_v19 }
 0x2d3   : > { %5450 = vmatpush.bf16.msra.mxu3 %v8201_v1  ;;  %5412 = vmatmul.bf16.vlgmr.msra.gmra.mxu0 %v9012_v48  ;;  %v5219_v13 = vadd.f32 %v5218_v63, %v5206_v26  ;;  %v213_v1 = vld [vmem:[%s9222_s8] sm:$0xff] }
 0x2d4   : > { %5425 = vmatmul.bf16.vlgmr.msra.gmra.mxu1 %v9013_v6 }
 0x2d5   : > { %5438 = vmatmul.bf16.vlgmr.msra.gmra.mxu2 %v9014_v36 }
 0x2d6   : > { %5451 = vmatmul.bf16.vlgmr.msra.gmra.mxu3 %v9015_v44 }
 0x2d8   : > { %v5231_v25 = vpop.f32.mrf.mxu2  ;;  %v5207_v42 = vpop.f32.mrf.mxu0 }
 0x2d9   : > { %v5232_v49 = vadd.f32 %v5231_v25, %v5219_v13  ;;  %v5244_v32 = vpop.f32.mrf.mxu3  ;;  %v5220_v45 = vpop.f32.mrf.mxu1 }
 0x2db   : > { %v5245_v20 = vadd.f32 %v5244_v32, %v5232_v49 }
 0x2e0   : > { %v5233_v38 = vpop.f32.mrf.mxu2 }
 0x2e1   : > { %v5246_v60 = vpop.f32.mrf.mxu3 }
 0x2f0   : > { %v5257_v47 = vpop.f32.mrf.mxu0 }
 0x2f1   : > { %v5258_v41 = vadd.f32 %v5257_v47, %v5245_v20  ;;  %v5270_v51 = vpop.f32.mrf.mxu1 }
 0x2f3   : > { %v5271_v37 = vadd.f32 %v5270_v51, %v5258_v41 }
 0x2f8   : > { %v5283_v61 = vpop.f32.mrf.mxu2  ;;  %v5259_v43 = vpop.f32.mrf.mxu0 }
 0x2f9   : > { %v5284_v12 = vadd.f32 %v5283_v61, %v5271_v37  ;;  %v5296_v62 = vpop.f32.mrf.mxu3  ;;  %v5272_v28 = vpop.f32.mrf.mxu1 }
 0x2fb   : > { %v5297_v50 = vadd.f32 %v5296_v62, %v5284_v12 }
 0x300   : > { %v5285_v35 = vpop.f32.mrf.mxu2 }
 0x301   : > { %v5298_v4 = vpop.f32.mrf.mxu3 }
 0x310   : > { %v5309_v52 = vpop.f32.mrf.mxu0 }
 0x311   : > { %v5322_v15 = vpop.f32.mrf.mxu1  ;;  %v5310_v2 = vadd.f32 %v5309_v52, %v5297_v50 }
 0x313   : > { %v5323_v11 = vadd.f32 %v5322_v15, %v5310_v2 }
 0x318   : > { %v5335_v5 = vpop.f32.mrf.mxu2  ;;  %v5311_v7 = vpop.f32.mrf.mxu0 }
 0x319   : > { %v5348_v23 = vpop.f32.mrf.mxu3  ;;  %v5324_v55 = vpop.f32.mrf.mxu1  ;;  %v5336_v30 = vadd.f32 %v5335_v5, %v5323_v11 }
 0x31b   : > { %v5349_v53 = vadd.f32 %v5348_v23, %v5336_v30 }
 0x320   : > { %v5337_v8 = vpop.f32.mrf.mxu2 }
 0x321   : > { %v5350_v22 = vpop.f32.mrf.mxu3 }
 0x330   : > { %v5361_v16 = vpop.f32.mrf.mxu0 }
 0x331   : > { %v5374_v24 = vpop.f32.mrf.mxu1  ;;  %v5362_v27 = vadd.f32 %v5361_v16, %v5349_v53 }
 0x333   : > { %v5375_v57 = vadd.f32 %v5374_v24, %v5362_v27 }
 0x338   : > { %v5387_v31 = vpop.f32.mrf.mxu2  ;;  %v5363_v46 = vpop.f32.mrf.mxu0 }
 0x339   : > { %v5400_v17 = vpop.f32.mrf.mxu3  ;;  %v5376_v40 = vpop.f32.mrf.mxu1  ;;  %v5388_v9 = vadd.f32 %v5387_v31, %v5375_v57 }
 0x33b   : > { %v5401_v18 = vadd.f32 %v5400_v17, %v5388_v9 }
 0x340   : > { %v5389_v39 = vpop.f32.mrf.mxu2 }
 0x341   : > { %v5402_v14 = vpop.f32.mrf.mxu3 }
 0x350   : > { %v5413_v54 = vpop.f32.mrf.mxu0 }
 0x351   : > { %v5426_v10 = vpop.f32.mrf.mxu1  ;;  %v5414_v56 = vadd.f32 %v5413_v54, %v5401_v18 }
 0x353   : > { %v5427_v21 = vadd.f32 %v5426_v10, %v5414_v56 }
 0x358   : > { %v5439_v58 = vpop.f32.mrf.mxu2  ;;  %v5415_v0 = vpop.f32.mrf.mxu0 }
 0x359   : > { %v5440_v33 = vadd.f32 %v5439_v58, %v5427_v21  ;;  %v5452_v59 = vpop.f32.mrf.mxu3  ;;  %v5428_v29 = vpop.f32.mrf.mxu1 }
 0x35b   : > { %v5453_v19 = vadd.f32 %v5452_v59, %v5440_v33 }
 0x35d   : > { %v5458_v48 = vrot.slane %v5453_v19, 4 }
 0x35f   : > { %v5460_v6 = vsel %vm5459_vm0, %v10393_v3, %v5458_v48 }
 0x360   : > { %v5462_v36 = vadd.f32 %v5460_v6, %v213_v1  ;;  %v5441_v44 = vpop.f32.mrf.mxu2 }
 0x361   : > { %v5454_v34 = vpop.f32.mrf.mxu3 }
 0x362   : > { %5463 = vst [vmem:[%s9222_s8] sm:$0xff] %v5462_v36 }
 0x363 PF: > { %s15_s16 = sadd.s32 1, %s9112_s16   ;;  %s10812_s9 = smov %s9088_s10 }
 0x364   : > { %p12_p3 = scmp.ge.s32.totalorder %s15_s16, 16   ;;  %s10813_s10 = smov %s9092_s11 }
 0x365   : > { %s10814_s11 = smov %s9200_s29  ;;  %s10815_s12 = smov %s9104_s14 }
 0x366   : > { %s10816_s13 = smov %s9108_s15  ;;  %s10817_s14 = smov %s10820_s18 }
 0x367   : > { %s10818_s15 = smov %s10824_s19  ;;  %14 = sbr.rel (!%p12_p3) target bundleno = 5 (0x5), region = 76 }
 0x36c   :  { %5486 = vsyncpa [#allocation3], 1 }
 0x36d   :  { %5488 = vsyncpa [#allocation3 + $0x1], 1 }

</bundles_post_ra>
